<compile_context>
chip_gen: v7x
topology: tpu7x:2x2x1
jax: 0.10.0
libtpu: 0.0.40
codegen_flags: <defaults>
</compile_context>

<pallas_src>
import functools

import jax
import jax.numpy as jnp
from jax.experimental import pallas as pl
from jax.experimental.pallas import tpu as pltpu

# Explicit MXU precision: all dots carry real-valued f32 data on the LHS and
# feed a 1e-4 comparison, so HIGHEST (multi-pass / f32-accurate) is required.
MXU_PRECISION = jax.lax.Precision.HIGHEST


def _round_up(x, m):
    return (x + m - 1) // m * m


def ot_kernel(p_ref, x_ref, m_ref, bd_ref, qg_ref, gb_ref, pr_ref,
              bias_ref, gamma_ref, beta_ref, tx_ref, cost_ref):
    """All per-sample math is done lane-dense on (tn, F*F) tiles.

    Lane l = i*F + k holds element (i, k) of the sample's (F, F) matrix.
    "Group" = the F consecutive lanes belonging to matrix row i.
    Constant matrices:
      BD = kron(I, W.T)          : Linear over the last matrix dim (1 matmul)
      QG = kron(I, ones(F,F))    : group reduce + broadcast fused (1 matmul each)
      GB = kron(I, ones(1,F))    : broadcast a per-group scalar to its F lanes
      PR = kron(ones(F,1), I)    : sum lanes sharing the same within-group pos k
    """
    F = x_ref.shape[-1]
    inv_f = jnp.float32(1.0 / F)
    dot = functools.partial(jnp.dot, preferred_element_type=jnp.float32,
                            precision=MXU_PRECISION)

    Pd = p_ref[...]                                           # (tn, F*F) f32

    # ---- Linear over the last matrix dim: one block-diagonal MXU matmul. ----
    plin = dot(Pd, bd_ref[...]) + bias_ref[...]               # (tn, F*F)

    # ---- LayerNorm (eps=1e-5, affine), stable E[(x-mu)^2] form.  Each QG
    #      matmul does the group reduce AND the broadcast back to the group's
    #      F lanes, replacing a reduce+broadcast matmul pair of v1. ----
    mu_b = dot(plin, qg_ref[...]) * inv_f                     # group mean, bcast
    cen = plin - mu_b
    var_b = dot(cen * cen, qg_ref[...]) * inv_f               # group var, bcast
    inv_std_b = jax.lax.rsqrt(var_b + 1e-5)
    pn = cen * inv_std_b * gamma_ref[...] + beta_ref[...]

    # ---- Softmax within each group of F lanes.  Row max >= every group max
    #      and softmax is shift-invariant per group, so this is exact; the
    #      denominator floor only guards absurd LN params (see header). ----
    z = pn - jnp.max(pn, axis=-1, keepdims=True)
    e = jnp.exp(z)
    denom_b = dot(e, qg_ref[...])                             # group sum, bcast
    denom_b = jnp.maximum(denom_b, jnp.float32(1e-30))
    s = e / denom_b                                           # softmax, lane-dense

    # ---- tx[n, k] = sum_i x[n, i] * s[n, i, k] ----
    xb = dot(x_ref[...], gb_ref[...])                         # x bcast per group
    tx = dot(s * xb, pr_ref[...])                             # (tn, F)
    tx_ref[...] = tx.astype(tx_ref.dtype)

    # ---- cost partial: sum_{i,j} s[n,i,j] * mask[n,j]
    #                  = sum_j mask[n,j] * colsum[n,j],  colsum = sum_i s. ----
    colsum = dot(s, pr_ref[...])                              # (tn, F)
    partial = jnp.sum(m_ref[...] * colsum)
    # Full-block fill kept deliberately: 4 KiB/tile writeback (<0.5% of the P
    # stream) on a known-safe (1,8,128) block layout.
    cost_ref[...] = jnp.full(cost_ref.shape, partial, jnp.float32)


def ot_forward(x, P, matrix_mask, params, *, tn_max=1024):
    bs, num_patch, n_vars, patch_len = x.shape
    F = patch_len                                   # fealen
    FF = F * F
    N = bs * n_vars * num_patch

    # Large row tile for amortisation, but capped at ceil(N/2) so the
    # "parallel" grid axis always has >= 2 tiles (keeps both v7x TCs busy;
    # harmless extra ~0.35 us grid step on 1-TC v5e/v6e).
    tn = min(tn_max, _round_up((N + 1) // 2, 8))
    tn = max(tn, 8)
    num_tiles = pl.cdiv(N, tn)
    N_pad = num_tiles * tn

    # Flatten exactly like x.permute(0, 2, 1, 3).reshape(-1, 1, fealen).
    x_flat = jnp.transpose(x, (0, 2, 1, 3)).reshape(N, F).astype(jnp.float32)
    P_dense = jnp.asarray(P, jnp.float32).reshape(N, FF)       # lane-dense staging
    mask_flat = jnp.asarray(matrix_mask, jnp.float32).reshape(N, F)
    pad = N_pad - N
    if pad:   # zero rows: softmax stays finite, mask=0 => no cost contribution
        x_flat = jnp.pad(x_flat, ((0, pad), (0, 0)))
        P_dense = jnp.pad(P_dense, ((0, pad), (0, 0)))
        mask_flat = jnp.pad(mask_flat, ((0, pad), (0, 0)))

    # Host-built constant matrices for lane-dense compute.
    Wt = jnp.asarray(params["w"], jnp.float32).T               # torch Linear: x @ W.T + b
    eyeF = jnp.eye(F, dtype=jnp.float32)
    BD = jnp.kron(eyeF, Wt)                                    # (FF, FF) block-diag Linear
    QG = jnp.kron(eyeF, jnp.ones((F, F), jnp.float32))         # (FF, FF) reduce+broadcast
    GB = jnp.kron(eyeF, jnp.ones((1, F), jnp.float32))         # (F, FF)  group broadcast
    PR = jnp.kron(jnp.ones((F, 1), jnp.float32), eyeF)         # (FF, F)  position reduce
    bias_t = jnp.tile(jnp.asarray(params["b"], jnp.float32).reshape(1, F), (1, F))
    gamma_t = jnp.tile(jnp.asarray(params["gamma"], jnp.float32).reshape(1, F), (1, F))
    beta_t = jnp.tile(jnp.asarray(params["beta"], jnp.float32).reshape(1, F), (1, F))

    tx_out, cost_rows = pl.pallas_call(
        ot_kernel,
        out_shape=(jax.ShapeDtypeStruct((N_pad, F), jnp.float32),
                   jax.ShapeDtypeStruct((num_tiles, 8, 128), jnp.float32)),
        grid_spec=pltpu.PrefetchScalarGridSpec(
            num_scalar_prefetch=0,
            grid=(num_tiles,),
            in_specs=[
                pl.BlockSpec((tn, FF), lambda n: (n, 0)),      # P (lane-dense)
                pl.BlockSpec((tn, F), lambda n: (n, 0)),       # x row
                pl.BlockSpec((tn, F), lambda n: (n, 0)),       # matrix_mask row
                pl.BlockSpec((FF, FF), lambda n: (0, 0)),      # BD
                pl.BlockSpec((FF, FF), lambda n: (0, 0)),      # QG
                pl.BlockSpec((F, FF), lambda n: (0, 0)),       # GB
                pl.BlockSpec((FF, F), lambda n: (0, 0)),       # PR
                pl.BlockSpec((1, FF), lambda n: (0, 0)),       # bias (lane-tiled)
                pl.BlockSpec((1, FF), lambda n: (0, 0)),       # LN gamma (lane-tiled)
                pl.BlockSpec((1, FF), lambda n: (0, 0)),       # LN beta (lane-tiled)
            ],
            out_specs=[
                pl.BlockSpec((tn, F), lambda n: (n, 0)),       # tx
                pl.BlockSpec((1, 8, 128), lambda n: (n, 0, 0)),  # per-tile cost partial
            ],
        ),
        compiler_params=pltpu.CompilerParams(
            dimension_semantics=("parallel",),     # shards tiles across v7x TCs
            vmem_limit_bytes=32 * 1024 * 1024,     # ~10-12 MiB used at tn=1024
        ),
    )(P_dense, x_flat, mask_flat, BD, QG, GB, PR, bias_t, gamma_t, beta_t)

    # tx back to (bs, num_patch, n_vars, patch_len) like the PyTorch permutes.
    tx = tx_out[:N].reshape(bs, n_vars, num_patch, patch_len).transpose(0, 2, 1, 3)
    # cost = mean(softmax(P) * C) over the TRUE N * F * F elements.
    cost = jnp.sum(cost_rows[:, 0, 0]) / (N * F * F)
    return tx, cost
    # TODO(synk): the PyTorch forward also builds x.repeat(1, fealen) but never uses
    # or returns it (dead code), so it is intentionally omitted here.


def ot_reference(x, P, matrix_mask, params):
    """Pure-JAX reference mirroring the PyTorch forward (precision pinned so the
    comparison is against f32-accurate matmuls regardless of env defaults)."""
    bs, num_patch, n_vars, patch_len = x.shape
    F = patch_len
    N = bs * n_vars * num_patch
    hp = jax.lax.Precision.HIGHEST
    Pm = P.reshape(N, F, F)
    plin = jnp.einsum('nij,kj->nik', Pm, params["w"], precision=hp) + params["b"]
    mu = jnp.mean(plin, -1, keepdims=True)
    var = jnp.mean((plin - mu) ** 2, -1, keepdims=True)
    pn = (plin - mu) / jnp.sqrt(var + 1e-5) * params["gamma"] + params["beta"]
    psoft = jax.nn.softmax(pn, axis=-1)
    xf = jnp.transpose(x, (0, 2, 1, 3)).reshape(N, F)
    tx = jnp.einsum('ni,nik->nk', xf, psoft, precision=hp)
    tx = tx.reshape(bs, n_vars, num_patch, patch_len).transpose(0, 2, 1, 3)
    C = matrix_mask.reshape(N, F)[:, None, :]          # unsqueeze(-2).expand
    cost = jnp.mean(psoft * C)
    return tx, cost


if __name__ == "__main__":
    key = jax.random.PRNGKey(0)
    bs, num_patch, n_vars, patch_len = 2, 8, 4, 16
    fealen = patch_len
    N = bs * n_vars * num_patch

    k1, k2, k3, k4, k5 = jax.random.split(key, 5)
    x = jax.random.normal(k1, (bs, num_patch, n_vars, patch_len), jnp.float32)
    P = jax.random.normal(k2, (N, fealen, fealen), jnp.float32)
    matrix_mask = (jax.random.uniform(k3, (N, fealen)) > 0.5).astype(jnp.float32)

    bound = float(1.0 / (fealen ** 0.5))
    params = {
        # nn.Linear(fealen, fealen): weight (F, F), bias (F,), uniform(-1/sqrt(F), 1/sqrt(F))
        "w": jax.random.uniform(k4, (fealen, fealen), jnp.float32, -bound, bound),
        "b": jax.random.uniform(k5, (fealen,), jnp.float32, -bound, bound),
        # nn.LayerNorm(fealen): gamma=1, beta=0
        "gamma": jnp.ones((fealen,), jnp.float32),
        "beta": jnp.zeros((fealen,), jnp.float32),
    }

    tx, cost = ot_forward(x, P, matrix_mask, params)
    jax.block_until_ready((tx, cost))

    tx_ref, cost_ref = ot_reference(x, P, matrix_mask, params)
    assert tx.shape == (bs, num_patch, n_vars, patch_len)
    assert jnp.allclose(tx, tx_ref, atol=1e-4, rtol=1e-4), "tx mismatch"
    assert jnp.allclose(cost, cost_ref, atol=1e-5, rtol=1e-4), "cost mismatch"
    print("KERNEL_OK")
</pallas_src>

<mosaic_0001>
module attributes {stable_mosaic.version = 11 : i64} {
  func.func @ot_kernel(%arg0: i32, %arg1: memref<32x256xf32, #tpu.memory_space<vmem>>, %arg2: memref<32x16xf32, #tpu.memory_space<vmem>>, %arg3: memref<32x16xf32, #tpu.memory_space<vmem>>, %arg4: memref<256x256xf32, #tpu.memory_space<vmem>>, %arg5: memref<256x256xf32, #tpu.memory_space<vmem>>, %arg6: memref<16x256xf32, #tpu.memory_space<vmem>>, %arg7: memref<256x16xf32, #tpu.memory_space<vmem>>, %arg8: memref<1x256xf32, #tpu.memory_space<vmem>>, %arg9: memref<1x256xf32, #tpu.memory_space<vmem>>, %arg10: memref<1x256xf32, #tpu.memory_space<vmem>>, %arg11: memref<32x16xf32, #tpu.memory_space<vmem>>, %arg12: memref<1x8x128xf32, #tpu.memory_space<vmem>>) attributes {dimension_semantics = [#tpu.dimension_semantics<parallel>], iteration_bounds = array<i64: 2>, scalar_prefetch = 0 : i64, scratch_operands = 0 : i64, tpu.core_type = #tpu.core_type<tc>, window_params = [{transform_indices = @transform_0, window_bounds = array<i64: 32, 256>}, {transform_indices = @transform_1, window_bounds = array<i64: 32, 16>}, {transform_indices = @transform_2, window_bounds = array<i64: 32, 16>}, {pipeline_mode = #tpu.pipeline_mode<synchronous>, transform_indices = @transform_3, window_bounds = array<i64: 256, 256>}, {pipeline_mode = #tpu.pipeline_mode<synchronous>, transform_indices = @transform_4, window_bounds = array<i64: 256, 256>}, {pipeline_mode = #tpu.pipeline_mode<synchronous>, transform_indices = @transform_5, window_bounds = array<i64: 16, 256>}, {pipeline_mode = #tpu.pipeline_mode<synchronous>, transform_indices = @transform_6, window_bounds = array<i64: 256, 16>}, {pipeline_mode = #tpu.pipeline_mode<synchronous>, transform_indices = @transform_7, window_bounds = array<i64: 1, 256>}, {pipeline_mode = #tpu.pipeline_mode<synchronous>, transform_indices = @transform_8, window_bounds = array<i64: 1, 256>}, {pipeline_mode = #tpu.pipeline_mode<synchronous>, transform_indices = @transform_9, window_bounds = array<i64: 1, 256>}, {transform_indices = @transform_10, window_bounds = array<i64: 32, 16>}, {transform_indices = @transform_11, window_bounds = array<i64: 1, 8, 128>}]} {
    %c0 = arith.constant 0 : index
    %c0_0 = arith.constant 0 : index
    %0 = vector.load %arg1[%c0, %c0_0] : memref<32x256xf32, #tpu.memory_space<vmem>>, vector<32x256xf32>
    %c0_1 = arith.constant 0 : index
    %c0_2 = arith.constant 0 : index
    %1 = vector.load %arg4[%c0_1, %c0_2] : memref<256x256xf32, #tpu.memory_space<vmem>>, vector<256x256xf32>
    %cst = arith.constant dense<0.000000e+00> : vector<32x256xf32>
    %2 = tpu.matmul %0, %1, %cst {dimension_numbers = #tpu.dot_dimension_numbers<[1], [0], [0], [1], [0, 0, 1, 1], [], []>, precision = #tpu.contract_precision<fp32>} : vector<32x256xf32>, vector<256x256xf32>, vector<32x256xf32> -> vector<32x256xf32>
    %c0_3 = arith.constant 0 : index
    %c0_4 = arith.constant 0 : index
    %3 = vector.load %arg8[%c0_3, %c0_4] : memref<1x256xf32, #tpu.memory_space<vmem>>, vector<1x256xf32>
    %4 = vector.broadcast %3 : vector<1x256xf32> to vector<32x256xf32>
    %5 = arith.addf %2, %4 : vector<32x256xf32>
    %c0_5 = arith.constant 0 : index
    %c0_6 = arith.constant 0 : index
    %6 = vector.load %arg5[%c0_5, %c0_6] : memref<256x256xf32, #tpu.memory_space<vmem>>, vector<256x256xf32>
    %cst_7 = arith.constant dense<0.000000e+00> : vector<32x256xf32>
    %7 = tpu.matmul %5, %6, %cst_7 {dimension_numbers = #tpu.dot_dimension_numbers<[1], [0], [0], [1], [0, 0, 1, 1], [], []>, precision = #tpu.contract_precision<fp32>} : vector<32x256xf32>, vector<256x256xf32>, vector<32x256xf32> -> vector<32x256xf32>
    %cst_8 = arith.constant 6.250000e-02 : f32
    %8 = vector.broadcast %cst_8 : f32 to vector<32x256xf32>
    %9 = arith.mulf %7, %8 : vector<32x256xf32>
    %10 = arith.subf %5, %9 : vector<32x256xf32>
    %11 = arith.mulf %10, %10 : vector<32x256xf32>
    %c0_9 = arith.constant 0 : index
    %c0_10 = arith.constant 0 : index
    %12 = vector.load %arg5[%c0_9, %c0_10] : memref<256x256xf32, #tpu.memory_space<vmem>>, vector<256x256xf32>
    %cst_11 = arith.constant dense<0.000000e+00> : vector<32x256xf32>
    %13 = tpu.matmul %11, %12, %cst_11 {dimension_numbers = #tpu.dot_dimension_numbers<[1], [0], [0], [1], [0, 0, 1, 1], [], []>, precision = #tpu.contract_precision<fp32>} : vector<32x256xf32>, vector<256x256xf32>, vector<32x256xf32> -> vector<32x256xf32>
    %cst_12 = arith.constant 6.250000e-02 : f32
    %14 = vector.broadcast %cst_12 : f32 to vector<32x256xf32>
    %15 = arith.mulf %13, %14 : vector<32x256xf32>
    %cst_13 = arith.constant 9.99999974E-6 : f32
    %16 = vector.broadcast %cst_13 : f32 to vector<32x256xf32>
    %17 = arith.addf %15, %16 : vector<32x256xf32>
    %18 = math.rsqrt %17 : vector<32x256xf32>
    %19 = arith.mulf %10, %18 : vector<32x256xf32>
    %c0_14 = arith.constant 0 : index
    %c0_15 = arith.constant 0 : index
    %20 = vector.load %arg9[%c0_14, %c0_15] : memref<1x256xf32, #tpu.memory_space<vmem>>, vector<1x256xf32>
    %21 = vector.broadcast %20 : vector<1x256xf32> to vector<32x256xf32>
    %22 = arith.mulf %19, %21 : vector<32x256xf32>
    %c0_16 = arith.constant 0 : index
    %c0_17 = arith.constant 0 : index
    %23 = vector.load %arg10[%c0_16, %c0_17] : memref<1x256xf32, #tpu.memory_space<vmem>>, vector<1x256xf32>
    %24 = vector.broadcast %23 : vector<1x256xf32> to vector<32x256xf32>
    %25 = arith.addf %22, %24 : vector<32x256xf32>
    %cst_18 = arith.constant dense<0xFF800000> : vector<32xf32>
    %26 = vector.multi_reduction <maximumf>, %25, %cst_18 [1] : vector<32x256xf32> to vector<32xf32>
    %27 = vector.shape_cast %26 : vector<32xf32> to vector<32x1xf32>
    %28 = vector.broadcast %27 : vector<32x1xf32> to vector<32x256xf32>
    %29 = arith.subf %25, %28 : vector<32x256xf32>
    %30 = math.exp %29 : vector<32x256xf32>
    %c0_19 = arith.constant 0 : index
    %c0_20 = arith.constant 0 : index
    %31 = vector.load %arg5[%c0_19, %c0_20] : memref<256x256xf32, #tpu.memory_space<vmem>>, vector<256x256xf32>
    %cst_21 = arith.constant dense<0.000000e+00> : vector<32x256xf32>
    %32 = tpu.matmul %30, %31, %cst_21 {dimension_numbers = #tpu.dot_dimension_numbers<[1], [0], [0], [1], [0, 0, 1, 1], [], []>, precision = #tpu.contract_precision<fp32>} : vector<32x256xf32>, vector<256x256xf32>, vector<32x256xf32> -> vector<32x256xf32>
    %cst_22 = arith.constant 1.000000e-30 : f32
    %33 = vector.broadcast %cst_22 : f32 to vector<32x256xf32>
    %34 = arith.maximumf %32, %33 : vector<32x256xf32>
    %35 = arith.divf %30, %34 : vector<32x256xf32>
    %c0_23 = arith.constant 0 : index
    %c0_24 = arith.constant 0 : index
    %36 = vector.load %arg2[%c0_23, %c0_24] : memref<32x16xf32, #tpu.memory_space<vmem>>, vector<32x16xf32>
    %c0_25 = arith.constant 0 : index
    %c0_26 = arith.constant 0 : index
    %37 = vector.load %arg6[%c0_25, %c0_26] : memref<16x256xf32, #tpu.memory_space<vmem>>, vector<16x256xf32>
    %cst_27 = arith.constant dense<0.000000e+00> : vector<32x256xf32>
    %38 = tpu.matmul %36, %37, %cst_27 {dimension_numbers = #tpu.dot_dimension_numbers<[1], [0], [0], [1], [0, 0, 1, 1], [], []>, precision = #tpu.contract_precision<fp32>} : vector<32x16xf32>, vector<16x256xf32>, vector<32x256xf32> -> vector<32x256xf32>
    %39 = arith.mulf %35, %38 : vector<32x256xf32>
    %c0_28 = arith.constant 0 : index
    %c0_29 = arith.constant 0 : index
    %40 = vector.load %arg7[%c0_28, %c0_29] : memref<256x16xf32, #tpu.memory_space<vmem>>, vector<256x16xf32>
    %cst_30 = arith.constant dense<0.000000e+00> : vector<32x16xf32>
    %41 = tpu.matmul %39, %40, %cst_30 {dimension_numbers = #tpu.dot_dimension_numbers<[1], [0], [0], [1], [0, 0, 1, 1], [], []>, precision = #tpu.contract_precision<fp32>} : vector<32x256xf32>, vector<256x16xf32>, vector<32x16xf32> -> vector<32x16xf32>
    %c0_31 = arith.constant 0 : index
    %c0_32 = arith.constant 0 : index
    %42 = vector.load %arg11[%c0_31, %c0_32] : memref<32x16xf32, #tpu.memory_space<vmem>>, vector<32x16xf32>
    tpu.vector_store %arg11[%c0_31, %c0_32], %41 {strides = array<i32>} : memref<32x16xf32, #tpu.memory_space<vmem>>, vector<32x16xf32>,
    %c0_33 = arith.constant 0 : index
    %c0_34 = arith.constant 0 : index
    %43 = vector.load %arg7[%c0_33, %c0_34] : memref<256x16xf32, #tpu.memory_space<vmem>>, vector<256x16xf32>
    %cst_35 = arith.constant dense<0.000000e+00> : vector<32x16xf32>
    %44 = tpu.matmul %35, %43, %cst_35 {dimension_numbers = #tpu.dot_dimension_numbers<[1], [0], [0], [1], [0, 0, 1, 1], [], []>, precision = #tpu.contract_precision<fp32>} : vector<32x256xf32>, vector<256x16xf32>, vector<32x16xf32> -> vector<32x16xf32>
    %c0_36 = arith.constant 0 : index
    %c0_37 = arith.constant 0 : index
    %45 = vector.load %arg3[%c0_36, %c0_37] : memref<32x16xf32, #tpu.memory_space<vmem>>, vector<32x16xf32>
    %46 = arith.mulf %45, %44 : vector<32x16xf32>
    %47 = vector.shape_cast %46 : vector<32x16xf32> to vector<1x32x16xf32>
    %cst_38 = arith.constant dense<0.000000e+00> : vector<1xf32>
    %48 = vector.multi_reduction <add>, %47, %cst_38 [1, 2] : vector<1x32x16xf32> to vector<1xf32>
    %49 = vector.shape_cast %48 : vector<1xf32> to vector<1x1x1xf32>
    %50 = vector.extract %49[0, 0, 0] : f32 from vector<1x1x1xf32>
    %51 = vector.broadcast %50 : f32 to vector<1x8x128xf32>
    %c0_39 = arith.constant 0 : index
    %c0_40 = arith.constant 0 : index
    %c0_41 = arith.constant 0 : index
    %52 = vector.load %arg12[%c0_39, %c0_40, %c0_41] : memref<1x8x128xf32, #tpu.memory_space<vmem>>, vector<1x8x128xf32>
    tpu.vector_store %arg12[%c0_39, %c0_40, %c0_41], %51 {strides = array<i32>} : memref<1x8x128xf32, #tpu.memory_space<vmem>>, vector<1x8x128xf32>,
    return
  }
  func.func @transform_0(%arg0: i32) -> (i32, i32) {
    %c0_i32 = arith.constant 0 : i32
    %c0_i32_0 = arith.constant 0 : i32
    return %arg0, %c0_i32 : i32, i32
  }
  func.func @transform_1(%arg0: i32) -> (i32, i32) {
    %c0_i32 = arith.constant 0 : i32
    %c0_i32_0 = arith.constant 0 : i32
    return %arg0, %c0_i32 : i32, i32
  }
  func.func @transform_2(%arg0: i32) -> (i32, i32) {
    %c0_i32 = arith.constant 0 : i32
    %c0_i32_0 = arith.constant 0 : i32
    return %arg0, %c0_i32 : i32, i32
  }
  func.func @transform_3(%arg0: i32) -> (i32, i32) {
    %c0_i32 = arith.constant 0 : i32
    %c0_i32_0 = arith.constant 0 : i32
    %c0_i32_1 = arith.constant 0 : i32
    return %c0_i32, %c0_i32_0 : i32, i32
  }
  func.func @transform_4(%arg0: i32) -> (i32, i32) {
    %c0_i32 = arith.constant 0 : i32
    %c0_i32_0 = arith.constant 0 : i32
    %c0_i32_1 = arith.constant 0 : i32
    return %c0_i32, %c0_i32_0 : i32, i32
  }
  func.func @transform_5(%arg0: i32) -> (i32, i32) {
    %c0_i32 = arith.constant 0 : i32
    %c0_i32_0 = arith.constant 0 : i32
    %c0_i32_1 = arith.constant 0 : i32
    return %c0_i32, %c0_i32_0 : i32, i32
  }
  func.func @transform_6(%arg0: i32) -> (i32, i32) {
    %c0_i32 = arith.constant 0 : i32
    %c0_i32_0 = arith.constant 0 : i32
    %c0_i32_1 = arith.constant 0 : i32
    return %c0_i32, %c0_i32_0 : i32, i32
  }
  func.func @transform_7(%arg0: i32) -> (i32, i32) {
    %c0_i32 = arith.constant 0 : i32
    %c0_i32_0 = arith.constant 0 : i32
    %c0_i32_1 = arith.constant 0 : i32
    return %c0_i32, %c0_i32_0 : i32, i32
  }
  func.func @transform_8(%arg0: i32) -> (i32, i32) {
    %c0_i32 = arith.constant 0 : i32
    %c0_i32_0 = arith.constant 0 : i32
    %c0_i32_1 = arith.constant 0 : i32
    return %c0_i32, %c0_i32_0 : i32, i32
  }
  func.func @transform_9(%arg0: i32) -> (i32, i32) {
    %c0_i32 = arith.constant 0 : i32
    %c0_i32_0 = arith.constant 0 : i32
    %c0_i32_1 = arith.constant 0 : i32
    return %c0_i32, %c0_i32_0 : i32, i32
  }
  func.func @transform_10(%arg0: i32) -> (i32, i32) {
    %c0_i32 = arith.constant 0 : i32
    %c0_i32_0 = arith.constant 0 : i32
    return %arg0, %c0_i32 : i32, i32
  }
  func.func @transform_11(%arg0: i32) -> (i32, i32, i32) {
    %c0_i32 = arith.constant 0 : i32
    %c0_i32_0 = arith.constant 0 : i32
    %c0_i32_1 = arith.constant 0 : i32
    return %arg0, %c0_i32, %c0_i32_0 : i32, i32, i32
  }
}

</mosaic_0001>

<bundles_post_ra>
// kernel: tpu_custom_call.1
= control target key start
LH: loop header
LB: loop body
LE: loop exit
PB: predicated region body
PF: predicated region fallthrough
CT: control target
= control target key end

     0   :  { %17 = vsyncpa [#allocation3], 0  ;;  %s17648_s0 = inlined_call_operand.vmem [shape: f32[64,256], index: 0, kind: input, shape index: {}]   ;;  %s17649_s1 = inlined_call_operand.vmem [shape: f32[64,16], index: 1, kind: input, shape index: {}]   ;;  %s17650_s2 = inlined_call_operand.vmem [shape: f32[64,16], index: 2, kind: input, shape index: {}]   ;;  %s17651_s3 = inlined_call_operand.hbm [shape: f32[256,256], index: 3, kind: input, shape index: {}]   ;;  %s17652_s4 = inlined_call_operand.hbm [shape: f32[256,256], index: 4, kind: input, shape index: {}]   ;;  %s17653_s5 = inlined_call_operand.vmem [shape: f32[16,256], index: 5, kind: input, shape index: {}]   ;;  %s17654_s6 = inlined_call_operand.vmem [shape: f32[256,16], index: 6, kind: input, shape index: {}]   ;;  %s17655_s7 = inlined_call_operand.vmem [shape: f32[1,256], index: 7, kind: input, shape index: {}]   ;;  %s17656_s8 = inlined_call_operand.vmem [shape: f32[1,256], index: 8, kind: input, shape index: {}]   ;;  %s17657_s9 = inlined_call_operand.vmem [shape: f32[1,256], index: 9, kind: input, shape index: {}]   ;;  %s17658_s10 = inlined_call_operand.vmem [shape: f32[64,16], index: 10, kind: output, shape index: {0}]   ;;  %s17659_s11 = inlined_call_operand.hbm [shape: f32[2,8,128], index: 11, kind: output, shape index: {1}]  }
   0x1   :  { %18 = vsyncpa [#allocation6], 0 }
   0x2   :  { %19 = vsyncpa [#allocation4], 0 }
   0x3   :  { %21 = vsyncpa [#allocation4 + $0x1], 0  ;;  %s12646_s17 = smov 0   ;;  %s12648_s18 = smov 0  }
   0x4   :  { %s12650_s19 = smov 0   ;;  %s12652_s20 = smov 0  }
   0x5 LB: > { %18570 = sst [smem:[#allocation11_spill]] %s12566_s17  ;;  %s12667_s21 = sadd.s32 4294967295, %s12578_s20   ;;  %s12578_s20 = sphi %s12652_s20, %s20110_s20   ;;  %s12574_s19 = sphi %s12650_s19, %s20112_s19   ;;  %s12570_s18 = sphi %s12648_s18, %s20114_s18   ;;  %s12566_s17 = sphi %s12646_s17, %s20113_s17  }
   0x6   : > { %18571 = sst [smem:[#allocation12_spill]] %s12574_s19  ;;  %s9636_s22 = sadd.s32 4294967294, %s12578_s20  }
   0x7   : > { %s12671_s23 = sadd.s32 1, %s12578_s20   ;;  %s285_s24 = sadd.s32 1, %s12574_s19 }
   0x8   : > { %18572 = sst [smem:[#allocation13_spill]] %s12671_s23  ;;  %s282_s25 = ssub.s32 %s12578_s20, %s12671_s23 }
   0x9   : > { %p295_p0 = scmp.ne.s32.totalorder %s12574_s19, %s12570_s18  ;;  %p283_p1 = scmp.eq.s32.totalorder %s282_s25, 0 }
   0xa   : > { %p296_p2 = scmp.eq.s32.totalorder %s12667_s21, 1  ;;  %p301_p3 = scmp.ne.s32.totalorder %s12570_s18, %s12566_s17 }
   0xb   : > { %p302_p4 = scmp.eq.s32.totalorder %s9636_s22, 1  ;;  %p9637_p7 = scmp.ge.s32.totalorder %s12578_s20, 1 }
   0xc   : > { %s12682_s26 = scalar_select %p283_p1, %s12574_s19, %s285_s24  }
   0xd   : > { %p12684_p5 = por %p296_p2, %p295_p0  ;;  %p12688_p6 = por %p302_p4, %p301_p3 }
   0xe   : > { %18573 = sst [smem:[#allocation14_spill]] %s12682_s26  ;;  %p309_p8 = scmp.lt.s32.totalorder %s12578_s20, 3 }
   0xf   : > { %s18574_s27 = scalar_select %p12684_p5, 1, 0 }
  0x10   : > { %s18575_s28 = scalar_select %p12688_p6, 1, 0 }
  0x11   : > { %p17661_p9 = scmp.eq.s32.totalorder %s12667_s21, 0  ;;  %p12695_p10 = pnand %p9637_p7, %p309_p8 }
  0x12   : > { %18576 = sst [smem:[#allocation15_spill]] %s18575_s28  ;;  %s12580_s30 = smov [#allocation2]  }
  0x13   : > { %s18577_s29 = scalar_select %p12695_p10, 1, 0 }
  0x14   : > { %s321_s12 = sshll.u32 %s12580_s30, 4  ;;  %p12351_p11 = pneg %p12695_p10  ;;  %s322_s12 = int_to_ptr.vmem [resolvable:$true] %s321_s12 }
  0x15   : > { %s12581_s14 = smov [#allocation5]   ;;  %s12452_s24 = scalar_lea.hbm %s17651_s3, 8192 }
  0x16   : > { %p12703_p12 = pnand %p17661_p9, %p12351_p11  ;;  %s334_s15 = sshll.u32 %s12581_s14, 4  ;;  %s12707_s15 = int_to_ptr.vmem [resolvable:$true] %s334_s15 }
  0x17   : > { %p12453_p13 = scmp.ne.s32.totalorder %s17651_s3, %s12452_s24  ;;  %p12459_p3 = scmp.lt.u32.totalorder %s12452_s24, %s17651_s3 }
  0x18   : > { %p12454_p0 = pneg %p12703_p12 }
  0x1a   : > { %p12455_p1 = pnand %p12454_p0, %p12453_p13 }
  0x1c   : > { %p12456_p2 = pneg %p12455_p1 }
  0x1e   : > { %p12461_p4 = pnand %p12459_p3, %p12456_p2 }
  0x20   : > { %12464 = shalt.err (!%p12461_p4)
}
  0x21   : > { %s12465_s14 = scalar_lea.vmem %s322_s12, 8192  ;;  %p12473_p9 = scmp.lt.s32.totalorder %s322_s12, %s322_s12 }
  0x22   : > { %p12466_p7 = scmp.ne.s32.totalorder %s322_s12, %s12465_s14  ;;  %p12474_p6 = scmp.lt.s32.totalorder %s12465_s14, %s12465_s14 }
  0x24   : > { %p12468_p8 = pnand %p12466_p7, %p12454_p0  ;;  %p12475_p5 = por %p12474_p6, %p12473_p9 }
  0x26   : > { %p12469_p11 = pneg %p12468_p8 }
  0x28   : > { %p12476_p10 = pnand %p12475_p5, %p12469_p11 }
  0x2a   : > { %12479 = shalt.err (!%p12476_p10)
}
  0x2b   : > { %s12582_s16 = smov 256   ;;  %s12583_s22 = smov 16  }
  0x2c   : > { %12354 = dma.hbm_to_vmem [thread:$0]  (!%p12703_p12), %s17651_s3, 8192, %s322_s12, [#allocation3], %s12582_s16, %s12582_s16, %s12583_s22  }
  0x2d   : > { %s12480_s30 = scalar_lea.hbm %s17652_s4, 8192 }
  0x2e   : > { %p12481_p13 = scmp.ne.s32.totalorder %s17652_s4, %s12480_s30  ;;  %p12487_p9 = scmp.lt.u32.totalorder %s12480_s30, %s17652_s4 }
  0x30   : > { %p12483_p5 = pnand %p12481_p13, %p12454_p0 }
  0x32   : > { %p12484_p6 = pneg %p12483_p5 }
  0x34   : > { %p12489_p10 = pnand %p12487_p9, %p12484_p6 }
  0x36   : > { %12492 = shalt.err (!%p12489_p10)
}
  0x37   : > { %s12493_s12 = scalar_lea.vmem %s12707_s15, 8192  ;;  %p12501_p4 = scmp.lt.s32.totalorder %s12707_s15, %s12707_s15 }
  0x38   : > { %p12494_p1 = scmp.ne.s32.totalorder %s12707_s15, %s12493_s12  ;;  %p12502_p7 = scmp.lt.s32.totalorder %s12493_s12, %s12493_s12 }
  0x3a   : > { %p12496_p2 = pnand %p12494_p1, %p12454_p0  ;;  %p12503_p8 = por %p12502_p7, %p12501_p4 }
  0x3c   : > { %p12497_p3 = pneg %p12496_p2 }
  0x3e   : > { %p12504_p11 = pnand %p12503_p8, %p12497_p3 }
  0x40   : > { %12507 = shalt.err (!%p12504_p11)
}
  0x41   : > { %12357 = dma.hbm_to_vmem [thread:$0]  (!%p12703_p12), %s17652_s4, 8192, %s12707_s15, [#allocation6], %s12582_s16, %s12582_s16, %s12583_s22  }
  0x42   : > { %p18579_p13 = scmp.ne.s32.totalorder %s18577_s29, 0 }
  0x44   : > { %393 = sbr.rel (%p18579_p13) target bundleno = 3192 (0xc78), region = 60 }
  0x4b   : > { %p18580_p5 = scmp.eq.s32.totalorder %s12667_s21, 0 }
  0x4d   : > { %12553 = dma.done.wait (%p18580_p5), [#allocation3], 8192   ;;  %p18581_p0 = pmov %p18580_p5 }
  0x4f   : > { %12555 = vsyncadd (%p18581_p0), [#allocation3], 4294959104  ;;  %p18582_p6 = pmov %p18581_p0 }
  0x50   : > { %p18583_p9 = pmov %p18581_p0 }
  0x51   : > { %12557 = dma.done.wait (%p18582_p6), [#allocation6], 8192  }
  0x52   : > { %12559 = vsyncadd (%p18583_p9), [#allocation6], 4294959104  ;;  %v487_v0 = vld [vmem:[#allocation2 + $0x8] sm:$0xff]  ;;  %v489_v1 = vld [vmem:[#allocation2 + $0x18] sm:$0xff]  ;;  %s9645_s28 = sshll.u32 %s12667_s21, 2  ;;  %vm6670_vm0 = vcmask 130048  }
  0x53   : > { %v486_v2 = vld [vmem:[#allocation2] sm:$0xff]  ;;  %v562_v3 = vand.u32 4294901760, %v487_v0  ;;  %v566_v4 = vand.u32 4294901760, %v489_v1  ;;  %v488_v5 = vld [vmem:[#allocation2 + $0x10] sm:$0xff]  ;;  %v491_v7 = vld [vmem:[#allocation2 + $0x28] sm:$0xff]  ;;  %p12846_p12 = scmp.lt.s32.totalorder %s9645_s28, 7 }
  0x54   : > { %v564_v6 = vand.u32 4294901760, %v486_v2  ;;  %v493_v8 = vld [vmem:[#allocation2 + $0x38] sm:$0xff]  ;;  %v568_v9 = vand.u32 4294901760, %v488_v5  ;;  %v570_v10 = vand.u32 4294901760, %v491_v7  ;;  %v490_v12 = vld [vmem:[#allocation2 + $0x20] sm:$0xff]  ;;  %v492_v13 = vld [vmem:[#allocation2 + $0x30] sm:$0xff] }
  0x55   : > { %v574_v11 = vand.u32 4294901760, %v493_v8  ;;  %v495_v14 = vld [vmem:[#allocation2 + $0x48] sm:$0xff]  ;;  %v12766_v15 = vpack.c.bf16 %v566_v4, %v562_v3  ;;  %v497_v16 = vld [vmem:[#allocation2 + $0x58] sm:$0xff]  ;;  %v494_v17 = vld [vmem:[#allocation2 + $0x40] sm:$0xff]  ;;  %v572_v22 = vand.u32 4294901760, %v490_v12  ;;  %v576_v23 = vand.u32 4294901760, %v492_v13 }
  0x56   : > { %v496_v18 = vld [vmem:[#allocation2 + $0x50] sm:$0xff]  ;;  %v12768_v19 = vpack.c.bf16 %v568_v9, %v564_v6  ;;  %v499_v21 = vld [vmem:[#allocation2 + $0x68] sm:$0xff]  ;;  %v578_v24 = vand.u32 4294901760, %v495_v14  ;;  %v582_v25 = vand.u32 4294901760, %v497_v16  ;;  %v580_v26 = vand.u32 4294901760, %v494_v17  ;;  %v501_v28 = vld [vmem:[#allocation2 + $0x78] sm:$0xff] }
  0x57   : > { %18584 = vst [vmem:[#allocation16_spill] sm:$0xff] %v12766_v15  ;;  %v12770_v20 = vpack.c.bf16 %v574_v11, %v570_v10  ;;  %10188 = vmatprep.subr.bf16.mxu0 %v12766_v15  ;;  %v584_v27 = vand.u32 4294901760, %v496_v18  ;;  %v12775_v29 = vpack.c.bf16 %v576_v23, %v572_v22  ;;  %v586_v30 = vand.u32 4294901760, %v499_v21  ;;  %v498_v31 = vld [vmem:[#allocation2 + $0x60] sm:$0xff]  ;;  %v500_v32 = vld [vmem:[#allocation2 + $0x70] sm:$0xff]  ;;  %v503_v34 = vld [vmem:[#allocation2 + $0x88] sm:$0xff] }
  0x58   : > { %18585 = vst [vmem:[#allocation17_spill] sm:$0xff] %v12768_v19  ;;  %10190 = vmatpush1.bf16.msra.mxu0 %v12768_v19  ;;  %v12777_v33 = vpack.c.bf16 %v582_v25, %v578_v24  ;;  %v505_v35 = vld [vmem:[#allocation2 + $0x98] sm:$0xff]  ;;  %v590_v36 = vand.u32 4294901760, %v501_v28  ;;  %v588_v38 = vand.u32 4294901760, %v498_v31  ;;  %v592_v39 = vand.u32 4294901760, %v500_v32  ;;  %v502_v44 = vld [vmem:[#allocation2 + $0x80] sm:$0xff] }
  0x59   : > { %18586 = vst [vmem:[#allocation18_spill] sm:$0xff] %v12770_v20  ;;  %10192 = vmatprep.subr.bf16.mxu0 %v12770_v20  ;;  %18587 = vst [vmem:[#allocation19_spill] sm:$0xff] %v12775_v29  ;;  %v12780_v37 = vpack.c.bf16 %v584_v27, %v580_v26  ;;  %v12782_v40 = vsub.f32 %v487_v0, %v562_v3  ;;  %v594_v42 = vand.u32 4294901760, %v503_v34  ;;  %v598_v43 = vand.u32 4294901760, %v505_v35  ;;  %v504_v45 = vld [vmem:[#allocation2 + $0x90] sm:$0xff]  ;;  %v507_v50 = vld [vmem:[#allocation2 + $0xa8] sm:$0xff] }
  0x5a   : > { %18588 = vst [vmem:[#allocation20_spill] sm:$0xff] %v12777_v33  ;;  %v12785_v41 = vpack.c.bf16 %v590_v36, %v586_v30  ;;  %v12787_v46 = vsub.f32 %v489_v1, %v566_v4  ;;  %v12789_v47 = vsub.f32 %v486_v2, %v564_v6  ;;  %v12791_v48 = vsub.f32 %v488_v5, %v568_v9  ;;  %v509_v51 = vld [vmem:[#allocation2 + $0xb8] sm:$0xff]  ;;  %v506_v56 = vld [vmem:[#allocation2 + $0xa0] sm:$0xff]  ;;  %v508_v57 = vld [vmem:[#allocation2 + $0xb0] sm:$0xff]  ;;  %s20116_s28 = smov (!%p12846_p12, %s9645_s28), 7  ;;  %s9655_s12 = sshll.u32 %s12667_s21, 7 }
  0x5b   : > { %18589 = vst [vmem:[#allocation21_spill] sm:$0xff] %v12780_v37  ;;  %18590 = vst [vmem:[#allocation22_spill] sm:$0xff] %v12782_v40  ;;  %v12793_v49 = vsub.f32 %v491_v7, %v570_v10  ;;  %v12795_v52 = vsub.f32 %v493_v8, %v574_v11  ;;  %v12797_v53 = vsub.f32 %v490_v12, %v572_v22  ;;  %v596_v60 = vand.u32 4294901760, %v502_v44  ;;  %v511_v2 = vld [vmem:[#allocation2 + $0xc8] sm:$0xff]  ;;  %v513_v3 = vld [vmem:[#allocation2 + $0xd8] sm:$0xff]  ;;  %s9658_s13 = sshll.u32 %s20116_s28, 4 }
  0x5c   : > { %10194 = vmatpush1.bf16.msra.mxu0 %v12775_v29  ;;  %18591 = vst [vmem:[#allocation23_spill] sm:$0xff] %v12785_v41  ;;  %18592 = vst [vmem:[#allocation24_spill] sm:$0xff] %v12787_v46  ;;  %v12799_v54 = vsub.f32 %v492_v13, %v576_v23  ;;  %v12801_v55 = vsub.f32 %v495_v14, %v578_v24  ;;  %v12803_v58 = vsub.f32 %v497_v16, %v582_v25  ;;  %v510_v8 = vld [vmem:[#allocation2 + $0xc0] sm:$0xff]  ;;  %v512_v9 = vld [vmem:[#allocation2 + $0xd0] sm:$0xff]  ;;  %s12931_s22 = scalar_lea.vmem %s17648_s0, %s9658_s13  ;;  %s16089_s19 = sshll.u32 %s20116_s28, 3 }
  0x5d   : > { %10196 = vmatprep.subr.bf16.mxu0 %v12777_v33  ;;  %18593 = vst [vmem:[#allocation25_spill] sm:$0xff] %v12797_v53  ;;  %v12806_v59 = vpack.c.bf16 %v592_v39, %v588_v38  ;;  %v600_v61 = vand.u32 4294901760, %v504_v45  ;;  %v12808_v62 = vsub.f32 %v494_v17, %v580_v26  ;;  %v12811_v63 = vpack.c.bf16 %v598_v43, %v594_v42  ;;  %v515_v14 = vld [vmem:[#allocation2 + $0xe8] sm:$0xff]  ;;  %v517_v22 = vld [vmem:[#allocation2 + $0xf8] sm:$0xff]  ;;  %v514_v23 = vld [vmem:[#allocation2 + $0xe0] sm:$0xff]  ;;  %s464_s25 = scalar_lea.vmem %s17649_s1, %s16089_s19  ;;  %s17608_s13 = scalar_lea.hbm %s17659_s11, %s9655_s12 }
  0x5e   : > { %18594 = vst [vmem:[#allocation26_spill] sm:$0xff] %v12801_v55  ;;  %18595 = vst [vmem:[#allocation27_spill] sm:$0xff] %v12803_v58  ;;  %v602_v0 = vand.u32 4294901760, %v507_v50  ;;  %v606_v1 = vand.u32 4294901760, %v509_v51  ;;  %v12813_v4 = vsub.f32 %v496_v18, %v584_v27  ;;  %v12815_v5 = vsub.f32 %v499_v21, %v586_v30  ;;  %v516_v24 = vld [vmem:[#allocation2 + $0xf0] sm:$0xff]  ;;  %v527_v33 = vld [vmem:[#allocation2 + $0x148] sm:$0xff] }
  0x5f   : > { %18596 = vst [vmem:[#allocation28_spill] sm:$0xff] %v12806_v59  ;;  %18597 = vst [vmem:[#allocation29_spill] sm:$0xff] %v12811_v63  ;;  %v604_v6 = vand.u32 4294901760, %v506_v56  ;;  %v608_v7 = vand.u32 4294901760, %v508_v57  ;;  %v12817_v10 = vsub.f32 %v501_v28, %v590_v36  ;;  %v12819_v11 = vsub.f32 %v498_v31, %v588_v38  ;;  %v521_v36 = vld [vmem:[#allocation2 + $0x118] sm:$0xff]  ;;  %v526_v20 = vld [vmem:[#allocation2 + $0x140] sm:$0xff] }
  0x60   : > { %10198 = vmatpush1.bf16.msra.mxu0 %v12780_v37  ;;  %18598 = vst [vmem:[#allocation30_spill] sm:$0xff] %v12815_v5  ;;  %v12821_v12 = vsub.f32 %v500_v32, %v592_v39  ;;  %v12823_v13 = vsub.f32 %v503_v34, %v594_v42  ;;  %v12827_v16 = vsub.f32 %v505_v35, %v598_v43  ;;  %v610_v18 = vand.u32 4294901760, %v511_v2  ;;  %v519_v35 = vld [vmem:[#allocation2 + $0x108] sm:$0xff]  ;;  %v529_v29 = vld [vmem:[#allocation2 + $0x158] sm:$0xff]  ;;  %v528_v19 = vld [vmem:[#allocation2 + $0x150] sm:$0xff]  ;;  %p20106_p1 = scmp.ne.s32.totalorder %s18574_s27, 0 }
  0x61   : > { %10200 = vmatprep.subr.bf16.mxu0 %v12785_v41  ;;  %18599 = vst [vmem:[#allocation31_spill] sm:$0xff] %v12817_v10  ;;  %18600 = vst [vmem:[#allocation32_spill] sm:$0xff] %v12819_v11  ;;  %v12829_v17 = vpack.c.bf16 %v600_v61, %v596_v60  ;;  %v614_v21 = vand.u32 4294901760, %v513_v3  ;;  %v12832_v25 = vsub.f32 %v502_v44, %v596_v60  ;;  %v612_v27 = vand.u32 4294901760, %v510_v8  ;;  %v518_v44 = vld [vmem:[#allocation2 + $0x100] sm:$0xff]  ;;  %v531_v15 = vld [vmem:[#allocation2 + $0x168] sm:$0xff] }
  0x62   : > { %18601 = vst [vmem:[#allocation33_spill] sm:$0xff] %v12821_v12  ;;  %18602 = vst [vmem:[#allocation34_spill] sm:$0xff] %v12823_v13  ;;  %v12834_v26 = vpack.c.bf16 %v606_v1, %v602_v0  ;;  %v616_v28 = vand.u32 4294901760, %v512_v9  ;;  %v12836_v30 = vsub.f32 %v504_v45, %v600_v61  ;;  %v12838_v31 = vsub.f32 %v507_v50, %v602_v0  ;;  %v520_v45 = vld [vmem:[#allocation2 + $0x110] sm:$0xff]  ;;  %v523_v0 = vld [vmem:[#allocation2 + $0x128] sm:$0xff]  ;;  %s12585_s21 = smov [#allocation7]  }
  0x63   : > { %18603 = vst [vmem:[#allocation35_spill] sm:$0xff] %v12827_v16  ;;  %18604 = vst [vmem:[#allocation36_spill] sm:$0xff] %v12829_v17  ;;  %v12840_v32 = vsub.f32 %v509_v51, %v606_v1  ;;  %v12842_v34 = vpack.c.bf16 %v608_v7, %v604_v6  ;;  %v618_v38 = vand.u32 4294901760, %v515_v14  ;;  %v622_v39 = vand.u32 4294901760, %v517_v22 }
  0x64   : > { %10202 = vmatpush1.bf16.msra.mxu0 %v12806_v59  ;;  %18605 = vst [vmem:[#allocation37_spill] sm:$0xff] %v12832_v25  ;;  %18606 = vst [vmem:[#allocation38_spill] sm:$0xff] %v12834_v26  ;;  %v620_v42 = vand.u32 4294901760, %v514_v23  ;;  %v624_v43 = vand.u32 4294901760, %v516_v24  ;;  %v12851_v50 = vsub.f32 %v506_v56, %v604_v6  ;;  %v12853_v51 = vsub.f32 %v508_v57, %v608_v7  ;;  %v522_v56 = vld [vmem:[#allocation2 + $0x120] sm:$0xff]  ;;  %v524_v6 = vld [vmem:[#allocation2 + $0x130] sm:$0xff] }
  0x65   : > { %10204 = vmatprep.subr.bf16.mxu0 %v12811_v63  ;;  %18607 = vst [vmem:[#allocation39_spill] sm:$0xff] %v12836_v30  ;;  %18608 = vst [vmem:[#allocation40_spill] sm:$0xff] %v12838_v31  ;;  %v12855_v60 = vpack.c.bf16 %v614_v21, %v610_v18  ;;  %v12857_v61 = vsub.f32 %v511_v2, %v610_v18  ;;  %v12860_v1 = vsub.f32 %v513_v3, %v614_v21 }
  0x66   : > { %18609 = vst [vmem:[#allocation41_spill] sm:$0xff] %v12840_v32  ;;  %18610 = vst [vmem:[#allocation42_spill] sm:$0xff] %v12842_v34  ;;  %v12862_v63 = vpack.c.bf16 %v616_v28, %v612_v27  ;;  %v626_v59 = vand.u32 4294901760, %v519_v35  ;;  %v630_v41 = vand.u32 4294901760, %v521_v36  ;;  %v12864_v57 = vsub.f32 %v510_v8, %v612_v27 }
  0x67   : > { %18612 = vst [vmem:[#allocation43_spill] sm:$0xff] %v12851_v50  ;;  %18613 = vst [vmem:[#allocation44_spill] sm:$0xff] %v12853_v51  ;;  %v12866_v7 = vsub.f32 %v512_v9, %v616_v28  ;;  %v628_v2 = vand.u32 4294901760, %v518_v44  ;;  %v632_v18 = vand.u32 4294901760, %v520_v45  ;;  %v12868_v37 = vpack.c.bf16 %v622_v39, %v618_v38 }
  0x68   : > { %10206 = vmatpush1.bf16.msra.mxu0 %v12829_v17  ;;  %18614 = vst [vmem:[#allocation45_spill] sm:$0xff] %v12855_v60  ;;  %18615 = vst [vmem:[#allocation46_spill] sm:$0xff] %v12857_v61  ;;  %v525_v17 = vld [vmem:[#allocation2 + $0x138] sm:$0xff]  ;;  %v12872_v3 = vsub.f32 %v517_v22, %v622_v39  ;;  %v12874_v21 = vpack.c.bf16 %v624_v43, %v620_v42  ;;  %v634_v8 = vand.u32 4294901760, %v523_v0  ;;  %v636_v27 = vand.u32 4294901760, %v522_v56  ;;  %v532_v61 = vld [vmem:[#allocation2 + $0x170] sm:$0xff] }
  0x69   : > { %10208 = vmatprep.subr.bf16.mxu0 %v12834_v26  ;;  %18616 = vst [vmem:[#allocation47_spill] sm:$0xff] %v12860_v1  ;;  %18617 = vst [vmem:[#allocation48_spill] sm:$0xff] %v12862_v63  ;;  %v12870_v26 = vsub.f32 %v515_v14, %v618_v38  ;;  %v638_v9 = vand.u32 4294901760, %v525_v17  ;;  %v640_v28 = vand.u32 4294901760, %v524_v6  ;;  %v12884_v14 = vsub.f32 %v514_v23, %v620_v42  ;;  %v530_v1 = vld [vmem:[#allocation2 + $0x160] sm:$0xff] }
  0x6a   : > { %18618 = vst [vmem:[#allocation49_spill] sm:$0xff] %v12864_v57  ;;  %18619 = vst [vmem:[#allocation50_spill] sm:$0xff] %v12866_v7  ;;  %v12886_v22 = vsub.f32 %v516_v24, %v624_v43  ;;  %v12888_v38 = vpack.c.bf16 %v630_v41, %v626_v59  ;;  %v12890_v39 = vsub.f32 %v519_v35, %v626_v59  ;;  %v646_v7 = vand.u32 4294901760, %v529_v29  ;;  %v533_v57 = vld [vmem:[#allocation2 + $0x178] sm:$0xff]  ;;  %v535_v43 = vld [vmem:[#allocation2 + $0x188] sm:$0xff] }
  0x6b   : > { %18620 = vst [vmem:[#allocation51_spill] sm:$0xff] %v12868_v37  ;;  %18621 = vst [vmem:[#allocation52_spill] sm:$0xff] %v12870_v26  ;;  %v642_v26 = vand.u32 4294901760, %v527_v33  ;;  %v12898_v23 = vsub.f32 %v520_v45, %v632_v18  ;;  %v644_v24 = vand.u32 4294901760, %v526_v20  ;;  %v648_v42 = vand.u32 4294901760, %v528_v19 }
  0x6c   : > { %18622 = vst [vmem:[#allocation53_spill] sm:$0xff] %v12872_v3  ;;  %18623 = vst [vmem:[#allocation54_spill] sm:$0xff] %v12874_v21  ;;  %10210 = vmatpush1.bf16.msra.mxu0 %v12842_v34  ;;  %v12892_v3 = vsub.f32 %v521_v36, %v630_v41  ;;  %v12894_v34 = vpack.c.bf16 %v632_v18, %v628_v2  ;;  %v12901_v59 = vpack.c.bf16 %v638_v9, %v634_v8 }
  0x6d   : > { %10212 = vmatprep.subr.bf16.mxu0 %v12855_v60  ;;  %18624 = vst [vmem:[#allocation55_spill] sm:$0xff] %v12884_v14  ;;  %18625 = vst [vmem:[#allocation56_spill] sm:$0xff] %v12886_v22  ;;  %v12896_v60 = vsub.f32 %v518_v44, %v628_v2  ;;  %v12903_v41 = vsub.f32 %v523_v0, %v634_v8  ;;  %v12905_v35 = vsub.f32 %v525_v17, %v638_v9  ;;  %v541_v22 = vld [vmem:[#allocation2 + $0x1b8] sm:$0xff] }
  0x6e   : > { %18626 = vst [vmem:[#allocation57_spill] sm:$0xff] %v12888_v38  ;;  %18627 = vst [vmem:[#allocation58_spill] sm:$0xff] %v12890_v39  ;;  %v12907_v36 = vpack.c.bf16 %v640_v28, %v636_v27  ;;  %v650_v44 = vand.u32 4294901760, %v531_v15  ;;  %v654_v45 = vand.u32 4294901760, %v533_v57  ;;  %v652_v2 = vand.u32 4294901760, %v530_v1 }
  0x6f   : > { %18628 = vst [vmem:[#allocation59_spill] sm:$0xff] %v12892_v3  ;;  %18629 = vst [vmem:[#allocation60_spill] sm:$0xff] %v12894_v34  ;;  %v537_v3 = vld [vmem:[#allocation2 + $0x198] sm:$0xff]  ;;  %v656_v18 = vand.u32 4294901760, %v532_v61  ;;  %v12913_v39 = vsub.f32 %v524_v6, %v640_v28  ;;  %v12915_v0 = vpack.c.bf16 %v646_v7, %v642_v26  ;;  %v12917_v17 = vsub.f32 %v527_v33, %v642_v26  ;;  %v538_v28 = vld [vmem:[#allocation2 + $0x1a0] sm:$0xff] }
  0x70   : > { %18630 = vst [vmem:[#allocation61_spill] sm:$0xff] %v12896_v60  ;;  %18631 = vst [vmem:[#allocation62_spill] sm:$0xff] %v12898_v23  ;;  %10214 = vmatpush1.bf16.msra.mxu0 %v12862_v63  ;;  %v534_v23 = vld [vmem:[#allocation2 + $0x180] sm:$0xff]  ;;  %v536_v60 = vld [vmem:[#allocation2 + $0x190] sm:$0xff]  ;;  %v12911_v63 = vsub.f32 %v522_v56, %v636_v27  ;;  %v12919_v8 = vsub.f32 %v529_v29, %v646_v7  ;;  %v12921_v9 = vpack.c.bf16 %v648_v42, %v644_v24 }
  0x71   : > { %18632 = vst [vmem:[#allocation63_spill] sm:$0xff] %v12901_v59  ;;  %18633 = vst [vmem:[#allocation64_spill] sm:$0xff] %v12903_v41  ;;  %10216 = vmatprep.subr.bf16.mxu0 %v12868_v37  ;;  %v662_v37 = vand.u32 4294901760, %v537_v3  ;;  %v539_v41 = vld [vmem:[#allocation2 + $0x1a8] sm:$0xff]  ;;  %v12924_v14 = vsub.f32 %v526_v20, %v644_v24  ;;  %v12926_v56 = vsub.f32 %v528_v19, %v648_v42  ;;  %v660_v6 = vand.u32 4294901760, %v534_v23  ;;  %v545_v7 = vld [vmem:[#allocation2 + $0x1d8] sm:$0xff] }
  0x72   : > { %18634 = vst [vmem:[#allocation65_spill] sm:$0xff] %v12905_v35  ;;  %18635 = vst [vmem:[#allocation66_spill] sm:$0xff] %v12907_v36  ;;  %v658_v35 = vand.u32 4294901760, %v535_v43  ;;  %v664_v27 = vand.u32 4294901760, %v536_v60  ;;  %v12934_v29 = vpack.c.bf16 %v654_v45, %v650_v44  ;;  %v12936_v33 = vsub.f32 %v531_v15, %v650_v44  ;;  %v543_v26 = vld [vmem:[#allocation2 + $0x1c8] sm:$0xff] }
  0x73   : > { %18636 = vst [vmem:[#allocation67_spill] sm:$0xff] %v12911_v63  ;;  %18637 = vst [vmem:[#allocation68_spill] sm:$0xff] %v12913_v39  ;;  %v540_v39 = vld [vmem:[#allocation2 + $0x1b0] sm:$0xff]  ;;  %v12938_v20 = vsub.f32 %v533_v57, %v654_v45  ;;  %v12940_v19 = vpack.c.bf16 %v656_v18, %v652_v2  ;;  %v12942_v24 = vsub.f32 %v530_v1, %v652_v2  ;;  %v668_v15 = vand.u32 4294901760, %v538_v28  ;;  %v479_v57 = vld [vmem:[%s12931_s22 + $0x8] sm:$0xff] }
  0x74   : > { %18638 = vst [vmem:[#allocation69_spill] sm:$0xff] %v12915_v0  ;;  %18639 = vst [vmem:[#allocation70_spill] sm:$0xff] %v12917_v17  ;;  %10218 = vmatpush1.bf16.msra.mxu0 %v12874_v21  ;;  %v12944_v42 = vsub.f32 %v532_v61, %v656_v18  ;;  %v666_v21 = vand.u32 4294901760, %v539_v41  ;;  %v12948_v17 = vsub.f32 %v535_v43, %v658_v35  ;;  %v672_v44 = vand.u32 4294901760, %v540_v39  ;;  %v478_v45 = vld [vmem:[%s12931_s22] sm:$0xff] }
  0x75   : > { %18640 = vst [vmem:[#allocation71_spill] sm:$0xff] %v12919_v8  ;;  %18641 = vst [vmem:[#allocation72_spill] sm:$0xff] %v12921_v9  ;;  %10220 = vmatprep.subr.bf16.mxu0 %v12888_v38  ;;  %v544_v38 = vld [vmem:[#allocation2 + $0x1d0] sm:$0xff]  ;;  %v12946_v8 = vpack.c.bf16 %v662_v37, %v658_v35  ;;  %v12955_v1 = vpack.c.bf16 %v664_v27, %v660_v6  ;;  %v674_v61 = vand.u32 4294901760, %v543_v26  ;;  %v678_v2 = vand.u32 4294901760, %v545_v7 }
  0x76   : > { %18642 = vst [vmem:[#allocation73_spill] sm:$0xff] %v12924_v14  ;;  %18643 = vst [vmem:[#allocation74_spill] sm:$0xff] %v12926_v56  ;;  %v670_v56 = vand.u32 4294901760, %v541_v22  ;;  %v542_v14 = vld [vmem:[#allocation2 + $0x1c0] sm:$0xff]  ;;  %v12958_v18 = vsub.f32 %v534_v23, %v660_v6  ;;  %v680_v43 = vand.u32 4294901760, %v544_v38  ;;  %v12972_v63 = vpack.c.bf16 %v672_v44, %v668_v15 }
  0x77   : > { %18644 = vst [vmem:[#allocation75_spill] sm:$0xff] %v12934_v29  ;;  %18645 = vst [vmem:[#allocation76_spill] sm:$0xff] %v12936_v33  ;;  %v676_v35 = vand.u32 4294901760, %v542_v14  ;;  %v12964_v33 = vsub.f32 %v539_v41, %v666_v21  ;;  %v12974_v23 = vsub.f32 %v538_v28, %v668_v15  ;;  %v12979_v6 = vpack.c.bf16 %v678_v2, %v674_v61  ;;  %v546_v41 = vld [vmem:[#allocation2 + $0x1e0] sm:$0xff] }
  0x78   : > { %18646 = vst [vmem:[#allocation77_spill] sm:$0xff] %v12938_v20  ;;  %18647 = vst [vmem:[#allocation78_spill] sm:$0xff] %v12940_v19  ;;  %10222 = vmatpush1.bf16.msra.mxu0 %v12894_v34  ;;  %v12953_v20 = vsub.f32 %v537_v3, %v662_v37  ;;  %v549_v34 = vld [vmem:[#allocation2 + $0x1f8] sm:$0xff]  ;;  %v12966_v37 = vand.u32 4294901760, %v479_v57  ;;  %v12968_v3 = vand.u32 4294901760, %v478_v45 }
  0x79   : > { %18648 = vst [vmem:[#allocation79_spill] sm:$0xff] %v12942_v24  ;;  %18649 = vst [vmem:[#allocation80_spill] sm:$0xff] %v12944_v42  ;;  %10224 = vmatprep.subr.bf16.mxu0 %v12901_v59  ;;  %v12960_v42 = vsub.f32 %v536_v60, %v664_v27  ;;  %v12962_v24 = vpack.c.bf16 %v670_v56, %v666_v21  ;;  %v12976_v60 = vsub.f32 %v540_v39, %v672_v44 }
  0x7a   : > { %18650 = vst [vmem:[#allocation81_spill] sm:$0xff] %v12946_v8  ;;  %18651 = vst [vmem:[#allocation82_spill] sm:$0xff] %v12948_v17  ;;  %v547_v17 = vld [vmem:[#allocation2 + $0x1e8] sm:$0xff]  ;;  %v12981_v27 = vsub.f32 %v543_v26, %v674_v61  ;;  %v12984_v59 = vsub.f32 %v479_v57, %v12966_v37  ;;  %v12990_v15 = vsub.f32 %v478_v45, %v12968_v3 }
  0x7b   : > { %18652 = vst [vmem:[#allocation83_spill] sm:$0xff] %v12953_v20  ;;  %18653 = vst [vmem:[#allocation84_spill] sm:$0xff] %v12955_v1  ;;  %v12970_v20 = vsub.f32 %v541_v22, %v670_v56  ;;  %v682_v21 = vand.u32 4294901760, %v547_v17  ;;  %v686_v22 = vand.u32 4294901760, %v549_v34  ;;  %v548_v56 = vld [vmem:[#allocation2 + $0x1f0] sm:$0xff]  ;;  %v12992_v44 = vsub.f32 %v545_v7, %v678_v2 }
  0x7c   : > { %18654 = vst [vmem:[#allocation85_spill] sm:$0xff] %v12960_v42  ;;  %18655 = vst [vmem:[#allocation86_spill] sm:$0xff] %v12962_v24  ;;  %10226 = vmatpush1.bf16.msra.mxu0 %v12907_v36  ;;  %v12994_v26 = vpack.c.bf16 %v680_v43, %v676_v35  ;;  %v12996_v61 = vsub.f32 %v542_v14, %v676_v35  ;;  %v17740_v57 = vand.u32 4294901760, %v12984_v59  ;;  %v688_v39 = vand.u32 4294901760, %v548_v56 }
  0x7d   : > { %18656 = vst [vmem:[#allocation87_spill] sm:$0xff] %v12964_v33  ;;  %18657 = vst [vmem:[#allocation88_spill] sm:$0xff] %v12966_v37  ;;  %10228 = vmatprep.subr.bf16.mxu0 %v12915_v0  ;;  %v12999_v36 = vsub.f32 %v544_v38, %v680_v43  ;;  %v684_v0 = vand.u32 4294901760, %v546_v41  ;;  %v13010_v38 = vpack.c.bf16 %v686_v22, %v682_v21  ;;  %v18672_v2 = vand.u32 4294901760, %v12782_v40 }
  0x7e   : > { %18658 = vst [vmem:[#allocation89_spill] sm:$0xff] %v12968_v3  ;;  %18659 = vst [vmem:[#allocation90_spill] sm:$0xff] %v12970_v20  ;;  %v693_v7 = vsub.f32 %v12984_v59, %v17740_v57  ;;  %v18673_v43 = vand.u32 4294901760, %v12787_v46  ;;  %v17755_v37 = vand.u32 4294901760, %v12990_v15  ;;  %v13021_v57 = vsub.f32 %v549_v34, %v686_v22 }
  0x7f   : > { %18660 = vst [vmem:[#allocation91_spill] sm:$0xff] %v12972_v63  ;;  %18661 = vst [vmem:[#allocation92_spill] sm:$0xff] %v12974_v23  ;;  %v758_v35 = vsub.f32 %v12782_v40, %v18672_v2  ;;  %v17758_v14 = vand.u32 4294901760, %v12797_v53  ;;  %v18677_v3 = vand.u32 4294901760, %v12791_v48  ;;  %v18679_v34 = vand.u32 4294901760, %v12793_v49 }
  0x80   : > { %18662 = vst [vmem:[#allocation93_spill] sm:$0xff] %v12976_v60  ;;  %18663 = vst [vmem:[#allocation94_spill] sm:$0xff] %v12979_v6  ;;  %10230 = vmatpush1.bf16.msra.mxu0 %v12921_v9  ;;  %v770_v28 = vsub.f32 %v12787_v46, %v18673_v43  ;;  %v13019_v9 = vsub.f32 %v547_v17, %v682_v21  ;;  %v694_v45 = vand.u32 4294901760, %v693_v7  ;;  %v18680_v22 = vand.u32 4294901760, %v12795_v52 }
  0x81   : > { %18664 = vst [vmem:[#allocation95_spill] sm:$0xff] %v12981_v27  ;;  %18665 = vst [vmem:[#allocation96_spill] sm:$0xff] %v12984_v59  ;;  %10232 = vmatprep.subr.bf16.mxu0 %v12934_v29  ;;  %v18676_v29 = vand.u32 4294901760, %v12789_v47  ;;  %v776_v2 = vsub.f32 %v12791_v48, %v18677_v3  ;;  %v13033_v17 = vpack.c.bf16 %v688_v39, %v684_v0  ;;  %v759_v3 = vand.u32 4294901760, %v758_v35 }
  0x82   : > { %18666 = vst [vmem:[#allocation97_spill] sm:$0xff] %v12990_v15  ;;  %18667 = vst [vmem:[#allocation98_spill] sm:$0xff] %v12992_v44  ;;  %695 = vmatprep.mubr.f32.mxu0 %v694_v45  ;;  %v782_v21 = vsub.f32 %v12793_v49, %v18679_v34  ;;  %v771_v40 = vand.u32 4294901760, %v770_v28  ;;  %v13046_v43 = vsub.f32 %v12990_v15, %v17755_v37  ;;  %v18682_v46 = vand.u32 4294901760, %v12801_v55 }
  0x83   : > { %18668 = vst [vmem:[#allocation99_spill] sm:$0xff] %v12994_v26  ;;  %18669 = vst [vmem:[#allocation100_spill] sm:$0xff] %v12996_v61  ;;  %v764_v59 = vsub.f32 %v12789_v47, %v18676_v29  ;;  %v794_v29 = vsub.f32 %v12795_v52, %v18680_v22  ;;  %v788_v34 = vsub.f32 %v12797_v53, %v17758_v14  ;;  %v18683_v45 = vand.u32 4294901760, %v12803_v58 }
  0x84   : > { %18670 = vst [vmem:[#allocation101_spill] sm:$0xff] %v12999_v36  ;;  %18671 = vst [vmem:[#allocation102_spill] sm:$0xff] %v13010_v38  ;;  %10234 = vmatpush1.bf16.msra.mxu0 %v12940_v19  ;;  %v18681_v19 = vand.u32 4294901760, %v12799_v54  ;;  %v806_v37 = vsub.f32 %v12801_v55, %v18682_v46  ;;  %v13064_v14 = vsub.f32 %v546_v41, %v684_v0  ;;  %v783_v53 = vand.u32 4294901760, %v782_v21 }
  0x85   : > { %18674 = vst [vmem:[#allocation103_spill] sm:$0xff] %v13019_v9  ;;  %18675 = vst [vmem:[#allocation104_spill] sm:$0xff] %v13021_v57  ;;  %10236 = vmatprep.subr.bf16.mxu0 %v12946_v8  ;;  %v765_v28 = vand.u32 4294901760, %v764_v59  ;;  %v777_v8 = vand.u32 4294901760, %v776_v2  ;;  %v818_v15 = vsub.f32 %v12803_v58, %v18683_v45  ;;  %v17765_v7 = vand.u32 4294901760, %v12817_v10 }
  0x86   : > { %18678 = vst [vmem:[#allocation105_spill] sm:$0xff] %v13033_v17  ;;  %v800_v22 = vsub.f32 %v12799_v54, %v18681_v19  ;;  %18684 = vst [vmem:[#allocation106_spill] sm:$0xff] %v13064_v14  ;;  %v795_v19 = vand.u32 4294901760, %v794_v29  ;;  %v13068_v59 = vsub.f32 %v548_v56, %v688_v39  ;;  %v10251_v2 = vpack.c.bf16 %v771_v40, %v759_v3 }
  0x87   : > { %v18686_v35 = vand.u32 4294901760, %v12808_v62  ;;  %v789_v45 = vand.u32 4294901760, %v788_v34  ;;  %v18687_v0 = vand.u32 4294901760, %v12813_v4  ;;  %v18688_v21 = vand.u32 4294901760, %v12815_v5 }
  0x88   : > { %10238 = vmatpush1.bf16.msra.mxu0 %v12955_v1  ;;  %18685 = vst [vmem:[#allocation107_spill] sm:$0xff] %v13068_v59  ;;  %v801_v58 = vand.u32 4294901760, %v800_v22  ;;  %v700_v56 = vand.u32 4294901760, %v13046_v43  ;;  %v10253_v39 = vpack.c.bf16 %v777_v8, %v765_v28  ;;  %v807_v40 = vand.u32 4294901760, %v806_v37 }
  0x89   : > { %10240 = vmatprep.subr.bf16.mxu0 %v12962_v24  ;;  %v812_v46 = vsub.f32 %v12808_v62, %v18686_v35  ;;  %v824_v41 = vsub.f32 %v12813_v4, %v18687_v0  ;;  %v830_v29 = vsub.f32 %v12815_v5, %v18688_v21  ;;  %v819_v3 = vand.u32 4294901760, %v818_v15  ;;  %v18695_v0 = vld [vmem:[#allocation47_spill] sm:$0xff] }
  0x8a   : > { %v10255_v35 = vpack.c.bf16 %v795_v19, %v783_v53  ;;  %v842_v34 = vsub.f32 %v12817_v10, %v17765_v7  ;;  %v18689_v21 = vand.u32 4294901760, %v12819_v11  ;;  %v10257_v53 = vpack.c.bf16 %v801_v58, %v789_v45 }
  0x8b   : > { %v813_v55 = vand.u32 4294901760, %v812_v46  ;;  %v825_v43 = vand.u32 4294901760, %v824_v41  ;;  %v831_v28 = vand.u32 4294901760, %v830_v29  ;;  %v13094_v7 = vpack.c.bf16 %v819_v3, %v807_v40  ;;  %v18694_v46 = vld [vmem:[#allocation46_spill] sm:$0xff] }
  0x8c   : > { %10242 = vmatpush1.bf16.msra.mxu0 %v12972_v63  ;;  %v836_v8 = vsub.f32 %v12819_v11, %v18689_v21  ;;  %v843_v21 = vand.u32 4294901760, %v842_v34  ;;  %v18690_v37 = vand.u32 4294901760, %v12821_v12  ;;  %v18691_v58 = vand.u32 4294901760, %v12823_v13 }
  0x8d   : > { %10244 = vmatprep.subr.bf16.mxu0 %v12979_v6  ;;  %v18692_v29 = vand.u32 4294901760, %v12827_v16  ;;  %v18693_v3 = vand.u32 4294901760, %v12832_v25  ;;  %v13116_v19 = vpack.c.bf16 %v825_v43, %v813_v55  ;;  %v18698_v63 = vand.u32 4294901760, %v12838_v31  ;;  %v18701_v43 = vld [vmem:[#allocation50_spill] sm:$0xff] }
  0x8e   : > { %v848_v15 = vsub.f32 %v12821_v12, %v18690_v37  ;;  %v854_v45 = vsub.f32 %v12823_v13, %v18691_v58  ;;  %v18696_v58 = vand.u32 4294901760, %v12836_v30  ;;  %v18699_v24 = vand.u32 4294901760, %v12840_v32  ;;  %v18785_v12 = vld [vmem:[#allocation68_spill] sm:$0xff] }
  0x8f   : > { %v866_v40 = vsub.f32 %v12827_v16, %v18692_v29  ;;  %v860_v34 = vsub.f32 %v12832_v25, %v18693_v3  ;;  %v878_v29 = vsub.f32 %v12838_v31, %v18698_v63  ;;  %v18700_v22 = vand.u32 4294901760, %v12851_v50 }
  0x90   : > { %10246 = vmatpush1.bf16.msra.mxu0 %v12994_v26  ;;  %v837_v26 = vand.u32 4294901760, %v836_v8  ;;  %v872_v41 = vsub.f32 %v12836_v30, %v18696_v58  ;;  %v890_v3 = vsub.f32 %v12840_v32, %v18699_v24  ;;  %v849_v37 = vand.u32 4294901760, %v848_v15  ;;  %v18705_v8 = vld [vmem:[#allocation52_spill] sm:$0xff] }
  0x91   : > { %10248 = vmatprep.subr.bf16.mxu0 %v13010_v38  ;;  %v18697_v38 = vld [vmem:[#allocation49_spill] sm:$0xff]  ;;  %v884_v55 = vsub.f32 %v12851_v50, %v18700_v22  ;;  %v18702_v58 = vand.u32 4294901760, %v12853_v51  ;;  %v18703_v1 = vand.u32 4294901760, %v18694_v46  ;;  %v18704_v31 = vand.u32 4294901760, %v18695_v0 }
  0x92   : > { %v855_v32 = vand.u32 4294901760, %v854_v45  ;;  %v867_v22 = vand.u32 4294901760, %v866_v40  ;;  %v861_v50 = vand.u32 4294901760, %v860_v34  ;;  %v18706_v15 = vand.u32 4294901760, %v18697_v38 }
  0x93   : > { %v896_v6 = vsub.f32 %v12853_v51, %v18702_v58  ;;  %v902_v63 = vsub.f32 %v18694_v46, %v18703_v1  ;;  %v914_v24 = vsub.f32 %v18695_v0, %v18704_v31  ;;  %v18707_v58 = vand.u32 4294901760, %v18701_v43  ;;  %v18708_v1 = vld [vmem:[#allocation53_spill] sm:$0xff] }
  0x94   : > { %10250 = vmatpush1.bf16.msra.mxu0 %v13033_v17  ;;  %v873_v17 = vand.u32 4294901760, %v872_v41  ;;  %v908_v25 = vsub.f32 %v18697_v38, %v18706_v15  ;;  %v10263_v16 = vpack.c.bf16 %v843_v21, %v831_v28  ;;  %v879_v31 = vand.u32 4294901760, %v878_v29  ;;  %v18709_v41 = vld [vmem:[#allocation55_spill] sm:$0xff] }
  0x95   : > { %10252 = vmatprep.subr.bf16.mxu0 %v10251_v2  ;;  %v920_v51 = vsub.f32 %v18701_v43, %v18707_v58  ;;  %v891_v2 = vand.u32 4294901760, %v890_v3  ;;  %v885_v45 = vand.u32 4294901760, %v884_v55  ;;  %v897_v40 = vand.u32 4294901760, %v896_v6  ;;  %v18711_v43 = vld [vmem:[#allocation56_spill] sm:$0xff]  ;;  %v18714_v55 = vld [vmem:[#allocation59_spill] sm:$0xff] }
  0x96   : > { %v903_v34 = vand.u32 4294901760, %v902_v63  ;;  %v915_v30 = vand.u32 4294901760, %v914_v24  ;;  %v17801_v0 = vand.u32 4294901760, %v18709_v41  ;;  %v10265_v13 = vpack.c.bf16 %v849_v37, %v837_v26  ;;  %v18718_v37 = vld [vmem:[#allocation65_spill] sm:$0xff] }
  0x97   : > { %701 = vmatmul.mubr.f32.vlgmr.msra.gmra.mrb[0].mxu0 %v700_v56  ;;  %v10267_v15 = vpack.c.bf16 %v867_v22, %v855_v32  ;;  %v18710_v38 = vand.u32 4294901760, %v18705_v8  ;;  %v17800_v46 = vand.u32 4294901760, %v18711_v43  ;;  %v10269_v56 = vpack.c.bf16 %v873_v17, %v861_v50  ;;  %v18716_v32 = vld [vmem:[#allocation62_spill] sm:$0xff]  ;;  %v18717_v17 = vld [vmem:[#allocation64_spill] sm:$0xff] }
  0x98   : > { %10254 = vmatpush1.bf16.msra.mxu0 %v10253_v39  ;;  %v909_v28 = vand.u32 4294901760, %v908_v25  ;;  %v921_v21 = vand.u32 4294901760, %v920_v51  ;;  %v18712_v29 = vand.u32 4294901760, %v18708_v1  ;;  %v18713_v39 = vld [vmem:[#allocation58_spill] sm:$0xff]  ;;  %v17804_v63 = vand.u32 4294901760, %v18714_v55 }
  0x99   : > { %10256 = vmatprep.subr.bf16.mxu0 %v10255_v35  ;;  %v926_v58 = vsub.f32 %v18705_v8, %v18710_v38  ;;  %v17802_v3 = vand.u32 4294901760, %v18713_v39  ;;  %v18715_v35 = vld [vmem:[#allocation61_spill] sm:$0xff]  ;;  %v10271_v24 = vpack.c.bf16 %v891_v2, %v879_v31  ;;  %v13162_v38 = vpack.c.bf16 %v897_v40, %v885_v45  ;;  %v18720_v40 = vld [vmem:[#allocation68_spill] sm:$0xff]  ;;  %v18723_v45 = vld [vmem:[#allocation71_spill] sm:$0xff] }
  0x9a   : > { %v938_v6 = vsub.f32 %v18708_v1, %v18712_v29  ;;  %v17806_v26 = vand.u32 4294901760, %v18715_v35  ;;  %v13164_v22 = vpack.c.bf16 %v915_v30, %v903_v34  ;;  %v932_v25 = vsub.f32 %v18709_v41, %v17801_v0  ;;  %v18719_v30 = vld [vmem:[#allocation67_spill] sm:$0xff]  ;;  %v18722_v0 = vld [vmem:[#allocation70_spill] sm:$0xff]  ;;  %v18731_v34 = vld [vmem:[#allocation77_spill] sm:$0xff] }
  0x9b   : > { %v927_v50 = vand.u32 4294901760, %v926_v58  ;;  %v944_v51 = vsub.f32 %v18711_v43, %v17800_v46  ;;  %v13175_v31 = vpack.c.bf16 %v921_v21, %v909_v28  ;;  %v962_v58 = vsub.f32 %v18714_v55, %v17804_v63 }
  0x9c   : > { %10258 = vmatpush1.bf16.msra.mxu0 %v10257_v53  ;;  %v939_v2 = vand.u32 4294901760, %v938_v6  ;;  %v956_v46 = vsub.f32 %v18715_v35, %v17806_v26  ;;  %v18721_v28 = vand.u32 4294901760, %v18716_v32  ;;  %v933_v6 = vand.u32 4294901760, %v932_v25 }
  0x9d   : > { %10260 = vmatprep.subr.bf16.mxu0 %v13094_v7  ;;  %v950_v7 = vsub.f32 %v18713_v39, %v17802_v3  ;;  %v18724_v3 = vld [vmem:[#allocation73_spill] sm:$0xff]  ;;  %v945_v39 = vand.u32 4294901760, %v944_v51  ;;  %v18725_v63 = vand.u32 4294901760, %v18717_v17  ;;  %v18726_v26 = vand.u32 4294901760, %v18718_v37 }
  0x9e   : > { %v968_v21 = vsub.f32 %v18716_v32, %v18721_v28  ;;  %v18727_v28 = vld [vmem:[#allocation74_spill] sm:$0xff]  ;;  %v18729_v53 = vand.u32 4294901760, %v18720_v40  ;;  %v18792_v10 = vand.u32 4294901760, %v13019_v9 }
  0x9f   : > { %v974_v55 = vsub.f32 %v18717_v17, %v18725_v63  ;;  %v986_v35 = vsub.f32 %v18718_v37, %v18726_v26  ;;  %v951_v41 = vand.u32 4294901760, %v950_v7  ;;  %v963_v63 = vand.u32 4294901760, %v962_v58 }
  0xa0   : > { %10262 = vmatpush1.bf16.msra.mxu0 %v13116_v19  ;;  %v18728_v19 = vand.u32 4294901760, %v18719_v30  ;;  %v992_v29 = vsub.f32 %v18720_v40, %v18729_v53  ;;  %v957_v17 = vand.u32 4294901760, %v956_v46  ;;  %v969_v1 = vand.u32 4294901760, %v968_v21 }
  0xa1   : > { %10264 = vmatprep.subr.bf16.mxu0 %v10263_v16  ;;  %v18730_v16 = vld [vmem:[#allocation76_spill] sm:$0xff]  ;;  %v18732_v26 = vand.u32 4294901760, %v18722_v0  ;;  %v18734_v53 = vand.u32 4294901760, %v18724_v3  ;;  %v18735_v43 = vand.u32 4294901760, %v18727_v28  ;;  %v10279_v46 = vpack.c.bf16 %v939_v2, %v927_v50 }
  0xa2   : > { %v980_v25 = vsub.f32 %v18719_v30, %v18728_v19  ;;  %v18733_v19 = vand.u32 4294901760, %v18723_v45  ;;  %v18737_v21 = vand.u32 4294901760, %v18731_v34  ;;  %v987_v40 = vand.u32 4294901760, %v986_v35  ;;  %v18739_v50 = vld [vmem:[#allocation80_spill] sm:$0xff] }
  0xa3   : > { %v998_v32 = vsub.f32 %v18722_v0, %v18732_v26  ;;  %v1004_v51 = vsub.f32 %v18724_v3, %v18734_v53  ;;  %v1016_v7 = vsub.f32 %v18727_v28, %v18735_v43  ;;  %v18738_v0 = vld [vmem:[#allocation79_spill] sm:$0xff]  ;;  %v993_v53 = vand.u32 4294901760, %v992_v29  ;;  %v481_v3 = vld [vmem:[%s12931_s22 + $0x18] sm:$0xff] }
  0xa4   : > { %10266 = vmatpush1.bf16.msra.mxu0 %v10265_v13  ;;  %v1010_v30 = vsub.f32 %v18723_v45, %v18733_v19  ;;  %v18736_v13 = vand.u32 4294901760, %v18730_v16  ;;  %v1034_v26 = vsub.f32 %v18731_v34, %v18737_v21  ;;  %v17827_v19 = vand.u32 4294901760, %v18738_v0 }
  0xa5   : > { %10268 = vmatprep.subr.bf16.mxu0 %v10267_v15  ;;  %v975_v45 = vand.u32 4294901760, %v974_v55  ;;  %v981_v37 = vand.u32 4294901760, %v980_v25  ;;  %v10281_v8 = vpack.c.bf16 %v945_v39, %v933_v6  ;;  %v13230_v43 = vpack.c.bf16 %v963_v63, %v951_v41 }
  0xa6   : > { %v1022_v58 = vsub.f32 %v18730_v16, %v18736_v13  ;;  %v13232_v15 = vpack.c.bf16 %v969_v1, %v957_v17  ;;  %v17822_v2 = vand.u32 4294901760, %v18739_v50  ;;  %v999_v13 = vand.u32 4294901760, %v998_v32  ;;  %v480_v1 = vld [vmem:[%s12931_s22 + $0x10] sm:$0xff] }
  0xa7   : > { %v1011_v16 = vand.u32 4294901760, %v1010_v30  ;;  %v1005_v28 = vand.u32 4294901760, %v1004_v51  ;;  %v1017_v21 = vand.u32 4294901760, %v1016_v7  ;;  %v1035_v35 = vand.u32 4294901760, %v1034_v26  ;;  %v18742_v30 = vld [vmem:[#allocation83_spill] sm:$0xff] }
  0xa8   : > { %10270 = vmatpush1.bf16.msra.mxu0 %v10269_v56  ;;  %v1023_v55 = vand.u32 4294901760, %v1022_v58  ;;  %v13238_v29 = vsub.f32 %v18738_v0, %v17827_v19  ;;  %v13240_v41 = vand.u32 4294901760, %v481_v3  ;;  %v13243_v39 = vpack.c.bf16 %v987_v40, %v975_v45  ;;  %v18741_v56 = vld [vmem:[#allocation82_spill] sm:$0xff]  ;;  %v483_v7 = vld [vmem:[%s12931_s22 + $0x28] sm:$0xff] }
  0xa9   : > { %10272 = vmatprep.subr.bf16.mxu0 %v10271_v24  ;;  %v13245_v17 = vpack.c.bf16 %v993_v53, %v981_v37  ;;  %v17826_v32 = vand.u32 4294901760, %v18741_v56  ;;  %v17825_v6 = vand.u32 4294901760, %v18742_v30  ;;  %v1040_v24 = vsub.f32 %v18739_v50, %v17822_v2 }
  0xaa   : > { %18740 = vst [vmem:[#allocation77_spill] sm:$0xff] %v13240_v41  ;;  %v17823_v25 = vand.u32 4294901760, %v12958_v18  ;;  %v17824_v51 = vand.u32 4294901760, %v12960_v42  ;;  %v13255_v63 = vsub.f32 %v481_v3, %v13240_v41  ;;  %v13259_v37 = vpack.c.bf16 %v1011_v16, %v999_v13 }
  0xab   : > { %v17828_v45 = vand.u32 4294901760, %v12964_v33  ;;  %v17830_v40 = vand.u32 4294901760, %v12970_v20  ;;  %v13263_v58 = vand.u32 4294901760, %v480_v1  ;;  %v13266_v26 = vpack.c.bf16 %v1017_v21, %v1005_v28 }
  0xac   : > { %18743 = vst [vmem:[#allocation82_spill] sm:$0xff] %v13255_v63  ;;  %10274 = vmatpush1.bf16.msra.mxu0 %v13162_v38  ;;  %v13268_v53 = vpack.c.bf16 %v1035_v35, %v1023_v55  ;;  %v1029_v3 = vand.u32 4294901760, %v13238_v29  ;;  %v17829_v2 = vand.u32 4294901760, %v13255_v63  ;;  %v1046_v38 = vsub.f32 %v18741_v56, %v17826_v32  ;;  %v482_v29 = vld [vmem:[%s12931_s22 + $0x20] sm:$0xff] }
  0xad   : > { %18744 = vst [vmem:[#allocation108_spill] sm:$0xff] %v13263_v58  ;;  %10276 = vmatprep.subr.bf16.mxu0 %v13164_v22  ;;  %v1058_v16 = vsub.f32 %v18742_v30, %v17825_v6  ;;  %v13279_v13 = vsub.f32 %v480_v1, %v13263_v58  ;;  %v13281_v22 = vand.u32 4294901760, %v483_v7  ;;  %v1041_v28 = vand.u32 4294901760, %v1040_v24 }
  0xae   : > { %v1052_v21 = vsub.f32 %v12958_v18, %v17823_v25  ;;  %v1064_v55 = vsub.f32 %v12960_v42, %v17824_v51  ;;  %v709_v35 = vsub.f32 %v13255_v63, %v17829_v2  ;;  %v1070_v1 = vsub.f32 %v12964_v33, %v17828_v45 }
  0xaf   : > { %18745 = vst [vmem:[#allocation109_spill] sm:$0xff] %v13279_v13  ;;  %18746 = vst [vmem:[#allocation110_spill] sm:$0xff] %v13281_v22  ;;  %v1082_v24 = vsub.f32 %v12970_v20, %v17830_v40  ;;  %v17835_v25 = vand.u32 4294901760, %v13279_v13  ;;  %v13302_v51 = vsub.f32 %v483_v7, %v13281_v22  ;;  %v13312_v63 = vand.u32 4294901760, %v482_v29  ;;  %v485_v7 = vld [vmem:[%s12931_s22 + $0x38] sm:$0xff] }
  0xb0   : > { %10278 = vmatpush1.bf16.msra.mxu0 %v13175_v31  ;;  %v710_v6 = vand.u32 4294901760, %v709_v35  ;;  %v1059_v35 = vand.u32 4294901760, %v1058_v16  ;;  %v1053_v22 = vand.u32 4294901760, %v1052_v21  ;;  %v1065_v32 = vand.u32 4294901760, %v1064_v55  ;;  %v484_v16 = vld [vmem:[%s12931_s22 + $0x30] sm:$0xff]  ;;  %s476_s22 = scalar_lea.vmem %s17658_s10, %s16089_s19 }
  0xb1   : > { %18747 = vst [vmem:[#allocation111_spill] sm:$0xff] %v13302_v51  ;;  %10280 = vmatprep.subr.bf16.mxu0 %v10279_v46  ;;  %v715_v45 = vsub.f32 %v13279_v13, %v17835_v25  ;;  %v17840_v2 = vand.u32 4294901760, %v13302_v51  ;;  %18748 = vst [vmem:[#allocation112_spill] sm:$0xff] %v13312_v63  ;;  %v1047_v46 = vand.u32 4294901760, %v1046_v38  ;;  %v1071_v19 = vand.u32 4294901760, %v1070_v1 }
  0xb2   : > { %711 = vmatprep.mubr.f32.mxu0 %v710_v6  ;;  %v13319_v13 = vsub.f32 %v482_v29, %v13312_v63  ;;  %v1083_v40 = vand.u32 4294901760, %v1082_v24  ;;  %v18750_v58 = vand.u32 4294901760, %v12974_v23  ;;  %v18751_v6 = vand.u32 4294901760, %v12976_v60 }
  0xb3   : > { %v716_v31 = vand.u32 4294901760, %v715_v45  ;;  %v725_v25 = vsub.f32 %v13302_v51, %v17840_v2  ;;  %v13332_v45 = vand.u32 4294901760, %v485_v7  ;;  %v18753_v55 = vand.u32 4294901760, %v12981_v27  ;;  %v18778_v51 = vld [vmem:[#allocation58_spill] sm:$0xff] }
  0xb4   : > { %10282 = vmatpush1.bf16.msra.mxu0 %v10281_v8  ;;  %18749 = vst [vmem:[#allocation113_spill] sm:$0xff] %v13319_v13  ;;  %v13325_v38 = vsub.f32 %v12974_v23, %v18750_v58  ;;  %v13330_v8 = vsub.f32 %v12976_v60, %v18751_v6  ;;  %v18754_v29 = vand.u32 4294901760, %v12992_v44  ;;  %v17843_v1 = vand.u32 4294901760, %v13319_v13 }
  0xb5   : > { %10284 = vmatprep.subr.bf16.mxu0 %v13230_v43  ;;  %18752 = vst [vmem:[#allocation114_spill] sm:$0xff] %v13332_v45  ;;  %717 = vmatmul.mubr.f32.gmra.mrb[2].mxu0 %v716_v31  ;;  %v726_v21 = vand.u32 4294901760, %v725_v25  ;;  %v13338_v43 = vsub.f32 %v12981_v27, %v18753_v55  ;;  %v13346_v24 = vpack.c.bf16 %v1041_v28, %v1029_v3  ;;  %v17841_v6 = vand.u32 4294901760, %v12996_v61 }
  0xb6   : > { %v13343_v58 = vsub.f32 %v12992_v44, %v18754_v29  ;;  %v13351_v25 = vsub.f32 %v485_v7, %v13332_v45  ;;  %v13354_v31 = vpack.c.bf16 %v1059_v35, %v1047_v46  ;;  %v13356_v55 = vpack.c.bf16 %v1065_v32, %v1053_v22  ;;  %v18760_v22 = vld [vmem:[#allocation26_spill] sm:$0xff]  ;;  %v18791_v32 = vld [vmem:[#allocation76_spill] sm:$0xff] }
  0xb7   : > { %727 = vmatprep.mubr.f32.mxu0 %v726_v21  ;;  %v731_v29 = vsub.f32 %v13319_v13, %v17843_v1  ;;  %v13361_v3 = vand.u32 4294901760, %v484_v16  ;;  %v13364_v28 = vpack.c.bf16 %v1083_v40, %v1071_v19  ;;  %v1077_v7 = vand.u32 4294901760, %v13325_v38  ;;  %v18759_v1 = vld [vmem:[#allocation25_spill] sm:$0xff] }
  0xb8   : > { %18755 = vst [vmem:[#allocation115_spill] sm:$0xff] %v13351_v25  ;;  %10286 = vmatpush1.bf16.msra.mxu0 %v13232_v15  ;;  %v1089_v2 = vand.u32 4294901760, %v13330_v8  ;;  %v17842_v15 = vand.u32 4294901760, %v13351_v25  ;;  %v18758_v19 = vand.u32 4294901760, %v12999_v36  ;;  %v18788_v13 = vld [vmem:[#allocation73_spill] sm:$0xff]  ;;  %v1118_v11 = vsub.f32 %v13019_v9, %v18792_v10 }
  0xb9   : > { %18756 = vst [vmem:[#allocation116_spill] sm:$0xff] %v13361_v3  ;;  %10288 = vmatprep.subr.bf16.mxu0 %v13243_v39  ;;  %v732_v46 = vand.u32 4294901760, %v731_v29  ;;  %v13372_v35 = vsub.f32 %v484_v16, %v13361_v3  ;;  %v13377_v39 = vsub.f32 %v12996_v61, %v17841_v6  ;;  %v18781_v6 = vld [vmem:[#allocation62_spill] sm:$0xff]  ;;  %v18782_v3 = vld [vmem:[#allocation64_spill] sm:$0xff]  ;;  %v10377_v8 = vpack.c.bf16 %v13068_v59, %v13064_v14 }
  0xba   : > { %v13382_v40 = vsub.f32 %v12999_v36, %v18758_v19  ;;  %v741_v38 = vsub.f32 %v13351_v25, %v17842_v15  ;;  %v18777_v25 = vld [vmem:[#allocation56_spill] sm:$0xff]  ;;  %v18789_v15 = vld [vmem:[#allocation74_spill] sm:$0xff]  ;;  %v18795_v61 = vand.u32 4294901760, %v13068_v59 }
  0xbb   : > { %18757 = vst [vmem:[#allocation117_spill] sm:$0xff] %v13372_v35  ;;  %v17850_v29 = vand.u32 4294901760, %v13372_v35  ;;  %733 = vmatmul.mubr.f32.gmra.mrb[4].mxu0 %v732_v46  ;;  %v18784_v46 = vld [vmem:[#allocation67_spill] sm:$0xff] }
  0xbc   : > { %10290 = vmatpush1.bf16.msra.mxu0 %v13245_v17  ;;  %v742_v19 = vand.u32 4294901760, %v741_v38  ;;  %v18761_v17 = vld [vmem:[#allocation27_spill] sm:$0xff] }
  0xbd   : > { %10292 = vmatprep.subr.bf16.mxu0 %v13259_v37  ;;  %v747_v21 = vsub.f32 %v13372_v35, %v17850_v29  ;;  %v18780_v29 = vld [vmem:[#allocation61_spill] sm:$0xff]  ;;  %v18787_v38 = vld [vmem:[#allocation71_spill] sm:$0xff]  ;;  %v18790_v35 = vld [vmem:[#allocation88_spill] sm:$0xff]  ;;  %v10375_v37 = vpack.c.bf16 %v13021_v57, %v13019_v9 }
  0xbe   : > { %743 = vmatprep.mubr.f32.mxu0 %v742_v19  ;;  %v18783_v19 = vld [vmem:[#allocation65_spill] sm:$0xff] }
  0xbf   : > { %v748_v16 = vand.u32 4294901760, %v747_v21  ;;  %v10305_v21 = vpack.c.bf16 %v1089_v2, %v1077_v7  ;;  %v18797_v2 = vand.u32 4294901760, %v13343_v58  ;;  %v18808_v58 = vld [vmem:[#allocation31_spill] sm:$0xff] }
  0xc0   : > { %10294 = vmatpush1.bf16.msra.mxu0 %v13266_v26  ;;  %v18779_v26 = vld [vmem:[#allocation59_spill] sm:$0xff] }
  0xc1   : > { %10296 = vmatprep.subr.bf16.mxu0 %v13268_v53  ;;  %749 = vmatmul.mubr.f32.gmra.mrb[6].mxu0 %v748_v16  ;;  %v18786_v53 = vld [vmem:[#allocation70_spill] sm:$0xff]  ;;  %v1101_v16 = vand.u32 4294901760, %v13377_v39 }
  0xc2   : > { %1140 = vmatprep.mubr.f32.mxu0 %v18790_v35  ;;  %v18794_v35 = vand.u32 4294901760, %v13064_v14 }
  0xc4   : > { %10298 = vmatpush1.bf16.msra.mxu0 %v13346_v24  ;;  %v18793_v24 = vand.u32 4294901760, %v13021_v57  ;;  %v1124_v10 = vsub.f32 %v13064_v14, %v18794_v35  ;;  %v18798_v14 = vld [vmem:[#allocation22_spill] sm:$0xff] }
  0xc5   : > { %10300 = vmatprep.subr.bf16.mxu0 %v13354_v31  ;;  %v1113_v31 = vand.u32 4294901760, %v13382_v40 }
  0xc6   : > { %v1130_v5 = vsub.f32 %v13021_v57, %v18793_v24  ;;  %v1136_v24 = vsub.f32 %v13068_v59, %v18795_v61  ;;  %v18796_v57 = vand.u32 4294901760, %v13338_v43  ;;  %v1125_v40 = vand.u32 4294901760, %v1124_v10  ;;  %v18799_v61 = vld [vmem:[#allocation24_spill] sm:$0xff]  ;;  %v18800_v43 = vld [vmem:[#allocation89_spill] sm:$0xff] }
  0xc7   : > { %v10309_v39 = vpack.c.bf16 %v1113_v31, %v1101_v16  ;;  %v10315_v59 = vpack.c.bf16 %v18799_v61, %v18798_v14  ;;  %v18811_v16 = vld [vmem:[#allocation116_spill] sm:$0xff]  ;;  %v18812_v31 = vld [vmem:[#allocation33_spill] sm:$0xff] }
  0xc8   : > { %10302 = vmatpush1.bf16.msra.mxu0 %v13356_v55  ;;  %v10307_v7 = vpack.c.bf16 %v18797_v2, %v18796_v57  ;;  %v1119_v55 = vand.u32 4294901760, %v1118_v11  ;;  %v1131_v9 = vand.u32 4294901760, %v1130_v5  ;;  %v1137_v36 = vand.u32 4294901760, %v1136_v24  ;;  %v18813_v10 = vld [vmem:[#allocation32_spill] sm:$0xff] }
  0xc9   : > { %10304 = vmatprep.subr.bf16.mxu0 %v13364_v28  ;;  %v18801_v11 = vpack.c.bf16 %v12791_v48, %v12789_v47  ;;  %v18802_v5 = vpack.c.bf16 %v12795_v52, %v12793_v49  ;;  %v18806_v57 = vpack.c.bf16 %v18761_v17, %v18760_v22  ;;  %v18809_v28 = vld [vmem:[#allocation30_spill] sm:$0xff]  ;;  %v18814_v24 = vpack.c.bf16 %v18812_v31, %v18813_v10  ;;  %v18815_v2 = vld [vmem:[#allocation96_spill] sm:$0xff] }
  0xca   : > { %v10311_v27 = vpack.c.bf16 %v1131_v9, %v1119_v55  ;;  %v10313_v35 = vpack.c.bf16 %v1137_v36, %v1125_v40  ;;  %v18803_v9 = vld [vmem:[#allocation108_spill] sm:$0xff]  ;;  %v18804_v36 = vpack.c.bf16 %v12799_v54, %v18759_v1  ;;  %v18817_v55 = vld [vmem:[#allocation34_spill] sm:$0xff]  ;;  %v18819_v40 = vld [vmem:[#allocation39_spill] sm:$0xff] }
  0xcc   : > { %10306 = vmatpush1.bf16.msra.mxu0 %v10305_v21  ;;  %v18810_v21 = vpack.c.bf16 %v18808_v58, %v18809_v28 }
  0xcd   : > { %10308 = vmatprep.subr.bf16.mxu0 %v10307_v7  ;;  %v18816_v7 = vld [vmem:[#allocation35_spill] sm:$0xff] }
  0xd0   : > { %10310 = vmatpush1.bf16.msra.mxu0 %v10309_v39  ;;  %v18818_v39 = vpack.c.bf16 %v18816_v7, %v18817_v55 }
  0xd1   : > { %10312 = vmatprep.subr.bf16.mxu0 %v10311_v27  ;;  %v18805_v27 = vld [vmem:[#allocation110_spill] sm:$0xff] }
  0xd4   : > { %10314 = vmatpush1.bf16.msra.mxu0 %v10313_v35  ;;  %v18820_v35 = vld [vmem:[#allocation37_spill] sm:$0xff] }
  0xd5   : > { %10316 = vmatprep.subr.bf16.mxu0 %v10315_v59  ;;  %v18807_v59 = vpack.c.bf16 %v12813_v4, %v12808_v62 }
  0xd7   : > { %1142 = vmatmul.mubr.f32.vlgmr.msra.gmra.mrb[0].mxu0 %v18800_v43  ;;  %v18835_v43 = vld [vmem:[#allocation52_spill] sm:$0xff] }
  0xd8   : > { %10318 = vmatpush1.bf16.msra.mxu0 %v18801_v11  ;;  %1148 = vmatprep.mubr.f32.mxu0 %v13240_v41  ;;  %v18821_v11 = vpack.c.bf16 %v18819_v40, %v18820_v35 }
  0xd9   : > { %10320 = vmatprep.subr.bf16.mxu0 %v18802_v5  ;;  %v18822_v5 = vld [vmem:[#allocation41_spill] sm:$0xff] }
  0xdb   : > { %1150 = vmatmul.mubr.f32.gmra.mrb[2].mxu0 %v18803_v9  ;;  %v18832_v9 = vld [vmem:[#allocation49_spill] sm:$0xff] }
  0xdc   : > { %10322 = vmatpush1.bf16.msra.mxu0 %v18804_v36  ;;  %1156 = vmatprep.mubr.f32.mxu0 %v18805_v27  ;;  %v18823_v36 = vld [vmem:[#allocation40_spill] sm:$0xff]  ;;  %v18831_v27 = vld [vmem:[#allocation50_spill] sm:$0xff] }
  0xdd   : > { %10324 = vmatprep.subr.bf16.mxu0 %v18806_v57  ;;  %v18824_v57 = vpack.c.bf16 %v18822_v5, %v18823_v36  ;;  %v18833_v41 = vpack.c.bf16 %v18831_v27, %v18832_v9 }
  0xdf   : > { %1158 = vmatmul.mubr.f32.gmra.mrb[4].mxu0 %v13312_v63 }
  0xe0   : > { %10326 = vmatpush1.bf16.msra.mxu0 %v18807_v59  ;;  %1164 = vmatprep.mubr.f32.mxu0 %v13332_v45  ;;  %v18825_v59 = vld [vmem:[#allocation44_spill] sm:$0xff]  ;;  %v18828_v45 = vld [vmem:[#allocation47_spill] sm:$0xff] }
  0xe1   : > { %10328 = vmatprep.subr.bf16.mxu0 %v18810_v21  ;;  %v18826_v21 = vld [vmem:[#allocation43_spill] sm:$0xff] }
  0xe3   : > { %1166 = vmatmul.mubr.f32.gmra.mrb[6].mxu0 %v18811_v16  ;;  %v18827_v16 = vpack.c.bf16 %v18825_v59, %v18826_v21 }
  0xe4   : > { %10330 = vmatpush1.bf16.msra.mxu0 %v18814_v24  ;;  %1366 = vmatprep.mubr.f32.mxu0 %v18815_v2  ;;  %v18829_v24 = vld [vmem:[#allocation46_spill] sm:$0xff] }
  0xe5   : > { %10332 = vmatprep.subr.bf16.mxu0 %v18818_v39  ;;  %v18830_v63 = vpack.c.bf16 %v18828_v45, %v18829_v24  ;;  %v18834_v39 = vld [vmem:[#allocation53_spill] sm:$0xff] }
  0xe6   : > { %v18836_v40 = vpack.c.bf16 %v18834_v39, %v18835_v43 }
  0xe8   : > { %10334 = vmatpush1.bf16.msra.mxu0 %v18821_v11  ;;  %v18837_v11 = vld [vmem:[#allocation55_spill] sm:$0xff] }
  0xe9   : > { %10336 = vmatprep.subr.bf16.mxu0 %v18824_v57  ;;  %v18838_v5 = vpack.c.bf16 %v18777_v25, %v18837_v11  ;;  %v18839_v57 = vpack.c.bf16 %v18779_v26, %v18778_v51 }
  0xec   : > { %10338 = vmatpush1.bf16.msra.mxu0 %v18827_v16  ;;  %v18840_v16 = vpack.c.bf16 %v18781_v6, %v18780_v29 }
  0xed   : > { %10340 = vmatprep.subr.bf16.mxu0 %v18830_v63  ;;  %v18841_v63 = vpack.c.bf16 %v18783_v19, %v18782_v3 }
  0xf0   : > { %10342 = vmatpush1.bf16.msra.mxu0 %v18833_v41  ;;  %v18842_v41 = vpack.c.bf16 %v18785_v12, %v18784_v46 }
  0xf1   : > { %10344 = vmatprep.subr.bf16.mxu0 %v18836_v40  ;;  %v18843_v40 = vpack.c.bf16 %v18787_v38, %v18786_v53 }
  0xf4   : > { %10346 = vmatpush1.bf16.msra.mxu0 %v18838_v5  ;;  %v18844_v5 = vpack.c.bf16 %v18789_v15, %v18788_v13 }
  0xf5   : > { %10348 = vmatprep.subr.bf16.mxu0 %v18839_v57  ;;  %v18845_v57 = vpack.c.bf16 %v18731_v34, %v18791_v32 }
  0xf8   : > { %10350 = vmatpush1.bf16.msra.mxu0 %v18840_v16  ;;  %v18846_v16 = vpack.c.bf16 %v18739_v50, %v18738_v0  ;;  %v18854_v0 = vld [vmem:[#allocation100_spill] sm:$0xff] }
  0xf9   : > { %10352 = vmatprep.subr.bf16.mxu0 %v18841_v63  ;;  %v18847_v63 = vpack.c.bf16 %v18742_v30, %v18741_v56 }
  0xfc   : > { %10354 = vmatpush1.bf16.msra.mxu0 %v18842_v41  ;;  %v18848_v41 = vpack.c.bf16 %v12960_v42, %v12958_v18  ;;  %v18879_v42 = vld [vmem:[#allocation54_spill] sm:$0xff] }
  0xfd   : > { %10356 = vmatprep.subr.bf16.mxu0 %v18843_v40  ;;  %v18849_v40 = vpack.c.bf16 %v12970_v20, %v12964_v33  ;;  %v18858_v20 = vld [vmem:[#allocation17_spill] sm:$0xff]  ;;  %v18877_v33 = vld [vmem:[#allocation48_spill] sm:$0xff] }
 0x100   : > { %10358 = vmatpush1.bf16.msra.mxu0 %v18844_v5  ;;  %v18850_v5 = vpack.c.bf16 %v12976_v60, %v12974_v23  ;;  %v18860_v60 = vld [vmem:[#allocation18_spill] sm:$0xff] }
 0x101   : > { %10360 = vmatprep.subr.bf16.mxu0 %v18845_v57  ;;  %v18851_v57 = vld [vmem:[#allocation95_spill] sm:$0xff]  ;;  %v18875_v23 = vld [vmem:[#allocation42_spill] sm:$0xff] }
 0x102   : > { %v18852_v50 = vpack.c.bf16 %v12992_v44, %v18851_v57  ;;  %v18862_v44 = vld [vmem:[#allocation19_spill] sm:$0xff]  ;;  %v18873_v57 = vld [vmem:[#allocation36_spill] sm:$0xff] }
 0x104   : > { %10362 = vmatpush1.bf16.msra.mxu0 %v18846_v16  ;;  %v18853_v16 = vld [vmem:[#allocation101_spill] sm:$0xff] }
 0x105   : > { %10364 = vmatprep.subr.bf16.mxu0 %v18847_v63  ;;  %v18855_v30 = vpack.c.bf16 %v18853_v16, %v18854_v0  ;;  %v18856_v63 = vld [vmem:[#allocation16_spill] sm:$0xff] }
 0x106   : > { %v18864_v16 = vld [vmem:[#allocation20_spill] sm:$0xff] }
 0x107   : > { %v18870_v0 = vld [vmem:[#allocation28_spill] sm:$0xff] }
 0x108   : > { %10366 = vmatpush1.bf16.msra.mxu0 %v18848_v41  ;;  %v18857_v41 = vld [vmem:[#allocation97_spill] sm:$0xff] }
 0x109   : > { %10368 = vmatprep.subr.bf16.mxu0 %v18849_v40  ;;  %v18859_v40 = vld [vmem:[#allocation82_spill] sm:$0xff] }
 0x10c   : > { %10370 = vmatpush1.bf16.msra.mxu0 %v18850_v5  ;;  %v18861_v5 = vld [vmem:[#allocation109_spill] sm:$0xff] }
 0x10d   : > { %10372 = vmatprep.subr.bf16.mxu0 %v18852_v50  ;;  %v18863_v50 = vld [vmem:[#allocation111_spill] sm:$0xff] }
 0x110   : > { %10374 = vmatpush1.bf16.msra.mxu0 %v18855_v30  ;;  %v18865_v30 = vld [vmem:[#allocation113_spill] sm:$0xff] }
 0x111   : > { %10376 = vmatprep.subr.bf16.mxu0 %v10375_v37  ;;  %v18867_v37 = vld [vmem:[#allocation115_spill] sm:$0xff] }
 0x114   : > { %10378 = vmatpush1.bf16.msra.mxu0 %v10377_v8  ;;  %v18866_v8 = vld [vmem:[#allocation21_spill] sm:$0xff] }
 0x115   : > { %10380 = vmatprep.subr.bf16.mxu0 %v18856_v63  ;;  %v18868_v63 = vld [vmem:[#allocation23_spill] sm:$0xff] }
 0x117   : > { %1369 = vmatmul.mubr.f32.vlgmr.msra.gmra.mrb[0].mxu0 %v18857_v41 }
 0x118   : > { %10382 = vmatpush1.bf16.msra.mxu0 %v18858_v20  ;;  %1376 = vmatprep.mubr.f32.mxu0 %v18859_v40  ;;  %v18869_v20 = vld [vmem:[#allocation117_spill] sm:$0xff] }
 0x119   : > { %10384 = vmatprep.subr.bf16.mxu0 %v18860_v60  ;;  %v18871_v60 = vand.u32 4294901760, %v18815_v2  ;;  %v18881_v2 = vld [vmem:[#allocation60_spill] sm:$0xff] }
 0x11b   : > { %1379 = vmatmul.mubr.f32.gmra.mrb[2].mxu0 %v18861_v5 }
 0x11c   : > { %10386 = vmatpush1.bf16.msra.mxu0 %v18862_v44  ;;  %1386 = vmatprep.mubr.f32.mxu0 %v18863_v50  ;;  %v18872_v44 = vld [vmem:[#allocation29_spill] sm:$0xff] }
 0x11d   : > { %10388 = vmatprep.subr.bf16.mxu0 %v18864_v16  ;;  %v18874_v16 = vld [vmem:[#allocation38_spill] sm:$0xff] }
 0x11f   : > { %1389 = vmatmul.mubr.f32.gmra.mrb[4].mxu0 %v18865_v30 }
 0x120   : > { %10390 = vmatpush1.bf16.msra.mxu0 %v18866_v8  ;;  %1396 = vmatprep.mubr.f32.mxu0 %v18867_v37  ;;  %v18876_v8 = vld [vmem:[#allocation45_spill] sm:$0xff] }
 0x121   : > { %10392 = vmatprep.subr.bf16.mxu0 %v18868_v63  ;;  %v18878_v63 = vld [vmem:[#allocation51_spill] sm:$0xff] }
 0x123   : > { %1399 = vmatmul.mubr.f32.gmra.mrb[6].mxu0 %v18869_v20 }
 0x124   : > { %10394 = vmatpush1.bf16.msra.mxu0 %v18870_v0  ;;  %1536 = vmatprep.mubr.f32.mxu0 %v18871_v60  ;;  %v18880_v0 = vld [vmem:[#allocation57_spill] sm:$0xff]  ;;  %v18882_v60 = vld [vmem:[#allocation63_spill] sm:$0xff] }
 0x125   : > { %10396 = vmatprep.subr.bf16.mxu0 %v18872_v44  ;;  %v18883_v44 = vld [vmem:[#allocation66_spill] sm:$0xff] }
 0x128   : > { %10398 = vmatpush1.bf16.msra.mxu0 %v18873_v57  ;;  %v18884_v57 = vld [vmem:[#allocation69_spill] sm:$0xff] }
 0x129   : > { %10400 = vmatprep.subr.bf16.mxu0 %v18874_v16  ;;  %v18885_v16 = vld [vmem:[#allocation72_spill] sm:$0xff] }
 0x12c   : > { %10402 = vmatpush1.bf16.msra.mxu0 %v18875_v23  ;;  %v18886_v23 = vld [vmem:[#allocation75_spill] sm:$0xff] }
 0x12d   : > { %10404 = vmatprep.subr.bf16.mxu0 %v18876_v8  ;;  %v18887_v8 = vld [vmem:[#allocation78_spill] sm:$0xff] }
 0x130   : > { %10406 = vmatpush1.bf16.msra.mxu0 %v18877_v33  ;;  %v18888_v33 = vld [vmem:[#allocation81_spill] sm:$0xff] }
 0x131   : > { %10408 = vmatprep.subr.bf16.mxu0 %v18878_v63  ;;  %v18889_v63 = vld [vmem:[#allocation84_spill] sm:$0xff] }
 0x134   : > { %10410 = vmatpush1.bf16.msra.mxu0 %v18879_v42  ;;  %v18890_v42 = vld [vmem:[#allocation86_spill] sm:$0xff] }
 0x135   : > { %10412 = vmatprep.subr.bf16.mxu0 %v18880_v0  ;;  %v18891_v0 = vld [vmem:[#allocation91_spill] sm:$0xff] }
 0x138   : > { %10414 = vmatpush1.bf16.msra.mxu0 %v18881_v2  ;;  %v18892_v2 = vld [vmem:[#allocation94_spill] sm:$0xff] }
 0x139   : > { %10416 = vmatprep.subr.bf16.mxu0 %v18882_v60  ;;  %v18893_v60 = vld [vmem:[#allocation99_spill] sm:$0xff] }
 0x13c   : > { %10418 = vmatpush1.bf16.msra.mxu0 %v18883_v44  ;;  %v18894_v44 = vld [vmem:[#allocation102_spill] sm:$0xff] }
 0x13d   : > { %10420 = vmatprep.subr.bf16.mxu0 %v18884_v57 }
 0x140   : > { %10422 = vmatpush1.bf16.msra.mxu0 %v18885_v16  ;;  %v18895_v16 = vand.u32 4294901760, %v18798_v14  ;;  %v18903_v14 = vand.u32 4294901760, %v18759_v1  ;;  %v18912_v1 = vand.u32 4294901760, %v18809_v28  ;;  %v18919_v28 = vand.u32 4294901760, %v18816_v7 }
 0x141   : > { %10424 = vmatprep.subr.bf16.mxu0 %v18886_v23  ;;  %v18896_v23 = vand.u32 4294901760, %v18799_v61 }
 0x143   : > { %v10443_v57 = vpack.c.bf16 %v18896_v23, %v18895_v16  ;;  %v18904_v23 = vand.u32 4294901760, %v12799_v54  ;;  %v18911_v54 = vand.u32 4294901760, %v18863_v50  ;;  %v18915_v16 = vand.u32 4294901760, %v18813_v10  ;;  %v13674_v50 = vld [vmem:[#allocation5 + $0x18] sm:$0xff]  ;;  %v13676_v10 = vld [vmem:[#allocation5] sm:$0xff] }
 0x144   : > { %10426 = vmatpush1.bf16.msra.mxu0 %v18887_v8  ;;  %v18897_v8 = vld [vmem:[#allocation105_spill] sm:$0xff] }
 0x145   : > { %10428 = vmatprep.subr.bf16.mxu0 %v18888_v33  ;;  %v18898_v33 = vand.u32 4294901760, %v12789_v47  ;;  %v10449_v61 = vpack.c.bf16 %v18904_v23, %v18903_v14  ;;  %v18905_v47 = vand.u32 4294901760, %v18859_v40  ;;  %v17899_v14 = vand.u32 4294901760, %v13676_v10  ;;  %v13688_v23 = vld [vmem:[#allocation5 + $0x28] sm:$0xff] }
 0x148   : > { %10430 = vmatpush1.bf16.msra.mxu0 %v18889_v63  ;;  %v18899_v63 = vand.u32 4294901760, %v12791_v48  ;;  %v18906_v48 = vand.u32 4294901760, %v18760_v22  ;;  %v18913_v22 = vand.u32 4294901760, %v18808_v58  ;;  %v18920_v58 = vand.u32 4294901760, %v18869_v20  ;;  %v13685_v20 = vld [vmem:[#allocation5 + $0x10] sm:$0xff] }
 0x149   : > { %10432 = vmatprep.subr.bf16.mxu0 %v18890_v42 }
 0x14a   : > { %v10445_v42 = vpack.c.bf16 %v18899_v63, %v18898_v33 }
 0x14c   : > { %10434 = vmatpush1.bf16.msra.mxu0 %v18891_v0  ;;  %v18900_v0 = vand.u32 4294901760, %v12793_v49  ;;  %v18907_v49 = vand.u32 4294901760, %v18761_v17  ;;  %v18914_v17 = vand.u32 4294901760, %v18865_v30  ;;  %v18922_v30 = vld [vmem:[#allocation39_spill] sm:$0xff] }
 0x14d   : > { %10436 = vmatprep.subr.bf16.mxu0 %v18892_v2  ;;  %v18901_v2 = vand.u32 4294901760, %v12795_v52  ;;  %v18908_v52 = vand.u32 4294901760, %v18861_v5  ;;  %v13672_v5 = vld [vmem:[#allocation5 + $0x8] sm:$0xff] }
 0x14e   : > { %v10451_v33 = vpack.c.bf16 %v18907_v49, %v18906_v48  ;;  %v17905_v7 = vand.u32 4294901760, %v13672_v5 }
 0x150   : > { %10438 = vmatpush1.bf16.msra.mxu0 %v18893_v60  ;;  %v10447_v60 = vpack.c.bf16 %v18901_v2, %v18900_v0 }
 0x151   : > { %10440 = vmatprep.subr.bf16.mxu0 %v18894_v44  ;;  %v18902_v44 = vand.u32 4294901760, %v18857_v41  ;;  %v18918_v41 = vand.u32 4294901760, %v18817_v55  ;;  %v17904_v55 = vand.u32 4294901760, %v13674_v50 }
 0x153   : > { %v10459_v40 = vpack.c.bf16 %v18919_v28, %v18918_v41  ;;  %v13733_v28 = vld [vmem:[#allocation5 + $0x68] sm:$0xff] }
 0x154   : > { %10442 = vmatpush1.bf16.msra.mxu0 %v18897_v8 }
 0x155   : > { %10444 = vmatprep.subr.bf16.mxu0 %v10443_v57  ;;  %v10455_v57 = vpack.c.bf16 %v18913_v22, %v18912_v1 }
 0x157   : > { %1540 = vmatmul.mubr.f32.vlgmr.msra.gmra.mrb[0].mxu0 %v18902_v44  ;;  %v18910_v44 = vand.u32 4294901760, %v12813_v4  ;;  %v18917_v4 = vand.u32 4294901760, %v18867_v37  ;;  %v18923_v37 = vand.u32 4294901760, %v18922_v30 }
 0x158   : > { %10446 = vmatpush1.bf16.msra.mxu0 %v10445_v42  ;;  %1548 = vmatprep.mubr.f32.mxu0 %v18905_v47  ;;  %v18909_v42 = vand.u32 4294901760, %v12808_v62  ;;  %v18916_v62 = vand.u32 4294901760, %v18812_v31  ;;  %v18921_v31 = vand.u32 4294901760, %v18820_v35  ;;  %v18925_v35 = vand.u32 4294901760, %v18823_v36  ;;  %v18926_v47 = vld [vmem:[#allocation41_spill] sm:$0xff] }
 0x159   : > { %10448 = vmatprep.subr.bf16.mxu0 %v10447_v60  ;;  %v18924_v60 = vld [vmem:[#allocation88_spill] sm:$0xff]  ;;  %v18927_v48 = vand.u32 4294901760, %v18926_v47  ;;  %v13709_v36 = vpack.c.bf16 %v17904_v55, %v17905_v7 }
 0x15a   : > { %v10453_v0 = vpack.c.bf16 %v18910_v44, %v18909_v42  ;;  %v10457_v63 = vpack.c.bf16 %v18916_v62, %v18915_v16  ;;  %v10461_v2 = vpack.c.bf16 %v18923_v37, %v18921_v31  ;;  %v13699_v44 = vld [vmem:[#allocation5 + $0x20] sm:$0xff]  ;;  %v13718_v62 = vld [vmem:[#allocation5 + $0x50] sm:$0xff]  ;;  %v18932_v31 = vand.u32 4294901760, %v18825_v59 }
 0x15b   : > { %1552 = vmatmul.mubr.f32.gmra.mrb[2].mxu0 %v18908_v52  ;;  %v10463_v49 = vpack.c.bf16 %v18927_v48, %v18925_v35  ;;  %v17893_v52 = vand.u32 4294901760, %v13688_v23  ;;  %18928 = vst [vmem:[#allocation25_spill] sm:$0xff] %v13709_v36  ;;  %v17889_v1 = vand.u32 4294901760, %v13699_v44  ;;  %v13716_v16 = vld [vmem:[#allocation5 + $0x40] sm:$0xff]  ;;  %10572 = vmatprep.subr.bf16.mxu1 %v13709_v36  ;;  %v18933_v37 = vand.u32 4294901760, %v18829_v24 }
 0x15c   : > { %10450 = vmatpush1.bf16.msra.mxu0 %v10449_v61  ;;  %1560 = vmatprep.mubr.f32.mxu0 %v18911_v54  ;;  %v13690_v61 = vld [vmem:[#allocation5 + $0x38] sm:$0xff]  ;;  %v13703_v54 = vld [vmem:[#allocation5 + $0x48] sm:$0xff]  ;;  %v18934_v35 = vand.u32 4294901760, %v18828_v45  ;;  %v17894_v59 = vand.u32 4294901760, %v13718_v62  ;;  %v17897_v24 = vand.u32 4294901760, %v13733_v28 }
 0x15d   : > { %10452 = vmatprep.subr.bf16.mxu0 %v10451_v33  ;;  %v17898_v33 = vand.u32 4294901760, %v13685_v20  ;;  %v17892_v42 = vand.u32 4294901760, %v13690_v61 }
 0x15e   : > { %v10467_v47 = vpack.c.bf16 %v18934_v35, %v18933_v37  ;;  %v13770_v37 = vld [vmem:[#allocation5 + $0x98] sm:$0xff]  ;;  %v18937_v35 = vand.u32 4294901760, %v18832_v9 }
 0x15f   : > { %1564 = vmatmul.mubr.f32.gmra.mrb[4].mxu0 %v18914_v17  ;;  %v17891_v17 = vand.u32 4294901760, %v13703_v54 }
 0x160   : > { %10454 = vmatpush1.bf16.msra.mxu0 %v10453_v0  ;;  %1572 = vmatprep.mubr.f32.mxu0 %v18917_v4  ;;  %v13701_v0 = vld [vmem:[#allocation5 + $0x30] sm:$0xff]  ;;  %v13730_v4 = vpack.c.bf16 %v17892_v42, %v17893_v52 }
 0x161   : > { %10456 = vmatprep.subr.bf16.mxu0 %v10455_v57  ;;  %v17888_v22 = vand.u32 4294901760, %v13701_v0  ;;  %v13713_v57 = vld [vmem:[#allocation5 + $0x58] sm:$0xff] }
 0x162   : > { %18930 = vst [vmem:[#allocation27_spill] sm:$0xff] %v13730_v4  ;;  %v17890_v41 = vand.u32 4294901760, %v13713_v57 }
 0x163   : > { %1576 = vmatmul.mubr.f32.gmra.mrb[6].mxu0 %v18920_v58  ;;  %v18931_v58 = vand.u32 4294901760, %v18826_v21  ;;  %v17895_v21 = vand.u32 4294901760, %v13716_v16 }
 0x164   : > { %10458 = vmatpush1.bf16.msra.mxu0 %v10457_v63  ;;  %1839 = vmatprep.mubr.f32.mxu0 %v18924_v60  ;;  %v13724_v63 = vpack.c.bf16 %v17898_v33, %v17899_v14  ;;  %v13760_v45 = vpack.c.bf16 %v17890_v41, %v17891_v17  ;;  %v18939_v41 = vand.u32 4294901760, %v18835_v43  ;;  %v18940_v17 = vand.u32 4294901760, %v18834_v39 }
 0x165   : > { %10460 = vmatprep.subr.bf16.mxu0 %v10459_v40  ;;  %v13735_v40 = vld [vmem:[#allocation5 + $0x78] sm:$0xff]  ;;  %v10465_v30 = vpack.c.bf16 %v18932_v31, %v18931_v58  ;;  %v13766_v58 = vld [vmem:[#allocation5 + $0x70] sm:$0xff]  ;;  %v13768_v31 = vld [vmem:[#allocation5 + $0x88] sm:$0xff]  ;;  %v13785_v52 = vpack.c.bf16 %v17894_v59, %v17895_v21  ;;  %v17902_v39 = vand.u32 4294901760, %v13770_v37  ;;  %v18948_v59 = vand.u32 4294901760, %v18777_v25 }
 0x166   : > { %18929 = vst [vmem:[#allocation26_spill] sm:$0xff] %v13724_v63  ;;  %10574 = vmatpush1.bf16.msra.mxu1 %v13724_v63  ;;  %18936 = vst [vmem:[#allocation58_spill] sm:$0xff] %v13760_v45  ;;  %v17896_v48 = vand.u32 4294901760, %v13735_v40  ;;  %v10471_v42 = vpack.c.bf16 %v18940_v17, %v18939_v41  ;;  %v17900_v9 = vand.u32 4294901760, %v13766_v58  ;;  %v13800_v17 = vld [vmem:[#allocation5 + $0x90] sm:$0xff]  ;;  %v13802_v41 = vld [vmem:[#allocation5 + $0xa8] sm:$0xff] }
 0x167   : > { %10576 = vmatprep.subr.bf16.mxu1 %v13730_v4  ;;  %18941 = vst [vmem:[#allocation59_spill] sm:$0xff] %v13785_v52  ;;  %18944 = vst [vmem:[#allocation64_spill] sm:$0xff] %v13800_v17  ;;  %v17909_v25 = vand.u32 4294901760, %v13802_v41 }
 0x168   : > { %10462 = vmatpush1.bf16.msra.mxu0 %v10461_v2  ;;  %v13751_v2 = vpack.c.bf16 %v17888_v22, %v17889_v1  ;;  %v18938_v22 = vand.u32 4294901760, %v18831_v27  ;;  %v13794_v43 = vpack.c.bf16 %v17896_v48, %v17897_v24  ;;  %v17903_v27 = vand.u32 4294901760, %v13768_v31  ;;  %18945 = vst [vmem:[#allocation65_spill] sm:$0xff] %v13802_v41 }
 0x169   : > { %10464 = vmatprep.subr.bf16.mxu0 %v10463_v49  ;;  %v13764_v49 = vld [vmem:[#allocation5 + $0x60] sm:$0xff]  ;;  %v18949_v48 = vand.u32 4294901760, %v18778_v51  ;;  %v18950_v24 = vand.u32 4294901760, %v18779_v26 }
 0x16a   : > { %18935 = vst [vmem:[#allocation56_spill] sm:$0xff] %v13751_v2  ;;  %v10469_v1 = vpack.c.bf16 %v18938_v22, %v18937_v35  ;;  %10578 = vmatpush1.bf16.msra.mxu1 %v13751_v2  ;;  %18942 = vst [vmem:[#allocation61_spill] sm:$0xff] %v13794_v43  ;;  %v13798_v22 = vld [vmem:[#allocation5 + $0x80] sm:$0xff]  ;;  %v18947_v35 = vand.u32 4294901760, %v18837_v11  ;;  %v17906_v11 = vand.u32 4294901760, %v13800_v17  ;;  %v13828_v51 = vpack.c.bf16 %v17902_v39, %v17903_v27 }
 0x16b   : > { %10580 = vmatprep.subr.bf16.mxu1 %v13760_v45  ;;  %18943 = vst [vmem:[#allocation62_spill] sm:$0xff] %v13798_v22  ;;  %v10475_v33 = vpack.c.bf16 %v18950_v24, %v18949_v48  ;;  %v13836_v24 = vld [vmem:[#allocation5 + $0xc8] sm:$0xff]  ;;  %v13838_v48 = vld [vmem:[#allocation5 + $0xd8] sm:$0xff]  ;;  %v18959_v39 = vand.u32 4294901760, %v18782_v3  ;;  %v18960_v27 = vand.u32 4294901760, %v18783_v19 }
 0x16c   : > { %10466 = vmatpush1.bf16.msra.mxu0 %v10465_v30  ;;  %v17901_v30 = vand.u32 4294901760, %v13764_v49  ;;  %v10473_v21 = vpack.c.bf16 %v18948_v59, %v18947_v35  ;;  %18952 = vst [vmem:[#allocation70_spill] sm:$0xff] %v13828_v51  ;;  %v13834_v59 = vld [vmem:[#allocation5 + $0xb0] sm:$0xff]  ;;  %18955 = vst [vmem:[#allocation74_spill] sm:$0xff] %v13836_v24  ;;  %v18957_v35 = vand.u32 4294901760, %v18780_v29 }
 0x16d   : > { %10468 = vmatprep.subr.bf16.mxu0 %v10467_v47  ;;  %v13804_v47 = vld [vmem:[#allocation5 + $0xb8] sm:$0xff]  ;;  %18954 = vst [vmem:[#allocation73_spill] sm:$0xff] %v13834_v59  ;;  %18956 = vst [vmem:[#allocation76_spill] sm:$0xff] %v13838_v48  ;;  %v10479_v55 = vpack.c.bf16 %v18960_v27, %v18959_v39  ;;  %v17910_v29 = vand.u32 4294901760, %v13834_v59  ;;  %v13870_v27 = vld [vmem:[#allocation5 + $0xe8] sm:$0xff] }
 0x16e   : > { %18946 = vst [vmem:[#allocation67_spill] sm:$0xff] %v13804_v47  ;;  %10582 = vmatpush1.bf16.msra.mxu1 %v13785_v52  ;;  %v13819_v14 = vpack.c.bf16 %v17900_v9, %v17901_v30  ;;  %v17908_v26 = vand.u32 4294901760, %v13804_v47  ;;  %v18958_v9 = vand.u32 4294901760, %v18781_v6  ;;  %18965 = vst [vmem:[#allocation33_spill] sm:$0xff] %v13870_v27  ;;  %v13872_v39 = vld [vmem:[#allocation5 + $0xf8] sm:$0xff] }
 0x16f   : > { %10584 = vmatprep.subr.bf16.mxu1 %v13794_v43  ;;  %18966 = vst [vmem:[#allocation32_spill] sm:$0xff] %v13872_v39 }
 0x170   : > { %10470 = vmatpush1.bf16.msra.mxu0 %v10469_v1  ;;  %18951 = vst [vmem:[#allocation68_spill] sm:$0xff] %v13819_v14  ;;  %v17907_v1 = vand.u32 4294901760, %v13798_v22  ;;  %v10477_v30 = vpack.c.bf16 %v18958_v9, %v18957_v35  ;;  %v13862_v6 = vpack.c.bf16 %v17908_v26, %v17909_v25  ;;  %v13868_v9 = vld [vmem:[#allocation5 + $0xd0] sm:$0xff]  ;;  %v18967_v35 = vand.u32 4294901760, %v18784_v46 }
 0x171   : > { %10472 = vmatprep.subr.bf16.mxu0 %v10471_v42  ;;  %v13832_v42 = vld [vmem:[#allocation5 + $0xa0] sm:$0xff]  ;;  %18964 = vst [vmem:[#allocation30_spill] sm:$0xff] %v13868_v9  ;;  %v18969_v26 = vand.u32 4294901760, %v18786_v53  ;;  %v18970_v25 = vand.u32 4294901760, %v18787_v38  ;;  %v18973_v53 = vand.u32 4294901760, %v13838_v48  ;;  %v18980_v46 = vand.u32 4294901760, %v18789_v15 }
 0x172   : > { %18953 = vst [vmem:[#allocation71_spill] sm:$0xff] %v13832_v42  ;;  %10586 = vmatpush1.bf16.msra.mxu1 %v13819_v14  ;;  %v13853_v7 = vpack.c.bf16 %v17906_v11, %v17907_v1  ;;  %18962 = vst [vmem:[#allocation24_spill] sm:$0xff] %v13862_v6  ;;  %v18968_v11 = vand.u32 4294901760, %v18785_v12  ;;  %v18972_v12 = vand.u32 4294901760, %v13836_v24  ;;  %v18984_v48 = vand.u32 4294901760, %v13868_v9 }
 0x173   : > { %10588 = vmatprep.subr.bf16.mxu1 %v13828_v51  ;;  %v10483_v19 = vpack.c.bf16 %v18970_v25, %v18969_v26  ;;  %v13900_v25 = vld [vmem:[#allocation5 + $0xe0] sm:$0xff]  ;;  %v13902_v26 = vld [vmem:[#allocation5 + $0xf0] sm:$0xff]  ;;  %v18986_v15 = vand.u32 4294901760, %v13870_v27 }
 0x174   : > { %10474 = vmatpush1.bf16.msra.mxu0 %v10473_v21  ;;  %18961 = vst [vmem:[#allocation22_spill] sm:$0xff] %v13853_v7  ;;  %v17911_v21 = vand.u32 4294901760, %v13832_v42  ;;  %v10481_v1 = vpack.c.bf16 %v18968_v11, %v18967_v35  ;;  %v13896_v38 = vpack.c.bf16 %v18973_v53, %v18972_v12  ;;  %18975 = vst [vmem:[#allocation34_spill] sm:$0xff] %v13900_v25  ;;  %v13904_v35 = vld [vmem:[#allocation5 + $0x108] sm:$0xff]  ;;  %v18981_v12 = vand.u32 4294901760, %v18791_v32 }
 0x175   : > { %10476 = vmatprep.subr.bf16.mxu0 %v10475_v33  ;;  %v13866_v33 = vld [vmem:[#allocation5 + $0xc0] sm:$0xff]  ;;  %18976 = vst [vmem:[#allocation37_spill] sm:$0xff] %v13902_v26  ;;  %18977 = vst [vmem:[#allocation40_spill] sm:$0xff] %v13904_v35  ;;  %v18982_v53 = vand.u32 4294901760, %v18731_v34  ;;  %v18987_v32 = vand.u32 4294901760, %v13872_v39  ;;  %v19000_v9 = vand.u32 4294901760, %v13900_v25 }
 0x176   : > { %18963 = vst [vmem:[#allocation31_spill] sm:$0xff] %v13866_v33  ;;  %10590 = vmatpush1.bf16.msra.mxu1 %v13853_v7  ;;  %v13887_v3 = vpack.c.bf16 %v17910_v29, %v17911_v21  ;;  %18974 = vst [vmem:[#allocation35_spill] sm:$0xff] %v13896_v38  ;;  %v13906_v29 = vld [vmem:[#allocation5 + $0x118] sm:$0xff]  ;;  %v18979_v21 = vand.u32 4294901760, %v18788_v13 }
 0x177   : > { %10592 = vmatprep.subr.bf16.mxu1 %v13862_v6  ;;  %18978 = vst [vmem:[#allocation44_spill] sm:$0xff] %v13906_v29  ;;  %v10487_v11 = vpack.c.bf16 %v18982_v53, %v18981_v12  ;;  %v13930_v34 = vpack.c.bf16 %v18987_v32, %v18986_v15  ;;  %v13940_v12 = vld [vmem:[#allocation5 + $0x138] sm:$0xff]  ;;  %v18993_v53 = vld [vmem:[#allocation79_spill] sm:$0xff]  ;;  %v18997_v15 = vand.u32 4294901760, %v18741_v56  ;;  %v19004_v56 = vand.u32 4294901760, %v13906_v29 }
 0x178   : > { %10478 = vmatpush1.bf16.msra.mxu0 %v10477_v30  ;;  %18971 = vst [vmem:[#allocation96_spill] sm:$0xff] %v13887_v3  ;;  %v10485_v30 = vpack.c.bf16 %v18980_v46, %v18979_v21  ;;  %v13934_v46 = vld [vmem:[#allocation5 + $0x100] sm:$0xff]  ;;  %18992 = vst [vmem:[#allocation53_spill] sm:$0xff] %v13940_v12  ;;  %v18994_v13 = vand.u32 4294901760, %v18993_v53  ;;  %v18998_v32 = vld [vmem:[#allocation83_spill] sm:$0xff] }
 0x179   : > { %10480 = vmatprep.subr.bf16.mxu0 %v10479_v55  ;;  %v18983_v55 = vand.u32 4294901760, %v13866_v33  ;;  %18988 = vst [vmem:[#allocation47_spill] sm:$0xff] %v13930_v34  ;;  %18989 = vst [vmem:[#allocation46_spill] sm:$0xff] %v13934_v46  ;;  %v18999_v21 = vand.u32 4294901760, %v18998_v32  ;;  %v19001_v33 = vand.u32 4294901760, %v13902_v26  ;;  %v19010_v32 = vand.u32 4294901760, %v12958_v18 }
 0x17a   : > { %10594 = vmatpush1.bf16.msra.mxu1 %v13887_v3  ;;  %v19011_v53 = vld [vmem:[#allocation85_spill] sm:$0xff]  ;;  %v19017_v26 = vand.u32 4294901760, %v13934_v46 }
 0x17b   : > { %v13921_v24 = vpack.c.bf16 %v18984_v48, %v18983_v55  ;;  %10596 = vmatprep.subr.bf16.mxu1 %v13896_v38  ;;  %v13936_v48 = vld [vmem:[#allocation5 + $0x110] sm:$0xff]  ;;  %v13938_v55 = vld [vmem:[#allocation5 + $0x128] sm:$0xff]  ;;  %v13955_v59 = vpack.c.bf16 %v19001_v33, %v19000_v9 }
 0x17c   : > { %10482 = vmatpush1.bf16.msra.mxu0 %v10481_v1  ;;  %18990 = vst [vmem:[#allocation50_spill] sm:$0xff] %v13936_v48  ;;  %18991 = vst [vmem:[#allocation49_spill] sm:$0xff] %v13938_v55  ;;  %v18995_v1 = vld [vmem:[#allocation80_spill] sm:$0xff]  ;;  %v13972_v9 = vld [vmem:[#allocation5 + $0x148] sm:$0xff]  ;;  %v19018_v25 = vand.u32 4294901760, %v13936_v48 }
 0x17d   : > { %10484 = vmatprep.subr.bf16.mxu0 %v10483_v19  ;;  %18985 = vst [vmem:[#allocation43_spill] sm:$0xff] %v13921_v24  ;;  %v18996_v27 = vand.u32 4294901760, %v18995_v1  ;;  %v10491_v19 = vpack.c.bf16 %v18999_v21, %v18997_v15  ;;  %19002 = vst [vmem:[#allocation52_spill] sm:$0xff] %v13955_v59  ;;  %v13968_v21 = vld [vmem:[#allocation5 + $0x120] sm:$0xff]  ;;  %v13970_v33 = vld [vmem:[#allocation5 + $0x130] sm:$0xff] }
 0x17e   : > { %10598 = vmatpush1.bf16.msra.mxu1 %v13921_v24  ;;  %19006 = vst [vmem:[#allocation97_spill] sm:$0xff] %v13968_v21  ;;  %19007 = vst [vmem:[#allocation82_spill] sm:$0xff] %v13970_v33  ;;  %v13974_v15 = vld [vmem:[#allocation5 + $0x158] sm:$0xff]  ;;  %v19015_v1 = vld [vmem:[#allocation90_spill] sm:$0xff]  ;;  %v13989_v42 = vpack.c.bf16 %v19018_v25, %v19017_v26  ;;  %v19035_v46 = vand.u32 4294901760, %v13968_v21  ;;  %v19036_v47 = vand.u32 4294901760, %v13970_v33 }
 0x17f   : > { %v10489_v39 = vpack.c.bf16 %v18996_v27, %v18994_v13  ;;  %10600 = vmatprep.subr.bf16.mxu1 %v13930_v34  ;;  %v19003_v27 = vand.u32 4294901760, %v13904_v35  ;;  %19008 = vst [vmem:[#allocation109_spill] sm:$0xff] %v13972_v9  ;;  %19009 = vst [vmem:[#allocation111_spill] sm:$0xff] %v13974_v15  ;;  %v19016_v35 = vand.u32 4294901760, %v19015_v1  ;;  %v14004_v25 = vld [vmem:[#allocation5 + $0x150] sm:$0xff]  ;;  %v14006_v26 = vld [vmem:[#allocation5 + $0x168] sm:$0xff] }
 0x180   : > { %10486 = vmatpush1.bf16.msra.mxu0 %v10485_v30  ;;  %v19012_v30 = vand.u32 4294901760, %v19011_v53  ;;  %19019 = vst [vmem:[#allocation113_spill] sm:$0xff] %v13989_v42  ;;  %19024 = vst [vmem:[#allocation105_spill] sm:$0xff] %v14004_v25  ;;  %v14023_v41 = vpack.c.bf16 %v19036_v47, %v19035_v46  ;;  %v14038_v47 = vld [vmem:[#allocation5 + $0x170] sm:$0xff]  ;;  %v14040_v46 = vld [vmem:[#allocation5 + $0x188] sm:$0xff]  ;;  %v19053_v17 = vand.u32 4294901760, %v14004_v25 }
 0x181   : > { %10488 = vmatprep.subr.bf16.mxu0 %v10487_v11  ;;  %v13964_v11 = vpack.c.bf16 %v19004_v56, %v19003_v27  ;;  %v19013_v27 = vld [vmem:[#allocation87_spill] sm:$0xff]  ;;  %19025 = vst [vmem:[#allocation39_spill] sm:$0xff] %v14006_v26  ;;  %19041 = vst [vmem:[#allocation80_spill] sm:$0xff] %v14038_v47  ;;  %v19086_v25 = vld [vmem:[#allocation29_spill] sm:$0xff] }
 0x182   : > { %v10493_v29 = vpack.c.bf16 %v19012_v30, %v19010_v32  ;;  %v19014_v56 = vand.u32 4294901760, %v19013_v27  ;;  %10602 = vmatpush1.bf16.msra.mxu1 %v13955_v59  ;;  %v19021_v30 = vand.u32 4294901760, %v13940_v12  ;;  %v14002_v32 = vld [vmem:[#allocation5 + $0x140] sm:$0xff]  ;;  %v14008_v27 = vld [vmem:[#allocation5 + $0x178] sm:$0xff]  ;;  %19037 = vst [vmem:[#allocation41_spill] sm:$0xff] %v14023_v41  ;;  %19042 = vst [vmem:[#allocation83_spill] sm:$0xff] %v14040_v46 }
 0x183   : > { %19005 = vst [vmem:[#allocation55_spill] sm:$0xff] %v13964_v11  ;;  %10604 = vmatprep.subr.bf16.mxu1 %v13964_v11  ;;  %19023 = vst [vmem:[#allocation117_spill] sm:$0xff] %v14002_v32  ;;  %v19052_v21 = vand.u32 4294901760, %v14002_v32  ;;  %v19088_v32 = vld [vmem:[#allocation38_spill] sm:$0xff] }
 0x184   : > { %10490 = vmatpush1.bf16.msra.mxu0 %v10489_v39  ;;  %v10495_v13 = vpack.c.bf16 %v19016_v35, %v19014_v56  ;;  %19026 = vst [vmem:[#allocation88_spill] sm:$0xff] %v14008_v27  ;;  %v19027_v56 = vld [vmem:[#allocation92_spill] sm:$0xff]  ;;  %v19029_v39 = vld [vmem:[#allocation93_spill] sm:$0xff]  ;;  %v19033_v35 = vld [vmem:[#allocation98_spill] sm:$0xff] }
 0x185   : > { %10492 = vmatprep.subr.bf16.mxu0 %v10491_v19  ;;  %v19020_v19 = vand.u32 4294901760, %v13938_v55  ;;  %v19028_v18 = vand.u32 4294901760, %v19027_v56  ;;  %v19030_v55 = vand.u32 4294901760, %v19029_v39  ;;  %v19034_v48 = vand.u32 4294901760, %v19033_v35  ;;  %v14036_v35 = vld [vmem:[#allocation5 + $0x160] sm:$0xff] }
 0x186   : > { %10606 = vmatpush1.bf16.msra.mxu1 %v13989_v42  ;;  %v14057_v22 = vpack.c.bf16 %v19053_v17, %v19052_v21  ;;  %v14072_v17 = vld [vmem:[#allocation5 + $0x190] sm:$0xff]  ;;  %v19060_v21 = vld [vmem:[#allocation106_spill] sm:$0xff] }
 0x187   : > { %v13998_v53 = vpack.c.bf16 %v19021_v30, %v19020_v19  ;;  %v10497_v12 = vpack.c.bf16 %v19030_v55, %v19028_v18  ;;  %v19031_v19 = vld [vmem:[#allocation95_spill] sm:$0xff]  ;;  %v19038_v55 = vand.u32 4294901760, %v13972_v9  ;;  %19059 = vst [vmem:[#allocation93_spill] sm:$0xff] %v14072_v17 }
 0x188   : > { %10494 = vmatpush1.bf16.msra.mxu0 %v10493_v29  ;;  %v19032_v30 = vand.u32 4294901760, %v19031_v19  ;;  %v14042_v19 = vld [vmem:[#allocation5 + $0x198] sm:$0xff]  ;;  %19054 = vst [vmem:[#allocation87_spill] sm:$0xff] %v14057_v22 }
 0x189   : > { %19022 = vst [vmem:[#allocation115_spill] sm:$0xff] %v13998_v53  ;;  %10496 = vmatprep.subr.bf16.mxu0 %v10495_v13  ;;  %10608 = vmatprep.subr.bf16.mxu1 %v13998_v53  ;;  %v19039_v13 = vand.u32 4294901760, %v13974_v15  ;;  %19043 = vst [vmem:[#allocation85_spill] sm:$0xff] %v14042_v19  ;;  %v19046_v29 = vld [vmem:[#allocation101_spill] sm:$0xff] }
 0x18a   : > { %v10499_v1 = vpack.c.bf16 %v19034_v48, %v19032_v30  ;;  %v19044_v30 = vld [vmem:[#allocation100_spill] sm:$0xff]  ;;  %v19047_v9 = vand.u32 4294901760, %v19046_v29  ;;  %10610 = vmatpush1.bf16.msra.mxu1 %v14023_v41 }
 0x18b   : > { %v14032_v39 = vpack.c.bf16 %v19039_v13, %v19038_v55  ;;  %v19045_v56 = vand.u32 4294901760, %v19044_v30  ;;  %v19048_v55 = vld [vmem:[#allocation103_spill] sm:$0xff]  ;;  %v19050_v48 = vld [vmem:[#allocation104_spill] sm:$0xff] }
 0x18c   : > { %10498 = vmatpush1.bf16.msra.mxu0 %v10497_v12  ;;  %v19049_v13 = vand.u32 4294901760, %v19048_v55  ;;  %v19051_v33 = vand.u32 4294901760, %v19050_v48  ;;  %v14070_v48 = vld [vmem:[#allocation5 + $0x180] sm:$0xff]  ;;  %v19061_v55 = vand.u32 4294901760, %v19060_v21  ;;  %v19068_v21 = vand.u32 4294901760, %v14042_v19  ;;  %v19081_v19 = vld [vmem:[#allocation21_spill] sm:$0xff] }
 0x18d   : > { %19040 = vst [vmem:[#allocation79_spill] sm:$0xff] %v14032_v39  ;;  %v10501_v15 = vpack.c.bf16 %v19047_v9, %v19045_v56  ;;  %10500 = vmatprep.subr.bf16.mxu0 %v10499_v1  ;;  %10612 = vmatprep.subr.bf16.mxu1 %v14032_v39  ;;  %v19055_v9 = vand.u32 4294901760, %v14006_v26  ;;  %v19056_v1 = vand.u32 4294901760, %v14008_v27  ;;  %19058 = vst [vmem:[#allocation92_spill] sm:$0xff] %v14070_v48  ;;  %v17963_v56 = vand.u32 4294901760, %v14070_v48  ;;  %v19084_v26 = vld [vmem:[#allocation116_spill] sm:$0xff] }
 0x18e   : > { %v10503_v18 = vpack.c.bf16 %v19051_v33, %v19049_v13  ;;  %v19062_v13 = vld [vmem:[#allocation107_spill] sm:$0xff]  ;;  %10614 = vmatpush1.bf16.msra.mxu1 %v14057_v22  ;;  %v17962_v27 = vand.u32 4294901760, %v14072_v17  ;;  %v19090_v17 = vld [vmem:[#allocation45_spill] sm:$0xff] }
 0x18f   : > { %v14066_v29 = vpack.c.bf16 %v19056_v1, %v19055_v9  ;;  %v19063_v30 = vand.u32 4294901760, %v19062_v13  ;;  %v19064_v9 = vand.u32 4294901760, %v14036_v35  ;;  %v19065_v1 = vand.u32 4294901760, %v14038_v47  ;;  %v19072_v13 = vld [vmem:[#allocation89_spill] sm:$0xff]  ;;  %v19092_v48 = vld [vmem:[#allocation51_spill] sm:$0xff] }
 0x190   : > { %10502 = vmatpush1.bf16.msra.mxu0 %v10501_v15  ;;  %v19067_v15 = vand.u32 4294901760, %v14040_v46  ;;  %v19082_v46 = vld [vmem:[#allocation114_spill] sm:$0xff]  ;;  %v19094_v47 = vld [vmem:[#allocation57_spill] sm:$0xff] }
 0x191   : > { %19057 = vst [vmem:[#allocation90_spill] sm:$0xff] %v14066_v29  ;;  %v10505_v12 = vpack.c.bf16 %v19063_v30, %v19061_v55  ;;  %10504 = vmatprep.subr.bf16.mxu0 %v10503_v18  ;;  %v14083_v33 = vpack.c.bf16 %v19065_v1, %v19064_v9  ;;  %10616 = vmatprep.subr.bf16.mxu1 %v14066_v29  ;;  %v19070_v18 = vld [vmem:[#allocation16_spill] sm:$0xff]  ;;  %v19073_v9 = vld [vmem:[#allocation17_spill] sm:$0xff] }
 0x192   : > { %v14092_v30 = vpack.c.bf16 %v19068_v21, %v19067_v15  ;;  %v14100_v55 = vpack.c.bf16 %v17962_v27, %v17963_v56  ;;  %v19074_v1 = vld [vmem:[#allocation77_spill] sm:$0xff]  ;;  %v19075_v15 = vld [vmem:[#allocation18_spill] sm:$0xff]  ;;  %v19077_v21 = vld [vmem:[#allocation19_spill] sm:$0xff] }
 0x193   : > { %19066 = vst [vmem:[#allocation95_spill] sm:$0xff] %v14083_v33  ;;  %10618 = vmatpush1.bf16.msra.mxu1 %v14083_v33  ;;  %v19079_v27 = vld [vmem:[#allocation20_spill] sm:$0xff] }
 0x194   : > { %19069 = vst [vmem:[#allocation98_spill] sm:$0xff] %v14092_v30  ;;  %10506 = vmatpush1.bf16.msra.mxu0 %v10505_v12  ;;  %19071 = vst [vmem:[#allocation100_spill] sm:$0xff] %v14100_v55  ;;  %10620 = vmatprep.subr.bf16.mxu1 %v14092_v30  ;;  %v19076_v12 = vld [vmem:[#allocation108_spill] sm:$0xff] }
 0x195   : > { %10508 = vmatprep.subr.bf16.mxu0 %v19070_v18  ;;  %v19078_v18 = vld [vmem:[#allocation110_spill] sm:$0xff]  ;;  %v19080_v56 = vld [vmem:[#allocation112_spill] sm:$0xff] }
 0x197   : > { %1841 = vmatmul.mubr.f32.vlgmr.msra.gmra.mrb[0].mxu0 %v19072_v13  ;;  %10622 = vmatpush1.bf16.msra.mxu1 %v14100_v55 }
 0x198   : > { %10510 = vmatpush1.bf16.msra.mxu0 %v19073_v9  ;;  %1847 = vmatprep.mubr.f32.mxu0 %v19074_v1  ;;  %v19083_v9 = vld [vmem:[#allocation23_spill] sm:$0xff] }
 0x199   : > { %10512 = vmatprep.subr.bf16.mxu0 %v19075_v15  ;;  %v19085_v15 = vld [vmem:[#allocation28_spill] sm:$0xff] }
 0x19b   : > { %1849 = vmatmul.mubr.f32.gmra.mrb[2].mxu0 %v19076_v12 }
 0x19c   : > { %10514 = vmatpush1.bf16.msra.mxu0 %v19077_v21  ;;  %1855 = vmatprep.mubr.f32.mxu0 %v19078_v18  ;;  %v19087_v21 = vld [vmem:[#allocation36_spill] sm:$0xff] }
 0x19d   : > { %10516 = vmatprep.subr.bf16.mxu0 %v19079_v27  ;;  %v19089_v27 = vld [vmem:[#allocation42_spill] sm:$0xff] }
 0x19f   : > { %1857 = vmatmul.mubr.f32.gmra.mrb[4].mxu0 %v19080_v56 }
 0x1a0   : > { %10518 = vmatpush1.bf16.msra.mxu0 %v19081_v19  ;;  %1863 = vmatprep.mubr.f32.mxu0 %v19082_v46  ;;  %v19091_v19 = vld [vmem:[#allocation48_spill] sm:$0xff] }
 0x1a1   : > { %10520 = vmatprep.subr.bf16.mxu0 %v19083_v9  ;;  %v19093_v9 = vld [vmem:[#allocation54_spill] sm:$0xff] }
 0x1a3   : > { %1865 = vmatmul.mubr.f32.gmra.mrb[6].mxu0 %v19084_v26 }
 0x1a4   : > { %10522 = vmatpush1.bf16.msra.mxu0 %v19085_v15  ;;  %2000 = vmatprep.mubr.f32.mxu0 %v18924_v60  ;;  %v19095_v15 = vld [vmem:[#allocation60_spill] sm:$0xff]  ;;  %v19096_v60 = vld [vmem:[#allocation63_spill] sm:$0xff] }
 0x1a5   : > { %10524 = vmatprep.subr.bf16.mxu0 %v19086_v25  ;;  %v19097_v25 = vld [vmem:[#allocation66_spill] sm:$0xff] }
 0x1a8   : > { %10526 = vmatpush1.bf16.msra.mxu0 %v19087_v21  ;;  %v19098_v21 = vld [vmem:[#allocation69_spill] sm:$0xff] }
 0x1a9   : > { %10528 = vmatprep.subr.bf16.mxu0 %v19088_v32  ;;  %v19099_v32 = vld [vmem:[#allocation72_spill] sm:$0xff] }
 0x1ac   : > { %10530 = vmatpush1.bf16.msra.mxu0 %v19089_v27  ;;  %v19100_v27 = vld [vmem:[#allocation75_spill] sm:$0xff] }
 0x1ad   : > { %10532 = vmatprep.subr.bf16.mxu0 %v19090_v17  ;;  %v19101_v17 = vld [vmem:[#allocation78_spill] sm:$0xff] }
 0x1b0   : > { %10534 = vmatpush1.bf16.msra.mxu0 %v19091_v19  ;;  %v19102_v19 = vld [vmem:[#allocation81_spill] sm:$0xff] }
 0x1b1   : > { %10536 = vmatprep.subr.bf16.mxu0 %v19092_v48  ;;  %v19103_v48 = vld [vmem:[#allocation84_spill] sm:$0xff] }
 0x1b4   : > { %10538 = vmatpush1.bf16.msra.mxu0 %v19093_v9  ;;  %v19104_v9 = vld [vmem:[#allocation86_spill] sm:$0xff] }
 0x1b5   : > { %10540 = vmatprep.subr.bf16.mxu0 %v19094_v47  ;;  %v19105_v47 = vld [vmem:[#allocation91_spill] sm:$0xff] }
 0x1b8   : > { %10542 = vmatpush1.bf16.msra.mxu0 %v19095_v15  ;;  %v19106_v15 = vld [vmem:[#allocation94_spill] sm:$0xff] }
 0x1b9   : > { %10544 = vmatprep.subr.bf16.mxu0 %v19096_v60  ;;  %v19107_v60 = vld [vmem:[#allocation99_spill] sm:$0xff] }
 0x1bc   : > { %10546 = vmatpush1.bf16.msra.mxu0 %v19097_v25  ;;  %v19108_v25 = vld [vmem:[#allocation102_spill] sm:$0xff] }
 0x1bd   : > { %10548 = vmatprep.subr.bf16.mxu0 %v19098_v21 }
 0x1c0   : > { %10550 = vmatpush1.bf16.msra.mxu0 %v19099_v32 }
 0x1c1   : > { %10552 = vmatprep.subr.bf16.mxu0 %v19100_v27  ;;  %v2089_v27 = vld [vmem:[#allocation5 + $0x1c8] sm:$0xff] }
 0x1c4   : > { %10554 = vmatpush1.bf16.msra.mxu0 %v19101_v17  ;;  %v2091_v17 = vld [vmem:[#allocation5 + $0x1d8] sm:$0xff] }
 0x1c5   : > { %10556 = vmatprep.subr.bf16.mxu0 %v19102_v19  ;;  %v2208_v19 = vand.u32 4294901760, %v2089_v27 }
 0x1c8   : > { %10558 = vmatpush1.bf16.msra.mxu0 %v19103_v48  ;;  %v2212_v48 = vand.u32 4294901760, %v2091_v17 }
 0x1c9   : > { %10560 = vmatprep.subr.bf16.mxu0 %v19104_v9  ;;  %v2088_v9 = vld [vmem:[#allocation5 + $0x1c0] sm:$0xff] }
 0x1cc   : > { %10562 = vmatpush1.bf16.msra.mxu0 %v19105_v47  ;;  %v2090_v47 = vld [vmem:[#allocation5 + $0x1d0] sm:$0xff] }
 0x1cd   : > { %10564 = vmatprep.subr.bf16.mxu0 %v19106_v15  ;;  %v2210_v15 = vand.u32 4294901760, %v2088_v9 }
 0x1d0   : > { %10566 = vmatpush1.bf16.msra.mxu0 %v19107_v60  ;;  %v2214_v60 = vand.u32 4294901760, %v2090_v47 }
 0x1d1   : > { %10568 = vmatprep.subr.bf16.mxu0 %v19108_v25  ;;  %v14189_v25 = vpack.c.bf16 %v2212_v48, %v2208_v19 }
 0x1d3   : > { %19111 = vst [vmem:[#allocation104_spill] sm:$0xff] %v14189_v25 }
 0x1d4   : > { %10570 = vmatpush1.bf16.msra.mxu0 %v18897_v8  ;;  %v2085_v8 = vld [vmem:[#allocation5 + $0x1a8] sm:$0xff] }
 0x1d5   : > { %10956 = vmatprep.subr.bf16.mxu0 %v13709_v36 }
 0x1d7   : > { %2002 = vmatmul.mubr.f32.vlgmr.msra.gmra.mrb[0].mxu0 %v19072_v13  ;;  %v2084_v13 = vld [vmem:[#allocation5 + $0x1a0] sm:$0xff] }
 0x1d8   : > { %2008 = vmatprep.mubr.f32.mxu0 %v19074_v1  ;;  %10958 = vmatpush1.bf16.msra.mxu0 %v13724_v63  ;;  %v2086_v1 = vld [vmem:[#allocation5 + $0x1b0] sm:$0xff]  ;;  %v19180_v63 = vld [vmem:[#allocation65_spill] sm:$0xff] }
 0x1d9   : > { %10960 = vmatprep.subr.bf16.mxu0 %v13730_v4  ;;  %v19181_v36 = vand.u32 4294901760, %v19180_v63 }
 0x1db   : > { %2010 = vmatmul.mubr.f32.gmra.mrb[2].mxu0 %v19076_v12  ;;  %v2202_v12 = vand.u32 4294901760, %v2084_v13 }
 0x1dc   : > { %2016 = vmatprep.mubr.f32.mxu0 %v19078_v18  ;;  %10962 = vmatpush1.bf16.msra.mxu0 %v13751_v2  ;;  %v2206_v18 = vand.u32 4294901760, %v2086_v1 }
 0x1dd   : > { %10964 = vmatprep.subr.bf16.mxu0 %v13760_v45 }
 0x1de   : > { %v14183_v32 = vpack.c.bf16 %v2206_v18, %v2202_v12 }
 0x1df   : > { %2018 = vmatmul.mubr.f32.gmra.mrb[4].mxu0 %v19080_v56 }
 0x1e0   : > { %2024 = vmatprep.mubr.f32.mxu0 %v19082_v46  ;;  %10966 = vmatpush1.bf16.msra.mxu0 %v13785_v52  ;;  %v2200_v46 = vand.u32 4294901760, %v2085_v8  ;;  %19110 = vst [vmem:[#allocation103_spill] sm:$0xff] %v14183_v32 }
 0x1e1   : > { %10968 = vmatprep.subr.bf16.mxu0 %v13794_v43 }
 0x1e3   : > { %2026 = vmatmul.mubr.f32.gmra.mrb[6].mxu0 %v19084_v26  ;;  %v14176_v26 = vld [vmem:[#allocation5 + $0x1b8] sm:$0xff] }
 0x1e4   : > { %10970 = vmatpush1.bf16.msra.mxu0 %v13819_v14  ;;  %v17980_v56 = vand.u32 4294901760, %v14176_v26  ;;  %v19169_v14 = vld [vmem:[#allocation62_spill] sm:$0xff] }
 0x1e5   : > { %10972 = vmatprep.subr.bf16.mxu0 %v13828_v51 }
 0x1e6   : > { %v14181_v21 = vpack.c.bf16 %v17980_v56, %v2200_v46  ;;  %v19112_v56 = vand.u32 4294901760, %v13672_v5 }
 0x1e8   : > { %10974 = vmatpush1.bf16.msra.mxu0 %v13853_v7  ;;  %19109 = vst [vmem:[#allocation101_spill] sm:$0xff] %v14181_v21  ;;  %10624 = vmatprep.subr.bf16.mxu1 %v14181_v21 }
 0x1e9   : > { %10976 = vmatprep.subr.bf16.mxu0 %v13862_v6  ;;  %10626 = vmatpush1.bf16.msra.mxu1 %v14183_v32 }
 0x1ea   : > { %10628 = vmatprep.subr.bf16.mxu1 %v14189_v25 }
 0x1ec   : > { %10978 = vmatpush1.bf16.msra.mxu0 %v13887_v3 }
 0x1ed   : > { %10980 = vmatprep.subr.bf16.mxu0 %v13896_v38 }
 0x1f0   : > { %10982 = vmatpush1.bf16.msra.mxu0 %v13921_v24  ;;  %v19145_v24 = vand.u32 4294901760, %v13733_v28 }
 0x1f1   : > { %10984 = vmatprep.subr.bf16.mxu0 %v13930_v34 }
 0x1f4   : > { %10986 = vmatpush1.bf16.msra.mxu0 %v13955_v59 }
 0x1f5   : > { %10988 = vmatprep.subr.bf16.mxu0 %v13964_v11 }
 0x1f8   : > { %10990 = vmatpush1.bf16.msra.mxu0 %v13989_v42 }
 0x1f9   : > { %10992 = vmatprep.subr.bf16.mxu0 %v13998_v53  ;;  %v14206_v53 = vld [vmem:[#allocation5 + $0x1f0] sm:$0xff] }
 0x1fc   : > { %10994 = vmatpush1.bf16.msra.mxu0 %v14023_v41  ;;  %v14204_v41 = vld [vmem:[#allocation5 + $0x1e0] sm:$0xff] }
 0x1fd   : > { %10996 = vmatprep.subr.bf16.mxu0 %v14032_v39 }
 0x200   : > { %10998 = vmatpush1.bf16.msra.mxu0 %v14057_v22  ;;  %v2095_v22 = vld [vmem:[#allocation5 + $0x1f8] sm:$0xff] }
 0x201   : > { %11000 = vmatprep.subr.bf16.mxu0 %v14066_v29  ;;  %v14201_v29 = vpack.c.bf16 %v2214_v60, %v2210_v15 }
 0x203   : > { %19114 = vst [vmem:[#allocation106_spill] sm:$0xff] %v14201_v29  ;;  %10630 = vmatpush1.bf16.msra.mxu1 %v14201_v29 }
 0x204   : > { %11002 = vmatpush1.bf16.msra.mxu0 %v14083_v33 }
 0x205   : > { %11004 = vmatprep.subr.bf16.mxu0 %v14092_v30  ;;  %v19113_v30 = vand.u32 4294901760, %v13674_v50 }
 0x207   : > { %v14199_v33 = vsub.f32 %v13674_v50, %v19113_v30  ;;  %v18016_v50 = vand.u32 4294901760, %v14204_v41  ;;  %v18015_v30 = vand.u32 4294901760, %v14206_v53 }
 0x208   : > { %11006 = vmatpush1.bf16.msra.mxu0 %v14100_v55  ;;  %v14194_v55 = vsub.f32 %v13672_v5, %v19112_v56 }
 0x209   : > { %11008 = vmatprep.subr.bf16.mxu0 %v14181_v21  ;;  %v2093_v21 = vld [vmem:[#allocation5 + $0x1e8] sm:$0xff]  ;;  %v18014_v56 = vand.u32 4294901760, %v14199_v33 }
 0x20a   : > { %v2216_v39 = vand.u32 4294901760, %v2093_v21  ;;  %v18013_v5 = vand.u32 4294901760, %v14194_v55 }
 0x20b   : > { %v2304_v59 = vsub.f32 %v14199_v33, %v18014_v56  ;;  %v14237_v56 = vsub.f32 %v2085_v8, %v2200_v46 }
 0x20c   : > { %11010 = vmatpush1.bf16.msra.mxu0 %v14183_v32  ;;  %v2220_v32 = vand.u32 4294901760, %v2095_v22  ;;  %v2292_v11 = vsub.f32 %v14194_v55, %v18013_v5 }
 0x20d   : > { %11012 = vmatprep.subr.bf16.mxu0 %v14189_v25  ;;  %v14227_v25 = vpack.c.bf16 %v18015_v30, %v18016_v50  ;;  %19118 = vst [vmem:[#allocation17_spill] sm:$0xff] %v14237_v56  ;;  %v14239_v30 = vsub.f32 %v2084_v13, %v2202_v12  ;;  %v14241_v50 = vsub.f32 %v2086_v1, %v2206_v18 }
 0x20e   : > { %v14215_v42 = vpack.c.bf16 %v2220_v32, %v2216_v39  ;;  %v2293_v34 = vand.u32 4294901760, %v2292_v11  ;;  %v14258_v13 = vsub.f32 %v2090_v47, %v2214_v60 }
 0x20f   : > { %19116 = vst [vmem:[#allocation16_spill] sm:$0xff] %v14227_v25  ;;  %19119 = vst [vmem:[#allocation77_spill] sm:$0xff] %v14239_v30  ;;  %v18022_v11 = vand.u32 4294901760, %v14241_v50 }
 0x210   : > { %11014 = vmatpush1.bf16.msra.mxu0 %v14201_v29  ;;  %19115 = vst [vmem:[#allocation107_spill] sm:$0xff] %v14215_v42  ;;  %10632 = vmatprep.subr.bf16.mxu1 %v14215_v42  ;;  %v2305_v29 = vand.u32 4294901760, %v2304_v59  ;;  %19120 = vst [vmem:[#allocation18_spill] sm:$0xff] %v14241_v50  ;;  %v18028_v59 = vand.u32 4294901760, %v14239_v30 }
 0x211   : > { %11016 = vmatprep.subr.bf16.mxu0 %v14215_v42  ;;  %10634 = vmatpush1.bf16.msra.mxu1 %v14227_v25  ;;  %v14245_v42 = vsub.f32 %v2089_v27, %v2208_v19  ;;  %v2622_v8 = vsub.f32 %v14241_v50, %v18022_v11  ;;  %19124 = vst [vmem:[#allocation20_spill] sm:$0xff] %v14258_v13  ;;  %v18025_v19 = vand.u32 4294901760, %v14258_v13 }
 0x212   : > { %v14233_v5 = vpack.c.bf16 %v2305_v29, %v2293_v34  ;;  %v2610_v34 = vsub.f32 %v14239_v30, %v18028_v59  ;;  %v14250_v29 = vsub.f32 %v2091_v17, %v2212_v48  ;;  %v14266_v48 = vsub.f32 %v2093_v21, %v2216_v39 }
 0x213   : > { %19121 = vst [vmem:[#allocation108_spill] sm:$0xff] %v14245_v42  ;;  %v18021_v46 = vand.u32 4294901760, %v14245_v42  ;;  %v2623_v27 = vand.u32 4294901760, %v2622_v8  ;;  %v2646_v8 = vsub.f32 %v14258_v13, %v18025_v19 }
 0x214   : > { %11018 = vmatpush1.bf16.msra.mxu0 %v14227_v25  ;;  %19117 = vst [vmem:[#allocation89_spill] sm:$0xff] %v14233_v5  ;;  %10636 = vmatprep.subr.bf16.mxu1 %v14233_v5  ;;  %19122 = vst [vmem:[#allocation19_spill] sm:$0xff] %v14250_v29  ;;  %v14252_v25 = vsub.f32 %v2088_v9, %v2210_v15  ;;  %v2611_v1 = vand.u32 4294901760, %v2610_v34  ;;  %v18023_v12 = vand.u32 4294901760, %v14250_v29  ;;  %v18026_v39 = vand.u32 4294901760, %v14266_v48 }
 0x215   : > { %11020 = vmatprep.subr.bf16.mxu0 %v14233_v5  ;;  %v2628_v17 = vsub.f32 %v14245_v42, %v18021_v46  ;;  %19125 = vst [vmem:[#allocation112_spill] sm:$0xff] %v14266_v48  ;;  %v14274_v15 = vsub.f32 %v2095_v22, %v2220_v32 }
 0x216   : > { %19123 = vst [vmem:[#allocation110_spill] sm:$0xff] %v14252_v25  ;;  %v18024_v18 = vand.u32 4294901760, %v14252_v25  ;;  %v2640_v9 = vsub.f32 %v14250_v29, %v18023_v12  ;;  %v14276_v60 = vpack.c.bf16 %v2623_v27, %v2611_v1  ;;  %v2647_v12 = vand.u32 4294901760, %v2646_v8 }
 0x217   : > { %19126 = vst [vmem:[#allocation21_spill] sm:$0xff] %v14274_v15  ;;  %v2629_v34 = vand.u32 4294901760, %v2628_v17  ;;  %v18027_v11 = vand.u32 4294901760, %v14274_v15 }
 0x218   : > { %v2634_v47 = vsub.f32 %v14252_v25, %v18024_v18  ;;  %19127 = vst [vmem:[#allocation114_spill] sm:$0xff] %v14276_v60  ;;  %v2641_v21 = vand.u32 4294901760, %v2640_v9  ;;  %v2652_v18 = vsub.f32 %v14266_v48, %v18026_v39  ;;  %v552_v9 = vlaneseq }
 0x219   : > { %v2664_v32 = vsub.f32 %v14274_v15, %v18027_v11  ;;  %v19132_v39 = vand.u32 4294901760, %v13685_v20 }
 0x21a   : > { %v2635_v46 = vand.u32 4294901760, %v2634_v47  ;;  %v14286_v22 = vpack.c.bf16 %v2641_v21, %v2629_v34  ;;  %v2653_v27 = vand.u32 4294901760, %v2652_v18  ;;  %v19131_v47 = vand.u32 4294901760, %v13676_v10 }
 0x21b   : > { %v2665_v17 = vand.u32 4294901760, %v2664_v32  ;;  %v14303_v34 = vsub.f32 %v13685_v20, %v19132_v39  ;;  %v19133_v21 = vand.u32 4294901760, %v13688_v23  ;;  %v553_v32 = vshrl.u32 %v552_v9, 7 }
 0x21c   : > { %19128 = vst [vmem:[#allocation23_spill] sm:$0xff] %v14286_v22  ;;  %v14291_v1 = vpack.c.bf16 %v2647_v12, %v2635_v46  ;;  %v14298_v8 = vsub.f32 %v13676_v10, %v19131_v47  ;;  %v19134_v12 = vand.u32 4294901760, %v13690_v61  ;;  %v19136_v39 = vand.u32 4294901760, %v13701_v0 }
 0x21d   : > { %v14293_v19 = vpack.c.bf16 %v2665_v17, %v2653_v27  ;;  %v14308_v46 = vsub.f32 %v13688_v23, %v19133_v21  ;;  %v19135_v27 = vand.u32 4294901760, %v13699_v44  ;;  %v18030_v20 = vand.u32 4294901760, %v14303_v34 }
 0x21e   : > { %19129 = vst [vmem:[#allocation116_spill] sm:$0xff] %v14291_v1  ;;  %v14313_v18 = vsub.f32 %v13690_v61, %v19134_v12  ;;  %v18029_v17 = vand.u32 4294901760, %v14298_v8  ;;  %v14325_v23 = vsub.f32 %v13701_v0, %v19136_v39  ;;  %v19137_v9 = vand.u32 4294901760, %v13703_v54 }
 0x21f   : > { %19130 = vst [vmem:[#allocation28_spill] sm:$0xff] %v14293_v19  ;;  %v14318_v10 = vsub.f32 %v13699_v44, %v19135_v27  ;;  %v18032_v47 = vand.u32 4294901760, %v14308_v46  ;;  %v14334_v44 = vsub.s32 0, %v553_v32  ;;  %v550_v27 = vld [vmem:[%s17655_s7] sm:$0x3]  ;;  %v2310_v39 = vsub.f32 %v14303_v34, %v18030_v20 }
 0x220   : > { %v14332_v21 = vsub.f32 %v13703_v54, %v19137_v9  ;;  %v2298_v0 = vsub.f32 %v14298_v8, %v18029_v17  ;;  %v19139_v9 = vand.u32 4294901760, %v13713_v57  ;;  %v19140_v12 = vand.u32 4294901760, %v13716_v16 }
 0x221   : > { %19138 = vst [vmem:[#allocation29_spill] sm:$0xff] %v14334_v44  ;;  %v2316_v54 = vsub.f32 %v14308_v46, %v18032_v47  ;;  %v19142_v17 = vand.u32 4294901760, %v13718_v62  ;;  %v19144_v11 = vand.u32 4294901760, %v14313_v18  ;;  %v19151_v47 = vand.u32 4294901760, %v13764_v49 }
 0x222   : > { %v14353_v59 = vsub.f32 %v13713_v57, %v19139_v9  ;;  %v14358_v61 = vsub.f32 %v13716_v16, %v19140_v12  ;;  %v14372_v57 = vsub.f32 %v13733_v28, %v19145_v24  ;;  %v19147_v9 = vand.u32 4294901760, %v13735_v40 }
 0x223   : > { %v14363_v20 = vsub.f32 %v13718_v62, %v19142_v17  ;;  %v2328_v5 = vsub.f32 %v14313_v18, %v19144_v11  ;;  %v14380_v12 = vrot.slane %v550_v27, %v14334_v44  ;;  %v14382_v62 = vsub.s32 1, %v553_v32 }
 0x224   : > { %19141 = vst [vmem:[#allocation36_spill] sm:$0xff] %v14358_v61  ;;  %19146 = vst [vmem:[#allocation42_spill] sm:$0xff] %v14372_v57  ;;  %v14377_v16 = vsub.f32 %v13735_v40, %v19147_v9  ;;  %v19150_v17 = vand.u32 4294901760, %v14318_v10  ;;  %v14390_v38 = vsub.f32 %v13764_v49, %v19151_v47  ;;  %v2299_v28 = vand.u32 4294901760, %v2298_v0 }
 0x225   : > { %19143 = vst [vmem:[#allocation38_spill] sm:$0xff] %v14363_v20  ;;  %19149 = vst [vmem:[#allocation48_spill] sm:$0xff] %v14382_v62  ;;  %v2311_v24 = vand.u32 4294901760, %v2310_v39  ;;  %v19153_v3 = vand.u32 4294901760, %v14325_v23  ;;  %v19154_v9 = vand.u32 4294901760, %v13766_v58  ;;  %v2317_v44 = vand.u32 4294901760, %v2316_v54 }
 0x226   : > { %19148 = vst [vmem:[#allocation45_spill] sm:$0xff] %v14377_v16  ;;  %v2322_v11 = vsub.f32 %v14318_v10, %v19150_v17  ;;  %19152 = vst [vmem:[#allocation51_spill] sm:$0xff] %v14390_v38  ;;  %v2329_v49 = vand.u32 4294901760, %v2328_v5  ;;  %v19156_v47 = vand.u32 4294901760, %v14332_v21  ;;  %v19157_v54 = vand.u32 4294901760, %v13768_v31 }
 0x227   : > { %v2334_v40 = vsub.f32 %v14325_v23, %v19153_v3  ;;  %v14398_v32 = vsub.f32 %v13766_v58, %v19154_v9  ;;  %v19159_v17 = vand.u32 4294901760, %v13770_v37  ;;  %v19161_v39 = vand.u32 4294901760, %v14036_v35 }
 0x228   : > { %v2340_v0 = vsub.f32 %v14332_v21, %v19156_v47  ;;  %v2323_v51 = vand.u32 4294901760, %v2322_v11  ;;  %v14412_v9 = vsub.f32 %v13768_v31, %v19157_v54  ;;  %v19163_v11 = vld [vmem:[#allocation80_spill] sm:$0xff]  ;;  %v19166_v31 = vand.u32 4294901760, %v14353_v59 }
 0x229   : > { %19155 = vst [vmem:[#allocation54_spill] sm:$0xff] %v14398_v32  ;;  %v14417_v5 = vsub.f32 %v13770_v37, %v19159_v17  ;;  %v2335_v7 = vand.u32 4294901760, %v2334_v40  ;;  %v14423_v3 = vsub.f32 %v14036_v35, %v19161_v39  ;;  %v19164_v58 = vand.u32 4294901760, %v19163_v11 }
 0x22a   : > { %19158 = vst [vmem:[#allocation57_spill] sm:$0xff] %v14412_v9  ;;  %v2352_v54 = vsub.f32 %v14353_v59, %v19166_v31  ;;  %v19167_v37 = vand.u32 4294901760, %v14358_v61  ;;  %v19168_v17 = vand.u32 4294901760, %v14363_v20  ;;  %v19170_v35 = vand.u32 4294901760, %v19169_v14 }
 0x22b   : > { %19160 = vst [vmem:[#allocation60_spill] sm:$0xff] %v14417_v5  ;;  %19162 = vst [vmem:[#allocation63_spill] sm:$0xff] %v14423_v3  ;;  %v14428_v6 = vsub.f32 %v19163_v11, %v19164_v58  ;;  %v2341_v43 = vand.u32 4294901760, %v2340_v0  ;;  %v19172_v58 = vand.u32 4294901760, %v14372_v57  ;;  %v19173_v31 = vand.u32 4294901760, %v14377_v16  ;;  %v19186_v0 = vld [vmem:[#allocation93_spill] sm:$0xff] }
 0x22c   : > { %v2346_v40 = vsub.f32 %v14358_v61, %v19167_v37  ;;  %v2358_v47 = vsub.f32 %v14363_v20, %v19168_v17  ;;  %v14442_v39 = vsub.f32 %v19169_v14, %v19170_v35  ;;  %v19175_v17 = vand.u32 4294901760, %v14390_v38  ;;  %v19176_v35 = vld [vmem:[#allocation64_spill] sm:$0xff] }
 0x22d   : > { %19165 = vst [vmem:[#allocation66_spill] sm:$0xff] %v14428_v6  ;;  %v2364_v11 = vsub.f32 %v14372_v57, %v19172_v58  ;;  %v2376_v52 = vsub.f32 %v14377_v16, %v19173_v31  ;;  %v14452_v37 = vpack.c.bf16 %v14428_v6, %v14423_v3  ;;  %v19177_v2 = vand.u32 4294901760, %v19176_v35  ;;  %v19183_v16 = vld [vmem:[#allocation92_spill] sm:$0xff] }
 0x22e   : > { %19171 = vst [vmem:[#allocation69_spill] sm:$0xff] %v14442_v39  ;;  %v2370_v45 = vsub.f32 %v14390_v38, %v19175_v17  ;;  %v19179_v4 = vand.u32 4294901760, %v14398_v32  ;;  %v19184_v17 = vand.u32 4294901760, %v19183_v16  ;;  %v19187_v38 = vand.u32 4294901760, %v19186_v0 }
 0x22f   : > { %19174 = vst [vmem:[#allocation72_spill] sm:$0xff] %v14452_v37  ;;  %v14462_v58 = vsub.f32 %v19176_v35, %v19177_v2  ;;  %v14470_v37 = vsub.f32 %v19180_v63, %v19181_v36  ;;  %v2353_v2 = vand.u32 4294901760, %v2352_v54  ;;  %v2347_v35 = vand.u32 4294901760, %v2346_v40 }
 0x230   : > { %v2382_v31 = vsub.f32 %v14398_v32, %v19179_v4  ;;  %v14475_v14 = vsub.f32 %v19183_v16, %v19184_v17  ;;  %v14480_v57 = vsub.f32 %v19186_v0, %v19187_v38  ;;  %v2359_v20 = vand.u32 4294901760, %v2358_v47  ;;  %v19199_v47 = vld [vmem:[#allocation67_spill] sm:$0xff] }
 0x231   : > { %19178 = vst [vmem:[#allocation75_spill] sm:$0xff] %v14462_v58  ;;  %19182 = vst [vmem:[#allocation78_spill] sm:$0xff] %v14470_v37  ;;  %v18076_v4 = vand.u32 4294901760, %v14442_v39  ;;  %v14484_v32 = vrot.slane %v550_v27, %v14382_v62  ;;  %v2365_v36 = vand.u32 4294901760, %v2364_v11  ;;  %v2377_v63 = vand.u32 4294901760, %v2376_v52 }
 0x232   : > { %19185 = vst [vmem:[#allocation81_spill] sm:$0xff] %v14475_v14  ;;  %19188 = vst [vmem:[#allocation84_spill] sm:$0xff] %v14480_v57  ;;  %v14488_v61 = vpack.c.bf16 %v14480_v57, %v14475_v14  ;;  %v14490_v16 = vpack.c.bf16 %v2311_v24, %v2299_v28  ;;  %v14492_v17 = vpack.c.bf16 %v2329_v49, %v2317_v44  ;;  %v19192_v38 = vand.u32 4294901760, %v14412_v9 }
 0x233   : > { %v2371_v40 = vand.u32 4294901760, %v2370_v45  ;;  %v2383_v27 = vand.u32 4294901760, %v2382_v31  ;;  %v19193_v11 = vand.u32 4294901760, %v14417_v5  ;;  %v14506_v24 = vpack.c.bf16 %v2335_v7, %v2323_v51 }
 0x234   : > { %19189 = vst [vmem:[#allocation86_spill] sm:$0xff] %v14488_v61  ;;  %19190 = vst [vmem:[#allocation91_spill] sm:$0xff] %v14490_v16  ;;  %v14497_v54 = vsub.f32 %v14412_v9, %v19192_v38  ;;  %v14508_v44 = vpack.c.bf16 %v2353_v2, %v2341_v43  ;;  %v14510_v49 = vpack.c.bf16 %v2359_v20, %v2347_v35  ;;  %v19200_v0 = vand.u32 4294901760, %v19199_v47 }
 0x235   : > { %19191 = vst [vmem:[#allocation94_spill] sm:$0xff] %v14492_v17  ;;  %v14503_v52 = vsub.f32 %v14417_v5, %v19193_v11  ;;  %19194 = vst [vmem:[#allocation99_spill] sm:$0xff] %v14506_v24  ;;  %v14515_v38 = vsub.f32 %v14442_v39, %v18076_v4  ;;  %v14520_v11 = vpack.c.bf16 %v2377_v63, %v2365_v36  ;;  %v19204_v2 = vand.u32 4294901760, %v14462_v58  ;;  %v19205_v36 = vld [vmem:[#allocation71_spill] sm:$0xff]  ;;  %v19240_v39 = vld [vmem:[#allocation76_spill] sm:$0xff] }
 0x236   : > { %19195 = vst [vmem:[#allocation102_spill] sm:$0xff] %v14508_v44  ;;  %19196 = vst [vmem:[#allocation80_spill] sm:$0xff] %v14510_v49  ;;  %v14525_v7 = vsub.f32 %v19199_v47, %v19200_v0  ;;  %v14529_v43 = vpack.c.bf16 %v14241_v50, %v14239_v30  ;;  %v19206_v63 = vand.u32 4294901760, %v19205_v36  ;;  %v14548_v0 = vpack.c.bf16 %v2383_v27, %v2371_v40 }
 0x237   : > { %19198 = vst [vmem:[#allocation64_spill] sm:$0xff] %v14520_v11  ;;  %v14538_v35 = vsub.f32 %v14462_v58, %v19204_v2  ;;  %v19210_v4 = vand.u32 4294901760, %v14470_v37  ;;  %v14567_v40 = vpack.c.bf16 %v14250_v29, %v14245_v42  ;;  %v14579_v50 = vpack.c.bf16 %v14258_v13, %v14252_v25 }
 0x238   : > { %19201 = vst [vmem:[#allocation65_spill] sm:$0xff] %v14525_v7  ;;  %19202 = vst [vmem:[#allocation92_spill] sm:$0xff] %v14529_v43  ;;  %v19222_v42 = vand.u32 4294901760, %v14204_v41  ;;  %v14611_v43 = vpack.c.bf16 %v14274_v15, %v14266_v48 }
 0x239   : > { %19209 = vst [vmem:[#allocation118_spill] sm:$0xff] %v14548_v0  ;;  %v14554_v20 = vsub.f32 %v14470_v37, %v19210_v4  ;;  %19215 = vst [vmem:[#allocation120_spill] sm:$0xff] %v14567_v40 }
 0x23a   : > { %19218 = vst [vmem:[#allocation123_spill] sm:$0xff] %v14579_v50  ;;  %v14597_v13 = vsub.f32 %v14204_v41, %v19222_v42  ;;  %19227 = vst [vmem:[#allocation130_spill] sm:$0xff] %v14611_v43 }
 0x23c   : > { %19223 = vst [vmem:[#allocation127_spill] sm:$0xff] %v14597_v13 }
 0x2aa   : > { %v2003_v28 = vpop.f32.mrb[0].mxu0 }
 0x2ab   : > { %v14518_v45 = vadd.f32 %v2003_v28, %v14380_v12  ;;  %v2005_v31 = vpop.f32.mrb[1].mxu0  ;;  %v14543_v28 = vsub.f32 %v19205_v36, %v19206_v63  ;;  %v19212_v36 = vld [vmem:[#allocation73_spill] sm:$0xff] }
 0x2ac   : > { %v14532_v51 = vadd.f32 %v2005_v31, %v14484_v32  ;;  %v19213_v63 = vand.u32 4294901760, %v19212_v36 }
 0x2ad   : > { %19197 = vst [vmem:[#allocation62_spill] sm:$0xff] %v14518_v45  ;;  %19207 = vst [vmem:[#allocation67_spill] sm:$0xff] %v14543_v28  ;;  %v14546_v47 = vand.u32 4294901760, %v14518_v45 }
 0x2ae   : > { %19203 = vst [vmem:[#allocation93_spill] sm:$0xff] %v14532_v51  ;;  %v14557_v2 = vand.u32 4294901760, %v14532_v51  ;;  %v2011_v62 = vpop.f32.mrb[2].mxu0  ;;  %v14563_v30 = vsub.f32 %v19212_v36, %v19213_v63 }
 0x2af   : > { %19208 = vst [vmem:[#allocation71_spill] sm:$0xff] %v14546_v47  ;;  %v14571_v27 = vsub.f32 %v14518_v45, %v14546_v47  ;;  %v14574_v4 = vadd.f32 %v2011_v62, %v14380_v12  ;;  %v2013_v31 = vpop.f32.mrb[3].mxu0 }
 0x2b0   : > { %19211 = vst [vmem:[#allocation119_spill] sm:$0xff] %v14557_v2  ;;  %19214 = vst [vmem:[#allocation73_spill] sm:$0xff] %v14563_v30  ;;  %v14582_v36 = vadd.f32 %v2013_v31, %v14484_v32  ;;  %v14586_v63 = vsub.f32 %v14532_v51, %v14557_v2  ;;  %v19224_v31 = vand.u32 4294901760, %v14206_v53 }
 0x2b1   : > { %19216 = vst [vmem:[#allocation121_spill] sm:$0xff] %v14571_v27  ;;  %19217 = vst [vmem:[#allocation122_spill] sm:$0xff] %v14574_v4  ;;  %v14591_v62 = vand.u32 4294901760, %v14574_v4 }
 0x2b2   : > { %19219 = vst [vmem:[#allocation124_spill] sm:$0xff] %v14582_v36  ;;  %19220 = vst [vmem:[#allocation125_spill] sm:$0xff] %v14586_v63  ;;  %v14602_v25 = vsub.f32 %v14206_v53, %v19224_v31  ;;  %v14605_v51 = vand.u32 4294901760, %v14582_v36  ;;  %v2019_v45 = vpop.f32.mrb[4].mxu0  ;;  %v19230_v31 = vand.u32 4294901760, %v14571_v27 }
 0x2b3   : > { %19221 = vst [vmem:[#allocation126_spill] sm:$0xff] %v14591_v62  ;;  %v14615_v41 = vsub.f32 %v14574_v4, %v14591_v62  ;;  %v14618_v42 = vadd.f32 %v2019_v45, %v14380_v12  ;;  %v2021_v53 = vpop.f32.mrb[5].mxu0  ;;  %v19234_v4 = vand.u32 4294901760, %v14586_v63 }
 0x2b4   : > { %19225 = vst [vmem:[#allocation128_spill] sm:$0xff] %v14602_v25  ;;  %19226 = vst [vmem:[#allocation129_spill] sm:$0xff] %v14605_v51  ;;  %v2233_v40 = vsub.f32 %v14571_v27, %v19230_v31  ;;  %v14625_v29 = vpack.c.bf16 %v14602_v25, %v14597_v13  ;;  %v14629_v50 = vsub.f32 %v14582_v36, %v14605_v51  ;;  %v19236_v27 = vand.u32 4294901760, %v14525_v7  ;;  %v19237_v36 = vld [vmem:[#allocation74_spill] sm:$0xff] }
 0x2b5   : > { %19228 = vst [vmem:[#allocation131_spill] sm:$0xff] %v14615_v41  ;;  %19229 = vst [vmem:[#allocation132_spill] sm:$0xff] %v14618_v42  ;;  %v14632_v15 = vadd.f32 %v2021_v53, %v14484_v32  ;;  %v2227_v45 = vsub.f32 %v14586_v63, %v19234_v4  ;;  %v14639_v43 = vand.u32 4294901760, %v14618_v42  ;;  %v19238_v61 = vand.u32 4294901760, %v19237_v36 }
 0x2b6   : > { %19231 = vst [vmem:[#allocation133_spill] sm:$0xff] %v14625_v29  ;;  %19232 = vst [vmem:[#allocation134_spill] sm:$0xff] %v14629_v50  ;;  %v14645_v29 = vsub.f32 %v14525_v7, %v19236_v27  ;;  %v2027_v4 = vpop.f32.mrb[6].mxu0  ;;  %v19241_v63 = vand.u32 4294901760, %v19240_v39  ;;  %v19245_v5 = vand.u32 4294901760, %v14615_v41 }
 0x2b7   : > { %19233 = vst [vmem:[#allocation135_spill] sm:$0xff] %v14632_v15  ;;  %19235 = vst [vmem:[#allocation136_spill] sm:$0xff] %v14639_v43  ;;  %v14650_v53 = vsub.f32 %v19237_v36, %v19238_v61  ;;  %v14653_v37 = vand.u32 4294901760, %v14632_v15  ;;  %v2228_v48 = vand.u32 4294901760, %v2227_v45  ;;  %v14663_v27 = vsub.f32 %v14618_v42, %v14639_v43  ;;  %v2029_v61 = vpop.f32.mrb[7].mxu0 }
 0x2b8   : > { %v14659_v31 = vsub.f32 %v19240_v39, %v19241_v63  ;;  %v14666_v7 = vadd.f32 %v2027_v4, %v14380_v12  ;;  %v2234_v36 = vand.u32 4294901760, %v2233_v40  ;;  %v2249_v45 = vsub.f32 %v14615_v41, %v19245_v5  ;;  %v19249_v12 = vld [vmem:[#allocation31_spill] sm:$0xff] }
 0x2b9   : > { %19239 = vst [vmem:[#allocation74_spill] sm:$0xff] %v14653_v37  ;;  %19243 = vst [vmem:[#allocation137_spill] sm:$0xff] %v14663_v27  ;;  %v14673_v58 = vsub.f32 %v14632_v15, %v14653_v37  ;;  %v14676_v39 = vadd.f32 %v2029_v61, %v14484_v32  ;;  %2229 = vmatprep.mubr.f32.mxu1 %v2228_v48  ;;  %v19248_v63 = vand.u32 4294901760, %v14629_v50  ;;  %v19250_v4 = vand.u32 4294901760, %v19249_v12  ;;  %v19254_v48 = vld [vmem:[#allocation30_spill] sm:$0xff] }
 0x2ba   : > { %19242 = vst [vmem:[#allocation76_spill] sm:$0xff] %v14659_v31  ;;  %19244 = vst [vmem:[#allocation138_spill] sm:$0xff] %v14666_v7  ;;  %v14687_v9 = vand.u32 4294901760, %v14666_v7  ;;  %2235 = vmatmul.mubr.f32.vlgmr.msra.gmra.mrb[0].mxu1 %v2234_v36  ;;  %v19253_v15 = vand.u32 4294901760, %v14543_v28  ;;  %v19255_v61 = vand.u32 4294901760, %v19254_v48  ;;  %v19257_v36 = vand.u32 4294901760, %v14563_v30 }
 0x2bb   : > { %19246 = vst [vmem:[#allocation139_spill] sm:$0xff] %v14673_v58  ;;  %19247 = vst [vmem:[#allocation140_spill] sm:$0xff] %v14676_v39  ;;  %v2243_v42 = vsub.f32 %v14629_v50, %v19248_v63  ;;  %v14684_v40 = vsub.f32 %v19249_v12, %v19250_v4  ;;  %v14699_v63 = vand.u32 4294901760, %v14676_v39  ;;  %10638 = vmatpush1.bf16.msra.mxu1 %v14490_v16  ;;  %v18131_v4 = vand.u32 4294901760, %v14673_v58 }
 0x2bc   : > { %19252 = vst [vmem:[#allocation141_spill] sm:$0xff] %v14687_v9  ;;  %v2418_v32 = vsub.f32 %v14543_v28, %v19253_v15  ;;  %v14696_v41 = vsub.f32 %v19254_v48, %v19255_v61  ;;  %v2430_v5 = vsub.f32 %v14563_v30, %v19257_v36  ;;  %v14708_v15 = vsub.f32 %v14666_v7, %v14687_v9 }
 0x2bd   : > { %19251 = vst [vmem:[#allocation31_spill] sm:$0xff] %v14684_v40  ;;  %19256 = vst [vmem:[#allocation30_spill] sm:$0xff] %v14699_v63  ;;  %v2244_v12 = vand.u32 4294901760, %v2243_v42  ;;  %10640 = vmatprep.subr.bf16.mxu1 %v14492_v17  ;;  %v2250_v48 = vand.u32 4294901760, %v2249_v45  ;;  %v19259_v61 = vand.u32 4294901760, %v14663_v27  ;;  %v14717_v42 = vsub.f32 %v14676_v39, %v14699_v63  ;;  %v19263_v39 = vld [vmem:[#allocation32_spill] sm:$0xff] }
 0x2be   : > { %19258 = vst [vmem:[#allocation142_spill] sm:$0xff] %v14708_v15  ;;  %v2259_v36 = vsub.f32 %v14673_v58, %v18131_v4  ;;  %v18136_v45 = vand.u32 4294901760, %v14708_v15  ;;  %v2419_v7 = vand.u32 4294901760, %v2418_v32  ;;  %v19271_v32 = vand.u32 4294901760, %v14650_v53 }
 0x2bf   : > { %v2265_v50 = vsub.f32 %v14663_v27, %v19259_v61  ;;  %19260 = vst [vmem:[#allocation143_spill] sm:$0xff] %v14717_v42  ;;  %2245 = vmatprep.mubr.f32.mxu1 %v2244_v12  ;;  %v19261_v27 = vld [vmem:[#allocation33_spill] sm:$0xff]  ;;  %v19264_v12 = vand.u32 4294901760, %v19263_v39  ;;  %10642 = vmatpush1.bf16.msra.mxu1 %v14506_v24  ;;  %v18139_v17 = vand.u32 4294901760, %v14717_v42 }
 0x2c0   : > { %2251 = vmatmul.mubr.f32.gmra.mrb[2].mxu1 %v2250_v48  ;;  %v19262_v16 = vand.u32 4294901760, %v19261_v27  ;;  %v2260_v4 = vand.u32 4294901760, %v2259_v36  ;;  %v2425_v48 = vand.u32 4294901760, %v14645_v29  ;;  %10644 = vmatprep.subr.bf16.mxu1 %v14508_v44  ;;  %v19272_v44 = vand.u32 4294901760, %v14659_v31 }
 0x2c1   : > { %v14734_v28 = vsub.f32 %v19263_v39, %v19264_v12  ;;  %v2266_v61 = vand.u32 4294901760, %v2265_v50  ;;  %v19268_v12 = vld [vmem:[#allocation37_spill] sm:$0xff]  ;;  %v2275_v29 = vsub.f32 %v14717_v42, %v18139_v17  ;;  %v2431_v50 = vand.u32 4294901760, %v2430_v5  ;;  %v19278_v42 = vld [vmem:[#allocation40_spill] sm:$0xff] }
 0x2c2   : > { %v14729_v30 = vsub.f32 %v19261_v27, %v19262_v16  ;;  %v2281_v16 = vsub.f32 %v14708_v15, %v18136_v45  ;;  %v19265_v27 = vld [vmem:[#allocation34_spill] sm:$0xff]  ;;  %v19269_v24 = vand.u32 4294901760, %v19268_v12  ;;  %2261 = vmatprep.mubr.f32.mxu1 %v2260_v4  ;;  %v2436_v45 = vsub.f32 %v14650_v53, %v19271_v32 }
 0x2c3   : > { %v19266_v58 = vand.u32 4294901760, %v19265_v27  ;;  %v19274_v4 = vand.u32 4294901760, %v14696_v41  ;;  %10646 = vmatpush1.bf16.msra.mxu1 %v14510_v49  ;;  %v2276_v32 = vand.u32 4294901760, %v2275_v29  ;;  %v19275_v15 = vand.u32 4294901760, %v14497_v54 }
 0x2c4   : > { %v14751_v36 = vsub.f32 %v19268_v12, %v19269_v24  ;;  %2267 = vmatmul.mubr.f32.gmra.mrb[4].mxu1 %v2266_v61  ;;  %10648 = vmatprep.subr.bf16.mxu1 %v14520_v11  ;;  %v2282_v5 = vand.u32 4294901760, %v2281_v16  ;;  %v19284_v29 = vand.u32 4294901760, %v14515_v38  ;;  %v19285_v54 = vand.u32 4294901760, %v14538_v35 }
 0x2c5   : > { %v14746_v39 = vsub.f32 %v19265_v27, %v19266_v58  ;;  %v2448_v58 = vsub.f32 %v14659_v31, %v19272_v44  ;;  %v19273_v27 = vand.u32 4294901760, %v14684_v40  ;;  %v2454_v12 = vsub.f32 %v14696_v41, %v19274_v4  ;;  %2277 = vmatprep.mubr.f32.mxu1 %v2276_v32 }
 0x2c6   : > { %19270 = vst [vmem:[#allocation32_spill] sm:$0xff] %v14751_v36  ;;  %v19276_v44 = vand.u32 4294901760, %v14503_v52  ;;  %v19279_v31 = vand.u32 4294901760, %v19278_v42  ;;  %v14792_v52 = vpack.c.bf16 %v19285_v54, %v19284_v29  ;;  %v19290_v35 = vand.u32 4294901760, %v14729_v30 }
 0x2c7   : > { %19267 = vst [vmem:[#allocation33_spill] sm:$0xff] %v14746_v39  ;;  %v2442_v24 = vsub.f32 %v14684_v40, %v19273_v27  ;;  %v19281_v40 = vld [vmem:[#allocation44_spill] sm:$0xff]  ;;  %v2449_v11 = vand.u32 4294901760, %v2448_v58  ;;  %v2455_v38 = vand.u32 4294901760, %v2454_v12  ;;  %v19291_v54 = vand.u32 4294901760, %v14734_v28  ;;  %10650 = vmatpush1.bf16.msra.mxu1 %v14548_v0  ;;  %v19294_v58 = vld [vmem:[#allocation50_spill] sm:$0xff] }
 0x2c8   : > { %v14775_v61 = vpack.c.bf16 %v19276_v44, %v19275_v15  ;;  %v14780_v27 = vsub.f32 %v19278_v42, %v19279_v31  ;;  %v19282_v4 = vand.u32 4294901760, %v19281_v40  ;;  %19286 = vst [vmem:[#allocation44_spill] sm:$0xff] %v14792_v52  ;;  %v18152_v15 = vand.u32 4294901760, %v14746_v39  ;;  %2283 = vmatmul.mubr.f32.gmra.mrb[6].mxu1 %v2282_v5  ;;  %v19308_v0 = vld [vmem:[#allocation82_spill] sm:$0xff] }
 0x2c9   : > { %v19287_v31 = vand.u32 4294901760, %v14554_v20  ;;  %v2443_v16 = vand.u32 4294901760, %v2442_v24  ;;  %v2460_v29 = vsub.f32 %v14729_v30, %v19290_v35  ;;  %v2472_v44 = vsub.f32 %v14734_v28, %v19291_v54  ;;  %2674 = vmatprep.mubr.f32.mxu1 %v14557_v2  ;;  %v19298_v35 = vld [vmem:[#allocation49_spill] sm:$0xff] }
 0x2ca   : > { %19277 = vst [vmem:[#allocation34_spill] sm:$0xff] %v14775_v61  ;;  %19280 = vst [vmem:[#allocation37_spill] sm:$0xff] %v14780_v27  ;;  %v14785_v17 = vsub.f32 %v19281_v40, %v19282_v4  ;;  %v14800_v40 = vpack.c.bf16 %v2431_v50, %v2419_v7  ;;  %v2437_v4 = vand.u32 4294901760, %v2436_v45  ;;  %v19292_v45 = vld [vmem:[#allocation46_spill] sm:$0xff]  ;;  %v19295_v24 = vand.u32 4294901760, %v19294_v58  ;;  %10652 = vmatprep.subr.bf16.mxu1 %v14775_v61  ;;  %v19305_v7 = vld [vmem:[#allocation97_spill] sm:$0xff] }
 0x2cb   : > { %v14798_v42 = vpack.c.bf16 %v2425_v48, %v19287_v31  ;;  %v19293_v48 = vand.u32 4294901760, %v19292_v45  ;;  %v2466_v5 = vsub.f32 %v14746_v39, %v18152_v15  ;;  %v19297_v32 = vand.u32 4294901760, %v14751_v36  ;;  %v19311_v2 = vld [vmem:[#allocation109_spill] sm:$0xff]  ;;  %10654 = vmatpush1.bf16.msra.mxu1 %v14792_v52 }
 0x2cc   : > { %19283 = vst [vmem:[#allocation40_spill] sm:$0xff] %v14785_v17  ;;  %19289 = vst [vmem:[#allocation145_spill] sm:$0xff] %v14800_v40  ;;  %v14820_v12 = vsub.f32 %v19294_v58, %v19295_v24  ;;  %v19299_v54 = vand.u32 4294901760, %v19298_v35  ;;  %v14839_v24 = vpack.c.bf16 %v2449_v11, %v2437_v4  ;;  %v19306_v61 = vand.u32 4294901760, %v19305_v7  ;;  %v19315_v4 = vld [vmem:[#allocation111_spill] sm:$0xff]  ;;  %v19320_v52 = vld [vmem:[#allocation117_spill] sm:$0xff] }
 0x2cd   : > { %19288 = vst [vmem:[#allocation144_spill] sm:$0xff] %v14798_v42  ;;  %v14815_v50 = vsub.f32 %v19292_v45, %v19293_v48  ;;  %v2478_v31 = vsub.f32 %v14751_v36, %v19297_v32  ;;  %v19301_v48 = vld [vmem:[#allocation53_spill] sm:$0xff]  ;;  %v19309_v49 = vand.u32 4294901760, %v19308_v0  ;;  %v14856_v36 = vpack.c.bf16 %v2455_v38, %v2443_v16  ;;  %10656 = vmatprep.subr.bf16.mxu1 %v14798_v42 }
 0x2ce   : > { %19296 = vst [vmem:[#allocation46_spill] sm:$0xff] %v14820_v12  ;;  %v14832_v45 = vsub.f32 %v19298_v35, %v19299_v54  ;;  %v19302_v20 = vand.u32 4294901760, %v19301_v48  ;;  %19304 = vst [vmem:[#allocation53_spill] sm:$0xff] %v14839_v24  ;;  %v14844_v15 = vsub.f32 %v19305_v7, %v19306_v61  ;;  %v19312_v35 = vand.u32 4294901760, %v19311_v2  ;;  %v19322_v42 = vld [vmem:[#allocation105_spill] sm:$0xff]  ;;  %v19324_v7 = vld [vmem:[#allocation39_spill] sm:$0xff] }
 0x2cf   : > { %v14849_v32 = vsub.f32 %v19308_v0, %v19309_v49  ;;  %19314 = vst [vmem:[#allocation146_spill] sm:$0xff] %v14856_v36  ;;  %v2473_v11 = vand.u32 4294901760, %v2472_v44  ;;  %v19318_v61 = vand.u32 4294901760, %v14780_v27  ;;  %v19319_v0 = vand.u32 4294901760, %v14785_v17  ;;  %10658 = vmatpush1.bf16.msra.mxu1 %v14800_v40 }
 0x2d0   : > { %19300 = vst [vmem:[#allocation50_spill] sm:$0xff] %v14832_v45  ;;  %v14837_v58 = vsub.f32 %v19301_v48, %v19302_v20  ;;  %19307 = vst [vmem:[#allocation97_spill] sm:$0xff] %v14844_v15  ;;  %v14854_v54 = vsub.f32 %v19311_v2, %v19312_v35  ;;  %v2461_v20 = vand.u32 4294901760, %v2460_v29  ;;  %v19316_v48 = vand.u32 4294901760, %v19315_v4  ;;  %10660 = vmatprep.subr.bf16.mxu1 %v14839_v24 }
 0x2d1   : > { %19310 = vst [vmem:[#allocation82_spill] sm:$0xff] %v14849_v32  ;;  %v2484_v49 = vsub.f32 %v14780_v27, %v19318_v61  ;;  %v2496_v2 = vsub.f32 %v14785_v17, %v19319_v0  ;;  %v2467_v44 = vand.u32 4294901760, %v2466_v5  ;;  %v2479_v29 = vand.u32 4294901760, %v2478_v31 }
 0x2d2   : > { %19303 = vst [vmem:[#allocation49_spill] sm:$0xff] %v14837_v58  ;;  %19313 = vst [vmem:[#allocation109_spill] sm:$0xff] %v14854_v54  ;;  %v14861_v39 = vsub.f32 %v19315_v4, %v19316_v48  ;;  %v19321_v0 = vand.u32 4294901760, %v19320_v52  ;;  %v19323_v5 = vand.u32 4294901760, %v19322_v42  ;;  %v19325_v35 = vand.u32 4294901760, %v19324_v7  ;;  %v19326_v48 = vld [vmem:[#allocation88_spill] sm:$0xff] }
 0x2d3   : > { %v19327_v17 = vand.u32 4294901760, %v19326_v48  ;;  %v19328_v38 = vand.u32 4294901760, %v14815_v50  ;;  %v19334_v40 = vand.u32 4294901760, %v14849_v32  ;;  %v19335_v24 = vand.u32 4294901760, %v14854_v54  ;;  %10662 = vmatpush1.bf16.msra.mxu1 %v14856_v36 }
 0x2d4   : > { %19317 = vst [vmem:[#allocation111_spill] sm:$0xff] %v14861_v39  ;;  %v14881_v16 = vsub.f32 %v19320_v52, %v19321_v0  ;;  %v14887_v31 = vsub.f32 %v19322_v42, %v19323_v5  ;;  %v14892_v4 = vsub.f32 %v19324_v7, %v19325_v35  ;;  %v2485_v52 = vand.u32 4294901760, %v2484_v49 }
 0x2d5   : > { %v14897_v61 = vsub.f32 %v19326_v48, %v19327_v17  ;;  %v2497_v0 = vand.u32 4294901760, %v2496_v2  ;;  %v2490_v27 = vsub.f32 %v14815_v50, %v19328_v38  ;;  %v19329_v42 = vand.u32 4294901760, %v14820_v12 }
 0x2d6   : > { %v14907_v7 = vpack.c.bf16 %v2473_v11, %v2461_v20  ;;  %v19331_v35 = vand.u32 4294901760, %v14832_v45  ;;  %v19332_v48 = vand.u32 4294901760, %v14837_v58  ;;  %v19333_v2 = vand.u32 4294901760, %v14844_v15 }
 0x2d7   : > { %v2502_v5 = vsub.f32 %v14820_v12, %v19329_v42  ;;  %v2526_v42 = vsub.f32 %v14849_v32, %v19334_v40  ;;  %v2532_v20 = vsub.f32 %v14854_v54, %v19335_v24  ;;  %v14934_v40 = vpack.c.bf16 %v2497_v0, %v2485_v52  ;;  %v19339_v12 = vld [vmem:[#allocation83_spill] sm:$0xff]  ;;  %v19408_v36 = vld [vmem:[#allocation50_spill] sm:$0xff] }
 0x2d8   : > { %19330 = vst [vmem:[#allocation117_spill] sm:$0xff] %v14907_v7  ;;  %v2508_v17 = vsub.f32 %v14832_v45, %v19331_v35  ;;  %v2520_v49 = vsub.f32 %v14837_v58, %v19332_v48  ;;  %v2514_v38 = vsub.f32 %v14844_v15, %v19333_v2  ;;  %v19336_v35 = vand.u32 4294901760, %v14861_v39  ;;  %10664 = vmatprep.subr.bf16.mxu1 %v14907_v7  ;;  %v19342_v58 = vld [vmem:[#allocation85_spill] sm:$0xff] }
 0x2d9   : > { %v14932_v15 = vpack.c.bf16 %v2479_v29, %v2467_v44  ;;  %19338 = vst [vmem:[#allocation39_spill] sm:$0xff] %v14934_v40  ;;  %v2491_v32 = vand.u32 4294901760, %v2490_v27  ;;  %v2503_v24 = vand.u32 4294901760, %v2502_v5  ;;  %v2527_v29 = vand.u32 4294901760, %v2526_v42 }
 0x2da   : > { %v2544_v45 = vsub.f32 %v14861_v39, %v19336_v35  ;;  %v2509_v11 = vand.u32 4294901760, %v2508_v17  ;;  %v2521_v54 = vand.u32 4294901760, %v2520_v49  ;;  %v19340_v35 = vand.u32 4294901760, %v19339_v12 }
 0x2db   : > { %19337 = vst [vmem:[#allocation105_spill] sm:$0xff] %v14932_v15  ;;  %v19343_v39 = vand.u32 4294901760, %v19342_v58  ;;  %v2515_v44 = vand.u32 4294901760, %v2514_v38  ;;  %v2533_v52 = vand.u32 4294901760, %v2532_v20  ;;  %v19345_v27 = vand.u32 4294901760, %v14881_v16  ;;  %10666 = vmatpush1.bf16.msra.mxu1 %v14932_v15 }
 0x2dc   : > { %v14940_v48 = vsub.f32 %v19339_v12, %v19340_v35  ;;  %v2545_v5 = vand.u32 4294901760, %v2544_v45  ;;  %v19346_v17 = vand.u32 4294901760, %v14887_v31  ;;  %v19347_v12 = vand.u32 4294901760, %v14892_v4  ;;  %10668 = vmatprep.subr.bf16.mxu1 %v14934_v40 }
 0x2dd   : > { %v14945_v2 = vsub.f32 %v19342_v58, %v19343_v39  ;;  %v2538_v0 = vsub.f32 %v14881_v16, %v19345_v27  ;;  %v19348_v7 = vand.u32 4294901760, %v14897_v61  ;;  %v14960_v58 = vpack.c.bf16 %v2503_v24, %v2491_v32 }
 0x2de   : > { %19341 = vst [vmem:[#allocation88_spill] sm:$0xff] %v14940_v48  ;;  %v2550_v49 = vsub.f32 %v14887_v31, %v19346_v17  ;;  %v2556_v35 = vsub.f32 %v14892_v4, %v19347_v12  ;;  %v14965_v42 = vpack.c.bf16 %v2521_v54, %v2509_v11  ;;  %v19351_v17 = vand.u32 4294901760, %v14176_v26 }
 0x2df   : > { %19344 = vst [vmem:[#allocation83_spill] sm:$0xff] %v14945_v2  ;;  %v2568_v39 = vsub.f32 %v14897_v61, %v19348_v7  ;;  %19349 = vst [vmem:[#allocation85_spill] sm:$0xff] %v14960_v58  ;;  %v14974_v12 = vpack.c.bf16 %v2527_v29, %v2515_v44  ;;  %v2539_v32 = vand.u32 4294901760, %v2538_v0  ;;  %v14976_v24 = vpack.c.bf16 %v2545_v5, %v2533_v52 }
 0x2e0   : > { %19350 = vst [vmem:[#allocation147_spill] sm:$0xff] %v14965_v42  ;;  %v14972_v7 = vsub.f32 %v14176_v26, %v19351_v17  ;;  %v2551_v38 = vand.u32 4294901760, %v2550_v49  ;;  %v2557_v45 = vand.u32 4294901760, %v2556_v35  ;;  %10670 = vmatpush1.bf16.msra.mxu1 %v14960_v58  ;;  %v19355_v54 = vand.u32 4294901760, %v14423_v3 }
 0x2e1   : > { %19353 = vst [vmem:[#allocation149_spill] sm:$0xff] %v14974_v12  ;;  %19354 = vst [vmem:[#allocation150_spill] sm:$0xff] %v14976_v24  ;;  %v2569_v15 = vand.u32 4294901760, %v2568_v39  ;;  %v19356_v27 = vand.u32 4294901760, %v14428_v6  ;;  %v18193_v26 = vand.u32 4294901760, %v14475_v14  ;;  %v18194_v44 = vand.u32 4294901760, %v14480_v57  ;;  %10672 = vmatprep.subr.bf16.mxu1 %v14965_v42 }
 0x2e2   : > { %19352 = vst [vmem:[#allocation148_spill] sm:$0xff] %v14972_v7  ;;  %v2562_v11 = vsub.f32 %v14423_v3, %v19355_v54  ;;  %v19357_v29 = vand.u32 4294901760, %v14940_v48  ;;  %v19358_v0 = vand.u32 4294901760, %v14945_v2  ;;  %v14996_v39 = vpack.c.bf16 %v2551_v38, %v2539_v32  ;;  %v19403_v42 = vld [vmem:[#allocation37_spill] sm:$0xff]  ;;  %v19451_v3 = vld [vmem:[#allocation52_spill] sm:$0xff] }
 0x2e3   : > { %v2574_v20 = vsub.f32 %v14428_v6, %v19356_v27  ;;  %v14998_v27 = vpack.c.bf16 %v2569_v15, %v2557_v45  ;;  %v19361_v38 = vand.u32 4294901760, %v14237_v56  ;;  %v19362_v45 = vand.u32 4294901760, %v14972_v7  ;;  %v19448_v6 = vld [vmem:[#allocation35_spill] sm:$0xff] }
 0x2e4   : > { %v2580_v52 = vsub.f32 %v14940_v48, %v19357_v29  ;;  %v2592_v5 = vsub.f32 %v14945_v2, %v19358_v0  ;;  %19359 = vst [vmem:[#allocation151_spill] sm:$0xff] %v14996_v39  ;;  %10674 = vmatpush1.bf16.msra.mxu1 %v14974_v12  ;;  %v2563_v17 = vand.u32 4294901760, %v2562_v11  ;;  %v2586_v29 = vsub.f32 %v14475_v14, %v18193_v26  ;;  %v19441_v14 = vld [vmem:[#allocation142_spill] sm:$0xff] }
 0x2e5   : > { %19360 = vst [vmem:[#allocation152_spill] sm:$0xff] %v14998_v27  ;;  %v2575_v54 = vand.u32 4294901760, %v2574_v20  ;;  %v2598_v0 = vsub.f32 %v14480_v57, %v18194_v44  ;;  %10676 = vmatprep.subr.bf16.mxu1 %v14976_v24  ;;  %v2604_v15 = vsub.f32 %v14237_v56, %v19361_v38  ;;  %v2616_v20 = vsub.f32 %v14972_v7, %v19362_v45  ;;  %v19440_v57 = vld [vmem:[#allocation61_spill] sm:$0xff] }
 0x2e6   : > { %v2581_v49 = vand.u32 4294901760, %v2580_v52  ;;  %v2593_v35 = vand.u32 4294901760, %v2592_v5  ;;  %v2587_v11 = vand.u32 4294901760, %v2586_v29  ;;  %v18198_v38 = vand.u32 4294901760, %v14597_v13 }
 0x2e7   : > { %v15015_v32 = vpack.c.bf16 %v2575_v54, %v2563_v17  ;;  %v2599_v26 = vand.u32 4294901760, %v2598_v0  ;;  %v2605_v52 = vand.u32 4294901760, %v2604_v15  ;;  %v2617_v5 = vand.u32 4294901760, %v2616_v20 }
 0x2e8   : > { %10678 = vmatpush1.bf16.msra.mxu1 %v14996_v39  ;;  %v15018_v44 = vpack.c.bf16 %v2593_v35, %v2581_v49  ;;  %v18197_v45 = vand.u32 4294901760, %v14602_v25  ;;  %v2658_v49 = vsub.f32 %v14597_v13, %v18198_v38  ;;  %v15044_v0 = vpack.c.bf16 %v14199_v33, %v14194_v55  ;;  %v19379_v38 = vld [vmem:[#allocation51_spill] sm:$0xff]  ;;  %v19400_v39 = vld [vmem:[#allocation33_spill] sm:$0xff] }
 0x2e9   : > { %19363 = vst [vmem:[#allocation153_spill] sm:$0xff] %v15015_v32  ;;  %10680 = vmatprep.subr.bf16.mxu1 %v14998_v27  ;;  %v15021_v24 = vpack.c.bf16 %v2599_v26, %v2587_v11  ;;  %v15026_v17 = vpack.c.bf16 %v2617_v5, %v2605_v52  ;;  %v15049_v15 = vpack.c.bf16 %v14303_v34, %v14298_v8  ;;  %v19373_v5 = vld [vmem:[#allocation36_spill] sm:$0xff]  ;;  %v19397_v27 = vld [vmem:[#allocation31_spill] sm:$0xff]  ;;  %v19427_v13 = vld [vmem:[#allocation133_spill] sm:$0xff] }
 0x2ea   : > { %19364 = vst [vmem:[#allocation154_spill] sm:$0xff] %v15018_v44  ;;  %v2670_v35 = vsub.f32 %v14602_v25, %v18197_v45  ;;  %v2659_v26 = vand.u32 4294901760, %v2658_v49  ;;  %19368 = vst [vmem:[#allocation158_spill] sm:$0xff] %v15044_v0  ;;  %v15054_v20 = vpack.c.bf16 %v14313_v18, %v14308_v46  ;;  %v15061_v11 = vpack.c.bf16 %v14325_v23, %v14318_v10  ;;  %v19374_v49 = vld [vmem:[#allocation38_spill] sm:$0xff] }
 0x2eb   : > { %19365 = vst [vmem:[#allocation155_spill] sm:$0xff] %v15021_v24  ;;  %19366 = vst [vmem:[#allocation156_spill] sm:$0xff] %v15026_v17  ;;  %v15066_v52 = vpack.c.bf16 %v14353_v59, %v14332_v21  ;;  %v19426_v25 = vld [vmem:[#allocation130_spill] sm:$0xff] }
 0x2ec   : > { %10682 = vmatpush1.bf16.msra.mxu1 %v15015_v32  ;;  %v2671_v54 = vand.u32 4294901760, %v2670_v35  ;;  %19369 = vst [vmem:[#allocation159_spill] sm:$0xff] %v15049_v15  ;;  %19370 = vst [vmem:[#allocation160_spill] sm:$0xff] %v15054_v20  ;;  %v15073_v35 = vpack.c.bf16 %v19374_v49, %v19373_v5 }
 0x2ed   : > { %10684 = vmatprep.subr.bf16.mxu1 %v15018_v44  ;;  %19371 = vst [vmem:[#allocation161_spill] sm:$0xff] %v15061_v11  ;;  %19372 = vst [vmem:[#allocation162_spill] sm:$0xff] %v15066_v52 }
 0x2ee   : > { %v15039_v29 = vpack.c.bf16 %v2671_v54, %v2659_v26  ;;  %19375 = vst [vmem:[#allocation36_spill] sm:$0xff] %v15073_v35  ;;  %v19376_v26 = vld [vmem:[#allocation42_spill] sm:$0xff]  ;;  %v19377_v54 = vld [vmem:[#allocation45_spill] sm:$0xff] }
 0x2ef   : > { %v15078_v45 = vpack.c.bf16 %v19377_v54, %v19376_v26 }
 0x2f0   : > { %10686 = vmatpush1.bf16.msra.mxu1 %v15021_v24  ;;  %19367 = vst [vmem:[#allocation157_spill] sm:$0xff] %v15039_v29  ;;  %v19393_v24 = vld [vmem:[#allocation73_spill] sm:$0xff] }
 0x2f1   : > { %10688 = vmatprep.subr.bf16.mxu1 %v15026_v17  ;;  %19378 = vst [vmem:[#allocation38_spill] sm:$0xff] %v15078_v45 }
 0x2f4   : > { %10690 = vmatpush1.bf16.msra.mxu1 %v14276_v60  ;;  %v19390_v60 = vld [vmem:[#allocation65_spill] sm:$0xff] }
 0x2f5   : > { %10692 = vmatprep.subr.bf16.mxu1 %v14286_v22 }
 0x2f8   : > { %10694 = vmatpush1.bf16.msra.mxu1 %v14291_v1  ;;  %v19387_v1 = vld [vmem:[#allocation75_spill] sm:$0xff] }
 0x2f9   : > { %10696 = vmatprep.subr.bf16.mxu1 %v14293_v19  ;;  %v19386_v19 = vld [vmem:[#allocation69_spill] sm:$0xff] }
 0x2fa   : > { %v15097_v22 = vpack.c.bf16 %v19387_v1, %v19386_v19 }
 0x2fc   : > { %10698 = vmatpush1.bf16.msra.mxu1 %v15039_v29  ;;  %19388 = vst [vmem:[#allocation51_spill] sm:$0xff] %v15097_v22 }
 0x2fd   : > { %10700 = vmatprep.subr.bf16.mxu1 %v15044_v0  ;;  %v19383_v0 = vld [vmem:[#allocation60_spill] sm:$0xff] }
 0x2ff   : > { %2676 = vmatmul.mubr.f32.vlgmr.msra.gmra.mrb[0].mxu1 %v14546_v47  ;;  %v19423_v47 = vld [vmem:[#allocation92_spill] sm:$0xff] }
 0x300   : > { %2682 = vmatprep.mubr.f32.mxu1 %v14605_v51  ;;  %10702 = vmatpush1.bf16.msra.mxu1 %v15049_v15  ;;  %v19420_v51 = vld [vmem:[#allocation72_spill] sm:$0xff] }
 0x301   : > { %10704 = vmatprep.subr.bf16.mxu1 %v15054_v20  ;;  %v19380_v20 = vld [vmem:[#allocation54_spill] sm:$0xff] }
 0x302   : > { %v15085_v15 = vpack.c.bf16 %v19380_v20, %v19379_v38 }
 0x303   : > { %2684 = vmatmul.mubr.f32.gmra.mrb[2].mxu1 %v14591_v62 }
 0x304   : > { %2690 = vmatprep.mubr.f32.mxu1 %v14653_v37  ;;  %10706 = vmatpush1.bf16.msra.mxu1 %v15061_v11  ;;  %19381 = vst [vmem:[#allocation42_spill] sm:$0xff] %v15085_v15  ;;  %v19382_v11 = vld [vmem:[#allocation57_spill] sm:$0xff] }
 0x305   : > { %10708 = vmatprep.subr.bf16.mxu1 %v15066_v52  ;;  %v15090_v29 = vpack.c.bf16 %v19383_v0, %v19382_v11  ;;  %v19385_v52 = vld [vmem:[#allocation125_spill] sm:$0xff] }
 0x306   : > { %v19414_v37 = vld [vmem:[#allocation109_spill] sm:$0xff] }
 0x307   : > { %2692 = vmatmul.mubr.f32.gmra.mrb[4].mxu1 %v14639_v43  ;;  %19384 = vst [vmem:[#allocation45_spill] sm:$0xff] %v15090_v29 }
 0x308   : > { %2698 = vmatprep.mubr.f32.mxu1 %v14699_v63  ;;  %10710 = vmatpush1.bf16.msra.mxu1 %v15073_v35  ;;  %v19389_v35 = vld [vmem:[#allocation78_spill] sm:$0xff]  ;;  %v19411_v63 = vld [vmem:[#allocation97_spill] sm:$0xff] }
 0x309   : > { %10712 = vmatprep.subr.bf16.mxu1 %v15078_v45  ;;  %v15102_v17 = vpack.c.bf16 %v19390_v60, %v19389_v35  ;;  %v19392_v45 = vld [vmem:[#allocation67_spill] sm:$0xff] }
 0x30a   : > { %v15107_v44 = vpack.c.bf16 %v19393_v24, %v19392_v45 }
 0x30b   : > { %2700 = vmatmul.mubr.f32.gmra.mrb[6].mxu1 %v14687_v9  ;;  %19391 = vst [vmem:[#allocation54_spill] sm:$0xff] %v15102_v17 }
 0x30c   : > { %10714 = vmatpush1.bf16.msra.mxu1 %v15085_v15  ;;  %2900 = vmatprep.mubr.f32.mxu1 %v19385_v52  ;;  %19394 = vst [vmem:[#allocation57_spill] sm:$0xff] %v15107_v44  ;;  %v19395_v15 = vld [vmem:[#allocation76_spill] sm:$0xff] }
 0x30d   : > { %10716 = vmatprep.subr.bf16.mxu1 %v15090_v29  ;;  %v15112_v32 = vpack.c.bf16 %v19395_v15, %v14650_v53  ;;  %v15117_v29 = vpack.c.bf16 %v14696_v41, %v19397_v27 }
 0x30f   : > { %19396 = vst [vmem:[#allocation60_spill] sm:$0xff] %v15112_v32  ;;  %19398 = vst [vmem:[#allocation125_spill] sm:$0xff] %v15117_v29 }
 0x310   : > { %10718 = vmatpush1.bf16.msra.mxu1 %v15097_v22  ;;  %v15122_v22 = vpack.c.bf16 %v14734_v28, %v14729_v30 }
 0x311   : > { %10720 = vmatprep.subr.bf16.mxu1 %v15102_v17  ;;  %v19401_v17 = vld [vmem:[#allocation32_spill] sm:$0xff] }
 0x312   : > { %19399 = vst [vmem:[#allocation69_spill] sm:$0xff] %v15122_v22  ;;  %v15127_v12 = vpack.c.bf16 %v19401_v17, %v19400_v39 }
 0x314   : > { %10722 = vmatpush1.bf16.msra.mxu1 %v15107_v44  ;;  %19402 = vst [vmem:[#allocation75_spill] sm:$0xff] %v15127_v12  ;;  %v19404_v44 = vld [vmem:[#allocation40_spill] sm:$0xff] }
 0x315   : > { %10724 = vmatprep.subr.bf16.mxu1 %v15112_v32  ;;  %v15132_v58 = vpack.c.bf16 %v19404_v44, %v19403_v42  ;;  %v19406_v32 = vld [vmem:[#allocation46_spill] sm:$0xff] }
 0x316   : > { %v15137_v40 = vpack.c.bf16 %v19406_v32, %v14815_v50 }
 0x317   : > { %19405 = vst [vmem:[#allocation78_spill] sm:$0xff] %v15132_v58 }
 0x318   : > { %10726 = vmatpush1.bf16.msra.mxu1 %v15117_v29  ;;  %19407 = vst [vmem:[#allocation65_spill] sm:$0xff] %v15137_v40  ;;  %v19409_v29 = vld [vmem:[#allocation49_spill] sm:$0xff] }
 0x319   : > { %10728 = vmatprep.subr.bf16.mxu1 %v15122_v22  ;;  %v15142_v9 = vpack.c.bf16 %v19409_v29, %v19408_v36  ;;  %v19412_v22 = vld [vmem:[#allocation82_spill] sm:$0xff] }
 0x31a   : > { %v15147_v43 = vpack.c.bf16 %v19412_v22, %v19411_v63 }
 0x31b   : > { %19410 = vst [vmem:[#allocation67_spill] sm:$0xff] %v15142_v9 }
 0x31c   : > { %10730 = vmatpush1.bf16.msra.mxu1 %v15127_v12  ;;  %19413 = vst [vmem:[#allocation73_spill] sm:$0xff] %v15147_v43  ;;  %v19415_v12 = vld [vmem:[#allocation111_spill] sm:$0xff] }
 0x31d   : > { %10732 = vmatprep.subr.bf16.mxu1 %v15132_v58  ;;  %v15152_v62 = vpack.c.bf16 %v19415_v12, %v19414_v37  ;;  %v15157_v58 = vpack.c.bf16 %v14887_v31, %v14881_v16 }
 0x31f   : > { %19416 = vst [vmem:[#allocation76_spill] sm:$0xff] %v15152_v62  ;;  %19417 = vst [vmem:[#allocation31_spill] sm:$0xff] %v15157_v58 }
 0x320   : > { %10734 = vmatpush1.bf16.msra.mxu1 %v15137_v40  ;;  %v15162_v40 = vpack.c.bf16 %v14897_v61, %v14892_v4 }
 0x321   : > { %10736 = vmatprep.subr.bf16.mxu1 %v15142_v9  ;;  %v15168_v9 = vpack.c.bf16 %v14945_v2, %v14940_v48  ;;  %v19444_v2 = vld [vmem:[#allocation70_spill] sm:$0xff]  ;;  %v19447_v48 = vld [vmem:[#allocation96_spill] sm:$0xff] }
 0x322   : > { %19418 = vst [vmem:[#allocation33_spill] sm:$0xff] %v15162_v40 }
 0x323   : > { %19419 = vst [vmem:[#allocation32_spill] sm:$0xff] %v15168_v9 }
 0x324   : > { %10738 = vmatpush1.bf16.msra.mxu1 %v15147_v43  ;;  %v15174_v43 = vpack.c.bf16 %v14972_v7, %v14237_v56  ;;  %v19430_v7 = vld [vmem:[#allocation134_spill] sm:$0xff] }
 0x325   : > { %10740 = vmatprep.subr.bf16.mxu1 %v15152_v62  ;;  %v19422_v62 = vld [vmem:[#allocation86_spill] sm:$0xff] }
 0x326   : > { %19421 = vst [vmem:[#allocation37_spill] sm:$0xff] %v15174_v43  ;;  %v19431_v56 = vld [vmem:[#allocation26_spill] sm:$0xff] }
 0x328   : > { %10742 = vmatpush1.bf16.msra.mxu1 %v15157_v58  ;;  %v19424_v58 = vld [vmem:[#allocation120_spill] sm:$0xff] }
 0x329   : > { %10744 = vmatprep.subr.bf16.mxu1 %v15162_v40  ;;  %v19425_v40 = vld [vmem:[#allocation123_spill] sm:$0xff] }
 0x32c   : > { %10746 = vmatpush1.bf16.msra.mxu1 %v19420_v51  ;;  %v19428_v51 = vld [vmem:[#allocation25_spill] sm:$0xff] }
 0x32d   : > { %10748 = vmatprep.subr.bf16.mxu1 %v15168_v9  ;;  %v19429_v9 = vld [vmem:[#allocation121_spill] sm:$0xff] }
 0x330   : > { %10750 = vmatpush1.bf16.msra.mxu1 %v19422_v62  ;;  %v19432_v62 = vld [vmem:[#allocation27_spill] sm:$0xff] }
 0x331   : > { %10752 = vmatprep.subr.bf16.mxu1 %v15174_v43  ;;  %v19433_v43 = vld [vmem:[#allocation131_spill] sm:$0xff] }
 0x334   : > { %10754 = vmatpush1.bf16.msra.mxu1 %v19423_v47  ;;  %v19434_v47 = vld [vmem:[#allocation139_spill] sm:$0xff] }
 0x335   : > { %10756 = vmatprep.subr.bf16.mxu1 %v19424_v58  ;;  %v19435_v58 = vld [vmem:[#allocation56_spill] sm:$0xff] }
 0x338   : > { %10758 = vmatpush1.bf16.msra.mxu1 %v19425_v40  ;;  %v19436_v40 = vld [vmem:[#allocation58_spill] sm:$0xff] }
 0x339   : > { %10760 = vmatprep.subr.bf16.mxu1 %v19426_v25  ;;  %v19437_v25 = vld [vmem:[#allocation137_spill] sm:$0xff] }
 0x33c   : > { %10762 = vmatpush1.bf16.msra.mxu1 %v19427_v13  ;;  %v19438_v13 = vld [vmem:[#allocation143_spill] sm:$0xff] }
 0x33d   : > { %10764 = vmatprep.subr.bf16.mxu1 %v19428_v51  ;;  %v19439_v51 = vld [vmem:[#allocation59_spill] sm:$0xff] }
 0x33f   : > { %2903 = vmatmul.mubr.f32.vlgmr.msra.gmra.mrb[0].mxu1 %v19429_v9 }
 0x340   : > { %2910 = vmatprep.mubr.f32.mxu1 %v19430_v7  ;;  %10766 = vmatpush1.bf16.msra.mxu1 %v19431_v56  ;;  %v19442_v56 = vld [vmem:[#allocation68_spill] sm:$0xff] }
 0x341   : > { %10768 = vmatprep.subr.bf16.mxu1 %v19432_v62  ;;  %v19443_v62 = vand.u32 4294901760, %v19385_v52  ;;  %v19453_v52 = vld [vmem:[#allocation113_spill] sm:$0xff] }
 0x343   : > { %2913 = vmatmul.mubr.f32.gmra.mrb[2].mxu1 %v19433_v43 }
 0x344   : > { %2920 = vmatprep.mubr.f32.mxu1 %v19434_v47  ;;  %10770 = vmatpush1.bf16.msra.mxu1 %v19435_v58  ;;  %v19445_v58 = vld [vmem:[#allocation22_spill] sm:$0xff] }
 0x345   : > { %10772 = vmatprep.subr.bf16.mxu1 %v19436_v40  ;;  %v19446_v40 = vld [vmem:[#allocation24_spill] sm:$0xff] }
 0x347   : > { %2923 = vmatmul.mubr.f32.gmra.mrb[4].mxu1 %v19437_v25 }
 0x348   : > { %2930 = vmatprep.mubr.f32.mxu1 %v19438_v13  ;;  %10774 = vmatpush1.bf16.msra.mxu1 %v19439_v51  ;;  %v19449_v51 = vld [vmem:[#allocation43_spill] sm:$0xff] }
 0x349   : > { %10776 = vmatprep.subr.bf16.mxu1 %v19440_v57  ;;  %v19450_v57 = vld [vmem:[#allocation47_spill] sm:$0xff] }
 0x34b   : > { %2933 = vmatmul.mubr.f32.gmra.mrb[6].mxu1 %v19441_v14 }
 0x34c   : > { %10778 = vmatpush1.bf16.msra.mxu1 %v19442_v56  ;;  %3070 = vmatprep.mubr.f32.mxu1 %v19443_v62  ;;  %v19452_v56 = vld [vmem:[#allocation55_spill] sm:$0xff] }
 0x34d   : > { %10780 = vmatprep.subr.bf16.mxu1 %v19444_v2  ;;  %v19454_v62 = vld [vmem:[#allocation115_spill] sm:$0xff]  ;;  %v19455_v2 = vld [vmem:[#allocation41_spill] sm:$0xff] }
 0x350   : > { %10782 = vmatpush1.bf16.msra.mxu1 %v19445_v58  ;;  %v19456_v58 = vld [vmem:[#allocation79_spill] sm:$0xff] }
 0x351   : > { %10784 = vmatprep.subr.bf16.mxu1 %v19446_v40  ;;  %v19457_v40 = vld [vmem:[#allocation87_spill] sm:$0xff] }
 0x354   : > { %10786 = vmatpush1.bf16.msra.mxu1 %v19447_v48  ;;  %v19458_v48 = vld [vmem:[#allocation90_spill] sm:$0xff] }
 0x355   : > { %10788 = vmatprep.subr.bf16.mxu1 %v19448_v6  ;;  %v19459_v6 = vld [vmem:[#allocation95_spill] sm:$0xff] }
 0x358   : > { %10790 = vmatpush1.bf16.msra.mxu1 %v19449_v51  ;;  %v19460_v51 = vld [vmem:[#allocation98_spill] sm:$0xff] }
 0x359   : > { %10792 = vmatprep.subr.bf16.mxu1 %v19450_v57  ;;  %v19461_v57 = vld [vmem:[#allocation100_spill] sm:$0xff] }
 0x35c   : > { %10794 = vmatpush1.bf16.msra.mxu1 %v19451_v3  ;;  %v19462_v3 = vld [vmem:[#allocation101_spill] sm:$0xff] }
 0x35d   : > { %10796 = vmatprep.subr.bf16.mxu1 %v19452_v56  ;;  %v19463_v56 = vld [vmem:[#allocation103_spill] sm:$0xff] }
 0x360   : > { %10798 = vmatpush1.bf16.msra.mxu1 %v19453_v52  ;;  %v19464_v52 = vld [vmem:[#allocation104_spill] sm:$0xff] }
 0x361   : > { %10800 = vmatprep.subr.bf16.mxu1 %v19454_v62  ;;  %v19465_v62 = vld [vmem:[#allocation106_spill] sm:$0xff] }
 0x364   : > { %10802 = vmatpush1.bf16.msra.mxu1 %v19455_v2  ;;  %v19466_v2 = vld [vmem:[#allocation107_spill] sm:$0xff] }
 0x365   : > { %10804 = vmatprep.subr.bf16.mxu1 %v19456_v58 }
 0x368   : > { %10806 = vmatpush1.bf16.msra.mxu1 %v19457_v40  ;;  %v19467_v40 = vand.u32 4294901760, %v14194_v55  ;;  %v19478_v55 = vand.u32 4294901760, %v19430_v7  ;;  %v19495_v7 = vand.u32 4294901760, %v19379_v38  ;;  %v19503_v38 = vand.u32 4294901760, %v19386_v19 }
 0x369   : > { %10808 = vmatprep.subr.bf16.mxu1 %v19458_v48  ;;  %v19468_v48 = vand.u32 4294901760, %v14199_v33  ;;  %v19477_v33 = vand.u32 4294901760, %v19429_v9  ;;  %v19485_v9 = vand.u32 4294901760, %v19433_v43  ;;  %v19493_v43 = vand.u32 4294901760, %v19437_v25 }
 0x36a   : > { %v19501_v25 = vand.u32 4294901760, %v19441_v14  ;;  %v19509_v14 = vand.u32 4294901760, %v19392_v45  ;;  %v19512_v19 = vand.u32 4294901760, %v14650_v53  ;;  %v19519_v45 = vand.u32 4294901760, %v14734_v28 }
 0x36b   : > { %v15227_v58 = vpack.c.bf16 %v19468_v48, %v19467_v40  ;;  %v19486_v48 = vand.u32 4294901760, %v19434_v47  ;;  %v19494_v47 = vand.u32 4294901760, %v19438_v13  ;;  %v19502_v13 = vld [vmem:[#allocation119_spill] sm:$0xff]  ;;  %v19521_v53 = vand.u32 4294901760, %v19400_v39 }
 0x36c   : > { %10810 = vmatpush1.bf16.msra.mxu1 %v19459_v6  ;;  %v19470_v6 = vld [vmem:[#allocation16_spill] sm:$0xff]  ;;  %v19528_v28 = vand.u32 4294901760, %v19406_v32  ;;  %v19530_v39 = vand.u32 4294901760, %v19408_v36  ;;  %v19537_v32 = vand.u32 4294901760, %v19415_v12  ;;  %v19539_v36 = vand.u32 4294901760, %v14881_v16 }
 0x36d   : > { %10812 = vmatprep.subr.bf16.mxu1 %v19460_v51  ;;  %19469 = vst [vmem:[#allocation40_spill] sm:$0xff] %v15227_v58  ;;  %v19550_v16 = vld [vmem:[#allocation88_spill] sm:$0xff] }
 0x370   : > { %10814 = vmatpush1.bf16.msra.mxu1 %v19461_v57  ;;  %v19471_v57 = vand.u32 4294901760, %v14298_v8  ;;  %v19479_v8 = vand.u32 4294901760, %v14318_v10  ;;  %v19487_v10 = vand.u32 4294901760, %v19373_v5  ;;  %v19496_v5 = vand.u32 4294901760, %v19380_v20 }
 0x371   : > { %10816 = vmatprep.subr.bf16.mxu1 %v19462_v3  ;;  %v19472_v3 = vand.u32 4294901760, %v14303_v34  ;;  %v19480_v34 = vand.u32 4294901760, %v14325_v23  ;;  %v19488_v23 = vand.u32 4294901760, %v19374_v49  ;;  %v19504_v20 = vand.u32 4294901760, %v19387_v1 }
 0x372   : > { %v15288_v49 = vpack.c.bf16 %v19496_v5, %v19495_v7  ;;  %v19513_v1 = vand.u32 4294901760, %v19395_v15  ;;  %v19522_v15 = vand.u32 4294901760, %v19401_v17  ;;  %v19531_v17 = vand.u32 4294901760, %v19409_v29  ;;  %v19547_v5 = vld [vmem:[#allocation66_spill] sm:$0xff] }
 0x373   : > { %v15234_v51 = vpack.c.bf16 %v19472_v3, %v19471_v57  ;;  %v15252_v57 = vpack.c.bf16 %v19480_v34, %v19479_v8  ;;  %v19510_v8 = vand.u32 4294901760, %v19393_v24  ;;  %v19518_v24 = vand.u32 4294901760, %v14729_v30 }
 0x374   : > { %10818 = vmatpush1.bf16.msra.mxu1 %v19463_v56  ;;  %19497 = vst [vmem:[#allocation111_spill] sm:$0xff] %v15288_v49  ;;  %v19527_v30 = vand.u32 4294901760, %v14815_v50  ;;  %v19536_v50 = vand.u32 4294901760, %v19414_v37  ;;  %v19540_v29 = vand.u32 4294901760, %v14887_v31  ;;  %v19545_v37 = vld [vmem:[#allocation63_spill] sm:$0xff]  ;;  %v19551_v31 = vand.u32 4294901760, %v19550_v16 }
 0x375   : > { %10820 = vmatprep.subr.bf16.mxu1 %v19464_v52  ;;  %19473 = vst [vmem:[#allocation46_spill] sm:$0xff] %v15234_v51  ;;  %19481 = vst [vmem:[#allocation49_spill] sm:$0xff] %v15252_v57  ;;  %v15319_v34 = vpack.c.bf16 %v19510_v8, %v19509_v14  ;;  %v19546_v12 = vand.u32 4294901760, %v19545_v37  ;;  %v19560_v8 = vld [vmem:[#allocation17_spill] sm:$0xff]  ;;  %v19587_v16 = vld [vmem:[#allocation128_spill] sm:$0xff] }
 0x377   : > { %19511 = vst [vmem:[#allocation139_spill] sm:$0xff] %v15319_v34 }
 0x378   : > { %10822 = vmatpush1.bf16.msra.mxu1 %v19465_v62  ;;  %v19474_v62 = vand.u32 4294901760, %v14308_v46  ;;  %v19482_v46 = vand.u32 4294901760, %v14332_v21  ;;  %v19491_v21 = vand.u32 4294901760, %v19377_v54  ;;  %v19499_v54 = vand.u32 4294901760, %v19383_v0 }
 0x379   : > { %10824 = vmatprep.subr.bf16.mxu1 %v19466_v2  ;;  %v19475_v2 = vand.u32 4294901760, %v14313_v18  ;;  %v19483_v18 = vand.u32 4294901760, %v14353_v59  ;;  %v19490_v59 = vand.u32 4294901760, %v19376_v26  ;;  %v19498_v26 = vand.u32 4294901760, %v19382_v11 }
 0x37a   : > { %v19506_v11 = vand.u32 4294901760, %v19389_v35  ;;  %v19507_v0 = vand.u32 4294901760, %v19390_v60  ;;  %v19515_v60 = vand.u32 4294901760, %v19397_v27  ;;  %v19516_v35 = vand.u32 4294901760, %v14696_v41 }
 0x37b   : > { %v15241_v52 = vpack.c.bf16 %v19475_v2, %v19474_v62  ;;  %v15259_v3 = vpack.c.bf16 %v19483_v18, %v19482_v46  ;;  %v15270_v2 = vpack.c.bf16 %v19488_v23, %v19487_v10  ;;  %v15277_v40 = vpack.c.bf16 %v19491_v21, %v19490_v59 }
 0x37c   : > { %10826 = vmatpush1.bf16.msra.mxu1 %v19470_v6  ;;  %v15295_v62 = vpack.c.bf16 %v19499_v54, %v19498_v26  ;;  %v15326_v46 = vpack.c.bf16 %v19513_v1, %v19512_v19  ;;  %v15333_v18 = vpack.c.bf16 %v19516_v35, %v19515_v60  ;;  %v19524_v41 = vand.u32 4294901760, %v19403_v42  ;;  %v19562_v1 = vld [vmem:[#allocation148_spill] sm:$0xff] }
 0x37d   : > { %10828 = vmatprep.subr.bf16.mxu1 %v15227_v58  ;;  %19476 = vst [vmem:[#allocation50_spill] sm:$0xff] %v15241_v52  ;;  %19484 = vst [vmem:[#allocation97_spill] sm:$0xff] %v15259_v3  ;;  %v19525_v27 = vand.u32 4294901760, %v19404_v44  ;;  %v15361_v23 = vpack.c.bf16 %v19528_v28, %v19527_v30  ;;  %v15368_v59 = vpack.c.bf16 %v19531_v17, %v19530_v39  ;;  %v19533_v42 = vand.u32 4294901760, %v19411_v63  ;;  %v19572_v28 = vld [vmem:[#allocation19_spill] sm:$0xff] }
 0x37e   : > { %19489 = vst [vmem:[#allocation82_spill] sm:$0xff] %v15270_v2  ;;  %19492 = vst [vmem:[#allocation109_spill] sm:$0xff] %v15277_v40  ;;  %v19534_v44 = vand.u32 4294901760, %v19412_v22  ;;  %v19542_v22 = vand.u32 4294901760, %v14892_v4  ;;  %v19543_v63 = vand.u32 4294901760, %v14897_v61  ;;  %v19548_v26 = vand.u32 4294901760, %v19547_v5 }
 0x37f   : > { %3074 = vmatmul.mubr.f32.vlgmr.msra.gmra.mrb[0].mxu1 %v19477_v33  ;;  %19500 = vst [vmem:[#allocation121_spill] sm:$0xff] %v15295_v62  ;;  %v15305_v33 = vpack.c.bf16 %v19504_v20, %v19503_v38  ;;  %19514 = vst [vmem:[#allocation137_spill] sm:$0xff] %v15326_v46  ;;  %v15354_v10 = vpack.c.bf16 %v19525_v27, %v19524_v41  ;;  %v19555_v4 = vld [vmem:[#allocation81_spill] sm:$0xff]  ;;  %v19561_v19 = vand.u32 4294901760, %v19560_v8  ;;  %v19563_v60 = vand.u32 4294901760, %v19562_v1  ;;  %v19570_v27 = vld [vmem:[#allocation108_spill] sm:$0xff] }
 0x380   : > { %3082 = vmatprep.mubr.f32.mxu1 %v19478_v55  ;;  %10830 = vmatpush1.bf16.msra.mxu1 %v15234_v51  ;;  %v15312_v55 = vpack.c.bf16 %v19507_v0, %v19506_v11  ;;  %19517 = vst [vmem:[#allocation143_spill] sm:$0xff] %v15333_v18  ;;  %19529 = vst [vmem:[#allocation164_spill] sm:$0xff] %v15361_v23  ;;  %v15375_v21 = vpack.c.bf16 %v19534_v44, %v19533_v42  ;;  %v19556_v61 = vand.u32 4294901760, %v19555_v4  ;;  %v19557_v11 = vld [vmem:[#allocation84_spill] sm:$0xff]  ;;  %v19575_v42 = vld [vmem:[#allocation110_spill] sm:$0xff] }
 0x381   : > { %10832 = vmatprep.subr.bf16.mxu1 %v15241_v52  ;;  %19505 = vst [vmem:[#allocation134_spill] sm:$0xff] %v15305_v33  ;;  %19526 = vst [vmem:[#allocation163_spill] sm:$0xff] %v15354_v10  ;;  %v15396_v7 = vpack.c.bf16 %v19543_v63, %v19542_v22  ;;  %v15403_v54 = vpack.c.bf16 %v19548_v26, %v19546_v12  ;;  %v19558_v0 = vand.u32 4294901760, %v19557_v11  ;;  %v19571_v30 = vand.u32 4294901760, %v19570_v27  ;;  %v19582_v63 = vld [vmem:[#allocation21_spill] sm:$0xff]  ;;  %v19585_v5 = vld [vmem:[#allocation127_spill] sm:$0xff] }
 0x382   : > { %19508 = vst [vmem:[#allocation131_spill] sm:$0xff] %v15312_v55  ;;  %19532 = vst [vmem:[#allocation165_spill] sm:$0xff] %v15368_v59  ;;  %v15424_v35 = vpack.c.bf16 %v19563_v60, %v19561_v19  ;;  %v19573_v39 = vand.u32 4294901760, %v19572_v28  ;;  %v19576_v44 = vand.u32 4294901760, %v19575_v42  ;;  %v19583_v37 = vand.u32 4294901760, %v19582_v63  ;;  %v19591_v4 = vld [vmem:[#allocation71_spill] sm:$0xff] }
 0x383   : > { %3086 = vmatmul.mubr.f32.gmra.mrb[2].mxu1 %v19485_v9  ;;  %v15340_v9 = vpack.c.bf16 %v19519_v45, %v19518_v24  ;;  %19535 = vst [vmem:[#allocation166_spill] sm:$0xff] %v15375_v21  ;;  %19544 = vst [vmem:[#allocation169_spill] sm:$0xff] %v15396_v7  ;;  %v15417_v14 = vpack.c.bf16 %v19558_v0, %v19556_v61  ;;  %v19565_v24 = vld [vmem:[#allocation77_spill] sm:$0xff]  ;;  %v19586_v26 = vand.u32 4294901760, %v19585_v5  ;;  %v19593_v11 = vld [vmem:[#allocation26_spill] sm:$0xff] }
 0x384   : > { %3094 = vmatprep.mubr.f32.mxu1 %v19486_v48  ;;  %10834 = vmatpush1.bf16.msra.mxu1 %v15252_v57  ;;  %v15347_v48 = vpack.c.bf16 %v19522_v15, %v19521_v53  ;;  %19549 = vst [vmem:[#allocation63_spill] sm:$0xff] %v15403_v54  ;;  %v19566_v45 = vand.u32 4294901760, %v19565_v24  ;;  %v19567_v53 = vld [vmem:[#allocation18_spill] sm:$0xff]  ;;  %v15438_v17 = vpack.c.bf16 %v19573_v39, %v19571_v30  ;;  %v19592_v61 = vld [vmem:[#allocation129_spill] sm:$0xff]  ;;  %v19594_v0 = vld [vmem:[#allocation27_spill] sm:$0xff] }
 0x385   : > { %10836 = vmatprep.subr.bf16.mxu1 %v15259_v3  ;;  %19520 = vst [vmem:[#allocation142_spill] sm:$0xff] %v15340_v9  ;;  %19559 = vst [vmem:[#allocation88_spill] sm:$0xff] %v15417_v14  ;;  %v19568_v15 = vand.u32 4294901760, %v19567_v53  ;;  %v19595_v8 = vld [vmem:[#allocation126_spill] sm:$0xff]  ;;  %v19597_v1 = vld [vmem:[#allocation56_spill] sm:$0xff] }
 0x386   : > { %19523 = vst [vmem:[#allocation119_spill] sm:$0xff] %v15347_v48  ;;  %19574 = vst [vmem:[#allocation84_spill] sm:$0xff] %v15438_v17  ;;  %v19596_v19 = vld [vmem:[#allocation74_spill] sm:$0xff]  ;;  %v19599_v24 = vld [vmem:[#allocation136_spill] sm:$0xff] }
 0x387   : > { %3098 = vmatmul.mubr.f32.gmra.mrb[4].mxu1 %v19493_v43  ;;  %v15382_v43 = vpack.c.bf16 %v19537_v32, %v19536_v50  ;;  %v15431_v41 = vpack.c.bf16 %v19568_v15, %v19566_v45  ;;  %v19577_v50 = vld [vmem:[#allocation20_spill] sm:$0xff]  ;;  %v19598_v60 = vld [vmem:[#allocation58_spill] sm:$0xff]  ;;  %v19601_v53 = vld [vmem:[#allocation59_spill] sm:$0xff] }
 0x388   : > { %3106 = vmatprep.mubr.f32.mxu1 %v19494_v47  ;;  %10838 = vmatpush1.bf16.msra.mxu1 %v15270_v2  ;;  %v15389_v47 = vpack.c.bf16 %v19540_v29, %v19539_v36  ;;  %v19578_v32 = vand.u32 4294901760, %v19577_v50  ;;  %v19580_v29 = vld [vmem:[#allocation112_spill] sm:$0xff]  ;;  %v19600_v45 = vld [vmem:[#allocation30_spill] sm:$0xff]  ;;  %v19602_v15 = vld [vmem:[#allocation61_spill] sm:$0xff] }
 0x389   : > { %10840 = vmatprep.subr.bf16.mxu1 %v15277_v40  ;;  %19538 = vst [vmem:[#allocation167_spill] sm:$0xff] %v15382_v43  ;;  %19569 = vst [vmem:[#allocation81_spill] sm:$0xff] %v15431_v41  ;;  %v19581_v22 = vand.u32 4294901760, %v19580_v29  ;;  %v19603_v27 = vld [vmem:[#allocation141_spill] sm:$0xff]  ;;  %v19604_v30 = vld [vmem:[#allocation68_spill] sm:$0xff] }
 0x38a   : > { %19541 = vst [vmem:[#allocation168_spill] sm:$0xff] %v15389_v47  ;;  %v15445_v36 = vpack.c.bf16 %v19578_v32, %v19576_v44  ;;  %v19605_v28 = vld [vmem:[#allocation70_spill] sm:$0xff]  ;;  %v19607_v42 = vld [vmem:[#allocation24_spill] sm:$0xff]  ;;  %v19609_v50 = vld [vmem:[#allocation35_spill] sm:$0xff] }
 0x38b   : > { %3110 = vmatmul.mubr.f32.gmra.mrb[6].mxu1 %v19501_v25  ;;  %v19552_v25 = vld [vmem:[#allocation83_spill] sm:$0xff]  ;;  %v15452_v12 = vpack.c.bf16 %v19583_v37, %v19581_v22  ;;  %v19606_v39 = vld [vmem:[#allocation22_spill] sm:$0xff]  ;;  %v19608_v44 = vld [vmem:[#allocation96_spill] sm:$0xff] }
 0x38c   : > { %10842 = vmatpush1.bf16.msra.mxu1 %v15288_v49  ;;  %3373 = vmatprep.mubr.f32.mxu1 %v19502_v13  ;;  %v19553_v38 = vand.u32 4294901760, %v19552_v25  ;;  %19564 = vst [vmem:[#allocation83_spill] sm:$0xff] %v15424_v35  ;;  %19579 = vst [vmem:[#allocation17_spill] sm:$0xff] %v15445_v36  ;;  %v19610_v32 = vld [vmem:[#allocation43_spill] sm:$0xff]  ;;  %v19612_v22 = vld [vmem:[#allocation52_spill] sm:$0xff] }
 0x38d   : > { %10844 = vmatprep.subr.bf16.mxu1 %v15295_v62  ;;  %19584 = vst [vmem:[#allocation148_spill] sm:$0xff] %v15452_v12  ;;  %v19611_v29 = vld [vmem:[#allocation47_spill] sm:$0xff]  ;;  %v19614_v37 = vld [vmem:[#allocation113_spill] sm:$0xff]  ;;  %v19642_v62 = vld [vmem:[#allocation140_spill] sm:$0xff] }
 0x38e   : > { %v15410_v20 = vpack.c.bf16 %v19553_v38, %v19551_v31  ;;  %v19588_v31 = vand.u32 4294901760, %v19587_v16  ;;  %v19590_v38 = vld [vmem:[#allocation25_spill] sm:$0xff]  ;;  %v19613_v63 = vld [vmem:[#allocation55_spill] sm:$0xff] }
 0x38f   : > { %v19616_v5 = vld [vmem:[#allocation41_spill] sm:$0xff]  ;;  %v19618_v16 = vld [vmem:[#allocation87_spill] sm:$0xff] }
 0x390   : > { %10846 = vmatpush1.bf16.msra.mxu1 %v15305_v33  ;;  %19554 = vst [vmem:[#allocation66_spill] sm:$0xff] %v15410_v20  ;;  %v15459_v25 = vpack.c.bf16 %v19588_v31, %v19586_v26  ;;  %v19617_v26 = vld [vmem:[#allocation79_spill] sm:$0xff]  ;;  %v19619_v31 = vld [vmem:[#allocation90_spill] sm:$0xff] }
 0x391   : > { %10848 = vmatprep.subr.bf16.mxu1 %v15312_v55 }
 0x392   : > { %19589 = vst [vmem:[#allocation77_spill] sm:$0xff] %v15459_v25 }
 0x394   : > { %10850 = vmatpush1.bf16.msra.mxu1 %v15319_v34 }
 0x395   : > { %10852 = vmatprep.subr.bf16.mxu1 %v15326_v46 }
 0x398   : > { %10854 = vmatpush1.bf16.msra.mxu1 %v15333_v18  ;;  %v19638_v18 = vld [vmem:[#allocation135_spill] sm:$0xff] }
 0x399   : > { %10856 = vmatprep.subr.bf16.mxu1 %v15340_v9 }
 0x39c   : > { %10858 = vmatpush1.bf16.msra.mxu1 %v15347_v48 }
 0x39d   : > { %10860 = vmatprep.subr.bf16.mxu1 %v15354_v10 }
 0x3a0   : > { %10862 = vmatpush1.bf16.msra.mxu1 %v15361_v23 }
 0x3a1   : > { %10864 = vmatprep.subr.bf16.mxu1 %v15368_v59 }
 0x3a4   : > { %10866 = vmatpush1.bf16.msra.mxu1 %v15375_v21 }
 0x3a5   : > { %10868 = vmatprep.subr.bf16.mxu1 %v15382_v43 }
 0x3a8   : > { %10870 = vmatpush1.bf16.msra.mxu1 %v15389_v47 }
 0x3a9   : > { %10872 = vmatprep.subr.bf16.mxu1 %v15396_v7 }
 0x3ac   : > { %10874 = vmatpush1.bf16.msra.mxu1 %v15403_v54 }
 0x3ad   : > { %10876 = vmatprep.subr.bf16.mxu1 %v15410_v20  ;;  %v19630_v20 = vld [vmem:[#allocation93_spill] sm:$0xff] }
 0x3b0   : > { %10878 = vmatpush1.bf16.msra.mxu1 %v15417_v14  ;;  %v19626_v14 = vld [vmem:[#allocation107_spill] sm:$0xff] }
 0x3b1   : > { %10880 = vmatprep.subr.bf16.mxu1 %v15424_v35  ;;  %v19625_v35 = vld [vmem:[#allocation106_spill] sm:$0xff] }
 0x3b4   : > { %10882 = vmatpush1.bf16.msra.mxu1 %v15431_v41  ;;  %v19624_v41 = vld [vmem:[#allocation104_spill] sm:$0xff] }
 0x3b5   : > { %10884 = vmatprep.subr.bf16.mxu1 %v15438_v17  ;;  %v19623_v17 = vld [vmem:[#allocation101_spill] sm:$0xff] }
 0x3b8   : > { %10886 = vmatpush1.bf16.msra.mxu1 %v15445_v36  ;;  %v19622_v36 = vld [vmem:[#allocation100_spill] sm:$0xff] }
 0x3b9   : > { %10888 = vmatprep.subr.bf16.mxu1 %v15452_v12  ;;  %v19621_v12 = vld [vmem:[#allocation98_spill] sm:$0xff] }
 0x3bc   : > { %10890 = vmatpush1.bf16.msra.mxu1 %v15459_v25  ;;  %v19620_v25 = vld [vmem:[#allocation95_spill] sm:$0xff] }
 0x3bd   : > { %10892 = vmatprep.subr.bf16.mxu1 %v19590_v38 }
 0x3bf   : > { %3375 = vmatmul.mubr.f32.vlgmr.msra.gmra.mrb[0].mxu1 %v19591_v4 }
 0x3c0   : > { %3381 = vmatprep.mubr.f32.mxu1 %v19592_v61  ;;  %10894 = vmatpush1.bf16.msra.mxu1 %v19593_v11 }
 0x3c1   : > { %10896 = vmatprep.subr.bf16.mxu1 %v19594_v0 }
 0x3c3   : > { %3383 = vmatmul.mubr.f32.gmra.mrb[2].mxu1 %v19595_v8 }
 0x3c4   : > { %3389 = vmatprep.mubr.f32.mxu1 %v19596_v19  ;;  %10898 = vmatpush1.bf16.msra.mxu1 %v19597_v1 }
 0x3c5   : > { %10900 = vmatprep.subr.bf16.mxu1 %v19598_v60 }
 0x3c7   : > { %3391 = vmatmul.mubr.f32.gmra.mrb[4].mxu1 %v19599_v24 }
 0x3c8   : > { %3397 = vmatprep.mubr.f32.mxu1 %v19600_v45  ;;  %10902 = vmatpush1.bf16.msra.mxu1 %v19601_v53 }
 0x3c9   : > { %10904 = vmatprep.subr.bf16.mxu1 %v19602_v15 }
 0x3cb   : > { %3399 = vmatmul.mubr.f32.gmra.mrb[6].mxu1 %v19603_v27 }
 0x3cc   : > { %10906 = vmatpush1.bf16.msra.mxu1 %v19604_v30  ;;  %3534 = vmatprep.mubr.f32.mxu1 %v19502_v13  ;;  %v19615_v13 = vld [vmem:[#allocation115_spill] sm:$0xff] }
 0x3cd   : > { %10908 = vmatprep.subr.bf16.mxu1 %v19605_v28 }
 0x3d0   : > { %10910 = vmatpush1.bf16.msra.mxu1 %v19606_v39 }
 0x3d1   : > { %10912 = vmatprep.subr.bf16.mxu1 %v19607_v42 }
 0x3d4   : > { %10914 = vmatpush1.bf16.msra.mxu1 %v19608_v44 }
 0x3d5   : > { %10916 = vmatprep.subr.bf16.mxu1 %v19609_v50 }
 0x3d8   : > { %10918 = vmatpush1.bf16.msra.mxu1 %v19610_v32 }
 0x3d9   : > { %10920 = vmatprep.subr.bf16.mxu1 %v19611_v29 }
 0x3dc   : > { %10922 = vmatpush1.bf16.msra.mxu1 %v19612_v22 }
 0x3dd   : > { %10924 = vmatprep.subr.bf16.mxu1 %v19613_v63 }
 0x3e0   : > { %10926 = vmatpush1.bf16.msra.mxu1 %v19614_v37 }
 0x3e1   : > { %10928 = vmatprep.subr.bf16.mxu1 %v19615_v13 }
 0x3e4   : > { %10930 = vmatpush1.bf16.msra.mxu1 %v19616_v5 }
 0x3e5   : > { %10932 = vmatprep.subr.bf16.mxu1 %v19617_v26 }
 0x3e8   : > { %10934 = vmatpush1.bf16.msra.mxu1 %v19618_v16 }
 0x3e9   : > { %10936 = vmatprep.subr.bf16.mxu1 %v19619_v31 }
 0x3ec   : > { %10938 = vmatpush1.bf16.msra.mxu1 %v19620_v25 }
 0x3ed   : > { %10940 = vmatprep.subr.bf16.mxu1 %v19621_v12 }
 0x3f0   : > { %10942 = vmatpush1.bf16.msra.mxu1 %v19622_v36 }
 0x3f1   : > { %10944 = vmatprep.subr.bf16.mxu1 %v19623_v17 }
 0x3f4   : > { %10946 = vmatpush1.bf16.msra.mxu1 %v19463_v56 }
 0x3f5   : > { %10948 = vmatprep.subr.bf16.mxu1 %v19624_v41 }
 0x3f8   : > { %10950 = vmatpush1.bf16.msra.mxu1 %v19625_v35 }
 0x3f9   : > { %10952 = vmatprep.subr.bf16.mxu1 %v19626_v14 }
 0x3fc   : > { %10954 = vmatpush1.bf16.msra.mxu1 %v19470_v6 }
 0x3fd   : > { %11340 = vmatprep.subr.bf16.mxu1 %v19590_v38 }
 0x3ff   : > { %3536 = vmatmul.mubr.f32.vlgmr.msra.gmra.mrb[0].mxu1 %v19591_v4  ;;  %v19627_v4 = vld [vmem:[#allocation89_spill] sm:$0xff] }
 0x400   : > { %3542 = vmatprep.mubr.f32.mxu1 %v19592_v61  ;;  %11342 = vmatpush1.bf16.msra.mxu1 %v19593_v11 }
 0x401   : > { %11344 = vmatprep.subr.bf16.mxu1 %v19594_v0 }
 0x403   : > { %3544 = vmatmul.mubr.f32.gmra.mrb[2].mxu1 %v19595_v8 }
 0x404   : > { %3550 = vmatprep.mubr.f32.mxu1 %v19596_v19  ;;  %11346 = vmatpush1.bf16.msra.mxu1 %v19597_v1 }
 0x405   : > { %11348 = vmatprep.subr.bf16.mxu1 %v19598_v60 }
 0x407   : > { %3552 = vmatmul.mubr.f32.gmra.mrb[4].mxu1 %v19599_v24 }
 0x408   : > { %3558 = vmatprep.mubr.f32.mxu1 %v19600_v45  ;;  %11350 = vmatpush1.bf16.msra.mxu1 %v19601_v53  ;;  %v19628_v45 = vld [vmem:[#allocation62_spill] sm:$0xff] }
 0x409   : > { %11352 = vmatprep.subr.bf16.mxu1 %v19602_v15 }
 0x40b   : > { %3560 = vmatmul.mubr.f32.gmra.mrb[6].mxu1 %v19603_v27 }
 0x40c   : > { %11354 = vmatpush1.bf16.msra.mxu1 %v19604_v30 }
 0x40d   : > { %11356 = vmatprep.subr.bf16.mxu1 %v19605_v28 }
 0x410   : > { %11358 = vmatpush1.bf16.msra.mxu1 %v19606_v39 }
 0x411   : > { %11360 = vmatprep.subr.bf16.mxu1 %v19607_v42 }
 0x414   : > { %11362 = vmatpush1.bf16.msra.mxu1 %v19608_v44 }
 0x415   : > { %11364 = vmatprep.subr.bf16.mxu1 %v19609_v50 }
 0x418   : > { %11366 = vmatpush1.bf16.msra.mxu1 %v19610_v32 }
 0x419   : > { %11368 = vmatprep.subr.bf16.mxu1 %v19611_v29 }
 0x41c   : > { %11370 = vmatpush1.bf16.msra.mxu1 %v19612_v22 }
 0x41d   : > { %11372 = vmatprep.subr.bf16.mxu1 %v19613_v63 }
 0x420   : > { %11374 = vmatpush1.bf16.msra.mxu1 %v19614_v37 }
 0x421   : > { %11376 = vmatprep.subr.bf16.mxu1 %v19615_v13 }
 0x424   : > { %11378 = vmatpush1.bf16.msra.mxu1 %v19616_v5 }
 0x425   : > { %11380 = vmatprep.subr.bf16.mxu1 %v19617_v26 }
 0x428   : > { %11382 = vmatpush1.bf16.msra.mxu1 %v19618_v16 }
 0x429   : > { %11384 = vmatprep.subr.bf16.mxu1 %v19619_v31 }
 0x42c   : > { %11386 = vmatpush1.bf16.msra.mxu1 %v19620_v25 }
 0x42d   : > { %11388 = vmatprep.subr.bf16.mxu1 %v19621_v12 }
 0x430   : > { %11390 = vmatpush1.bf16.msra.mxu1 %v19622_v36 }
 0x431   : > { %11392 = vmatprep.subr.bf16.mxu1 %v19623_v17 }
 0x434   : > { %11394 = vmatpush1.bf16.msra.mxu1 %v19463_v56 }
 0x435   : > { %11396 = vmatprep.subr.bf16.mxu1 %v19624_v41 }
 0x438   : > { %11398 = vmatpush1.bf16.msra.mxu1 %v19625_v35 }
 0x439   : > { %11400 = vmatprep.subr.bf16.mxu1 %v19626_v14 }
 0x43c   : > { %11402 = vmatpush1.bf16.msra.mxu1 %v19470_v6 }
 0x43d   : > { %11404 = vmatprep.subr.bf16.mxu1 %v19627_v4 }
 0x4d2   : > { %v3537_v61 = vpop.f32.mrb[0].mxu1 }
 0x4d3   : > { %v3566_v8 = vmul.f32 0.0625, %v3537_v61  ;;  %v3539_v19 = vpop.f32.mrb[1].mxu1  ;;  %v19632_v61 = vld [vmem:[#allocation122_spill] sm:$0xff] }
 0x4d4   : > { %v3567_v24 = vmul.f32 0.0625, %v3539_v19 }
 0x4d5   : > { %v15544_v27 = vsub.f32 %v19628_v45, %v3566_v8  ;;  %v19634_v45 = vld [vmem:[#allocation124_spill] sm:$0xff] }
 0x4d6   : > { %v15547_v54 = vsub.f32 %v19630_v20, %v3567_v24  ;;  %v3545_v7 = vpop.f32.mrb[2].mxu1 }
 0x4d7   : > { %19629 = vst [vmem:[#allocation18_spill] sm:$0xff] %v15544_v27  ;;  %v3582_v47 = vmul.f32 %v15544_v27, %v15544_v27  ;;  %v3568_v43 = vmul.f32 0.0625, %v3545_v7  ;;  %v3547_v21 = vpop.f32.mrb[3].mxu1 }
 0x4d8   : > { %19631 = vst [vmem:[#allocation108_spill] sm:$0xff] %v15547_v54  ;;  %v3583_v59 = vmul.f32 %v15547_v54, %v15547_v54  ;;  %v3569_v4 = vmul.f32 0.0625, %v3547_v21 }
 0x4d9   : > { %v15553_v23 = vand.u32 4294901760, %v3582_v47  ;;  %v15556_v19 = vsub.f32 %v19632_v61, %v3568_v43 }
 0x4da   : > { %v15558_v8 = vand.u32 4294901760, %v3583_v59  ;;  %v15561_v20 = vsub.f32 %v19634_v45, %v3569_v4  ;;  %v3553_v24 = vpop.f32.mrb[4].mxu1  ;;  %v19636_v45 = vld [vmem:[#allocation132_spill] sm:$0xff] }
 0x4db   : > { %19633 = vst [vmem:[#allocation19_spill] sm:$0xff] %v15556_v19  ;;  %v15564_v10 = vsub.f32 %v3582_v47, %v15553_v23  ;;  %v3584_v7 = vmul.f32 %v15556_v19, %v15556_v19  ;;  %v3570_v27 = vmul.f32 0.0625, %v3553_v24  ;;  %v3555_v54 = vpop.f32.mrb[5].mxu1 }
 0x4dc   : > { %19635 = vst [vmem:[#allocation110_spill] sm:$0xff] %v15561_v20  ;;  %v15569_v21 = vsub.f32 %v3583_v59, %v15558_v8  ;;  %v3585_v43 = vmul.f32 %v15561_v20, %v15561_v20  ;;  %v3571_v61 = vmul.f32 0.0625, %v3555_v54 }
 0x4dd   : > { %v18353_v48 = vand.u32 4294901760, %v15564_v10  ;;  %v15574_v4 = vand.u32 4294901760, %v3584_v7  ;;  %v15577_v9 = vsub.f32 %v19636_v45, %v3570_v27 }
 0x4de   : > { %v15579_v47 = vand.u32 4294901760, %v3585_v43  ;;  %v15582_v19 = vsub.f32 %v19638_v18, %v3571_v61  ;;  %v3561_v24 = vpop.f32.mrb[6].mxu1  ;;  %v18364_v59 = vand.u32 4294901760, %v15569_v21 }
 0x4df   : > { %19637 = vst [vmem:[#allocation20_spill] sm:$0xff] %v15577_v9  ;;  %v3727_v20 = vsub.f32 %v15564_v10, %v18353_v48  ;;  %v15589_v54 = vsub.f32 %v3584_v7, %v15574_v4  ;;  %v3586_v46 = vmul.f32 %v15577_v9, %v15577_v9  ;;  %v3572_v27 = vmul.f32 0.0625, %v3561_v24  ;;  %v3563_v45 = vpop.f32.mrb[7].mxu1  ;;  %v19640_v7 = vld [vmem:[#allocation138_spill] sm:$0xff] }
 0x4e0   : > { %19639 = vst [vmem:[#allocation112_spill] sm:$0xff] %v15582_v19  ;;  %v15594_v34 = vsub.f32 %v3585_v43, %v15579_v47  ;;  %v3587_v18 = vmul.f32 %v15582_v19, %v15582_v19  ;;  %v3573_v61 = vmul.f32 0.0625, %v3563_v45  ;;  %v3721_v55 = vsub.f32 %v15569_v21, %v18364_v59 }
 0x4e1   : > { %v15601_v48 = vand.u32 4294901760, %v3586_v46  ;;  %v15604_v33 = vsub.f32 %v19640_v7, %v3572_v27  ;;  %v18366_v9 = vand.u32 4294901760, %v15589_v54  ;;  %v3728_v45 = vand.u32 4294901760, %v3727_v20 }
 0x4e2   : > { %v15607_v24 = vand.u32 4294901760, %v3587_v18  ;;  %v15610_v43 = vsub.f32 %v19642_v62, %v3573_v61  ;;  %v3722_v49 = vand.u32 4294901760, %v3721_v55  ;;  %v18370_v19 = vand.u32 4294901760, %v15594_v34 }
 0x4e3   : > { %19641 = vst [vmem:[#allocation21_spill] sm:$0xff] %v15604_v33  ;;  %v15614_v40 = vsub.f32 %v3586_v46, %v15601_v48  ;;  %v3588_v59 = vmul.f32 %v15604_v33, %v15604_v33  ;;  %v3743_v27 = vsub.f32 %v15589_v54, %v18366_v9  ;;  %v19644_v33 = vld [vmem:[#allocation91_spill] sm:$0xff] }
 0x4e4   : > { %19643 = vst [vmem:[#allocation127_spill] sm:$0xff] %v15610_v43  ;;  %v15622_v7 = vsub.f32 %v3587_v18, %v15607_v24  ;;  %v3589_v62 = vmul.f32 %v15610_v43, %v15610_v43  ;;  %3723 = vmatprep.mubr.f32.mxu0 %v3722_v49  ;;  %v3737_v55 = vsub.f32 %v15594_v34, %v18370_v19  ;;  %v19645_v49 = vld [vmem:[#allocation94_spill] sm:$0xff] }
 0x4e5   : > { %v15629_v46 = vand.u32 4294901760, %v3588_v59  ;;  %3729 = vmatmul.mubr.f32.vlgmr.msra.gmra.mrb[8].mxu0 %v3728_v45  ;;  %v18375_v20 = vand.u32 4294901760, %v15614_v40  ;;  %v3744_v43 = vand.u32 4294901760, %v3743_v27 }
 0x4e6   : > { %v15632_v61 = vand.u32 4294901760, %v3589_v62  ;;  %11022 = vmatpush1.bf16.msra.mxu0 %v19644_v33  ;;  %v3738_v9 = vand.u32 4294901760, %v3737_v55  ;;  %v18376_v18 = vand.u32 4294901760, %v15622_v7 }
 0x4e7   : > { %v15637_v2 = vsub.f32 %v3588_v59, %v15629_v46  ;;  %11024 = vmatprep.subr.bf16.mxu0 %v19645_v49  ;;  %v3759_v19 = vsub.f32 %v15614_v40, %v18375_v20  ;;  %v19646_v59 = vld [vmem:[#allocation99_spill] sm:$0xff]  ;;  %v19647_v49 = vld [vmem:[#allocation102_spill] sm:$0xff] }
 0x4e8   : > { %v15644_v45 = vsub.f32 %v3589_v62, %v15632_v61  ;;  %3739 = vmatprep.mubr.f32.mxu0 %v3738_v9  ;;  %v3753_v55 = vsub.f32 %v15622_v7, %v18376_v18  ;;  %v19649_v18 = vld [vmem:[#allocation64_spill] sm:$0xff] }
 0x4e9   : > { %3745 = vmatmul.mubr.f32.gmra.mrb[10].mxu0 %v3744_v43  ;;  %v18377_v33 = vand.u32 4294901760, %v15637_v2  ;;  %v3760_v57 = vand.u32 4294901760, %v3759_v19  ;;  %v19648_v43 = vld [vmem:[#allocation80_spill] sm:$0xff]  ;;  %v19651_v19 = vld [vmem:[#allocation34_spill] sm:$0xff] }
 0x4ea   : > { %11026 = vmatpush1.bf16.msra.mxu0 %v19646_v59  ;;  %v3754_v3 = vand.u32 4294901760, %v3753_v55  ;;  %v18378_v27 = vand.u32 4294901760, %v15644_v45 }
 0x4eb   : > { %11028 = vmatprep.subr.bf16.mxu0 %v19647_v49  ;;  %v3775_v62 = vsub.f32 %v15637_v2, %v18377_v33  ;;  %v19650_v49 = vld [vmem:[#allocation118_spill] sm:$0xff]  ;;  %v19653_v33 = vld [vmem:[#allocation144_spill] sm:$0xff] }
 0x4ec   : > { %3755 = vmatprep.mubr.f32.mxu0 %v3754_v3  ;;  %v3769_v9 = vsub.f32 %v15644_v45, %v18378_v27  ;;  %v19652_v3 = vld [vmem:[#allocation44_spill] sm:$0xff]  ;;  %v19654_v27 = vld [vmem:[#allocation145_spill] sm:$0xff] }
 0x4ed   : > { %3761 = vmatmul.mubr.f32.gmra.mrb[12].mxu0 %v3760_v57  ;;  %v3776_v55 = vand.u32 4294901760, %v3775_v62  ;;  %v19655_v57 = vld [vmem:[#allocation53_spill] sm:$0xff]  ;;  %v19659_v62 = vld [vmem:[#allocation39_spill] sm:$0xff] }
 0x4ee   : > { %11030 = vmatpush1.bf16.msra.mxu0 %v19648_v43  ;;  %v3770_v20 = vand.u32 4294901760, %v3769_v9  ;;  %v19656_v9 = vld [vmem:[#allocation146_spill] sm:$0xff] }
 0x4ef   : > { %11032 = vmatprep.subr.bf16.mxu0 %v19649_v18  ;;  %v19657_v18 = vld [vmem:[#allocation117_spill] sm:$0xff] }
 0x4f0   : > { %3771 = vmatprep.mubr.f32.mxu0 %v3770_v20  ;;  %v19658_v20 = vld [vmem:[#allocation105_spill] sm:$0xff] }
 0x4f1   : > { %3777 = vmatmul.mubr.f32.gmra.mrb[14].mxu0 %v3776_v55  ;;  %v19660_v55 = vld [vmem:[#allocation85_spill] sm:$0xff] }
 0x4f2   : > { %11034 = vmatpush1.bf16.msra.mxu0 %v19650_v49  ;;  %4168 = vmatprep.mubr.f32.mxu0 %v15558_v8  ;;  %v19661_v49 = vld [vmem:[#allocation147_spill] sm:$0xff] }
 0x4f3   : > { %11036 = vmatprep.subr.bf16.mxu0 %v19651_v19  ;;  %v19662_v19 = vld [vmem:[#allocation149_spill] sm:$0xff] }
 0x4f6   : > { %11038 = vmatpush1.bf16.msra.mxu0 %v19652_v3  ;;  %v19663_v3 = vld [vmem:[#allocation150_spill] sm:$0xff] }
 0x4f7   : > { %11040 = vmatprep.subr.bf16.mxu0 %v19653_v33  ;;  %v19664_v33 = vld [vmem:[#allocation151_spill] sm:$0xff] }
 0x4fa   : > { %11042 = vmatpush1.bf16.msra.mxu0 %v19654_v27  ;;  %v19665_v27 = vld [vmem:[#allocation152_spill] sm:$0xff] }
 0x4fb   : > { %11044 = vmatprep.subr.bf16.mxu0 %v19655_v57  ;;  %v19666_v57 = vld [vmem:[#allocation153_spill] sm:$0xff] }
 0x4fe   : > { %11046 = vmatpush1.bf16.msra.mxu0 %v19656_v9  ;;  %v19667_v9 = vld [vmem:[#allocation154_spill] sm:$0xff] }
 0x4ff   : > { %11048 = vmatprep.subr.bf16.mxu0 %v19657_v18  ;;  %v19668_v18 = vld [vmem:[#allocation155_spill] sm:$0xff] }
 0x502   : > { %11050 = vmatpush1.bf16.msra.mxu0 %v19658_v20  ;;  %v19669_v20 = vld [vmem:[#allocation156_spill] sm:$0xff] }
 0x503   : > { %11052 = vmatprep.subr.bf16.mxu0 %v19659_v62  ;;  %v19670_v62 = vld [vmem:[#allocation114_spill] sm:$0xff] }
 0x506   : > { %11054 = vmatpush1.bf16.msra.mxu0 %v19660_v55  ;;  %v19671_v55 = vld [vmem:[#allocation23_spill] sm:$0xff] }
 0x507   : > { %11056 = vmatprep.subr.bf16.mxu0 %v19661_v49  ;;  %v19672_v49 = vld [vmem:[#allocation116_spill] sm:$0xff] }
 0x50a   : > { %11058 = vmatpush1.bf16.msra.mxu0 %v19662_v19  ;;  %v19673_v19 = vld [vmem:[#allocation28_spill] sm:$0xff] }
 0x50b   : > { %11060 = vmatprep.subr.bf16.mxu0 %v19663_v3  ;;  %v19674_v3 = vld [vmem:[#allocation157_spill] sm:$0xff] }
 0x50e   : > { %11062 = vmatpush1.bf16.msra.mxu0 %v19664_v33  ;;  %v19675_v33 = vld [vmem:[#allocation158_spill] sm:$0xff] }
 0x50f   : > { %11064 = vmatprep.subr.bf16.mxu0 %v19665_v27  ;;  %v19693_v27 = vld [vmem:[#allocation67_spill] sm:$0xff] }
 0x512   : > { %11066 = vmatpush1.bf16.msra.mxu0 %v19666_v57  ;;  %v19691_v57 = vld [vmem:[#allocation78_spill] sm:$0xff] }
 0x513   : > { %11068 = vmatprep.subr.bf16.mxu0 %v19667_v9  ;;  %v19676_v9 = vld [vmem:[#allocation159_spill] sm:$0xff] }
 0x516   : > { %11070 = vmatpush1.bf16.msra.mxu0 %v19668_v18  ;;  %v19677_v18 = vld [vmem:[#allocation160_spill] sm:$0xff] }
 0x517   : > { %11072 = vmatprep.subr.bf16.mxu0 %v19669_v20  ;;  %v19688_v20 = vld [vmem:[#allocation125_spill] sm:$0xff] }
 0x51a   : > { %11074 = vmatpush1.bf16.msra.mxu0 %v19670_v62  ;;  %v19687_v62 = vld [vmem:[#allocation60_spill] sm:$0xff] }
 0x51b   : > { %11076 = vmatprep.subr.bf16.mxu0 %v19671_v55  ;;  %v19678_v55 = vld [vmem:[#allocation161_spill] sm:$0xff] }
 0x51e   : > { %11078 = vmatpush1.bf16.msra.mxu0 %v19672_v49  ;;  %v19679_v49 = vld [vmem:[#allocation162_spill] sm:$0xff] }
 0x51f   : > { %11080 = vmatprep.subr.bf16.mxu0 %v19673_v19  ;;  %v19684_v19 = vld [vmem:[#allocation51_spill] sm:$0xff] }
 0x522   : > { %11082 = vmatpush1.bf16.msra.mxu0 %v19674_v3  ;;  %v19681_v3 = vld [vmem:[#allocation38_spill] sm:$0xff] }
 0x523   : > { %11084 = vmatprep.subr.bf16.mxu0 %v19675_v33  ;;  %v19680_v33 = vld [vmem:[#allocation36_spill] sm:$0xff] }
 0x525   : > { %4170 = vmatmul.mubr.f32.vlgmr.msra.gmra.mrb[8].mxu0 %v15553_v23 }
 0x526   : > { %4176 = vmatprep.mubr.f32.mxu0 %v15579_v47  ;;  %11086 = vmatpush1.bf16.msra.mxu0 %v19676_v9  ;;  %v19682_v9 = vld [vmem:[#allocation42_spill] sm:$0xff] }
 0x527   : > { %11088 = vmatprep.subr.bf16.mxu0 %v19677_v18  ;;  %v19683_v18 = vld [vmem:[#allocation45_spill] sm:$0xff] }
 0x529   : > { %4178 = vmatmul.mubr.f32.gmra.mrb[10].mxu0 %v15574_v4 }
 0x52a   : > { %4184 = vmatprep.mubr.f32.mxu0 %v15607_v24  ;;  %11090 = vmatpush1.bf16.msra.mxu0 %v19678_v55  ;;  %v19685_v55 = vld [vmem:[#allocation54_spill] sm:$0xff] }
 0x52b   : > { %11092 = vmatprep.subr.bf16.mxu0 %v19679_v49  ;;  %v19686_v49 = vld [vmem:[#allocation57_spill] sm:$0xff] }
 0x52d   : > { %4186 = vmatmul.mubr.f32.gmra.mrb[12].mxu0 %v15601_v48 }
 0x52e   : > { %4192 = vmatprep.mubr.f32.mxu0 %v15632_v61  ;;  %11094 = vmatpush1.bf16.msra.mxu0 %v19680_v33  ;;  %v19689_v33 = vld [vmem:[#allocation69_spill] sm:$0xff] }
 0x52f   : > { %11096 = vmatprep.subr.bf16.mxu0 %v19681_v3  ;;  %v19690_v3 = vld [vmem:[#allocation75_spill] sm:$0xff] }
 0x531   : > { %4194 = vmatmul.mubr.f32.gmra.mrb[14].mxu0 %v15629_v46 }
 0x532   : > { %11098 = vmatpush1.bf16.msra.mxu0 %v19682_v9  ;;  %4394 = vmatprep.mubr.f32.mxu0 %v15569_v21  ;;  %v19692_v9 = vld [vmem:[#allocation65_spill] sm:$0xff] }
 0x533   : > { %11100 = vmatprep.subr.bf16.mxu0 %v19683_v18  ;;  %v19694_v18 = vld [vmem:[#allocation73_spill] sm:$0xff] }
 0x536   : > { %11102 = vmatpush1.bf16.msra.mxu0 %v19684_v19  ;;  %v19695_v19 = vld [vmem:[#allocation76_spill] sm:$0xff] }
 0x537   : > { %11104 = vmatprep.subr.bf16.mxu0 %v19685_v55  ;;  %v19696_v55 = vld [vmem:[#allocation31_spill] sm:$0xff] }
 0x53a   : > { %11106 = vmatpush1.bf16.msra.mxu0 %v19686_v49  ;;  %v19697_v49 = vld [vmem:[#allocation33_spill] sm:$0xff] }
 0x53b   : > { %11108 = vmatprep.subr.bf16.mxu0 %v19687_v62  ;;  %v19698_v62 = vld [vmem:[#allocation72_spill] sm:$0xff] }
 0x53e   : > { %11110 = vmatpush1.bf16.msra.mxu0 %v19688_v20  ;;  %v19699_v20 = vld [vmem:[#allocation32_spill] sm:$0xff] }
 0x53f   : > { %11112 = vmatprep.subr.bf16.mxu0 %v19689_v33  ;;  %v19700_v33 = vld [vmem:[#allocation86_spill] sm:$0xff] }
 0x542   : > { %11114 = vmatpush1.bf16.msra.mxu0 %v19690_v3  ;;  %v19701_v3 = vld [vmem:[#allocation37_spill] sm:$0xff] }
 0x543   : > { %11116 = vmatprep.subr.bf16.mxu0 %v19691_v57  ;;  %v19702_v57 = vld [vmem:[#allocation92_spill] sm:$0xff] }
 0x546   : > { %11118 = vmatpush1.bf16.msra.mxu0 %v19692_v9  ;;  %v19703_v9 = vld [vmem:[#allocation120_spill] sm:$0xff] }
 0x547   : > { %11120 = vmatprep.subr.bf16.mxu0 %v19693_v27  ;;  %v19704_v27 = vld [vmem:[#allocation123_spill] sm:$0xff] }
 0x54a   : > { %11122 = vmatpush1.bf16.msra.mxu0 %v19694_v18  ;;  %v19705_v18 = vld [vmem:[#allocation130_spill] sm:$0xff] }
 0x54b   : > { %11124 = vmatprep.subr.bf16.mxu0 %v19695_v19  ;;  %v19706_v19 = vld [vmem:[#allocation133_spill] sm:$0xff] }
 0x54e   : > { %11126 = vmatpush1.bf16.msra.mxu0 %v19696_v55 }
 0x54f   : > { %11128 = vmatprep.subr.bf16.mxu0 %v19697_v49 }
 0x552   : > { %11130 = vmatpush1.bf16.msra.mxu0 %v19698_v62 }
 0x553   : > { %11132 = vmatprep.subr.bf16.mxu0 %v19699_v20 }
 0x556   : > { %11134 = vmatpush1.bf16.msra.mxu0 %v19700_v33 }
 0x557   : > { %11136 = vmatprep.subr.bf16.mxu0 %v19701_v3 }
 0x55a   : > { %11138 = vmatpush1.bf16.msra.mxu0 %v19702_v57  ;;  %v19713_v57 = vld [vmem:[#allocation97_spill] sm:$0xff] }
 0x55b   : > { %11140 = vmatprep.subr.bf16.mxu0 %v19703_v9  ;;  %v19712_v9 = vld [vmem:[#allocation49_spill] sm:$0xff] }
 0x55e   : > { %11142 = vmatpush1.bf16.msra.mxu0 %v19704_v27  ;;  %v19711_v27 = vand.u32 4294901760, %v15622_v7 }
 0x55f   : > { %11144 = vmatprep.subr.bf16.mxu0 %v19705_v18  ;;  %v19710_v18 = vand.u32 4294901760, %v15589_v54 }
 0x562   : > { %11146 = vmatpush1.bf16.msra.mxu0 %v19706_v19  ;;  %v19707_v19 = vand.u32 4294901760, %v15569_v21  ;;  %v19708_v21 = vand.u32 4294901760, %v15564_v10 }
 0x563   : > { %11148 = vmatprep.subr.bf16.mxu0 %v19590_v38 }
 0x565   : > { %4397 = vmatmul.mubr.f32.vlgmr.msra.gmra.mrb[8].mxu0 %v15564_v10  ;;  %v19714_v10 = vand.u32 4294901760, %v15614_v40 }
 0x566   : > { %4404 = vmatprep.mubr.f32.mxu0 %v15594_v34  ;;  %11150 = vmatpush1.bf16.msra.mxu0 %v19593_v11 }
 0x567   : > { %11152 = vmatprep.subr.bf16.mxu0 %v19594_v0 }
 0x569   : > { %4407 = vmatmul.mubr.f32.gmra.mrb[10].mxu0 %v15589_v54  ;;  %v19718_v54 = vand.u32 4294901760, %v15637_v2 }
 0x56a   : > { %4414 = vmatprep.mubr.f32.mxu0 %v15622_v7  ;;  %11154 = vmatpush1.bf16.msra.mxu0 %v19597_v1  ;;  %v19720_v7 = vld [vmem:[#allocation121_spill] sm:$0xff] }
 0x56b   : > { %11156 = vmatprep.subr.bf16.mxu0 %v19598_v60 }
 0x56d   : > { %4417 = vmatmul.mubr.f32.gmra.mrb[12].mxu0 %v15614_v40  ;;  %v19722_v40 = vld [vmem:[#allocation131_spill] sm:$0xff] }
 0x56e   : > { %4424 = vmatprep.mubr.f32.mxu0 %v15644_v45  ;;  %11158 = vmatpush1.bf16.msra.mxu0 %v19601_v53 }
 0x56f   : > { %11160 = vmatprep.subr.bf16.mxu0 %v19602_v15 }
 0x571   : > { %4427 = vmatmul.mubr.f32.gmra.mrb[14].mxu0 %v15637_v2  ;;  %v19727_v2 = vld [vmem:[#allocation119_spill] sm:$0xff] }
 0x572   : > { %11162 = vmatpush1.bf16.msra.mxu0 %v19604_v30  ;;  %4564 = vmatprep.mubr.f32.mxu0 %v19707_v19  ;;  %v19709_v19 = vand.u32 4294901760, %v15594_v34  ;;  %v19715_v34 = vand.u32 4294901760, %v15644_v45  ;;  %v19724_v45 = vld [vmem:[#allocation137_spill] sm:$0xff] }
 0x573   : > { %11164 = vmatprep.subr.bf16.mxu0 %v19605_v28 }
 0x576   : > { %11166 = vmatpush1.bf16.msra.mxu0 %v19606_v39 }
 0x577   : > { %11168 = vmatprep.subr.bf16.mxu0 %v19607_v42 }
 0x57a   : > { %11170 = vmatpush1.bf16.msra.mxu0 %v19608_v44 }
 0x57b   : > { %11172 = vmatprep.subr.bf16.mxu0 %v19609_v50 }
 0x57e   : > { %11174 = vmatpush1.bf16.msra.mxu0 %v19610_v32 }
 0x57f   : > { %11176 = vmatprep.subr.bf16.mxu0 %v19611_v29 }
 0x582   : > { %11178 = vmatpush1.bf16.msra.mxu0 %v19612_v22 }
 0x583   : > { %11180 = vmatprep.subr.bf16.mxu0 %v19613_v63 }
 0x586   : > { %11182 = vmatpush1.bf16.msra.mxu0 %v19614_v37 }
 0x587   : > { %11184 = vmatprep.subr.bf16.mxu0 %v19615_v13 }
 0x58a   : > { %11186 = vmatpush1.bf16.msra.mxu0 %v19616_v5 }
 0x58b   : > { %11188 = vmatprep.subr.bf16.mxu0 %v19617_v26 }
 0x58e   : > { %11190 = vmatpush1.bf16.msra.mxu0 %v19618_v16 }
 0x58f   : > { %11192 = vmatprep.subr.bf16.mxu0 %v19619_v31 }
 0x592   : > { %11194 = vmatpush1.bf16.msra.mxu0 %v19620_v25 }
 0x593   : > { %11196 = vmatprep.subr.bf16.mxu0 %v19621_v12 }
 0x596   : > { %11198 = vmatpush1.bf16.msra.mxu0 %v19622_v36 }
 0x597   : > { %11200 = vmatprep.subr.bf16.mxu0 %v19623_v17 }
 0x59a   : > { %11202 = vmatpush1.bf16.msra.mxu0 %v19463_v56 }
 0x59b   : > { %11204 = vmatprep.subr.bf16.mxu0 %v19624_v41 }
 0x59e   : > { %11206 = vmatpush1.bf16.msra.mxu0 %v19625_v35 }
 0x59f   : > { %11208 = vmatprep.subr.bf16.mxu0 %v19626_v14 }
 0x5a2   : > { %11210 = vmatpush1.bf16.msra.mxu0 %v19470_v6 }
 0x5a3   : > { %11212 = vmatprep.subr.bf16.mxu0 %v15227_v58 }
 0x5a5   : > { %4568 = vmatmul.mubr.f32.vlgmr.msra.gmra.mrb[8].mxu0 %v19708_v21  ;;  %v19716_v21 = vld [vmem:[#allocation82_spill] sm:$0xff] }
 0x5a6   : > { %4576 = vmatprep.mubr.f32.mxu0 %v19709_v19  ;;  %11214 = vmatpush1.bf16.msra.mxu0 %v15234_v51  ;;  %v19717_v19 = vld [vmem:[#allocation109_spill] sm:$0xff] }
 0x5a7   : > { %11216 = vmatprep.subr.bf16.mxu0 %v15241_v52 }
 0x5a9   : > { %4580 = vmatmul.mubr.f32.gmra.mrb[10].mxu0 %v19710_v18  ;;  %v19719_v18 = vld [vmem:[#allocation111_spill] sm:$0xff] }
 0x5aa   : > { %4588 = vmatprep.mubr.f32.mxu0 %v19711_v27  ;;  %11218 = vmatpush1.bf16.msra.mxu0 %v19712_v9  ;;  %v19721_v27 = vld [vmem:[#allocation134_spill] sm:$0xff] }
 0x5ab   : > { %11220 = vmatprep.subr.bf16.mxu0 %v19713_v57 }
 0x5ad   : > { %4592 = vmatmul.mubr.f32.gmra.mrb[12].mxu0 %v19714_v10  ;;  %v19723_v10 = vld [vmem:[#allocation139_spill] sm:$0xff] }
 0x5ae   : > { %4600 = vmatprep.mubr.f32.mxu0 %v19715_v34  ;;  %11222 = vmatpush1.bf16.msra.mxu0 %v19716_v21  ;;  %v19725_v34 = vld [vmem:[#allocation143_spill] sm:$0xff]  ;;  %v19730_v21 = vld [vmem:[#allocation165_spill] sm:$0xff] }
 0x5af   : > { %11224 = vmatprep.subr.bf16.mxu0 %v19717_v19  ;;  %v19726_v19 = vld [vmem:[#allocation142_spill] sm:$0xff] }
 0x5b1   : > { %4604 = vmatmul.mubr.f32.gmra.mrb[14].mxu0 %v19718_v54  ;;  %v19728_v54 = vld [vmem:[#allocation163_spill] sm:$0xff] }
 0x5b2   : > { %11226 = vmatpush1.bf16.msra.mxu0 %v19719_v18  ;;  %4867 = vmatprep.mubr.f32.mxu0 %v15558_v8  ;;  %v19729_v18 = vld [vmem:[#allocation164_spill] sm:$0xff] }
 0x5b3   : > { %11228 = vmatprep.subr.bf16.mxu0 %v19720_v7  ;;  %v19731_v7 = vld [vmem:[#allocation166_spill] sm:$0xff] }
 0x5b6   : > { %11230 = vmatpush1.bf16.msra.mxu0 %v19721_v27  ;;  %v19732_v27 = vld [vmem:[#allocation167_spill] sm:$0xff] }
 0x5b7   : > { %11232 = vmatprep.subr.bf16.mxu0 %v19722_v40  ;;  %v19733_v40 = vld [vmem:[#allocation168_spill] sm:$0xff] }
 0x5ba   : > { %11234 = vmatpush1.bf16.msra.mxu0 %v19723_v10  ;;  %v19734_v10 = vld [vmem:[#allocation169_spill] sm:$0xff] }
 0x5bb   : > { %11236 = vmatprep.subr.bf16.mxu0 %v19724_v45  ;;  %v19735_v45 = vld [vmem:[#allocation63_spill] sm:$0xff] }
 0x5be   : > { %11238 = vmatpush1.bf16.msra.mxu0 %v19725_v34  ;;  %v19736_v34 = vld [vmem:[#allocation66_spill] sm:$0xff] }
 0x5bf   : > { %11240 = vmatprep.subr.bf16.mxu0 %v19726_v19  ;;  %v19737_v19 = vld [vmem:[#allocation88_spill] sm:$0xff] }
 0x5c2   : > { %11242 = vmatpush1.bf16.msra.mxu0 %v19727_v2  ;;  %v19738_v2 = vld [vmem:[#allocation83_spill] sm:$0xff] }
 0x5c3   : > { %11244 = vmatprep.subr.bf16.mxu0 %v19728_v54  ;;  %v19739_v54 = vld [vmem:[#allocation81_spill] sm:$0xff] }
 0x5c6   : > { %11246 = vmatpush1.bf16.msra.mxu0 %v19729_v18  ;;  %v19740_v18 = vld [vmem:[#allocation84_spill] sm:$0xff] }
 0x5c7   : > { %11248 = vmatprep.subr.bf16.mxu0 %v19730_v21  ;;  %v19741_v21 = vld [vmem:[#allocation17_spill] sm:$0xff] }
 0x5ca   : > { %11250 = vmatpush1.bf16.msra.mxu0 %v19731_v7  ;;  %v19742_v7 = vld [vmem:[#allocation148_spill] sm:$0xff] }
 0x5cb   : > { %11252 = vmatprep.subr.bf16.mxu0 %v19732_v27  ;;  %v19743_v27 = vld [vmem:[#allocation77_spill] sm:$0xff] }
 0x5ce   : > { %11254 = vmatpush1.bf16.msra.mxu0 %v19733_v40 }
 0x5cf   : > { %11256 = vmatprep.subr.bf16.mxu0 %v19734_v10  ;;  %v19746_v10 = vld [vmem:[#allocation18_spill] sm:$0xff] }
 0x5d2   : > { %11258 = vmatpush1.bf16.msra.mxu0 %v19735_v45 }
 0x5d3   : > { %11260 = vmatprep.subr.bf16.mxu0 %v19736_v34 }
 0x5d6   : > { %11262 = vmatpush1.bf16.msra.mxu0 %v19737_v19 }
 0x5d7   : > { %11264 = vmatprep.subr.bf16.mxu0 %v19738_v2 }
 0x5da   : > { %11266 = vmatpush1.bf16.msra.mxu0 %v19739_v54 }
 0x5db   : > { %11268 = vmatprep.subr.bf16.mxu0 %v19740_v18 }
 0x5de   : > { %11270 = vmatpush1.bf16.msra.mxu0 %v19741_v21 }
 0x5df   : > { %11272 = vmatprep.subr.bf16.mxu0 %v19742_v7 }
 0x5e2   : > { %11274 = vmatpush1.bf16.msra.mxu0 %v19743_v27 }
 0x5e3   : > { %11276 = vmatprep.subr.bf16.mxu0 %v19590_v38 }
 0x5e5   : > { %4869 = vmatmul.mubr.f32.vlgmr.msra.gmra.mrb[8].mxu0 %v15553_v23 }
 0x5e6   : > { %4875 = vmatprep.mubr.f32.mxu0 %v15579_v47  ;;  %11278 = vmatpush1.bf16.msra.mxu0 %v19593_v11 }
 0x5e7   : > { %11280 = vmatprep.subr.bf16.mxu0 %v19594_v0 }
 0x5e9   : > { %4877 = vmatmul.mubr.f32.gmra.mrb[10].mxu0 %v15574_v4 }
 0x5ea   : > { %4883 = vmatprep.mubr.f32.mxu0 %v15607_v24  ;;  %11282 = vmatpush1.bf16.msra.mxu0 %v19597_v1 }
 0x5eb   : > { %11284 = vmatprep.subr.bf16.mxu0 %v19598_v60 }
 0x5ed   : > { %4885 = vmatmul.mubr.f32.gmra.mrb[12].mxu0 %v15601_v48 }
 0x5ee   : > { %4891 = vmatprep.mubr.f32.mxu0 %v15632_v61  ;;  %11286 = vmatpush1.bf16.msra.mxu0 %v19601_v53 }
 0x5ef   : > { %11288 = vmatprep.subr.bf16.mxu0 %v19602_v15 }
 0x5f1   : > { %4893 = vmatmul.mubr.f32.gmra.mrb[14].mxu0 %v15629_v46 }
 0x5f2   : > { %11290 = vmatpush1.bf16.msra.mxu0 %v19604_v30  ;;  %5028 = vmatprep.mubr.f32.mxu0 %v15558_v8 }
 0x5f3   : > { %11292 = vmatprep.subr.bf16.mxu0 %v19605_v28 }
 0x5f6   : > { %11294 = vmatpush1.bf16.msra.mxu0 %v19606_v39 }
 0x5f7   : > { %11296 = vmatprep.subr.bf16.mxu0 %v19607_v42 }
 0x5fa   : > { %11298 = vmatpush1.bf16.msra.mxu0 %v19608_v44 }
 0x5fb   : > { %11300 = vmatprep.subr.bf16.mxu0 %v19609_v50 }
 0x5fe   : > { %11302 = vmatpush1.bf16.msra.mxu0 %v19610_v32 }
 0x5ff   : > { %11304 = vmatprep.subr.bf16.mxu0 %v19611_v29 }
 0x602   : > { %11306 = vmatpush1.bf16.msra.mxu0 %v19612_v22 }
 0x603   : > { %11308 = vmatprep.subr.bf16.mxu0 %v19613_v63 }
 0x606   : > { %11310 = vmatpush1.bf16.msra.mxu0 %v19614_v37 }
 0x607   : > { %11312 = vmatprep.subr.bf16.mxu0 %v19615_v13 }
 0x60a   : > { %11314 = vmatpush1.bf16.msra.mxu0 %v19616_v5 }
 0x60b   : > { %11316 = vmatprep.subr.bf16.mxu0 %v19617_v26 }
 0x60e   : > { %11318 = vmatpush1.bf16.msra.mxu0 %v19618_v16 }
 0x60f   : > { %11320 = vmatprep.subr.bf16.mxu0 %v19619_v31 }
 0x612   : > { %11322 = vmatpush1.bf16.msra.mxu0 %v19620_v25 }
 0x613   : > { %11324 = vmatprep.subr.bf16.mxu0 %v19621_v12 }
 0x616   : > { %11326 = vmatpush1.bf16.msra.mxu0 %v19622_v36 }
 0x617   : > { %11328 = vmatprep.subr.bf16.mxu0 %v19623_v17 }
 0x61a   : > { %11330 = vmatpush1.bf16.msra.mxu0 %v19463_v56 }
 0x61b   : > { %11332 = vmatprep.subr.bf16.mxu0 %v19624_v41 }
 0x61e   : > { %11334 = vmatpush1.bf16.msra.mxu0 %v19625_v35 }
 0x61f   : > { %11336 = vmatprep.subr.bf16.mxu0 %v19626_v14 }
 0x622   : > { %11338 = vmatpush1.bf16.msra.mxu0 %v19470_v6  ;;  %v19749_v6 = vld [vmem:[#allocation110_spill] sm:$0xff] }
 0x625   : > { %5030 = vmatmul.mubr.f32.vlgmr.msra.gmra.mrb[8].mxu0 %v15553_v23 }
 0x626   : > { %5036 = vmatprep.mubr.f32.mxu0 %v15579_v47 }
 0x629   : > { %5038 = vmatmul.mubr.f32.gmra.mrb[10].mxu0 %v15574_v4 }
 0x62a   : > { %5044 = vmatprep.mubr.f32.mxu0 %v15607_v24 }
 0x62d   : > { %5046 = vmatmul.mubr.f32.gmra.mrb[12].mxu0 %v15601_v48 }
 0x62e   : > { %5052 = vmatprep.mubr.f32.mxu0 %v15632_v61 }
 0x631   : > { %5054 = vmatmul.mubr.f32.gmra.mrb[14].mxu0 %v15629_v46 }
 0x6f8   : > { %v5031_v8 = vpop.f32.mrb[8].mxu0 }
 0x6f9   : > { %v5060_v27 = vmul.f32 0.0625, %v5031_v8  ;;  %v5033_v7 = vpop.f32.mrb[9].mxu0 }
 0x6fa   : > { %v5061_v21 = vmul.f32 0.0625, %v5033_v7  ;;  %v5092_v7 = vld [vmem:[%s17656_s8] sm:$0x3] }
 0x6fb   : > { %v5068_v18 = vadd.f32 1e-05, %v5060_v27 }
 0x6fc   : > { %v5069_v54 = vadd.f32 1e-05, %v5061_v21  ;;  %v5039_v2 = vpop.f32.mrb[10].mxu0 }
 0x6fd   : > { %12404 = vrsqrt.f32 %v5068_v18  ;;  %v5062_v23 = vmul.f32 0.0625, %v5039_v2  ;;  %v5041_v47 = vpop.f32.mrb[11].mxu0 }
 0x6fe   : > { %12406 = vrsqrt.f32 %v5069_v54  ;;  %v5063_v4 = vmul.f32 0.0625, %v5041_v47  ;;  %v5112_v54 = vld [vmem:[%s17657_s9] sm:$0x3] }
 0x6ff   : > { %v5070_v19 = vadd.f32 1e-05, %v5062_v23 }
 0x700   : > { %v5071_v24 = vadd.f32 1e-05, %v5063_v4  ;;  %v5047_v34 = vpop.f32.mrb[12].mxu0  ;;  %v19745_v4 = vld [vmem:[#allocation48_spill] sm:$0xff] }
 0x701   : > { %12408 = vrsqrt.f32 %v5070_v19  ;;  %v5064_v48 = vmul.f32 0.0625, %v5047_v34  ;;  %v5049_v61 = vpop.f32.mrb[13].mxu0  ;;  %v19744_v34 = vld [vmem:[#allocation29_spill] sm:$0xff]  ;;  %v5121_v57 = vrot.slane %v5112_v54, %v19745_v4 }
 0x702   : > { %12410 = vrsqrt.f32 %v5071_v24  ;;  %v5065_v46 = vmul.f32 0.0625, %v5049_v61  ;;  %v5097_v8 = vrot.slane %v5092_v7, %v19744_v34  ;;  %v5101_v24 = vrot.slane %v5092_v7, %v19745_v4  ;;  %v19751_v4 = vld [vmem:[#allocation112_spill] sm:$0xff] }
 0x703   : > { %v5072_v45 = vadd.f32 1e-05, %v5064_v48 }
 0x704   : > { %v5073_v21 = vadd.f32 1e-05, %v5065_v46  ;;  %v5055_v27 = vpop.f32.mrb[14].mxu0 }
 0x705   : > { %12412 = vrsqrt.f32 %v5072_v45  ;;  %v5066_v18 = vmul.f32 0.0625, %v5055_v27  ;;  %v5057_v2 = vpop.f32.mrb[15].mxu0  ;;  %v5117_v45 = vrot.slane %v5112_v54, %v19744_v34  ;;  %v19747_v27 = vld [vmem:[#allocation108_spill] sm:$0xff] }
 0x706   : > { %12414 = vrsqrt.f32 %v5073_v21  ;;  %v5067_v19 = vmul.f32 0.0625, %v5057_v2 }
 0x707   : > { %v12405_v23 = vpop.eup %12404  ;;  %v5074_v47 = vadd.f32 1e-05, %v5066_v18  ;;  %v19748_v18 = vld [vmem:[#allocation19_spill] sm:$0xff] }
 0x708   : > { %v12407_v48 = vpop.eup %12406  ;;  %v5075_v61 = vadd.f32 1e-05, %v5067_v19  ;;  %v5084_v46 = vmul.f32 %v12405_v23, %v19746_v10 }
 0x709   : > { %12416 = vrsqrt.f32 %v5074_v47  ;;  %v5085_v40 = vmul.f32 %v12407_v48, %v19747_v27  ;;  %v19750_v48 = vld [vmem:[#allocation20_spill] sm:$0xff] }
 0x70a   : > { %12418 = vrsqrt.f32 %v5075_v61  ;;  %v5104_v21 = vmul.f32 %v5097_v8, %v5084_v46 }
 0x70b   : > { %v12409_v2 = vpop.eup %12408  ;;  %v5105_v9 = vmul.f32 %v5101_v24, %v5085_v40 }
 0x70c   : > { %v12411_v52 = vpop.eup %12410  ;;  %v5124_v51 = vadd.f32 %v5117_v45, %v5104_v21  ;;  %v5086_v58 = vmul.f32 %v12409_v2, %v19748_v18  ;;  %v19752_v18 = vld [vmem:[#allocation21_spill] sm:$0xff] }
 0x70d   : > { %v5125_v7 = vadd.f32 %v5121_v57, %v5105_v9  ;;  %v5087_v19 = vmul.f32 %v12411_v52, %v19749_v6  ;;  %v19753_v52 = vld [vmem:[#allocation127_spill] sm:$0xff] }
 0x70e   : > { %v5106_v14 = vmul.f32 %v5097_v8, %v5086_v58 }
 0x70f   : > { %v12413_v10 = vpop.eup %12412  ;;  %v5132_v23 = vmax.f32 %v5124_v51, %v5125_v7  ;;  %v5107_v34 = vmul.f32 %v5101_v24, %v5087_v19 }
 0x710   : > { %v12415_v47 = vpop.eup %12414  ;;  %v5126_v35 = vadd.f32 %v5117_v45, %v5106_v14  ;;  %v5088_v27 = vmul.f32 %v12413_v10, %v19750_v48 }
 0x711   : > { %5133 = vmax.xlane.f32.xlu0 %v5132_v23  ;;  %v5127_v54 = vadd.f32 %v5121_v57, %v5107_v34  ;;  %v5089_v61 = vmul.f32 %v12415_v47, %v19751_v4 }
 0x712   : > { %v5108_v40 = vmul.f32 %v5097_v8, %v5088_v27 }
 0x713   : > { %v12417_v46 = vpop.eup %12416  ;;  %v5135_v21 = vmax.f32 %v5126_v35, %v5127_v54  ;;  %v5109_v41 = vmul.f32 %v5101_v24, %v5089_v61 }
 0x714   : > { %v12419_v2 = vpop.eup %12418  ;;  %v5128_v9 = vadd.f32 %v5117_v45, %v5108_v40  ;;  %v5090_v6 = vmul.f32 %v12417_v46, %v19752_v18 }
 0x715   : > { %5136 = vmax.xlane.f32.xlu0 %v5135_v21  ;;  %v5129_v58 = vadd.f32 %v5121_v57, %v5109_v41  ;;  %v5091_v19 = vmul.f32 %v12419_v2, %v19753_v52 }
 0x716   : > { %v5110_v56 = vmul.f32 %v5097_v8, %v5090_v6 }
 0x717   : > { %v5138_v14 = vmax.f32 %v5128_v9, %v5129_v58  ;;  %v5111_v17 = vmul.f32 %v5101_v24, %v5091_v19 }
 0x718   : > { %v5130_v10 = vadd.f32 %v5117_v45, %v5110_v56 }
 0x719   : > { %5139 = vmax.xlane.f32.xlu1 %v5138_v14  ;;  %v5131_v23 = vadd.f32 %v5121_v57, %v5111_v17 }
 0x71b   : > { %v5141_v34 = vmax.f32 %v5130_v10, %v5131_v23 }
 0x71d   : > { %5142 = vmax.xlane.f32.xlu1 %v5141_v34 }
 0x79e   : > { %v5134_v47 = vpop.xlane.xlu0 %5133 }
 0x79f   : > { %v5144_v48 = vsub.f32 %v5124_v51, %v5134_v47  ;;  %v5145_v27 = vsub.f32 %v5125_v7, %v5134_v47 }
 0x7a1   : > { %v5152_v4 = vmul.f32 1.442695, %v5144_v48  ;;  %v5154_v61 = vmul.f32 1.442695, %v5145_v27 }
 0x7a2   : > { %v5137_v40 = vpop.xlane.xlu0 %5136 }
 0x7a3   : > { %12420 = vpow2.f32 %v5152_v4  ;;  %v5146_v46 = vsub.f32 %v5126_v35, %v5137_v40  ;;  %v5147_v21 = vsub.f32 %v5127_v54, %v5137_v40 }
 0x7a4   : > { %12422 = vpow2.f32 %v5154_v61 }
 0x7a5   : > { %v5156_v41 = vmul.f32 1.442695, %v5146_v46  ;;  %v5158_v2 = vmul.f32 1.442695, %v5147_v21 }
 0x7a6   : > { %v5140_v8 = vpop.xlane.xlu1 %5139 }
 0x7a7   : > { %12424 = vpow2.f32 %v5156_v41  ;;  %v5148_v24 = vsub.f32 %v5128_v9, %v5140_v8  ;;  %v5149_v56 = vsub.f32 %v5129_v58, %v5140_v8 }
 0x7a8   : > { %12426 = vpow2.f32 %v5158_v2 }
 0x7a9   : > { %v5160_v17 = vmul.f32 1.442695, %v5148_v24  ;;  %v5162_v57 = vmul.f32 1.442695, %v5149_v56 }
 0x7aa   : > { %v5143_v45 = vpop.xlane.xlu1 %5142 }
 0x7ab   : > { %12428 = vpow2.f32 %v5160_v17  ;;  %v5150_v51 = vsub.f32 %v5130_v10, %v5143_v45  ;;  %v5151_v7 = vsub.f32 %v5131_v23, %v5143_v45 }
 0x7ac   : > { %12430 = vpow2.f32 %v5162_v57 }
 0x7ad   : > { %v15880_v18 = vpop.eup %12420  ;;  %v5164_v6 = vmul.f32 1.442695, %v5150_v51  ;;  %v5166_v35 = vmul.f32 1.442695, %v5151_v7 }
 0x7ae   : > { %19754 = vst [vmem:[#allocation128_spill] sm:$0xff] %v15880_v18  ;;  %v15882_v54 = vpop.eup %12422  ;;  %v15885_v52 = vand.u32 4294901760, %v15880_v18 }
 0x7af   : > { %19755 = vst [vmem:[#allocation25_spill] sm:$0xff] %v15882_v54  ;;  %12432 = vpow2.f32 %v5164_v6  ;;  %v15888_v9 = vand.u32 4294901760, %v15882_v54 }
 0x7b0   : > { %19756 = vst [vmem:[#allocation71_spill] sm:$0xff] %v15885_v52  ;;  %12434 = vpow2.f32 %v5166_v35  ;;  %v15892_v58 = vsub.f32 %v15880_v18, %v15885_v52  ;;  %v19804_v18 = vld [vmem:[#allocation162_spill] sm:$0xff] }
 0x7b1   : > { %19757 = vst [vmem:[#allocation129_spill] sm:$0xff] %v15888_v9  ;;  %v15894_v19 = vpop.eup %12424  ;;  %v15898_v14 = vsub.f32 %v15882_v54, %v15888_v9 }
 0x7b2   : > { %19758 = vst [vmem:[#allocation26_spill] sm:$0xff] %v15894_v19  ;;  %v15900_v10 = vpop.eup %12426  ;;  %v18389_v23 = vand.u32 4294901760, %v15892_v58  ;;  %v15904_v34 = vand.u32 4294901760, %v15894_v19 }
 0x7b3   : > { %19759 = vst [vmem:[#allocation27_spill] sm:$0xff] %v15900_v10  ;;  %v18390_v47 = vand.u32 4294901760, %v15898_v14  ;;  %v15908_v48 = vand.u32 4294901760, %v15900_v10 }
 0x7b4   : > { %19760 = vst [vmem:[#allocation126_spill] sm:$0xff] %v15904_v34  ;;  %v5305_v27 = vsub.f32 %v15892_v58, %v18389_v23  ;;  %v15915_v4 = vsub.f32 %v15894_v19, %v15904_v34  ;;  %v19769_v23 = vld [vmem:[#allocation91_spill] sm:$0xff] }
 0x7b5   : > { %19761 = vst [vmem:[#allocation74_spill] sm:$0xff] %v15908_v48  ;;  %v15917_v61 = vpop.eup %12428  ;;  %v5299_v40 = vsub.f32 %v15898_v14, %v18390_v47  ;;  %v15924_v46 = vsub.f32 %v15900_v10, %v15908_v48 }
 0x7b6   : > { %19762 = vst [vmem:[#allocation56_spill] sm:$0xff] %v15917_v61  ;;  %v15926_v21 = vpop.eup %12430  ;;  %v5306_v41 = vand.u32 4294901760, %v5305_v27  ;;  %v18388_v2 = vand.u32 4294901760, %v15915_v4  ;;  %v15930_v8 = vand.u32 4294901760, %v15917_v61 }
 0x7b7   : > { %19763 = vst [vmem:[#allocation58_spill] sm:$0xff] %v15926_v21  ;;  %v5300_v24 = vand.u32 4294901760, %v5299_v40  ;;  %v18391_v56 = vand.u32 4294901760, %v15924_v46  ;;  %v15934_v17 = vand.u32 4294901760, %v15926_v21 }
 0x7b8   : > { %19764 = vst [vmem:[#allocation136_spill] sm:$0xff] %v15930_v8  ;;  %v5321_v57 = vsub.f32 %v15915_v4, %v18388_v2  ;;  %v15941_v45 = vsub.f32 %v15917_v61, %v15930_v8  ;;  %v19771_v61 = vld [vmem:[#allocation94_spill] sm:$0xff] }
 0x7b9   : > { %19765 = vst [vmem:[#allocation30_spill] sm:$0xff] %v15934_v17  ;;  %v15943_v51 = vpop.eup %12432  ;;  %5301 = vmatprep.mubr.f32.mxu1 %v5300_v24  ;;  %v5315_v7 = vsub.f32 %v15924_v46, %v18391_v56  ;;  %v15950_v6 = vsub.f32 %v15926_v21, %v15934_v17 }
 0x7ba   : > { %19766 = vst [vmem:[#allocation59_spill] sm:$0xff] %v15943_v51  ;;  %v15952_v35 = vpop.eup %12434  ;;  %5307 = vmatmul.mubr.f32.vlgmr.msra.gmra.mrb[8].mxu1 %v5306_v41  ;;  %v5322_v27 = vand.u32 4294901760, %v5321_v57  ;;  %v18394_v40 = vand.u32 4294901760, %v15941_v45  ;;  %v15956_v2 = vand.u32 4294901760, %v15943_v51 }
 0x7bb   : > { %19767 = vst [vmem:[#allocation61_spill] sm:$0xff] %v15952_v35  ;;  %11406 = vmatpush1.bf16.msra.mxu1 %v19769_v23  ;;  %v5316_v24 = vand.u32 4294901760, %v5315_v7  ;;  %v18397_v47 = vand.u32 4294901760, %v15950_v6  ;;  %v15961_v56 = vand.u32 4294901760, %v15952_v35 }
 0x7bc   : > { %19768 = vst [vmem:[#allocation141_spill] sm:$0xff] %v15956_v2  ;;  %11408 = vmatprep.subr.bf16.mxu1 %v19771_v61  ;;  %v5337_v41 = vsub.f32 %v15941_v45, %v18394_v40  ;;  %v15969_v57 = vsub.f32 %v15943_v51, %v15956_v2  ;;  %v19772_v51 = vld [vmem:[#allocation102_spill] sm:$0xff] }
 0x7bd   : > { %19770 = vst [vmem:[#allocation68_spill] sm:$0xff] %v15961_v56  ;;  %5317 = vmatprep.mubr.f32.mxu1 %v5316_v24  ;;  %v5331_v23 = vsub.f32 %v15950_v6, %v18397_v47  ;;  %v15976_v7 = vsub.f32 %v15952_v35, %v15961_v56 }
 0x7be   : > { %5323 = vmatmul.mubr.f32.gmra.mrb[10].mxu1 %v5322_v27  ;;  %v5338_v21 = vand.u32 4294901760, %v5337_v41  ;;  %v18398_v61 = vand.u32 4294901760, %v15969_v57 }
 0x7bf   : > { %11410 = vmatpush1.bf16.msra.mxu1 %v19646_v59  ;;  %v5332_v40 = vand.u32 4294901760, %v5331_v23  ;;  %v18399_v10 = vand.u32 4294901760, %v15976_v7  ;;  %v19773_v59 = vld [vmem:[#allocation64_spill] sm:$0xff]  ;;  %v19774_v23 = vld [vmem:[#allocation118_spill] sm:$0xff] }
 0x7c0   : > { %11412 = vmatprep.subr.bf16.mxu1 %v19772_v51  ;;  %v5353_v24 = vsub.f32 %v15969_v57, %v18398_v61  ;;  %v19775_v51 = vld [vmem:[#allocation34_spill] sm:$0xff]  ;;  %v19777_v61 = vld [vmem:[#allocation144_spill] sm:$0xff] }
 0x7c1   : > { %5333 = vmatprep.mubr.f32.mxu1 %v5332_v40  ;;  %v5347_v47 = vsub.f32 %v15976_v7, %v18399_v10  ;;  %v19776_v40 = vld [vmem:[#allocation44_spill] sm:$0xff]  ;;  %v19778_v10 = vld [vmem:[#allocation145_spill] sm:$0xff] }
 0x7c2   : > { %5339 = vmatmul.mubr.f32.gmra.mrb[12].mxu1 %v5338_v21  ;;  %v5354_v27 = vand.u32 4294901760, %v5353_v24  ;;  %v19779_v21 = vld [vmem:[#allocation53_spill] sm:$0xff] }
 0x7c3   : > { %11414 = vmatpush1.bf16.msra.mxu1 %v19648_v43  ;;  %v5348_v41 = vand.u32 4294901760, %v5347_v47  ;;  %v19780_v43 = vld [vmem:[#allocation146_spill] sm:$0xff]  ;;  %v19781_v47 = vld [vmem:[#allocation117_spill] sm:$0xff] }
 0x7c4   : > { %11416 = vmatprep.subr.bf16.mxu1 %v19773_v59  ;;  %v19782_v24 = vld [vmem:[#allocation105_spill] sm:$0xff]  ;;  %v19785_v59 = vld [vmem:[#allocation147_spill] sm:$0xff] }
 0x7c5   : > { %5349 = vmatprep.mubr.f32.mxu1 %v5348_v41  ;;  %v19784_v41 = vld [vmem:[#allocation85_spill] sm:$0xff] }
 0x7c6   : > { %5355 = vmatmul.mubr.f32.gmra.mrb[14].mxu1 %v5354_v27  ;;  %v19783_v27 = vld [vmem:[#allocation39_spill] sm:$0xff] }
 0x7c7   : > { %11418 = vmatpush1.bf16.msra.mxu1 %v19774_v23  ;;  %5746 = vmatprep.mubr.f32.mxu1 %v15888_v9  ;;  %v19786_v23 = vld [vmem:[#allocation149_spill] sm:$0xff]  ;;  %v19805_v9 = vld [vmem:[#allocation36_spill] sm:$0xff] }
 0x7c8   : > { %11420 = vmatprep.subr.bf16.mxu1 %v19775_v51  ;;  %v19787_v51 = vld [vmem:[#allocation150_spill] sm:$0xff] }
 0x7cb   : > { %11422 = vmatpush1.bf16.msra.mxu1 %v19776_v40  ;;  %v19790_v40 = vld [vmem:[#allocation153_spill] sm:$0xff] }
 0x7cc   : > { %11424 = vmatprep.subr.bf16.mxu1 %v19777_v61  ;;  %v19788_v61 = vld [vmem:[#allocation151_spill] sm:$0xff] }
 0x7cf   : > { %11426 = vmatpush1.bf16.msra.mxu1 %v19778_v10  ;;  %v19789_v10 = vld [vmem:[#allocation152_spill] sm:$0xff] }
 0x7d0   : > { %11428 = vmatprep.subr.bf16.mxu1 %v19779_v21  ;;  %v19791_v21 = vld [vmem:[#allocation154_spill] sm:$0xff] }
 0x7d3   : > { %11430 = vmatpush1.bf16.msra.mxu1 %v19780_v43  ;;  %v19792_v43 = vld [vmem:[#allocation155_spill] sm:$0xff] }
 0x7d4   : > { %11432 = vmatprep.subr.bf16.mxu1 %v19781_v47  ;;  %v19793_v47 = vld [vmem:[#allocation156_spill] sm:$0xff] }
 0x7d7   : > { %11434 = vmatpush1.bf16.msra.mxu1 %v19782_v24  ;;  %v19794_v24 = vld [vmem:[#allocation114_spill] sm:$0xff] }
 0x7d8   : > { %11436 = vmatprep.subr.bf16.mxu1 %v19783_v27  ;;  %v19795_v27 = vld [vmem:[#allocation23_spill] sm:$0xff] }
 0x7db   : > { %11438 = vmatpush1.bf16.msra.mxu1 %v19784_v41  ;;  %v19796_v41 = vld [vmem:[#allocation116_spill] sm:$0xff] }
 0x7dc   : > { %11440 = vmatprep.subr.bf16.mxu1 %v19785_v59  ;;  %v19797_v59 = vld [vmem:[#allocation28_spill] sm:$0xff] }
 0x7df   : > { %11442 = vmatpush1.bf16.msra.mxu1 %v19786_v23  ;;  %v19798_v23 = vld [vmem:[#allocation157_spill] sm:$0xff] }
 0x7e0   : > { %11444 = vmatprep.subr.bf16.mxu1 %v19787_v51  ;;  %v19799_v51 = vld [vmem:[#allocation158_spill] sm:$0xff] }
 0x7e3   : > { %11446 = vmatpush1.bf16.msra.mxu1 %v19788_v61  ;;  %v16020_v61 = vld [vmem:[%s17653_s5 + $0x8] sm:$0xff] }
 0x7e4   : > { %11448 = vmatprep.subr.bf16.mxu1 %v19789_v10  ;;  %v16025_v10 = vld [vmem:[%s17653_s5 + $0x18] sm:$0xff] }
 0x7e7   : > { %11450 = vmatpush1.bf16.msra.mxu1 %v19790_v40  ;;  %v18401_v40 = vand.u32 4294901760, %v16020_v61 }
 0x7e8   : > { %11452 = vmatprep.subr.bf16.mxu1 %v19791_v21  ;;  %v18403_v21 = vand.u32 4294901760, %v16025_v10 }
 0x7eb   : > { %11454 = vmatpush1.bf16.msra.mxu1 %v19792_v43  ;;  %v16032_v43 = vld [vmem:[%s17653_s5] sm:$0xff] }
 0x7ec   : > { %11456 = vmatprep.subr.bf16.mxu1 %v19793_v47  ;;  %v16037_v47 = vld [vmem:[%s17653_s5 + $0x10] sm:$0xff] }
 0x7ed   : > { %v19802_v35 = vand.u32 4294901760, %v16037_v47 }
 0x7ef   : > { %11458 = vmatpush1.bf16.msra.mxu1 %v19794_v24  ;;  %v18404_v24 = vand.u32 4294901760, %v16032_v43 }
 0x7f0   : > { %11460 = vmatprep.subr.bf16.mxu1 %v19795_v27 }
 0x7f1   : > { %v16058_v27 = vsub.f32 %v16032_v43, %v18404_v24  ;;  %v19803_v24 = vld [vmem:[#allocation161_spill] sm:$0xff] }
 0x7f3   : > { %11462 = vmatpush1.bf16.msra.mxu1 %v19796_v41  ;;  %v19800_v41 = vld [vmem:[#allocation159_spill] sm:$0xff] }
 0x7f4   : > { %11464 = vmatprep.subr.bf16.mxu1 %v19797_v59  ;;  %v16047_v59 = vsub.f32 %v16020_v61, %v18401_v40 }
 0x7f6   : > { %v18415_v40 = vand.u32 4294901760, %v16047_v59 }
 0x7f7   : > { %11466 = vmatpush1.bf16.msra.mxu1 %v19798_v23  ;;  %v16052_v23 = vsub.f32 %v16025_v10, %v18403_v21  ;;  %v18419_v21 = vand.u32 4294901760, %v16058_v27 }
 0x7f8   : > { %11468 = vmatprep.subr.bf16.mxu1 %v19799_v51  ;;  %v19801_v51 = vld [vmem:[#allocation160_spill] sm:$0xff] }
 0x7f9   : > { %v18418_v19 = vand.u32 4294901760, %v16052_v23 }
 0x7fa   : > { %5748 = vmatmul.mubr.f32.vlgmr.msra.gmra.mrb[8].mxu1 %v15885_v52 }
 0x7fb   : > { %5754 = vmatprep.mubr.f32.mxu1 %v15908_v48  ;;  %11470 = vmatpush1.bf16.msra.mxu1 %v19800_v41  ;;  %v16063_v41 = vsub.f32 %v16037_v47, %v19802_v35  ;;  %v6799_v35 = vsub.f32 %v16047_v59, %v18415_v40  ;;  %v6811_v54 = vsub.f32 %v16052_v23, %v18418_v19 }
 0x7fc   : > { %11472 = vmatprep.subr.bf16.mxu1 %v19801_v51 }
 0x7fd   : > { %v18420_v51 = vand.u32 4294901760, %v16063_v41  ;;  %v6800_v48 = vand.u32 4294901760, %v6799_v35 }
 0x7fe   : > { %5756 = vmatmul.mubr.f32.gmra.mrb[10].mxu1 %v15904_v34  ;;  %v6805_v34 = vsub.f32 %v16058_v27, %v18419_v21 }
 0x7ff   : > { %5762 = vmatprep.mubr.f32.mxu1 %v15934_v17  ;;  %11474 = vmatpush1.bf16.msra.mxu1 %v19803_v24  ;;  %v6817_v17 = vsub.f32 %v16063_v41, %v18420_v51  ;;  %v6812_v24 = vand.u32 4294901760, %v6811_v54  ;;  %v6662_v54 = vld [vmem:[%s464_s25] sm:$0xff]  ;;  %v19812_v51 = vld [vmem:[#allocation60_spill] sm:$0xff] }
 0x800   : > { %11476 = vmatprep.subr.bf16.mxu1 %v19804_v18  ;;  %v6806_v52 = vand.u32 4294901760, %v6805_v34  ;;  %v19806_v18 = vld [vmem:[#allocation38_spill] sm:$0xff]  ;;  %v6672_v34 = vsel %vm6670_vm0, %v6662_v54, 0 }
 0x801   : > { %v6818_v40 = vand.u32 4294901760, %v6817_v17  ;;  %v11727_v19 = vpack.c.bf16 %v6812_v24, %v6800_v48  ;;  %v16100_v48 = vand.u32 4294901760, %v6672_v34  ;;  %v19808_v17 = vld [vmem:[#allocation45_spill] sm:$0xff]  ;;  %v19810_v24 = vld [vmem:[#allocation54_spill] sm:$0xff] }
 0x802   : > { %5764 = vmatmul.mubr.f32.gmra.mrb[12].mxu1 %v15930_v8 }
 0x803   : > { %5770 = vmatprep.mubr.f32.mxu1 %v15961_v56  ;;  %11478 = vmatpush1.bf16.msra.mxu1 %v19805_v9  ;;  %v11729_v21 = vpack.c.bf16 %v6818_v40, %v6806_v52  ;;  %v19807_v9 = vld [vmem:[#allocation42_spill] sm:$0xff]  ;;  %v12584_v52 = vmov 0.0   ;;  %v19814_v56 = vld [vmem:[#allocation69_spill] sm:$0xff] }
 0x804   : > { %11480 = vmatprep.subr.bf16.mxu1 %v19806_v18  ;;  %11728 = vmatprep.subr.bf16.mxu0 %v11727_v19  ;;  %v6663_v19 = vld [vmem:[%s464_s25 + $0x8] sm:$0xff]  ;;  %v6664_v18 = vld [vmem:[%s464_s25 + $0x10] sm:$0xff] }
 0x805   : > { %11730 = vmatpush1.bf16.msra.mxu0 %v11729_v21  ;;  %6880 = vmatprep.mubr.f32.mxu0 %v12584_v52  ;;  %v6675_v40 = vsel %vm6670_vm0, %v6663_v19, 0  ;;  %v19809_v21 = vld [vmem:[#allocation51_spill] sm:$0xff]  ;;  %v6678_v54 = vsel %vm6670_vm0, %v6664_v18, 0  ;;  %v6665_v19 = vld [vmem:[%s464_s25 + $0x18] sm:$0xff]  ;;  %v11731_v18 = vpack.c.bf16 %v16052_v23, %v16047_v59  ;;  %s470_s25 = scalar_lea.vmem %s17650_s2, %s16089_s19  ;;  %s450_s19 = sand.u32 1, %s12570_s18  }
 0x806   : > { %5772 = vmatmul.mubr.f32.gmra.mrb[14].mxu1 %v15956_v2  ;;  %v16108_v35 = vand.u32 4294901760, %v6675_v40  ;;  %s9644_s28 = sshll.u32 %s450_s19, 3  ;;  %s9489_s15 = scalar_lea.sflag [#allocation4], %s450_s19 }
 0x807   : > { %11482 = vmatpush1.bf16.msra.mxu1 %v19807_v9  ;;  %5972 = vmatprep.mubr.f32.mxu1 %v15898_v14  ;;  %v19811_v9 = vld [vmem:[#allocation57_spill] sm:$0xff]  ;;  %s452_s30 = scalar_lea.vmem [#allocation7], %s9644_s28 }
 0x808   : > { %11484 = vmatprep.subr.bf16.mxu1 %v19808_v17  ;;  %6882 = vmatmul.mubr.f32.vlgmr.msra.gmra.mrb[16].mxu0 %v16100_v48  ;;  %v16115_v17 = vand.u32 4294901760, %v6678_v54  ;;  %v16140_v8 = vsub.f32 %v6675_v40, %v16108_v35  ;;  %s9506_s14 = sshll.u32 %s452_s30, 4  ;;  %s17603_s14 = int_to_ptr.vmem [resolvable:$true] %s9506_s14 }
 0x809   : > { %6887 = vmatprep.mubr.f32.mxu0 %v12584_v52  ;;  %11732 = vmatprep.subr.bf16.mxu0 %v11731_v18  ;;  %v19818_v18 = vld [vmem:[#allocation67_spill] sm:$0xff]  ;;  %s12508_s16 = scalar_lea.vmem %s17603_s14, 128 }
 0x80a   : > { %p12509_p10 = scmp.ne.s32.totalorder %s17603_s14, %s12508_s16 }
 0x80b   : > { %11486 = vmatpush1.bf16.msra.mxu1 %v19809_v21  ;;  %v6681_v21 = vsel %vm6670_vm0, %v6665_v19, 0  ;;  %v16133_v19 = vsub.f32 %v6672_v34, %v16100_v48  ;;  %v16147_v34 = vsub.f32 %v6678_v54, %v16115_v17  ;;  %v19823_v54 = vand.u32 4294901760, %v16032_v43 }
 0x80c   : > { %11488 = vmatprep.subr.bf16.mxu1 %v19810_v24  ;;  %6889 = vmatmul.mubr.f32.gmra.mrb[18].mxu0 %v16108_v35  ;;  %v19813_v24 = vld [vmem:[#allocation125_spill] sm:$0xff]  ;;  %v16122_v2 = vand.u32 4294901760, %v6681_v21  ;;  %v19829_v43 = vand.u32 4294901760, %v16052_v23  ;;  %v19838_v23 = vld [vmem:[#allocation106_spill] sm:$0xff]  ;;  %p12510_p2 = pnand %p12509_p10, %p20106_p1 }
 0x80d   : > { %6894 = vmatprep.mubr.f32.mxu0 %v12584_v52 }
 0x80e   : > { %v16154_v40 = vsub.f32 %v6681_v21, %v16122_v2  ;;  %v19830_v21 = vld [vmem:[#allocation130_spill] sm:$0xff]  ;;  %p12511_p3 = pneg %p12510_p2 }
 0x80f   : > { %11490 = vmatpush1.bf16.msra.mxu1 %v19811_v9  ;;  %v11733_v9 = vpack.c.bf16 %v16063_v41, %v16058_v27 }
 0x810   : > { %11492 = vmatprep.subr.bf16.mxu1 %v19812_v51  ;;  %6896 = vmatmul.mubr.f32.gmra.mrb[20].mxu0 %v16115_v17  ;;  %v19815_v51 = vld [vmem:[#allocation75_spill] sm:$0xff] }
 0x811   : > { %6901 = vmatprep.mubr.f32.mxu0 %v12584_v52  ;;  %11734 = vmatpush1.bf16.msra.mxu0 %v11733_v9  ;;  %v19819_v9 = vld [vmem:[#allocation73_spill] sm:$0xff] }
 0x813   : > { %11494 = vmatpush1.bf16.msra.mxu1 %v19813_v24  ;;  %v19816_v24 = vld [vmem:[#allocation78_spill] sm:$0xff] }
 0x814   : > { %11496 = vmatprep.subr.bf16.mxu1 %v19814_v56  ;;  %6903 = vmatmul.mubr.f32.gmra.mrb[22].mxu0 %v16122_v2  ;;  %v19817_v56 = vld [vmem:[#allocation65_spill] sm:$0xff] }
 0x815   : > { %6981 = vmatprep.mubr.f32.mxu0 %v12584_v52 }
 0x817   : > { %11498 = vmatpush1.bf16.msra.mxu1 %v19815_v51  ;;  %v19820_v51 = vld [vmem:[#allocation76_spill] sm:$0xff] }
 0x818   : > { %11500 = vmatprep.subr.bf16.mxu1 %v19816_v24  ;;  %6984 = vmatmul.mubr.f32.vlgmr.msra.gmra.mrb[16].mxu0 %v16133_v19  ;;  %v19821_v24 = vand.u32 4294901760, %v16020_v61  ;;  %v19826_v61 = vld [vmem:[#allocation120_spill] sm:$0xff] }
 0x819   : > { %6989 = vmatprep.mubr.f32.mxu0 %v12584_v52 }
 0x81b   : > { %11502 = vmatpush1.bf16.msra.mxu1 %v19817_v56  ;;  %v19822_v56 = vand.u32 4294901760, %v16025_v10  ;;  %v19828_v10 = vand.u32 4294901760, %v16047_v59  ;;  %v19837_v59 = vld [vmem:[#allocation104_spill] sm:$0xff] }
 0x81c   : > { %11504 = vmatprep.subr.bf16.mxu1 %v19818_v18  ;;  %6992 = vmatmul.mubr.f32.gmra.mrb[18].mxu0 %v16140_v8 }
 0x81d   : > { %6997 = vmatprep.mubr.f32.mxu0 %v12584_v52  ;;  %v16160_v18 = vpack.c.bf16 %v19822_v56, %v19821_v24  ;;  %v19831_v24 = vand.u32 4294901760, %v16058_v27  ;;  %v19832_v56 = vand.u32 4294901760, %v16063_v41  ;;  %v19834_v27 = vand.u32 4294901760, %v15898_v14  ;;  %v19835_v14 = vld [vmem:[#allocation101_spill] sm:$0xff]  ;;  %v19839_v41 = vld [vmem:[#allocation107_spill] sm:$0xff] }
 0x81f   : > { %11506 = vmatpush1.bf16.msra.mxu1 %v19819_v9  ;;  %v19824_v9 = vand.u32 4294901760, %v16037_v47  ;;  %11736 = vmatprep.subr.bf16.mxu0 %v16160_v18  ;;  %v11739_v47 = vpack.c.bf16 %v19829_v43, %v19828_v10  ;;  %v19846_v10 = vand.u32 4294901760, %v15915_v4  ;;  %v19847_v43 = vand.u32 4294901760, %v15950_v6 }
 0x820   : > { %11508 = vmatprep.subr.bf16.mxu1 %v19820_v51  ;;  %7000 = vmatmul.mubr.f32.gmra.mrb[20].mxu0 %v16147_v34 }
 0x821   : > { %7005 = vmatprep.mubr.f32.mxu0 %v12584_v52  ;;  %v16167_v51 = vpack.c.bf16 %v19824_v9, %v19823_v54  ;;  %v11741_v54 = vpack.c.bf16 %v19832_v56, %v19831_v24  ;;  %v19833_v9 = vld [vmem:[#allocation133_spill] sm:$0xff]  ;;  %v19852_v24 = vld [vmem:[#allocation82_spill] sm:$0xff] }
 0x822   : > { %v19853_v56 = vld [vmem:[#allocation109_spill] sm:$0xff] }
 0x823   : > { %11510 = vmatpush1.bf16.msra.mxu1 %v19696_v55  ;;  %11738 = vmatpush1.bf16.msra.mxu0 %v16167_v51  ;;  %v6754_v55 = vand.u32 4294901760, %v16133_v19 }
 0x824   : > { %11512 = vmatprep.subr.bf16.mxu1 %v19697_v49  ;;  %7008 = vmatmul.mubr.f32.gmra.mrb[22].mxu0 %v16154_v40  ;;  %v6765_v49 = vand.u32 4294901760, %v16140_v8 }
 0x825   : > { %7082 = vmatprep.mubr.f32.mxu0 %v12584_v52  ;;  %11740 = vmatprep.subr.bf16.mxu0 %v11739_v47  ;;  %v19848_v47 = vld [vmem:[#allocation49_spill] sm:$0xff] }
 0x827   : > { %11514 = vmatpush1.bf16.msra.mxu1 %v19698_v62  ;;  %v19825_v62 = vld [vmem:[#allocation92_spill] sm:$0xff] }
 0x828   : > { %11516 = vmatprep.subr.bf16.mxu1 %v19699_v20  ;;  %7086 = vmatmul.mubr.f32.vlgmr.msra.gmra.mrb[16].mxu0 %v6754_v55  ;;  %v6776_v20 = vand.u32 4294901760, %v16147_v34 }
 0x829   : > { %7091 = vmatprep.mubr.f32.mxu0 %v12584_v52  ;;  %11742 = vmatpush1.bf16.msra.mxu0 %v11741_v54  ;;  %v19855_v54 = vld [vmem:[#allocation111_spill] sm:$0xff] }
 0x82a   : > { %11744 = vmatprep.subr.bf16.mxu0 %v16160_v18 }
 0x82b   : > { %11518 = vmatpush1.bf16.msra.mxu1 %v19700_v33  ;;  %v19827_v33 = vld [vmem:[#allocation123_spill] sm:$0xff] }
 0x82c   : > { %11520 = vmatprep.subr.bf16.mxu1 %v19701_v3  ;;  %7095 = vmatmul.mubr.f32.gmra.mrb[18].mxu0 %v6765_v49  ;;  %v6787_v3 = vand.u32 4294901760, %v16154_v40 }
 0x82d   : > { %7100 = vmatprep.mubr.f32.mxu0 %v12584_v52 }
 0x82f   : > { %11522 = vmatpush1.bf16.msra.mxu1 %v19825_v62  ;;  %v19843_v62 = vand.u32 4294901760, %v15924_v46 }
 0x830   : > { %11524 = vmatprep.subr.bf16.mxu1 %v19826_v61  ;;  %7104 = vmatmul.mubr.f32.gmra.mrb[20].mxu0 %v6776_v20  ;;  %v19844_v61 = vld [vmem:[#allocation46_spill] sm:$0xff] }
 0x831   : > { %7109 = vmatprep.mubr.f32.mxu0 %v12584_v52 }
 0x833   : > { %11526 = vmatpush1.bf16.msra.mxu1 %v19827_v33  ;;  %v19845_v33 = vld [vmem:[#allocation50_spill] sm:$0xff] }
 0x834   : > { %11528 = vmatprep.subr.bf16.mxu1 %v19830_v21  ;;  %7113 = vmatmul.mubr.f32.gmra.mrb[22].mxu0 %v6787_v3  ;;  %v19849_v21 = vld [vmem:[#allocation97_spill] sm:$0xff] }
 0x835   : > { %7195 = vmatprep.mubr.f32.mxu0 %v12584_v52 }
 0x837   : > { %11530 = vmatpush1.bf16.msra.mxu1 %v19833_v9  ;;  %v19857_v9 = vld [vmem:[#allocation121_spill] sm:$0xff] }
 0x838   : > { %11532 = vmatprep.subr.bf16.mxu1 %v19590_v38  ;;  %7197 = vmatmul.mubr.f32.vlgmr.msra.gmra.mrb[16].mxu0 %v16100_v48 }
 0x839   : > { %7202 = vmatprep.mubr.f32.mxu0 %v12584_v52  ;;  %11746 = vmatpush1.bf16.msra.mxu0 %v16167_v51 }
 0x83a   : > { %5975 = vmatmul.mubr.f32.vlgmr.msra.gmra.mrb[8].mxu1 %v15892_v58 }
 0x83b   : > { %5982 = vmatprep.mubr.f32.mxu1 %v15924_v46  ;;  %11534 = vmatpush1.bf16.msra.mxu1 %v19593_v11  ;;  %v19851_v46 = vand.u32 4294901760, %v15976_v7 }
 0x83c   : > { %11536 = vmatprep.subr.bf16.mxu1 %v19594_v0  ;;  %7204 = vmatmul.mubr.f32.gmra.mrb[18].mxu0 %v16108_v35 }
 0x83d   : > { %7209 = vmatprep.mubr.f32.mxu0 %v12584_v52 }
 0x83e   : > { %5985 = vmatmul.mubr.f32.gmra.mrb[10].mxu1 %v15915_v4  ;;  %v19854_v4 = vand.u32 4294901760, %v15969_v57 }
 0x83f   : > { %5992 = vmatprep.mubr.f32.mxu1 %v15950_v6  ;;  %11538 = vmatpush1.bf16.msra.mxu1 %v19597_v1  ;;  %v19856_v6 = vld [vmem:[#allocation129_spill] sm:$0xff] }
 0x840   : > { %11540 = vmatprep.subr.bf16.mxu1 %v19598_v60  ;;  %7211 = vmatmul.mubr.f32.gmra.mrb[20].mxu0 %v16115_v17 }
 0x841   : > { %7216 = vmatprep.mubr.f32.mxu0 %v12584_v52 }
 0x842   : > { %5995 = vmatmul.mubr.f32.gmra.mrb[12].mxu1 %v15941_v45 }
 0x843   : > { %6002 = vmatprep.mubr.f32.mxu1 %v15976_v7  ;;  %11542 = vmatpush1.bf16.msra.mxu1 %v19601_v53  ;;  %v19861_v7 = vld [vmem:[#allocation137_spill] sm:$0xff] }
 0x844   : > { %11544 = vmatprep.subr.bf16.mxu1 %v19602_v15  ;;  %7218 = vmatmul.mubr.f32.gmra.mrb[22].mxu0 %v16122_v2 }
 0x845   : > { %7292 = vmatprep.mubr.f32.mxu0 %v12584_v52 }
 0x846   : > { %6005 = vmatmul.mubr.f32.gmra.mrb[14].mxu1 %v15969_v57  ;;  %v19864_v57 = vld [vmem:[#allocation119_spill] sm:$0xff] }
 0x847   : > { %11546 = vmatpush1.bf16.msra.mxu1 %v19604_v30  ;;  %6142 = vmatprep.mubr.f32.mxu1 %v19834_v27  ;;  %v19858_v27 = vld [vmem:[#allocation134_spill] sm:$0xff] }
 0x848   : > { %11548 = vmatprep.subr.bf16.mxu1 %v19605_v28  ;;  %7294 = vmatmul.mubr.f32.vlgmr.msra.gmra.mrb[16].mxu0 %v16100_v48  ;;  %v19840_v48 = vld [vmem:[#allocation16_spill] sm:$0xff] }
 0x849   : > { %7299 = vmatprep.mubr.f32.mxu0 %v12584_v52 }
 0x84b   : > { %11550 = vmatpush1.bf16.msra.mxu1 %v19606_v39 }
 0x84c   : > { %11552 = vmatprep.subr.bf16.mxu1 %v19607_v42  ;;  %7301 = vmatmul.mubr.f32.gmra.mrb[18].mxu0 %v16108_v35  ;;  %v19841_v35 = vld [vmem:[#allocation40_spill] sm:$0xff] }
 0x84d   : > { %7306 = vmatprep.mubr.f32.mxu0 %v12584_v52 }
 0x84f   : > { %11554 = vmatpush1.bf16.msra.mxu1 %v19608_v44 }
 0x850   : > { %11556 = vmatprep.subr.bf16.mxu1 %v19609_v50  ;;  %7308 = vmatmul.mubr.f32.gmra.mrb[20].mxu0 %v16115_v17  ;;  %v19842_v17 = vand.u32 4294901760, %v15892_v58  ;;  %v19850_v58 = vand.u32 4294901760, %v15941_v45  ;;  %v19859_v45 = vld [vmem:[#allocation131_spill] sm:$0xff] }
 0x851   : > { %7313 = vmatprep.mubr.f32.mxu0 %v12584_v52 }
 0x853   : > { %11558 = vmatpush1.bf16.msra.mxu1 %v19610_v32 }
 0x854   : > { %11560 = vmatprep.subr.bf16.mxu1 %v19611_v29  ;;  %7315 = vmatmul.mubr.f32.gmra.mrb[22].mxu0 %v16122_v2  ;;  %v19836_v2 = vld [vmem:[#allocation103_spill] sm:$0xff] }
 0x857   : > { %11562 = vmatpush1.bf16.msra.mxu1 %v19612_v22 }
 0x858   : > { %11564 = vmatprep.subr.bf16.mxu1 %v19613_v63 }
 0x85b   : > { %11566 = vmatpush1.bf16.msra.mxu1 %v19614_v37 }
 0x85c   : > { %11568 = vmatprep.subr.bf16.mxu1 %v19615_v13 }
 0x85f   : > { %11570 = vmatpush1.bf16.msra.mxu1 %v19616_v5 }
 0x860   : > { %11572 = vmatprep.subr.bf16.mxu1 %v19617_v26 }
 0x863   : > { %11574 = vmatpush1.bf16.msra.mxu1 %v19618_v16 }
 0x864   : > { %11576 = vmatprep.subr.bf16.mxu1 %v19619_v31 }
 0x867   : > { %11578 = vmatpush1.bf16.msra.mxu1 %v19620_v25 }
 0x868   : > { %11580 = vmatprep.subr.bf16.mxu1 %v19621_v12 }
 0x86b   : > { %11582 = vmatpush1.bf16.msra.mxu1 %v19622_v36 }
 0x86c   : > { %11584 = vmatprep.subr.bf16.mxu1 %v19835_v14 }
 0x86f   : > { %11586 = vmatpush1.bf16.msra.mxu1 %v19836_v2 }
 0x870   : > { %11588 = vmatprep.subr.bf16.mxu1 %v19837_v59 }
 0x873   : > { %11590 = vmatpush1.bf16.msra.mxu1 %v19838_v23 }
 0x874   : > { %11592 = vmatprep.subr.bf16.mxu1 %v19839_v41 }
 0x877   : > { %11594 = vmatpush1.bf16.msra.mxu1 %v19840_v48 }
 0x878   : > { %11596 = vmatprep.subr.bf16.mxu1 %v19841_v35  ;;  %v19860_v35 = vld [vmem:[#allocation139_spill] sm:$0xff] }
 0x87a   : > { %6146 = vmatmul.mubr.f32.vlgmr.msra.gmra.mrb[8].mxu1 %v19842_v17  ;;  %v19862_v17 = vld [vmem:[#allocation143_spill] sm:$0xff] }
 0x87b   : > { %6154 = vmatprep.mubr.f32.mxu1 %v19843_v62  ;;  %11598 = vmatpush1.bf16.msra.mxu1 %v19844_v61  ;;  %v19863_v62 = vld [vmem:[#allocation142_spill] sm:$0xff]  ;;  %v19865_v61 = vld [vmem:[#allocation163_spill] sm:$0xff] }
 0x87c   : > { %11600 = vmatprep.subr.bf16.mxu1 %v19845_v33  ;;  %v19866_v33 = vld [vmem:[#allocation164_spill] sm:$0xff] }
 0x87e   : > { %6158 = vmatmul.mubr.f32.gmra.mrb[10].mxu1 %v19846_v10  ;;  %v19867_v10 = vld [vmem:[#allocation165_spill] sm:$0xff] }
 0x87f   : > { %6166 = vmatprep.mubr.f32.mxu1 %v19847_v43  ;;  %11602 = vmatpush1.bf16.msra.mxu1 %v19848_v47  ;;  %v19868_v43 = vld [vmem:[#allocation166_spill] sm:$0xff]  ;;  %v19869_v47 = vld [vmem:[#allocation167_spill] sm:$0xff] }
 0x880   : > { %11604 = vmatprep.subr.bf16.mxu1 %v19849_v21  ;;  %v19870_v21 = vld [vmem:[#allocation168_spill] sm:$0xff] }
 0x882   : > { %6170 = vmatmul.mubr.f32.gmra.mrb[12].mxu1 %v19850_v58  ;;  %v19871_v58 = vld [vmem:[#allocation169_spill] sm:$0xff] }
 0x883   : > { %6178 = vmatprep.mubr.f32.mxu1 %v19851_v46  ;;  %11606 = vmatpush1.bf16.msra.mxu1 %v19852_v24  ;;  %v19872_v46 = vld [vmem:[#allocation63_spill] sm:$0xff]  ;;  %v19873_v24 = vld [vmem:[#allocation66_spill] sm:$0xff] }
 0x884   : > { %11608 = vmatprep.subr.bf16.mxu1 %v19853_v56  ;;  %v16307_v56 = vld [vmem:[%s17654_s6 + $0x80] sm:$0xff] }
 0x886   : > { %6182 = vmatmul.mubr.f32.gmra.mrb[14].mxu1 %v19854_v4  ;;  %v16312_v4 = vld [vmem:[%s17654_s6 + $0x88] sm:$0xff] }
 0x887   : > { %11610 = vmatpush1.bf16.msra.mxu1 %v19855_v54  ;;  %6445 = vmatprep.mubr.f32.mxu1 %v19856_v6  ;;  %v16317_v54 = vld [vmem:[%s17654_s6] sm:$0xff] }
 0x888   : > { %11612 = vmatprep.subr.bf16.mxu1 %v19857_v9  ;;  %v7410_v9 = vand.u32 4294901760, %v16307_v56 }
 0x88b   : > { %11614 = vmatpush1.bf16.msra.mxu1 %v19858_v27  ;;  %v7413_v27 = vand.u32 4294901760, %v16312_v4 }
 0x88c   : > { %11616 = vmatprep.subr.bf16.mxu1 %v19859_v45  ;;  %v16324_v45 = vld [vmem:[%s17654_s6 + $0x8] sm:$0xff] }
 0x88f   : > { %11618 = vmatpush1.bf16.msra.mxu1 %v19860_v35  ;;  %v18448_v35 = vand.u32 4294901760, %v16317_v54 }
 0x890   : > { %11620 = vmatprep.subr.bf16.mxu1 %v19861_v7  ;;  %v19874_v7 = vld [vmem:[#allocation88_spill] sm:$0xff] }
 0x893   : > { %11622 = vmatpush1.bf16.msra.mxu1 %v19862_v17  ;;  %v18447_v17 = vand.u32 4294901760, %v16324_v45 }
 0x894   : > { %11624 = vmatprep.subr.bf16.mxu1 %v19863_v62  ;;  %v19875_v62 = vld [vmem:[#allocation83_spill] sm:$0xff] }
 0x897   : > { %11626 = vmatpush1.bf16.msra.mxu1 %v19864_v57  ;;  %v16334_v57 = vpack.c.bf16 %v7413_v27, %v7410_v9 }
 0x898   : > { %11628 = vmatprep.subr.bf16.mxu1 %v19865_v61  ;;  %v16340_v61 = vpack.c.bf16 %v18447_v17, %v18448_v35  ;;  %v16673_v17 = vsub.f32 %v16307_v56, %v7410_v9  ;;  %v16678_v35 = vsub.f32 %v16312_v4, %v7413_v27  ;;  %v19902_v56 = vand.u32 4294901760, %v16324_v45 }
 0x899   : > { %19876 = vst [vmem:[#allocation70_spill] sm:$0xff] %v16334_v57  ;;  %11844 = vmatprep.subr.bf16.mxu0 %v16334_v57 }
 0x89a   : > { %11846 = vmatpush3.bf16.msra.mxu0 %v16340_v61  ;;  %v16691_v9 = vsub.f32 %v16324_v45, %v19902_v56 }
 0x89b   : > { %11630 = vmatpush1.bf16.msra.mxu1 %v19866_v33  ;;  %v19877_v33 = vld [vmem:[#allocation81_spill] sm:$0xff] }
 0x89c   : > { %11632 = vmatprep.subr.bf16.mxu1 %v19867_v10  ;;  %v19878_v10 = vld [vmem:[#allocation84_spill] sm:$0xff] }
 0x89f   : > { %11634 = vmatpush1.bf16.msra.mxu1 %v19868_v43  ;;  %v19879_v43 = vld [vmem:[#allocation17_spill] sm:$0xff] }
 0x8a0   : > { %11636 = vmatprep.subr.bf16.mxu1 %v19869_v47  ;;  %v19880_v47 = vld [vmem:[#allocation148_spill] sm:$0xff] }
 0x8a3   : > { %11638 = vmatpush1.bf16.msra.mxu1 %v19870_v21  ;;  %v19881_v21 = vld [vmem:[#allocation77_spill] sm:$0xff] }
 0x8a4   : > { %11640 = vmatprep.subr.bf16.mxu1 %v19871_v58  ;;  %v19882_v58 = vld [vmem:[#allocation71_spill] sm:$0xff] }
 0x8a7   : > { %11642 = vmatpush1.bf16.msra.mxu1 %v19872_v46  ;;  %v19883_v46 = vld [vmem:[#allocation74_spill] sm:$0xff] }
 0x8a8   : > { %11644 = vmatprep.subr.bf16.mxu1 %v19873_v24  ;;  %v19884_v24 = vld [vmem:[#allocation126_spill] sm:$0xff] }
 0x8ab   : > { %11646 = vmatpush1.bf16.msra.mxu1 %v19874_v7  ;;  %v19885_v7 = vld [vmem:[#allocation30_spill] sm:$0xff] }
 0x8ac   : > { %11648 = vmatprep.subr.bf16.mxu1 %v19875_v62  ;;  %v19886_v62 = vld [vmem:[#allocation136_spill] sm:$0xff] }
 0x8af   : > { %11650 = vmatpush1.bf16.msra.mxu1 %v19877_v33  ;;  %v19887_v33 = vld [vmem:[#allocation68_spill] sm:$0xff] }
 0x8b0   : > { %11652 = vmatprep.subr.bf16.mxu1 %v19878_v10 }
 0x8b3   : > { %11654 = vmatpush1.bf16.msra.mxu1 %v19879_v43 }
 0x8b4   : > { %11656 = vmatprep.subr.bf16.mxu1 %v19880_v47 }
 0x8b7   : > { %11658 = vmatpush1.bf16.msra.mxu1 %v19881_v21  ;;  %v16551_v21 = vld [vmem:[%s17654_s6 + $0xc0] sm:$0xff] }
 0x8b8   : > { %11660 = vmatprep.subr.bf16.mxu1 %v19590_v38  ;;  %v19888_v38 = vld [vmem:[#allocation141_spill] sm:$0xff] }
 0x8ba   : > { %6447 = vmatmul.mubr.f32.vlgmr.msra.gmra.mrb[8].mxu1 %v19882_v58 }
 0x8bb   : > { %6453 = vmatprep.mubr.f32.mxu1 %v19883_v46  ;;  %11662 = vmatpush1.bf16.msra.mxu1 %v19593_v11 }
 0x8bc   : > { %11664 = vmatprep.subr.bf16.mxu1 %v19594_v0  ;;  %v6777_v0 = vsub.f32 %v16147_v34, %v6776_v20 }
 0x8be   : > { %6455 = vmatmul.mubr.f32.gmra.mrb[10].mxu1 %v19884_v24 }
 0x8bf   : > { %6461 = vmatprep.mubr.f32.mxu1 %v19885_v7  ;;  %11666 = vmatpush1.bf16.msra.mxu1 %v19597_v1  ;;  %v6778_v1 = vand.u32 4294901760, %v6777_v0 }
 0x8c0   : > { %11668 = vmatprep.subr.bf16.mxu1 %v19598_v60  ;;  %v6788_v60 = vsub.f32 %v16154_v40, %v6787_v3 }
 0x8c2   : > { %6463 = vmatmul.mubr.f32.gmra.mrb[12].mxu1 %v19886_v62 }
 0x8c3   : > { %6469 = vmatprep.mubr.f32.mxu1 %v19887_v33  ;;  %11670 = vmatpush1.bf16.msra.mxu1 %v19601_v53  ;;  %v6789_v53 = vand.u32 4294901760, %v6788_v60  ;;  %v16605_v60 = vld [vmem:[%s17654_s6 + $0x50] sm:$0xff] }
 0x8c4   : > { %11672 = vmatprep.subr.bf16.mxu1 %v19602_v15 }
 0x8c6   : > { %6471 = vmatmul.mubr.f32.gmra.mrb[14].mxu1 %v19888_v38 }
 0x8c7   : > { %11674 = vmatpush1.bf16.msra.mxu1 %v19604_v30  ;;  %6606 = vmatprep.mubr.f32.mxu1 %v19856_v6 }
 0x8c8   : > { %11676 = vmatprep.subr.bf16.mxu1 %v19605_v28 }
 0x8cb   : > { %11678 = vmatpush1.bf16.msra.mxu1 %v19606_v39 }
 0x8cc   : > { %11680 = vmatprep.subr.bf16.mxu1 %v19607_v42 }
 0x8cf   : > { %11682 = vmatpush1.bf16.msra.mxu1 %v19608_v44 }
 0x8d0   : > { %11684 = vmatprep.subr.bf16.mxu1 %v19609_v50 }
 0x8d3   : > { %11686 = vmatpush1.bf16.msra.mxu1 %v19610_v32 }
 0x8d4   : > { %11688 = vmatprep.subr.bf16.mxu1 %v19611_v29  ;;  %v16435_v29 = vld [vmem:[%s17654_s6 + $0x90] sm:$0xff] }
 0x8d5   : > { %v19903_v4 = vand.u32 4294901760, %v16435_v29 }
 0x8d7   : > { %11690 = vmatpush1.bf16.msra.mxu1 %v19612_v22  ;;  %v16440_v22 = vld [vmem:[%s17654_s6 + $0x98] sm:$0xff]  ;;  %v16696_v27 = vsub.f32 %v16435_v29, %v19903_v4 }
 0x8d8   : > { %11692 = vmatprep.subr.bf16.mxu1 %v19613_v63  ;;  %v18446_v63 = vand.u32 4294901760, %v16435_v29 }
 0x8d9   : > { %19904 = vst [vmem:[#allocation87_spill] sm:$0xff] %v16696_v27 }
 0x8db   : > { %11694 = vmatpush1.bf16.msra.mxu1 %v19614_v37  ;;  %v18445_v37 = vand.u32 4294901760, %v16440_v22 }
 0x8dc   : > { %11696 = vmatprep.subr.bf16.mxu1 %v19615_v13  ;;  %v16447_v13 = vld [vmem:[%s17654_s6 + $0x10] sm:$0xff] }
 0x8df   : > { %11698 = vmatpush1.bf16.msra.mxu1 %v19616_v5  ;;  %v16452_v5 = vld [vmem:[%s17654_s6 + $0x18] sm:$0xff] }
 0x8e0   : > { %11700 = vmatprep.subr.bf16.mxu1 %v19617_v26  ;;  %v18444_v26 = vand.u32 4294901760, %v16447_v13  ;;  %v19910_v45 = vand.u32 4294901760, %v16452_v5 }
 0x8e2   : > { %v16713_v56 = vsub.f32 %v16452_v5, %v19910_v45 }
 0x8e3   : > { %11702 = vmatpush1.bf16.msra.mxu1 %v19618_v16  ;;  %v18443_v16 = vand.u32 4294901760, %v16452_v5 }
 0x8e4   : > { %11704 = vmatprep.subr.bf16.mxu1 %v19619_v31  ;;  %v16460_v31 = vpack.c.bf16 %v18445_v37, %v18446_v63  ;;  %v7343_v37 = vld [vmem:[%s17654_s6 + $0x70] sm:$0xff]  ;;  %v16668_v63 = vld [vmem:[%s17654_s6 + $0x78] sm:$0xff]  ;;  %19911 = vst [vmem:[#allocation100_spill] sm:$0xff] %v16713_v56 }
 0x8e5   : > { %v19912_v29 = vand.u32 4294901760, %v16668_v63 }
 0x8e6   : > { %19889 = vst [vmem:[#allocation22_spill] sm:$0xff] %v16460_v31  ;;  %11848 = vmatprep.subr.bf16.mxu0 %v16460_v31 }
 0x8e7   : > { %11706 = vmatpush1.bf16.msra.mxu1 %v19620_v25  ;;  %v6766_v25 = vsub.f32 %v16140_v8, %v6765_v49  ;;  %v16466_v8 = vpack.c.bf16 %v18443_v16, %v18444_v26 }
 0x8e8   : > { %11708 = vmatprep.subr.bf16.mxu1 %v19621_v12 }
 0x8e9   : > { %v6767_v11 = vand.u32 4294901760, %v6766_v25  ;;  %19890 = vst [vmem:[#allocation24_spill] sm:$0xff] %v16466_v8  ;;  %11850 = vmatpush3.bf16.msra.mxu0 %v16466_v8  ;;  %v16591_v25 = vld [vmem:[%s17654_s6 + $0xd0] sm:$0xff] }
 0x8ea   : > { %v18434_v0 = vand.u32 4294901760, %v16591_v25 }
 0x8eb   : > { %11710 = vmatpush1.bf16.msra.mxu1 %v19622_v36  ;;  %v6755_v36 = vsub.f32 %v16133_v19, %v6754_v55  ;;  %v16476_v19 = vld [vmem:[%s17654_s6 + $0xa8] sm:$0xff] }
 0x8ec   : > { %11712 = vmatprep.subr.bf16.mxu1 %v19835_v14  ;;  %v18441_v40 = vand.u32 4294901760, %v16476_v19  ;;  %v16511_v14 = vld [vmem:[%s17654_s6 + $0xb0] sm:$0xff] }
 0x8ed   : > { %v6756_v12 = vand.u32 4294901760, %v6755_v36 }
 0x8ef   : > { %11714 = vmatpush1.bf16.msra.mxu1 %v19836_v2  ;;  %v16516_v2 = vld [vmem:[%s17654_s6 + $0xb8] sm:$0xff] }
 0x8f0   : > { %11716 = vmatprep.subr.bf16.mxu1 %v19837_v59  ;;  %v18438_v59 = vand.u32 4294901760, %v16511_v14 }
 0x8f3   : > { %11718 = vmatpush1.bf16.msra.mxu1 %v19838_v23  ;;  %v18437_v23 = vand.u32 4294901760, %v16516_v2 }
 0x8f4   : > { %11720 = vmatprep.subr.bf16.mxu1 %v19839_v41  ;;  %v16525_v41 = vld [vmem:[%s17654_s6 + $0x30] sm:$0xff] }
 0x8f5   : > { %v18432_v6 = vand.u32 4294901760, %v16525_v41  ;;  %v16540_v43 = vpack.c.bf16 %v18437_v23, %v18438_v59 }
 0x8f7   : > { %11722 = vmatpush1.bf16.msra.mxu1 %v19840_v48  ;;  %v16530_v48 = vld [vmem:[%s17654_s6 + $0x38] sm:$0xff]  ;;  %19893 = vst [vmem:[#allocation43_spill] sm:$0xff] %v16540_v43 }
 0x8f8   : > { %11724 = vmatprep.subr.bf16.mxu1 %v16160_v18  ;;  %v16485_v18 = vld [vmem:[%s17654_s6 + $0x20] sm:$0xff]  ;;  %v18431_v10 = vand.u32 4294901760, %v16530_v48 }
 0x8f9   : > { %v18440_v55 = vand.u32 4294901760, %v16485_v18 }
 0x8fa   : > { %6608 = vmatmul.mubr.f32.vlgmr.msra.gmra.mrb[8].mxu1 %v19882_v58  ;;  %v16546_v47 = vpack.c.bf16 %v18431_v10, %v18432_v6  ;;  %v16556_v58 = vld [vmem:[%s17654_s6 + $0xc8] sm:$0xff]  ;;  %v16631_v10 = vld [vmem:[%s17654_s6 + $0xe0] sm:$0xff] }
 0x8fb   : > { %6614 = vmatprep.mubr.f32.mxu1 %v19883_v46  ;;  %11726 = vmatpush1.bf16.msra.mxu1 %v16167_v51  ;;  %v16490_v51 = vld [vmem:[%s17654_s6 + $0x28] sm:$0xff]  ;;  %v18430_v46 = vand.u32 4294901760, %v16551_v21 }
 0x8fc   : > { %11748 = vmatprep.subr.bf16.mxu1 %v16334_v57  ;;  %v18439_v49 = vand.u32 4294901760, %v16490_v51  ;;  %19894 = vst [vmem:[#allocation47_spill] sm:$0xff] %v16546_v47  ;;  %v16636_v6 = vld [vmem:[%s17654_s6 + $0xe8] sm:$0xff]  ;;  %v19920_v5 = vand.u32 4294901760, %v16490_v51 }
 0x8fe   : > { %6616 = vmatmul.mubr.f32.gmra.mrb[10].mxu1 %v19884_v24  ;;  %v16506_v3 = vpack.c.bf16 %v18439_v49, %v18440_v55  ;;  %v18429_v24 = vand.u32 4294901760, %v16556_v58  ;;  %v16739_v45 = vsub.f32 %v16490_v51, %v19920_v5  ;;  %v19926_v51 = vand.u32 4294901760, %v16525_v41 }
 0x8ff   : > { %6622 = vmatprep.mubr.f32.mxu1 %v19885_v7  ;;  %v16565_v7 = vld [vmem:[%s17654_s6 + $0x40] sm:$0xff]  ;;  %v19934_v5 = vand.u32 4294901760, %v16556_v58 }
 0x900   : > { %19892 = vst [vmem:[#allocation35_spill] sm:$0xff] %v16506_v3  ;;  %v16580_v36 = vpack.c.bf16 %v18429_v24, %v18430_v46  ;;  %19921 = vst [vmem:[#allocation124_spill] sm:$0xff] %v16739_v45 }
 0x902   : > { %6624 = vmatmul.mubr.f32.gmra.mrb[12].mxu1 %v19886_v62  ;;  %v16570_v62 = vld [vmem:[%s17654_s6 + $0x48] sm:$0xff]  ;;  %19895 = vst [vmem:[#allocation52_spill] sm:$0xff] %v16580_v36 }
 0x903   : > { %6630 = vmatprep.mubr.f32.mxu1 %v19887_v33  ;;  %v18428_v33 = vand.u32 4294901760, %v16565_v7 }
 0x906   : > { %6632 = vmatmul.mubr.f32.gmra.mrb[14].mxu1 %v19888_v38  ;;  %v18427_v38 = vand.u32 4294901760, %v16570_v62 }
 0x907   : > { %6751 = vmatprep.mubr.f32.mxu1 %v12584_v52 }
 0x90a   : > { %6757 = vmatmul.mubr.f32.vlgmr.msra.gmra.mrb[16].mxu1 %v6756_v12  ;;  %v16586_v12 = vpack.c.bf16 %v18427_v38, %v18428_v33  ;;  %v18436_v38 = vand.u32 4294901760, %v16605_v60 }
 0x90b   : > { %6762 = vmatprep.mubr.f32.mxu1 %v12584_v52  ;;  %11750 = vmatpush3.bf16.msra.mxu1 %v16340_v61 }
 0x90c   : > { %11752 = vmatprep.subr.bf16.mxu1 %v16460_v31  ;;  %19896 = vst [vmem:[#allocation55_spill] sm:$0xff] %v16586_v12 }
 0x90e   : > { %6768 = vmatmul.mubr.f32.gmra.mrb[18].mxu1 %v6767_v11  ;;  %v16596_v11 = vld [vmem:[%s17654_s6 + $0xd8] sm:$0xff] }
 0x90f   : > { %6773 = vmatprep.mubr.f32.mxu1 %v12584_v52  ;;  %11754 = vmatpush3.bf16.msra.mxu1 %v16466_v8 }
 0x912   : > { %6779 = vmatmul.mubr.f32.gmra.mrb[20].mxu1 %v6778_v1  ;;  %v18433_v1 = vand.u32 4294901760, %v16596_v11 }
 0x913   : > { %6784 = vmatprep.mubr.f32.mxu1 %v12584_v52  ;;  %v16471_v52 = vld [vmem:[%s17654_s6 + $0xa0] sm:$0xff] }
 0x914   : > { %v18442_v34 = vand.u32 4294901760, %v16471_v52  ;;  %v16620_v24 = vpack.c.bf16 %v18433_v1, %v18434_v0  ;;  %v7446_v1 = vand.u32 4294901760, %v16631_v10  ;;  %v7449_v0 = vand.u32 4294901760, %v16636_v6 }
 0x916   : > { %6790 = vmatmul.mubr.f32.gmra.mrb[22].mxu1 %v6789_v53  ;;  %v16500_v20 = vpack.c.bf16 %v18441_v40, %v18442_v34  ;;  %v16610_v53 = vld [vmem:[%s17654_s6 + $0x58] sm:$0xff]  ;;  %19897 = vst [vmem:[#allocation113_spill] sm:$0xff] %v16620_v24  ;;  %v16650_v49 = vpack.c.bf16 %v7449_v0, %v7446_v1  ;;  %v7359_v40 = vld [vmem:[%s17654_s6 + $0xf0] sm:$0xff] }
 0x917   : > { %v18435_v33 = vand.u32 4294901760, %v16610_v53  ;;  %v7360_v34 = vld [vmem:[%s17654_s6 + $0xf8] sm:$0xff]  ;;  %v7452_v16 = vand.u32 4294901760, %v7359_v40 }
 0x918   : > { %19891 = vst [vmem:[#allocation96_spill] sm:$0xff] %v16500_v20  ;;  %11852 = vmatprep.subr.bf16.mxu0 %v16500_v20  ;;  %11756 = vmatprep.subr.bf16.mxu1 %v16500_v20  ;;  %19899 = vst [vmem:[#allocation41_spill] sm:$0xff] %v16650_v49  ;;  %v7455_v26 = vand.u32 4294901760, %v7360_v34 }
 0x919   : > { %11854 = vmatpush3.bf16.msra.mxu0 %v16506_v3  ;;  %11758 = vmatpush3.bf16.msra.mxu1 %v16506_v3  ;;  %v16626_v46 = vpack.c.bf16 %v18435_v33, %v18436_v38  ;;  %v7341_v33 = vld [vmem:[%s17654_s6 + $0x60] sm:$0xff]  ;;  %v7342_v38 = vld [vmem:[%s17654_s6 + $0x68] sm:$0xff] }
 0x91a   : > { %11856 = vmatprep.subr.bf16.mxu0 %v16540_v43  ;;  %11760 = vmatprep.subr.bf16.mxu1 %v16540_v43  ;;  %v7398_v23 = vand.u32 4294901760, %v7341_v33  ;;  %v7401_v59 = vand.u32 4294901760, %v7342_v38 }
 0x91b   : > { %v16416_v15 = vpop.f32.mrb[16].mxu0  ;;  %19898 = vst [vmem:[#allocation115_spill] sm:$0xff] %v16626_v46 }
 0x91c   : > { %v16418_v30 = vpop.f32.mrb[17].mxu0  ;;  %v16652_v55 = vpack.c.bf16 %v7401_v59, %v7398_v23 }
 0x91d   : > { %11858 = vmatpush3.bf16.msra.mxu0 %v16546_v47  ;;  %11762 = vmatpush3.bf16.msra.mxu1 %v16546_v47  ;;  %v19914_v47 = vand.u32 4294901760, %v16471_v52 }
 0x91e   : > { %11860 = vmatprep.subr.bf16.mxu0 %v16580_v36  ;;  %11764 = vmatprep.subr.bf16.mxu1 %v16580_v36  ;;  %19900 = vst [vmem:[#allocation79_spill] sm:$0xff] %v16652_v55  ;;  %v16698_v36 = vpack.c.bf16 %v7455_v26, %v7452_v16 }
 0x91f   : > { %v16420_v28 = vpop.f32.mrb[18].mxu0  ;;  %v16722_v43 = vsub.f32 %v16471_v52, %v19914_v47  ;;  %v19922_v52 = vand.u32 4294901760, %v16511_v14 }
 0x920   : > { %v16422_v39 = vpop.f32.mrb[19].mxu0  ;;  %19905 = vst [vmem:[#allocation90_spill] sm:$0xff] %v16698_v36 }
 0x921   : > { %11862 = vmatpush3.bf16.msra.mxu0 %v16586_v12  ;;  %11766 = vmatpush3.bf16.msra.mxu1 %v16586_v12  ;;  %19915 = vst [vmem:[#allocation62_spill] sm:$0xff] %v16722_v43  ;;  %v16744_v47 = vsub.f32 %v16511_v14, %v19922_v52  ;;  %v19928_v52 = vand.u32 4294901760, %v16530_v48 }
 0x922   : > { %11864 = vmatprep.subr.bf16.mxu0 %v16620_v24  ;;  %11768 = vmatprep.subr.bf16.mxu1 %v16620_v24  ;;  %v19901_v24 = vand.u32 4294901760, %v16317_v54 }
 0x923   : > { %v16424_v42 = vpop.f32.mrb[20].mxu0  ;;  %19923 = vst [vmem:[#allocation132_spill] sm:$0xff] %v16744_v47 }
 0x924   : > { %v16426_v44 = vpop.f32.mrb[21].mxu0  ;;  %v16686_v12 = vsub.f32 %v16317_v54, %v19901_v24  ;;  %v19908_v54 = vand.u32 4294901760, %v16447_v13 }
 0x925   : > { %11866 = vmatpush3.bf16.msra.mxu0 %v16626_v46  ;;  %11770 = vmatpush3.bf16.msra.mxu1 %v16626_v46 }
 0x926   : > { %11868 = vmatprep.subr.bf16.mxu0 %v16650_v49  ;;  %11772 = vmatprep.subr.bf16.mxu1 %v16650_v49  ;;  %v7404_v49 = vand.u32 4294901760, %v7343_v37  ;;  %v16708_v24 = vsub.f32 %v16447_v13, %v19908_v54  ;;  %v19918_v13 = vand.u32 4294901760, %v16485_v18 }
 0x927   : > { %v16428_v50 = vpop.f32.mrb[22].mxu0 }
 0x928   : > { %v16430_v32 = vpop.f32.mrb[23].mxu0  ;;  %19909 = vst [vmem:[#allocation98_spill] sm:$0xff] %v16708_v24  ;;  %v16717_v4 = vpack.c.bf16 %v19912_v29, %v7404_v49  ;;  %v16732_v54 = vsub.f32 %v16485_v18, %v19918_v13  ;;  %v19924_v29 = vand.u32 4294901760, %v16516_v2  ;;  %v16758_v13 = vsub.f32 %v16525_v41, %v19926_v51 }
 0x929   : > { %11870 = vmatpush3.bf16.msra.mxu0 %v16652_v55  ;;  %11774 = vmatpush3.bf16.msra.mxu1 %v16652_v55  ;;  %v19906_v55 = vand.u32 4294901760, %v16440_v22  ;;  %v16766_v18 = vsub.f32 %v16530_v48, %v19928_v52  ;;  %v19933_v51 = vand.u32 4294901760, %v16678_v35  ;;  %v19936_v48 = vand.u32 4294901760, %v16565_v7 }
 0x92a   : > { %19913 = vst [vmem:[#allocation89_spill] sm:$0xff] %v16717_v4  ;;  %19919 = vst [vmem:[#allocation122_spill] sm:$0xff] %v16732_v54  ;;  %11872 = vmatprep.subr.bf16.mxu0 %v16698_v36  ;;  %11776 = vmatprep.subr.bf16.mxu1 %v16698_v36  ;;  %v16834_v8 = vsub.f32 %v7343_v37, %v7404_v49 }
 0x92b   : > { %v16703_v46 = vsub.f32 %v16440_v22, %v19906_v55  ;;  %v19916_v22 = vand.u32 4294901760, %v16476_v19  ;;  %19927 = vst [vmem:[#allocation138_spill] sm:$0xff] %v16758_v13  ;;  %19929 = vst [vmem:[#allocation140_spill] sm:$0xff] %v16766_v18  ;;  %v7641_v14 = vsub.f32 %v16678_v35, %v19933_v51  ;;  %v16787_v52 = vsub.f32 %v16565_v7, %v19936_v48 }
 0x92c   : > { %v19940_v51 = vand.u32 4294901760, %v16570_v62  ;;  %v19944_v7 = vand.u32 4294901760, %v16596_v11  ;;  %19956 = vst [vmem:[#allocation20_spill] sm:$0xff] %v16834_v8 }
 0x92d   : > { %19907 = vst [vmem:[#allocation95_spill] sm:$0xff] %v16703_v46  ;;  %v16727_v55 = vsub.f32 %v16476_v19, %v19916_v22  ;;  %11874 = vmatpush3.bf16.msra.mxu0 %v16717_v4  ;;  %11778 = vmatpush3.bf16.msra.mxu1 %v16717_v4  ;;  %v16753_v22 = vsub.f32 %v16516_v2, %v19924_v29  ;;  %v19930_v19 = vand.u32 4294901760, %v16551_v21  ;;  %v19932_v29 = vand.u32 4294901760, %v16673_v17 }
 0x92e   : > { %11908 = vmatprep.subr.bf16.mxu0 %v16334_v57  ;;  %v16782_v57 = vsub.f32 %v16556_v58, %v19934_v5  ;;  %19937 = vst [vmem:[#allocation31_spill] sm:$0xff] %v16787_v52  ;;  %v16798_v36 = vsub.f32 %v16570_v62, %v19940_v51  ;;  %v19942_v58 = vand.u32 4294901760, %v16591_v25  ;;  %v16808_v48 = vsub.f32 %v16596_v11, %v19944_v7 }
 0x92f   : > { %19917 = vst [vmem:[#allocation93_spill] sm:$0xff] %v16727_v55  ;;  %19925 = vst [vmem:[#allocation135_spill] sm:$0xff] %v16753_v22  ;;  %v16771_v2 = vsub.f32 %v16551_v21, %v19930_v19  ;;  %v7634_v41 = vsub.f32 %v16673_v17, %v19932_v29  ;;  %v19938_v21 = vand.u32 4294901760, %v16686_v12  ;;  %v19939_v29 = vand.u32 4294901760, %v16691_v9 }
 0x930   : > { %19935 = vst [vmem:[#allocation80_spill] sm:$0xff] %v16782_v57  ;;  %19941 = vst [vmem:[#allocation33_spill] sm:$0xff] %v16798_v36  ;;  %v16803_v5 = vsub.f32 %v16591_v25, %v19942_v58  ;;  %v16821_v51 = vsub.f32 %v16631_v10, %v7446_v1  ;;  %v16824_v25 = vsub.f32 %v16636_v6, %v7449_v0  ;;  %v18490_v10 = vand.u32 4294901760, %v16696_v27 }
 0x931   : > { %19931 = vst [vmem:[#allocation99_spill] sm:$0xff] %v16771_v2  ;;  %v7522_v19 = vsub.f32 %v16686_v12, %v19938_v21  ;;  %v7529_v4 = vsub.f32 %v16691_v9, %v19939_v29  ;;  %19945 = vst [vmem:[#allocation32_spill] sm:$0xff] %v16808_v48  ;;  %v19946_v21 = vand.u32 4294901760, %v16605_v60  ;;  %v19948_v29 = vand.u32 4294901760, %v16610_v53 }
 0x932   : > { %19943 = vst [vmem:[#allocation72_spill] sm:$0xff] %v16803_v5  ;;  %19950 = vst [vmem:[#allocation29_spill] sm:$0xff] %v16821_v51  ;;  %v16826_v58 = vsub.f32 %v7341_v33, %v7398_v23  ;;  %v16828_v11 = vsub.f32 %v7342_v38, %v7401_v59  ;;  %v16830_v7 = vsub.f32 %v7359_v40, %v7452_v16  ;;  %v7635_v20 = vand.u32 4294901760, %v7634_v41 }
 0x933   : > { %v16813_v3 = vsub.f32 %v16605_v60, %v19946_v21  ;;  %v16818_v62 = vsub.f32 %v16610_v53, %v19948_v29  ;;  %19951 = vst [vmem:[#allocation48_spill] sm:$0xff] %v16824_v25  ;;  %v7642_v60 = vand.u32 4294901760, %v7641_v14  ;;  %v16832_v21 = vsub.f32 %v7360_v34, %v7455_v26 }
 0x934   : > { %19952 = vst [vmem:[#allocation18_spill] sm:$0xff] %v16826_v58  ;;  %19953 = vst [vmem:[#allocation108_spill] sm:$0xff] %v16828_v11  ;;  %v7523_v53 = vand.u32 4294901760, %v7522_v19  ;;  %v7530_v29 = vand.u32 4294901760, %v7529_v4  ;;  %v18483_v6 = vand.u32 4294901760, %v16703_v46  ;;  %v18481_v23 = vand.u32 4294901760, %v16708_v24 }
 0x935   : > { %19947 = vst [vmem:[#allocation86_spill] sm:$0xff] %v16813_v3  ;;  %19949 = vst [vmem:[#allocation37_spill] sm:$0xff] %v16818_v62  ;;  %v16836_v31 = vpack.c.bf16 %v7642_v60, %v7635_v20  ;;  %v18480_v16 = vand.u32 4294901760, %v16713_v56  ;;  %v18479_v40 = vand.u32 4294901760, %v16722_v43  ;;  %v18482_v26 = vand.u32 4294901760, %v16727_v55 }
 0x936   : > { %19954 = vst [vmem:[#allocation19_spill] sm:$0xff] %v16830_v7  ;;  %19955 = vst [vmem:[#allocation110_spill] sm:$0xff] %v16832_v21  ;;  %v16841_v59 = vpack.c.bf16 %v7530_v29, %v7523_v53  ;;  %v7648_v37 = vsub.f32 %v16696_v27, %v18490_v10  ;;  %v7655_v34 = vsub.f32 %v16703_v46, %v18483_v6  ;;  %v18488_v20 = vand.u32 4294901760, %v16732_v54 }
 0x937   : > { %19957 = vst [vmem:[#allocation112_spill] sm:$0xff] %v16836_v31  ;;  %11780 = vmatprep.subr.bf16.mxu1 %v16836_v31  ;;  %v7536_v49 = vsub.f32 %v16708_v24, %v18481_v23  ;;  %v7543_v33 = vsub.f32 %v16713_v56, %v18480_v16  ;;  %v7662_v38 = vsub.f32 %v16722_v43, %v18479_v40  ;;  %v18487_v1 = vand.u32 4294901760, %v16739_v45 }
 0x938   : > { %v7669_v0 = vsub.f32 %v16727_v55, %v18482_v26  ;;  %v7649_v4 = vand.u32 4294901760, %v7648_v37  ;;  %v7656_v14 = vand.u32 4294901760, %v7655_v34  ;;  %v7550_v19 = vsub.f32 %v16732_v54, %v18488_v20 }
 0x939   : > { %v7537_v41 = vand.u32 4294901760, %v7536_v49  ;;  %v7544_v60 = vand.u32 4294901760, %v7543_v33  ;;  %v7663_v53 = vand.u32 4294901760, %v7662_v38  ;;  %v7557_v40 = vsub.f32 %v16739_v45, %v18487_v1 }
 0x93a   : > { %v7670_v29 = vand.u32 4294901760, %v7669_v0  ;;  %v16873_v16 = vpack.c.bf16 %v7656_v14, %v7649_v4  ;;  %v7551_v23 = vand.u32 4294901760, %v7550_v19  ;;  %v18485_v26 = vand.u32 4294901760, %v16744_v47 }
 0x93b   : > { %v18484_v37 = vand.u32 4294901760, %v16753_v22  ;;  %v16877_v34 = vpack.c.bf16 %v7544_v60, %v7537_v41  ;;  %v7558_v6 = vand.u32 4294901760, %v7557_v40  ;;  %v18486_v33 = vand.u32 4294901760, %v16758_v13 }
 0x93c   : > { %v16879_v49 = vpack.c.bf16 %v7670_v29, %v7663_v53  ;;  %v7676_v38 = vsub.f32 %v16744_v47, %v18485_v26  ;;  %v18489_v4 = vand.u32 4294901760, %v16766_v18  ;;  %v18493_v14 = vand.u32 4294901760, %v16771_v2 }
 0x93d   : > { %v7683_v0 = vsub.f32 %v16753_v22, %v18484_v37  ;;  %v16890_v19 = vpack.c.bf16 %v7558_v6, %v7551_v23  ;;  %v7564_v40 = vsub.f32 %v16758_v13, %v18486_v33  ;;  %v18492_v41 = vand.u32 4294901760, %v16782_v57 }
 0x93e   : > { %v18494_v60 = vand.u32 4294901760, %v16787_v52  ;;  %v7677_v53 = vand.u32 4294901760, %v7676_v38  ;;  %v7571_v37 = vsub.f32 %v16766_v18, %v18489_v4  ;;  %v7690_v26 = vsub.f32 %v16771_v2, %v18493_v14 }
 0x93f   : > { %v7684_v29 = vand.u32 4294901760, %v7683_v0  ;;  %v7565_v6 = vand.u32 4294901760, %v7564_v40  ;;  %v7697_v23 = vsub.f32 %v16782_v57, %v18492_v41  ;;  %v18496_v38 = vand.u32 4294901760, %v16798_v36 }
 0x940   : > { %v7578_v33 = vsub.f32 %v16787_v52, %v18494_v60  ;;  %v7572_v1 = vand.u32 4294901760, %v7571_v37  ;;  %v7691_v20 = vand.u32 4294901760, %v7690_v26  ;;  %v18495_v4 = vand.u32 4294901760, %v16803_v5 }
 0x941   : > { %v16910_v0 = vpack.c.bf16 %v7684_v29, %v7677_v53  ;;  %v7698_v10 = vand.u32 4294901760, %v7697_v23  ;;  %v7585_v40 = vsub.f32 %v16798_v36, %v18496_v38  ;;  %v18498_v41 = vand.u32 4294901760, %v16808_v48 }
 0x942   : > { %v7579_v31 = vand.u32 4294901760, %v7578_v33  ;;  %v16917_v14 = vpack.c.bf16 %v7572_v1, %v7565_v6  ;;  %v7704_v60 = vsub.f32 %v16803_v5, %v18495_v4  ;;  %v18499_v53 = vand.u32 4294901760, %v16813_v3 }
 0x943   : > { %v18502_v26 = vand.u32 4294901760, %v16818_v62  ;;  %v19959_v37 = vand.u32 4294901760, %v16668_v63  ;;  %v16929_v29 = vpack.c.bf16 %v7698_v10, %v7691_v20  ;;  %v7586_v23 = vand.u32 4294901760, %v7585_v40 }
 0x944   : > { %19958 = vst [vmem:[#allocation21_spill] sm:$0xff] %v16917_v14  ;;  %v7711_v1 = vsub.f32 %v16808_v48, %v18498_v41  ;;  %v7705_v6 = vand.u32 4294901760, %v7704_v60  ;;  %v7592_v4 = vsub.f32 %v16813_v3, %v18499_v53  ;;  %v18501_v14 = vand.u32 4294901760, %v16821_v51 }
 0x945   : > { %v16927_v33 = vsub.f32 %v16668_v63, %v19959_v37  ;;  %19961 = vst [vmem:[#allocation91_spill] sm:$0xff] %v16929_v29  ;;  %v7599_v38 = vsub.f32 %v16818_v62, %v18502_v26  ;;  %v16941_v63 = vpack.c.bf16 %v7586_v23, %v7579_v31  ;;  %v18504_v20 = vand.u32 4294901760, %v16824_v25 }
 0x946   : > { %v7712_v10 = vand.u32 4294901760, %v7711_v1  ;;  %v18505_v40 = vand.u32 4294901760, %v16826_v58  ;;  %v7593_v37 = vand.u32 4294901760, %v7592_v4  ;;  %v7718_v60 = vsub.f32 %v16821_v51, %v18501_v14 }
 0x947   : > { %19960 = vst [vmem:[#allocation127_spill] sm:$0xff] %v16927_v33  ;;  %19962 = vst [vmem:[#allocation94_spill] sm:$0xff] %v16941_v63  ;;  %v7600_v41 = vand.u32 4294901760, %v7599_v38  ;;  %v18506_v53 = vand.u32 4294901760, %v16828_v11  ;;  %v7725_v31 = vsub.f32 %v16824_v25, %v18504_v20  ;;  %v18507_v14 = vand.u32 4294901760, %v16830_v7 }
 0x948   : > { %v16949_v29 = vpack.c.bf16 %v7712_v10, %v7705_v6  ;;  %v7606_v23 = vsub.f32 %v16826_v58, %v18505_v40  ;;  %v7719_v4 = vand.u32 4294901760, %v7718_v60  ;;  %v18510_v10 = vand.u32 4294901760, %v16832_v21 }
 0x949   : > { %v16957_v1 = vpack.c.bf16 %v7600_v41, %v7593_v37  ;;  %v7613_v38 = vsub.f32 %v16828_v11, %v18506_v53  ;;  %v7726_v26 = vand.u32 4294901760, %v7725_v31  ;;  %v7732_v40 = vsub.f32 %v16830_v7, %v18507_v14 }
 0x94a   : > { %19963 = vst [vmem:[#allocation102_spill] sm:$0xff] %v16949_v29  ;;  %v7607_v6 = vand.u32 4294901760, %v7606_v23  ;;  %v18512_v29 = vand.u32 4294901760, %v16834_v8  ;;  %v18511_v41 = vand.u32 4294901760, %v16927_v33  ;;  %v7739_v60 = vsub.f32 %v16832_v21, %v18510_v10 }
 0x94b   : > { %19964 = vst [vmem:[#allocation64_spill] sm:$0xff] %v16957_v1  ;;  %v7614_v20 = vand.u32 4294901760, %v7613_v38  ;;  %v16969_v37 = vpack.c.bf16 %v7726_v26, %v7719_v4  ;;  %v7733_v53 = vand.u32 4294901760, %v7732_v40  ;;  %v16988_v10 = vpack.c.bf16 %v16678_v35, %v16673_v17 }
 0x94c   : > { %v7620_v31 = vsub.f32 %v16834_v8, %v18512_v29  ;;  %v7627_v38 = vsub.f32 %v16927_v33, %v18511_v41  ;;  %v7740_v14 = vand.u32 4294901760, %v7739_v60  ;;  %v16996_v40 = vpack.c.bf16 %v16703_v46, %v16696_v27 }
 0x94d   : > { %v16977_v23 = vpack.c.bf16 %v7614_v20, %v7607_v6  ;;  %v16992_v20 = vpack.c.bf16 %v16691_v9, %v16686_v12  ;;  %v17000_v6 = vpack.c.bf16 %v16713_v56, %v16708_v24  ;;  %v17020_v60 = vpack.c.bf16 %v16782_v57, %v16771_v2 }
 0x94e   : > { %v7621_v1 = vand.u32 4294901760, %v7620_v31  ;;  %v7628_v63 = vand.u32 4294901760, %v7627_v38  ;;  %v16982_v26 = vpack.c.bf16 %v7740_v14, %v7733_v53  ;;  %v17004_v14 = vpack.c.bf16 %v16727_v55, %v16722_v43 }
 0x94f   : > { %v17008_v53 = vpack.c.bf16 %v16739_v45, %v16732_v54  ;;  %v17024_v31 = vpack.c.bf16 %v16798_v36, %v16787_v52  ;;  %v17028_v38 = vpack.c.bf16 %v16808_v48, %v16803_v5  ;;  %v17032_v41 = vpack.c.bf16 %v16818_v62, %v16813_v3 }
 0x950   : > { %v16984_v4 = vpack.c.bf16 %v7628_v63, %v7621_v1  ;;  %v17012_v63 = vpack.c.bf16 %v16753_v22, %v16744_v47  ;;  %v17016_v1 = vpack.c.bf16 %v16766_v18, %v16758_v13  ;;  %v17036_v29 = vpack.c.bf16 %v16824_v25, %v16821_v51  ;;  %v19971_v47 = vld [vmem:[#allocation26_spill] sm:$0xff] }
 0x951   : > { %v17040_v57 = vpack.c.bf16 %v16828_v11, %v16826_v58  ;;  %v17044_v36 = vpack.c.bf16 %v16832_v21, %v16830_v7  ;;  %v17048_v48 = vpack.c.bf16 %v16927_v33, %v16834_v8 }
 0x952   : > { %19965 = vst [vmem:[#allocation118_spill] sm:$0xff] %v17036_v29 }
 0x953   : > { %19966 = vst [vmem:[#allocation34_spill] sm:$0xff] %v17040_v57  ;;  %19967 = vst [vmem:[#allocation44_spill] sm:$0xff] %v17044_v36 }
 0x954   : > { %19968 = vst [vmem:[#allocation144_spill] sm:$0xff] %v17048_v48 }
 0x9cd   : > { %v6609_v5 = vpop.f32.mrb[8].mxu1 }
 0x9ce   : > { %v6638_v52 = vmax.f32 %v6609_v5, 1e-30  ;;  %v6611_v62 = vpop.f32.mrb[9].mxu1 }
 0x9cf   : > { %v6639_v3 = vmax.f32 %v6611_v62, 1e-30 }
 0x9d0   : > { %12436 = vrcp.f32 %v6638_v52 }
 0x9d1   : > { %v6617_v2 = vpop.f32.mrb[10].mxu1  ;;  %12438 = vrcp.f32 %v6639_v3 }
 0x9d2   : > { %v6640_v25 = vmax.f32 %v6617_v2, 1e-30  ;;  %v6619_v51 = vpop.f32.mrb[11].mxu1  ;;  %v19969_v2 = vld [vmem:[#allocation128_spill] sm:$0xff] }
 0x9d3   : > { %v6641_v18 = vmax.f32 %v6619_v51, 1e-30 }
 0x9d4   : > { %12440 = vrcp.f32 %v6640_v25 }
 0x9d5   : > { %v6625_v11 = vpop.f32.mrb[12].mxu1  ;;  %12442 = vrcp.f32 %v6641_v18 }
 0x9d6   : > { %v6642_v58 = vmax.f32 %v6625_v11, 1e-30  ;;  %v6627_v21 = vpop.f32.mrb[13].mxu1  ;;  %v19970_v11 = vld [vmem:[#allocation25_spill] sm:$0xff] }
 0x9d7   : > { %v6643_v7 = vmax.f32 %v6627_v21, 1e-30 }
 0x9d8   : > { %12444 = vrcp.f32 %v6642_v58 }
 0x9d9   : > { %v6633_v13 = vpop.f32.mrb[14].mxu1  ;;  %12446 = vrcp.f32 %v6643_v7 }
 0x9da   : > { %v6644_v33 = vmax.f32 %v6633_v13, 1e-30  ;;  %v6635_v8 = vpop.f32.mrb[15].mxu1  ;;  %v12437_v5 = vpop.eup %12436 }
 0x9db   : > { %v6645_v22 = vmax.f32 %v6635_v8, 1e-30  ;;  %v12439_v62 = vpop.eup %12438  ;;  %v17051_v52 = vmul.f32 %v12437_v5, %v19969_v2 }
 0x9dc   : > { %12448 = vrcp.f32 %v6644_v33  ;;  %v17055_v21 = vmul.f32 %v12439_v62, %v19970_v11  ;;  %v19973_v62 = vld [vmem:[#allocation27_spill] sm:$0xff] }
 0x9dd   : > { %12450 = vrcp.f32 %v6645_v22  ;;  %v6758_v3 = vpop.f32.mrb[16].mxu1 }
 0x9de   : > { %v12139_v51 = vadd.f32 %v16416_v15, %v6758_v3  ;;  %v6760_v18 = vpop.f32.mrb[17].mxu1  ;;  %v12441_v25 = vpop.eup %12440 }
 0x9df   : > { %v12140_v58 = vadd.f32 %v16418_v30, %v6760_v18  ;;  %v12443_v13 = vpop.eup %12442  ;;  %v17063_v5 = vmul.f32 %v12441_v25, %v19971_v47 }
 0x9e0   : > { %v7321_v7 = vmul.f32 %v12139_v51, %v17051_v52  ;;  %v17069_v11 = vmul.f32 %v12443_v13, %v19973_v62  ;;  %v19975_v13 = vld [vmem:[#allocation56_spill] sm:$0xff] }
 0x9e1   : > { %v7322_v8 = vmul.f32 %v12140_v58, %v17055_v21  ;;  %v6769_v33 = vpop.f32.mrb[18].mxu1 }
 0x9e2   : > { %v17060_v22 = vand.u32 4294901760, %v7321_v7  ;;  %v12141_v15 = vadd.f32 %v16420_v28, %v6769_v33  ;;  %v6771_v3 = vpop.f32.mrb[19].mxu1  ;;  %v12445_v2 = vpop.eup %12444 }
 0x9e3   : > { %v17066_v45 = vand.u32 4294901760, %v7322_v8  ;;  %v12142_v30 = vadd.f32 %v16422_v39, %v6771_v3  ;;  %v12447_v51 = vpop.eup %12446  ;;  %v17084_v62 = vmul.f32 %v12445_v2, %v19975_v13  ;;  %v19979_v13 = vld [vmem:[#allocation59_spill] sm:$0xff] }
 0x9e4   : > { %v17073_v18 = vsub.f32 %v7321_v7, %v17060_v22  ;;  %v7323_v58 = vmul.f32 %v12141_v15, %v17063_v5  ;;  %v19977_v15 = vld [vmem:[#allocation58_spill] sm:$0xff] }
 0x9e5   : > { %19972 = vst [vmem:[#allocation145_spill] sm:$0xff] %v17066_v45  ;;  %v17077_v47 = vsub.f32 %v7322_v8, %v17066_v45  ;;  %v7324_v28 = vmul.f32 %v12142_v30, %v17069_v11  ;;  %v6780_v25 = vpop.f32.mrb[20].mxu1  ;;  %19976 = vst [vmem:[#allocation146_spill] sm:$0xff] %v17084_v62  ;;  %v17090_v8 = vmul.f32 %v12447_v51, %v19977_v15 }
 0x9e6   : > { %19974 = vst [vmem:[#allocation53_spill] sm:$0xff] %v17073_v18  ;;  %v12449_v33 = vpop.eup %12448  ;;  %v7465_v54 = vand.u32 4294901760, %v17073_v18  ;;  %v17081_v55 = vand.u32 4294901760, %v7323_v58  ;;  %v12143_v39 = vadd.f32 %v16424_v42, %v6780_v25  ;;  %v6782_v7 = vpop.f32.mrb[21].mxu1 }
 0x9e7   : > { %v12451_v3 = vpop.eup %12450  ;;  %v17087_v43 = vand.u32 4294901760, %v7324_v28  ;;  %19978 = vst [vmem:[#allocation117_spill] sm:$0xff] %v17090_v8  ;;  %v12144_v30 = vadd.f32 %v16426_v44, %v6782_v7  ;;  %v7459_v56 = vand.u32 4294901760, %v17077_v47  ;;  %v17104_v27 = vmul.f32 %v12449_v33, %v19979_v13 }
 0x9e8   : > { %v7466_v24 = vsub.f32 %v17073_v18, %v7465_v54  ;;  %v17096_v46 = vsub.f32 %v7323_v58, %v17081_v55  ;;  %v7325_v2 = vmul.f32 %v12143_v39, %v17084_v62  ;;  %v19981_v58 = vld [vmem:[#allocation61_spill] sm:$0xff] }
 0x9e9   : > { %v17100_v42 = vsub.f32 %v7324_v28, %v17087_v43  ;;  %v7326_v25 = vmul.f32 %v12144_v30, %v17090_v8  ;;  %19980 = vst [vmem:[#allocation105_spill] sm:$0xff] %v17104_v27  ;;  %v6791_v51 = vpop.f32.mrb[22].mxu1  ;;  %8035 = vmatprep.mubr.f32.mxu0 %v7459_v56  ;;  %v7460_v44 = vsub.f32 %v17077_v47, %v7459_v56 }
 0x9ea   : > { %v17107_v7 = vand.u32 4294901760, %v7325_v2  ;;  %v12145_v15 = vadd.f32 %v16428_v50, %v6791_v51  ;;  %v17111_v18 = vmul.f32 %v12451_v3, %v19981_v58  ;;  %v6793_v39 = vpop.f32.mrb[23].mxu1  ;;  %8039 = vmatmul.mubr.f32.vlgmr.msra.gmra.mrb[24].mxu0 %v7465_v54  ;;  %v7480_v28 = vand.u32 4294901760, %v17096_v46  ;;  %v19984_v3 = vld [vmem:[#allocation22_spill] sm:$0xff] }
 0x9eb   : > { %v17114_v62 = vand.u32 4294901760, %v7326_v25  ;;  %v12146_v33 = vadd.f32 %v16430_v32, %v6793_v39  ;;  %11910 = vmatpush3.bf16.msra.mxu0 %v16340_v61  ;;  %v7461_v30 = vand.u32 4294901760, %v7460_v44  ;;  %v7474_v56 = vand.u32 4294901760, %v17100_v42 }
 0x9ec   : > { %19982 = vst [vmem:[#allocation39_spill] sm:$0xff] %v17111_v18  ;;  %v7467_v13 = vand.u32 4294901760, %v7466_v24  ;;  %v17120_v8 = vsub.f32 %v7325_v2, %v17107_v7  ;;  %v7327_v50 = vmul.f32 %v12145_v15, %v17104_v27  ;;  %11912 = vmatprep.subr.bf16.mxu0 %v19984_v3  ;;  %v7481_v54 = vsub.f32 %v17096_v46, %v7480_v28  ;;  %v19985_v15 = vld [vmem:[#allocation24_spill] sm:$0xff] }
 0x9ed   : > { %v17126_v51 = vsub.f32 %v7326_v25, %v17114_v62  ;;  %v7328_v32 = vmul.f32 %v12146_v33, %v17111_v18  ;;  %7462 = vmatprep.mubr.f32.mxu1 %v7461_v30  ;;  %8046 = vmatprep.mubr.f32.mxu0 %v7474_v56  ;;  %v7475_v44 = vsub.f32 %v17100_v42, %v7474_v56  ;;  %v19987_v30 = vld [vmem:[#allocation96_spill] sm:$0xff] }
 0x9ee   : > { %19983 = vst [vmem:[#allocation85_spill] sm:$0xff] %v17120_v8  ;;  %v17130_v58 = vand.u32 4294901760, %v7327_v50  ;;  %7468 = vmatmul.mubr.f32.vlgmr.msra.gmra.mrb[24].mxu1 %v7467_v13  ;;  %8050 = vmatmul.mubr.f32.gmra.mrb[26].mxu0 %v7480_v28  ;;  %v7495_v24 = vand.u32 4294901760, %v17120_v8  ;;  %v7482_v56 = vand.u32 4294901760, %v7481_v54 }
 0x9ef   : > { %v17133_v2 = vand.u32 4294901760, %v7328_v32  ;;  %11782 = vmatpush3.bf16.msra.mxu1 %v16841_v59  ;;  %11914 = vmatpush3.bf16.msra.mxu0 %v19985_v15  ;;  %v7476_v25 = vand.u32 4294901760, %v7475_v44  ;;  %v7489_v39 = vand.u32 4294901760, %v17126_v51 }
 0x9f0   : > { %v17139_v33 = vsub.f32 %v7327_v50, %v17130_v58  ;;  %11784 = vmatprep.subr.bf16.mxu1 %v16873_v16  ;;  %11916 = vmatprep.subr.bf16.mxu0 %v19987_v30  ;;  %v7496_v28 = vsub.f32 %v17120_v8, %v7495_v24  ;;  %v19988_v50 = vld [vmem:[#allocation35_spill] sm:$0xff] }
 0x9f1   : > { %v17145_v13 = vsub.f32 %v7328_v32, %v17133_v2  ;;  %7477 = vmatprep.mubr.f32.mxu1 %v7476_v25  ;;  %8057 = vmatprep.mubr.f32.mxu0 %v7489_v39  ;;  %v7490_v27 = vsub.f32 %v17126_v51, %v7489_v39  ;;  %v19989_v8 = vld [vmem:[#allocation43_spill] sm:$0xff] }
 0x9f2   : > { %19986 = vst [vmem:[#allocation147_spill] sm:$0xff] %v17139_v33  ;;  %7483 = vmatmul.mubr.f32.gmra.mrb[26].mxu1 %v7482_v56  ;;  %8061 = vmatmul.mubr.f32.gmra.mrb[28].mxu0 %v7495_v24  ;;  %v7510_v44 = vand.u32 4294901760, %v17139_v33  ;;  %v7497_v32 = vand.u32 4294901760, %v7496_v28  ;;  %v19990_v39 = vld [vmem:[#allocation47_spill] sm:$0xff]  ;;  %v19991_v28 = vld [vmem:[#allocation52_spill] sm:$0xff] }
 0x9f3   : > { %11786 = vmatpush3.bf16.msra.mxu1 %v16877_v34  ;;  %11918 = vmatpush3.bf16.msra.mxu0 %v19988_v50  ;;  %v7491_v18 = vand.u32 4294901760, %v7490_v27  ;;  %v7504_v54 = vand.u32 4294901760, %v17145_v13 }
 0x9f4   : > { %11788 = vmatprep.subr.bf16.mxu1 %v16879_v49  ;;  %11920 = vmatprep.subr.bf16.mxu0 %v19989_v8  ;;  %v7511_v25 = vsub.f32 %v17139_v33, %v7510_v44  ;;  %v19993_v33 = vld [vmem:[#allocation55_spill] sm:$0xff] }
 0x9f5   : > { %7492 = vmatprep.mubr.f32.mxu1 %v7491_v18  ;;  %8068 = vmatprep.mubr.f32.mxu0 %v7504_v54  ;;  %v7505_v24 = vsub.f32 %v17145_v13, %v7504_v54  ;;  %v19992_v18 = vld [vmem:[#allocation21_spill] sm:$0xff] }
 0x9f6   : > { %7498 = vmatmul.mubr.f32.gmra.mrb[28].mxu1 %v7497_v32  ;;  %8072 = vmatmul.mubr.f32.gmra.mrb[30].mxu0 %v7510_v44  ;;  %v7512_v56 = vand.u32 4294901760, %v7511_v25  ;;  %v19994_v44 = vld [vmem:[#allocation91_spill] sm:$0xff]  ;;  %v19995_v54 = vld [vmem:[#allocation113_spill] sm:$0xff]  ;;  %v19996_v32 = vld [vmem:[#allocation94_spill] sm:$0xff] }
 0x9f7   : > { %11790 = vmatpush3.bf16.msra.mxu1 %v16890_v19  ;;  %11922 = vmatpush3.bf16.msra.mxu0 %v19990_v39  ;;  %v7506_v27 = vand.u32 4294901760, %v7505_v24  ;;  %v19997_v24 = vld [vmem:[#allocation115_spill] sm:$0xff]  ;;  %v19998_v39 = vld [vmem:[#allocation102_spill] sm:$0xff]  ;;  %v19999_v25 = vld [vmem:[#allocation41_spill] sm:$0xff] }
 0x9f8   : > { %8363 = vmatprep.mubr.f32.mxu0 %v17066_v45  ;;  %11792 = vmatprep.subr.bf16.mxu1 %v16910_v0 }
 0x9f9   : > { %7507 = vmatprep.mubr.f32.mxu1 %v7506_v27  ;;  %11924 = vmatprep.subr.bf16.mxu0 %v19991_v28  ;;  %v20000_v27 = vld [vmem:[#allocation64_spill] sm:$0xff] }
 0x9fa   : > { %7513 = vmatmul.mubr.f32.gmra.mrb[30].mxu1 %v7512_v56  ;;  %v20001_v56 = vld [vmem:[#allocation79_spill] sm:$0xff] }
 0x9fb   : > { %11794 = vmatpush3.bf16.msra.mxu1 %v19992_v18  ;;  %11926 = vmatpush3.bf16.msra.mxu0 %v19993_v33  ;;  %v20002_v33 = vld [vmem:[#allocation90_spill] sm:$0xff] }
 0x9fc   : > { %7743 = vmatprep.mubr.f32.mxu1 %v17066_v45  ;;  %11796 = vmatprep.subr.bf16.mxu1 %v19994_v44  ;;  %v20003_v45 = vld [vmem:[#allocation89_spill] sm:$0xff] }
 0x9fd   : > { %11928 = vmatprep.subr.bf16.mxu0 %v19995_v54  ;;  %v20004_v54 = vld [vmem:[#allocation112_spill] sm:$0xff] }
 0x9ff   : > { %11798 = vmatpush3.bf16.msra.mxu1 %v19996_v32  ;;  %11930 = vmatpush3.bf16.msra.mxu0 %v19997_v24 }
 0xa00   : > { %11800 = vmatprep.subr.bf16.mxu1 %v19998_v39  ;;  %11932 = vmatprep.subr.bf16.mxu0 %v19999_v25 }
 0xa03   : > { %11802 = vmatpush3.bf16.msra.mxu1 %v20000_v27  ;;  %11934 = vmatpush3.bf16.msra.mxu0 %v20001_v56 }
 0xa04   : > { %11804 = vmatprep.subr.bf16.mxu1 %v16969_v37  ;;  %11936 = vmatprep.subr.bf16.mxu0 %v20002_v33 }
 0xa07   : > { %11806 = vmatpush3.bf16.msra.mxu1 %v16977_v23  ;;  %11938 = vmatpush3.bf16.msra.mxu0 %v20003_v45 }
 0xa08   : > { %11808 = vmatprep.subr.bf16.mxu1 %v16982_v26  ;;  %11972 = vmatprep.subr.bf16.mxu0 %v20004_v54  ;;  %v20017_v54 = vld [vmem:[#allocation53_spill] sm:$0xff] }
 0xa0a   : > { %8365 = vmatmul.mubr.f32.vlgmr.msra.gmra.mrb[32].mxu0 %v17060_v22 }
 0xa0b   : > { %11810 = vmatpush3.bf16.msra.mxu1 %v16984_v4  ;;  %8370 = vmatprep.mubr.f32.mxu0 %v17087_v43 }
 0xa0c   : > { %11974 = vmatpush3.bf16.msra.mxu0 %v16841_v59  ;;  %11812 = vmatprep.subr.bf16.mxu1 %v16988_v10  ;;  %v17203_v59 = vand.u32 4294901760, %v17055_v21 }
 0xa0d   : > { %11976 = vmatprep.subr.bf16.mxu0 %v16873_v16  ;;  %v17229_v16 = vand.u32 4294901760, %v17051_v52 }
 0xa0e   : > { %7745 = vmatmul.mubr.f32.vlgmr.msra.gmra.mrb[32].mxu1 %v17060_v22  ;;  %8372 = vmatmul.mubr.f32.gmra.mrb[34].mxu0 %v17081_v55 }
 0xa0f   : > { %7750 = vmatprep.mubr.f32.mxu1 %v17087_v43  ;;  %11814 = vmatpush3.bf16.msra.mxu1 %v16992_v20 }
 0xa10   : > { %8377 = vmatprep.mubr.f32.mxu0 %v17114_v62  ;;  %11978 = vmatpush3.bf16.msra.mxu0 %v16877_v34  ;;  %v20005_v34 = vld [vmem:[#allocation70_spill] sm:$0xff] }
 0xa11   : > { %11816 = vmatprep.subr.bf16.mxu1 %v16996_v40  ;;  %11980 = vmatprep.subr.bf16.mxu0 %v16879_v49  ;;  %v20006_v49 = vand.u32 4294901760, %v16673_v17 }
 0xa12   : > { %7752 = vmatmul.mubr.f32.gmra.mrb[34].mxu1 %v17081_v55  ;;  %8379 = vmatmul.mubr.f32.gmra.mrb[36].mxu0 %v17107_v7 }
 0xa13   : > { %7757 = vmatprep.mubr.f32.mxu1 %v17114_v62  ;;  %11818 = vmatpush3.bf16.msra.mxu1 %v17000_v6 }
 0xa14   : > { %8384 = vmatprep.mubr.f32.mxu0 %v17133_v2  ;;  %11982 = vmatpush3.bf16.msra.mxu0 %v16890_v19  ;;  %v20007_v19 = vand.u32 4294901760, %v16678_v35  ;;  %v17253_v35 = vand.u32 4294901760, %v17063_v5 }
 0xa15   : > { %11820 = vmatprep.subr.bf16.mxu1 %v17004_v14  ;;  %11984 = vmatprep.subr.bf16.mxu0 %v16910_v0 }
 0xa16   : > { %7759 = vmatmul.mubr.f32.gmra.mrb[36].mxu1 %v17107_v7  ;;  %8386 = vmatmul.mubr.f32.gmra.mrb[38].mxu0 %v17130_v58  ;;  %v17236_v0 = vpack.c.bf16 %v20007_v19, %v20006_v49  ;;  %v20021_v49 = vld [vmem:[#allocation100_spill] sm:$0xff] }
 0xa17   : > { %7764 = vmatprep.mubr.f32.mxu1 %v17133_v2  ;;  %11822 = vmatpush3.bf16.msra.mxu1 %v17008_v53  ;;  %v20022_v19 = vand.u32 4294901760, %v20021_v49  ;;  %v17294_v49 = vsub.f32 %v17055_v21, %v17203_v59  ;;  %v20036_v21 = vld [vmem:[#allocation105_spill] sm:$0xff] }
 0xa18   : > { %11986 = vmatpush3.bf16.msra.mxu0 %v19992_v18  ;;  %8809 = vmatprep.mubr.f32.mxu0 %v17203_v59  ;;  %20008 = vst [vmem:[#allocation149_spill] sm:$0xff] %v17236_v0 }
 0xa19   : > { %11824 = vmatprep.subr.bf16.mxu1 %v17012_v63  ;;  %11988 = vmatprep.subr.bf16.mxu0 %v19994_v44 }
 0xa1a   : > { %7766 = vmatmul.mubr.f32.gmra.mrb[38].mxu1 %v17130_v58 }
 0xa1b   : > { %11826 = vmatpush3.bf16.msra.mxu1 %v17016_v1  ;;  %7901 = vmatprep.mubr.f32.mxu1 %v17077_v47 }
 0xa1c   : > { %11990 = vmatpush3.bf16.msra.mxu0 %v19996_v32  ;;  %11828 = vmatprep.subr.bf16.mxu1 %v17020_v60 }
 0xa1d   : > { %11992 = vmatprep.subr.bf16.mxu0 %v19998_v39  ;;  %v20014_v39 = vld [vmem:[#allocation95_spill] sm:$0xff] }
 0xa1e   : > { %v20015_v18 = vand.u32 4294901760, %v20014_v39 }
 0xa1f   : > { %11830 = vmatpush3.bf16.msra.mxu1 %v17024_v31 }
 0xa20   : > { %11994 = vmatpush3.bf16.msra.mxu0 %v20000_v27  ;;  %11832 = vmatprep.subr.bf16.mxu1 %v17028_v38 }
 0xa21   : > { %11996 = vmatprep.subr.bf16.mxu0 %v16969_v37  ;;  %v17239_v37 = vand.u32 4294901760, %v17069_v11 }
 0xa23   : > { %11834 = vmatpush3.bf16.msra.mxu1 %v17032_v41 }
 0xa24   : > { %11998 = vmatpush3.bf16.msra.mxu0 %v16977_v23  ;;  %11836 = vmatprep.subr.bf16.mxu1 %v17036_v29  ;;  %v20009_v23 = vand.u32 4294901760, %v16686_v12  ;;  %v20018_v12 = vld [vmem:[#allocation117_spill] sm:$0xff] }
 0xa25   : > { %12000 = vmatprep.subr.bf16.mxu0 %v16982_v26  ;;  %v20010_v26 = vand.u32 4294901760, %v16691_v9  ;;  %v17264_v32 = vand.u32 4294901760, %v20018_v12  ;;  %v20019_v9 = vld [vmem:[#allocation98_spill] sm:$0xff]  ;;  %v20067_v29 = vld [vmem:[#allocation113_spill] sm:$0xff] }
 0xa26   : > { %v20020_v27 = vand.u32 4294901760, %v20019_v9  ;;  %v20030_v9 = vld [vmem:[#allocation39_spill] sm:$0xff] }
 0xa27   : > { %11838 = vmatpush3.bf16.msra.mxu1 %v17040_v57  ;;  %v17249_v17 = vpack.c.bf16 %v20010_v26, %v20009_v23  ;;  %v20024_v26 = vld [vmem:[#allocation146_spill] sm:$0xff] }
 0xa28   : > { %12002 = vmatpush3.bf16.msra.mxu0 %v16984_v4  ;;  %11840 = vmatprep.subr.bf16.mxu1 %v17044_v36  ;;  %v20012_v4 = vld [vmem:[#allocation87_spill] sm:$0xff]  ;;  %v17274_v23 = vpack.c.bf16 %v20022_v19, %v20020_v27  ;;  %v17290_v27 = vand.u32 4294901760, %v20030_v9  ;;  %v20031_v19 = vld [vmem:[#allocation122_spill] sm:$0xff] }
 0xa29   : > { %12036 = vmatprep.subr.bf16.mxu0 %v20005_v34  ;;  %20011 = vst [vmem:[#allocation150_spill] sm:$0xff] %v17249_v17  ;;  %v20013_v47 = vand.u32 4294901760, %v20012_v4  ;;  %v17279_v4 = vand.u32 4294901760, %v20024_v26 }
 0xa2a   : > { %20023 = vst [vmem:[#allocation152_spill] sm:$0xff] %v17274_v23 }
 0xa2b   : > { %8811 = vmatmul.mubr.f32.vlgmr.msra.gmra.mrb[40].mxu0 %v17229_v16  ;;  %11842 = vmatpush3.bf16.msra.mxu1 %v17048_v48  ;;  %v17260_v44 = vpack.c.bf16 %v20015_v18, %v20013_v47  ;;  %v20025_v47 = vld [vmem:[#allocation62_spill] sm:$0xff]  ;;  %v20042_v48 = vld [vmem:[#allocation85_spill] sm:$0xff] }
 0xa2c   : > { %8816 = vmatprep.mubr.f32.mxu0 %v17239_v37  ;;  %12038 = vmatpush3.bf16.msra.mxu0 %v16340_v61  ;;  %v20026_v39 = vand.u32 4294901760, %v20025_v47  ;;  %v20032_v47 = vand.u32 4294901760, %v20031_v19  ;;  %v18561_v19 = vand.u32 4294901760, %v17294_v49 }
 0xa2d   : > { %11876 = vmatprep.subr.bf16.mxu1 %v17236_v0  ;;  %12040 = vmatprep.subr.bf16.mxu0 %v19984_v3  ;;  %20016 = vst [vmem:[#allocation151_spill] sm:$0xff] %v17260_v44 }
 0xa2e   : > { %7904 = vmatmul.mubr.f32.vlgmr.msra.gmra.mrb[40].mxu1 %v20017_v54 }
 0xa2f   : > { %8818 = vmatmul.mubr.f32.gmra.mrb[42].mxu0 %v17253_v35  ;;  %7910 = vmatprep.mubr.f32.mxu1 %v17100_v42  ;;  %v20027_v42 = vld [vmem:[#allocation93_spill] sm:$0xff] }
 0xa30   : > { %11878 = vmatpush3.bf16.msra.mxu1 %v17249_v17  ;;  %8823 = vmatprep.mubr.f32.mxu0 %v17264_v32  ;;  %v20028_v18 = vand.u32 4294901760, %v20027_v42 }
 0xa31   : > { %12042 = vmatpush3.bf16.msra.mxu0 %v19985_v15  ;;  %11880 = vmatprep.subr.bf16.mxu1 %v17260_v44  ;;  %v20037_v44 = vld [vmem:[#allocation132_spill] sm:$0xff] }
 0xa32   : > { %v17285_v54 = vpack.c.bf16 %v20028_v18, %v20026_v39  ;;  %7913 = vmatmul.mubr.f32.gmra.mrb[42].mxu1 %v17096_v46  ;;  %12044 = vmatprep.subr.bf16.mxu0 %v19987_v30  ;;  %v20033_v46 = vld [vmem:[#allocation124_spill] sm:$0xff]  ;;  %v17309_v18 = vand.u32 4294901760, %v20036_v21  ;;  %v20038_v17 = vand.u32 4294901760, %v20037_v44  ;;  %v20043_v44 = vld [vmem:[#allocation138_spill] sm:$0xff] }
 0xa33   : > { %8825 = vmatmul.mubr.f32.gmra.mrb[44].mxu0 %v17279_v4  ;;  %7919 = vmatprep.mubr.f32.mxu1 %v17126_v51  ;;  %v20034_v39 = vand.u32 4294901760, %v20033_v46  ;;  %v20039_v51 = vld [vmem:[#allocation135_spill] sm:$0xff]  ;;  %v20045_v46 = vld [vmem:[#allocation140_spill] sm:$0xff] }
 0xa34   : > { %20029 = vst [vmem:[#allocation153_spill] sm:$0xff] %v17285_v54  ;;  %11882 = vmatpush3.bf16.msra.mxu1 %v17274_v23  ;;  %8830 = vmatprep.mubr.f32.mxu0 %v17290_v27  ;;  %v20040_v0 = vand.u32 4294901760, %v20039_v51 }
 0xa35   : > { %v17304_v42 = vpack.c.bf16 %v20034_v39, %v20032_v47  ;;  %12046 = vmatpush3.bf16.msra.mxu0 %v19988_v50  ;;  %11884 = vmatprep.subr.bf16.mxu1 %v17285_v54  ;;  %v20044_v47 = vand.u32 4294901760, %v20043_v44  ;;  %v20049_v39 = vld [vmem:[#allocation99_spill] sm:$0xff]  ;;  %v20051_v54 = vld [vmem:[#allocation80_spill] sm:$0xff] }
 0xa36   : > { %v17315_v23 = vpack.c.bf16 %v20040_v0, %v20038_v17  ;;  %7922 = vmatmul.mubr.f32.gmra.mrb[44].mxu1 %v20042_v48  ;;  %12048 = vmatprep.subr.bf16.mxu0 %v19989_v8  ;;  %v20046_v0 = vand.u32 4294901760, %v20045_v46  ;;  %v20048_v48 = vld [vmem:[#allocation47_spill] sm:$0xff]  ;;  %v20050_v51 = vand.u32 4294901760, %v20049_v39  ;;  %v20052_v36 = vand.u32 4294901760, %v20051_v54  ;;  %v20058_v46 = vld [vmem:[#allocation33_spill] sm:$0xff]  ;;  %v20064_v39 = vld [vmem:[#allocation32_spill] sm:$0xff] }
 0xa37   : > { %20035 = vst [vmem:[#allocation154_spill] sm:$0xff] %v17304_v42  ;;  %8832 = vmatmul.mubr.f32.gmra.mrb[46].mxu0 %v17309_v18  ;;  %7928 = vmatprep.mubr.f32.mxu1 %v17145_v13  ;;  %v20056_v44 = vld [vmem:[#allocation31_spill] sm:$0xff] }
 0xa38   : > { %20041 = vst [vmem:[#allocation155_spill] sm:$0xff] %v17315_v23  ;;  %11886 = vmatpush3.bf16.msra.mxu1 %v17304_v42  ;;  %9101 = vmatprep.mubr.f32.mxu0 %v18561_v19  ;;  %v17329_v17 = vpack.c.bf16 %v20046_v0, %v20044_v47  ;;  %v17337_v13 = vpack.c.bf16 %v20052_v36, %v20050_v51  ;;  %v20054_v42 = vld [vmem:[#allocation147_spill] sm:$0xff]  ;;  %v20055_v19 = vld [vmem:[#allocation145_spill] sm:$0xff]  ;;  %v20057_v47 = vand.u32 4294901760, %v20056_v44  ;;  %v20059_v0 = vand.u32 4294901760, %v20058_v46  ;;  %v20062_v36 = vld [vmem:[#allocation72_spill] sm:$0xff] }
 0xa39   : > { %12050 = vmatpush3.bf16.msra.mxu0 %v20048_v48  ;;  %11888 = vmatprep.subr.bf16.mxu1 %v17315_v23  ;;  %v20061_v23 = vld [vmem:[#allocation55_spill] sm:$0xff]  ;;  %v20063_v54 = vand.u32 4294901760, %v20062_v36 }
 0xa3a   : > { %20047 = vst [vmem:[#allocation156_spill] sm:$0xff] %v17329_v17  ;;  %20053 = vst [vmem:[#allocation114_spill] sm:$0xff] %v17337_v13  ;;  %7931 = vmatmul.mubr.f32.gmra.mrb[46].mxu1 %v20054_v42  ;;  %12052 = vmatprep.subr.bf16.mxu0 %v19991_v28  ;;  %v17347_v57 = vpack.c.bf16 %v20059_v0, %v20057_v47  ;;  %v20065_v42 = vand.u32 4294901760, %v20064_v39  ;;  %v20072_v0 = vld [vmem:[#allocation29_spill] sm:$0xff] }
 0xa3b   : > { %8238 = vmatprep.mubr.f32.mxu1 %v20055_v19  ;;  %v20068_v19 = vld [vmem:[#allocation86_spill] sm:$0xff]  ;;  %v20073_v36 = vand.u32 4294901760, %v20072_v0 }
 0xa3c   : > { %11890 = vmatpush3.bf16.msra.mxu1 %v17329_v17  ;;  %20060 = vst [vmem:[#allocation23_spill] sm:$0xff] %v17347_v57  ;;  %v17355_v51 = vpack.c.bf16 %v20065_v42, %v20063_v54  ;;  %v20069_v44 = vand.u32 4294901760, %v20068_v19  ;;  %v20070_v17 = vld [vmem:[#allocation37_spill] sm:$0xff]  ;;  %v20077_v42 = vld [vmem:[#allocation18_spill] sm:$0xff] }
 0xa3d   : > { %12054 = vmatpush3.bf16.msra.mxu0 %v20061_v23  ;;  %11892 = vmatprep.subr.bf16.mxu1 %v17337_v13  ;;  %v20071_v46 = vand.u32 4294901760, %v20070_v17  ;;  %v20074_v13 = vld [vmem:[#allocation48_spill] sm:$0xff]  ;;  %v20078_v19 = vand.u32 4294901760, %v20077_v42 }
 0xa3e   : > { %20066 = vst [vmem:[#allocation116_spill] sm:$0xff] %v17355_v51  ;;  %12056 = vmatprep.subr.bf16.mxu0 %v20067_v29  ;;  %v20075_v39 = vand.u32 4294901760, %v20074_v13  ;;  %v20085_v42 = vld [vmem:[#allocation20_spill] sm:$0xff] }
 0xa3f   : > { %v17363_v47 = vpack.c.bf16 %v20071_v46, %v20069_v44  ;;  %v20081_v46 = vld [vmem:[#allocation19_spill] sm:$0xff] }
 0xa40   : > { %11894 = vmatpush3.bf16.msra.mxu1 %v17347_v57  ;;  %v17371_v54 = vpack.c.bf16 %v20075_v39, %v20073_v36  ;;  %v20079_v57 = vld [vmem:[#allocation108_spill] sm:$0xff]  ;;  %v20082_v0 = vand.u32 4294901760, %v20081_v46  ;;  %v17391_v39 = vsub.f32 %v17051_v52, %v17229_v16 }
 0xa41   : > { %12058 = vmatpush3.bf16.msra.mxu0 %v19997_v24  ;;  %11896 = vmatprep.subr.bf16.mxu1 %v17355_v51  ;;  %v20080_v17 = vand.u32 4294901760, %v20079_v57  ;;  %v20083_v51 = vld [vmem:[#allocation110_spill] sm:$0xff]  ;;  %v17396_v57 = vsub.f32 %v17069_v11, %v17239_v37  ;;  %v17411_v11 = vsub.f32 %v17063_v5, %v17253_v35  ;;  %v17425_v5 = vsub.f32 %v20024_v26, %v17279_v4 }
 0xa42   : > { %20076 = vst [vmem:[#allocation28_spill] sm:$0xff] %v17371_v54  ;;  %12060 = vmatprep.subr.bf16.mxu0 %v19999_v25  ;;  %v20084_v13 = vand.u32 4294901760, %v20083_v51  ;;  %v8531_v52 = vand.u32 4294901760, %v17391_v39 }
 0xa43   : > { %v17379_v44 = vpack.c.bf16 %v20080_v17, %v20078_v19  ;;  %v20086_v19 = vand.u32 4294901760, %v20085_v42  ;;  %v20087_v17 = vld [vmem:[#allocation127_spill] sm:$0xff]  ;;  %v8540_v51 = vand.u32 4294901760, %v17396_v57  ;;  %v17431_v42 = vsub.f32 %v20030_v9, %v17290_v27 }
 0xa44   : > { %11898 = vmatpush3.bf16.msra.mxu1 %v17363_v47  ;;  %v17387_v36 = vpack.c.bf16 %v20084_v13, %v20082_v0  ;;  %v20088_v46 = vand.u32 4294901760, %v20087_v17  ;;  %v17416_v0 = vsub.f32 %v20018_v12, %v17264_v32  ;;  %v8546_v13 = vand.u32 4294901760, %v17411_v11 }
 0xa45   : > { %12062 = vmatpush3.bf16.msra.mxu0 %v20001_v56  ;;  %11900 = vmatprep.subr.bf16.mxu1 %v17371_v54  ;;  %v8570_v26 = vand.u32 4294901760, %v17431_v42  ;;  %v20104_v9 = vld [vmem:[#allocation116_spill] sm:$0xff] }
 0xa46   : > { %12064 = vmatprep.subr.bf16.mxu0 %v20002_v33  ;;  %v17403_v54 = vpack.c.bf16 %v20088_v46, %v20086_v19  ;;  %v8555_v12 = vand.u32 4294901760, %v17416_v0 }
 0xa48   : > { %11902 = vmatpush3.bf16.msra.mxu1 %v17379_v44 }
 0xa49   : > { %12066 = vmatpush3.bf16.msra.mxu0 %v20003_v45  ;;  %11904 = vmatprep.subr.bf16.mxu1 %v17387_v36 }
 0xa4a   : > { %12100 = vmatprep.subr.bf16.mxu0 %v20005_v34 }
 0xa4c   : > { %9105 = vmatmul.mubr.f32.vlgmr.msra.gmra.mrb[48].mxu0 %v8531_v52  ;;  %11906 = vmatpush3.bf16.msra.mxu1 %v17403_v54 }
 0xa4d   : > { %9112 = vmatprep.mubr.f32.mxu0 %v8540_v51  ;;  %12102 = vmatpush3.bf16.msra.mxu0 %v16340_v61 }
 0xa4e   : > { %11940 = vmatprep.subr.bf16.mxu1 %v20005_v34  ;;  %12104 = vmatprep.subr.bf16.mxu0 %v19984_v3  ;;  %v8561_v34 = vand.u32 4294901760, %v17425_v5 }
 0xa4f   : > { %8240 = vmatmul.mubr.f32.vlgmr.msra.gmra.mrb[48].mxu1 %v17060_v22  ;;  %v17440_v22 = vsub.f32 %v20036_v21, %v17309_v18 }
 0xa50   : > { %9116 = vmatmul.mubr.f32.gmra.mrb[50].mxu0 %v8546_v13  ;;  %8245 = vmatprep.mubr.f32.mxu1 %v17087_v43  ;;  %v20089_v43 = vand.u32 4294901760, %v17294_v49 }
 0xa51   : > { %11942 = vmatpush3.bf16.msra.mxu1 %v16340_v61  ;;  %9123 = vmatprep.mubr.f32.mxu0 %v8555_v12  ;;  %v8576_v61 = vand.u32 4294901760, %v17440_v22 }
 0xa52   : > { %12106 = vmatpush3.bf16.msra.mxu0 %v19985_v15  ;;  %11944 = vmatprep.subr.bf16.mxu1 %v19984_v3  ;;  %v8547_v3 = vsub.f32 %v17411_v11, %v8546_v13 }
 0xa53   : > { %8247 = vmatmul.mubr.f32.gmra.mrb[50].mxu1 %v17081_v55  ;;  %12108 = vmatprep.subr.bf16.mxu0 %v19987_v30  ;;  %v8526_v55 = vsub.f32 %v17294_v49, %v20089_v43 }
 0xa54   : > { %9127 = vmatmul.mubr.f32.gmra.mrb[52].mxu0 %v8561_v34  ;;  %8252 = vmatprep.mubr.f32.mxu1 %v17114_v62 }
 0xa55   : > { %11946 = vmatpush3.bf16.msra.mxu1 %v19985_v15  ;;  %9134 = vmatprep.mubr.f32.mxu0 %v8570_v26  ;;  %v8527_v62 = vand.u32 4294901760, %v8526_v55  ;;  %v8548_v15 = vand.u32 4294901760, %v8547_v3 }
 0xa56   : > { %12110 = vmatpush3.bf16.msra.mxu0 %v19988_v50  ;;  %11948 = vmatprep.subr.bf16.mxu1 %v19987_v30 }
 0xa57   : > { %8254 = vmatmul.mubr.f32.gmra.mrb[52].mxu1 %v17107_v7  ;;  %12112 = vmatprep.subr.bf16.mxu0 %v19989_v8 }
 0xa58   : > { %9138 = vmatmul.mubr.f32.gmra.mrb[54].mxu0 %v8576_v61  ;;  %8259 = vmatprep.mubr.f32.mxu1 %v17133_v2  ;;  %v8556_v2 = vsub.f32 %v17416_v0, %v8555_v12 }
 0xa59   : > { %11950 = vmatpush3.bf16.msra.mxu1 %v19988_v50  ;;  %9429 = vmatprep.mubr.f32.mxu0 %v17203_v59 }
 0xa5a   : > { %12114 = vmatpush3.bf16.msra.mxu0 %v20048_v48  ;;  %11952 = vmatprep.subr.bf16.mxu1 %v19989_v8  ;;  %v8532_v8 = vsub.f32 %v17391_v39, %v8531_v52 }
 0xa5b   : > { %8261 = vmatmul.mubr.f32.gmra.mrb[54].mxu1 %v17130_v58  ;;  %12116 = vmatprep.subr.bf16.mxu0 %v19991_v28 }
 0xa5c   : > { %8528 = vmatprep.mubr.f32.mxu1 %v8527_v62  ;;  %v8533_v7 = vand.u32 4294901760, %v8532_v8 }
 0xa5d   : > { %11954 = vmatpush3.bf16.msra.mxu1 %v20048_v48 }
 0xa5e   : > { %12118 = vmatpush3.bf16.msra.mxu0 %v20061_v23  ;;  %11956 = vmatprep.subr.bf16.mxu1 %v19991_v28  ;;  %v20094_v28 = vld [vmem:[#allocation149_spill] sm:$0xff] }
 0xa5f   : > { %12120 = vmatprep.subr.bf16.mxu0 %v20067_v29 }
 0xa61   : > { %11958 = vmatpush3.bf16.msra.mxu1 %v20061_v23  ;;  %v20103_v23 = vld [vmem:[#allocation23_spill] sm:$0xff] }
 0xa62   : > { %12122 = vmatpush3.bf16.msra.mxu0 %v19997_v24  ;;  %11960 = vmatprep.subr.bf16.mxu1 %v20067_v29  ;;  %v8541_v29 = vsub.f32 %v17396_v57, %v8540_v51 }
 0xa63   : > { %12124 = vmatprep.subr.bf16.mxu0 %v19999_v25 }
 0xa64   : > { %v8542_v58 = vand.u32 4294901760, %v8541_v29 }
 0xa65   : > { %11962 = vmatpush3.bf16.msra.mxu1 %v19997_v24  ;;  %v20100_v24 = vld [vmem:[#allocation155_spill] sm:$0xff] }
 0xa66   : > { %12126 = vmatpush3.bf16.msra.mxu0 %v20001_v56  ;;  %11964 = vmatprep.subr.bf16.mxu1 %v19999_v25  ;;  %v20101_v25 = vld [vmem:[#allocation156_spill] sm:$0xff] }
 0xa67   : > { %12128 = vmatprep.subr.bf16.mxu0 %v20002_v33 }
 0xa69   : > { %11966 = vmatpush3.bf16.msra.mxu1 %v20001_v56  ;;  %v20102_v56 = vld [vmem:[#allocation114_spill] sm:$0xff] }
 0xa6a   : > { %12130 = vmatpush3.bf16.msra.mxu0 %v20003_v45  ;;  %11968 = vmatprep.subr.bf16.mxu1 %v20002_v33  ;;  %v8557_v33 = vand.u32 4294901760, %v8556_v2 }
 0xa6d   : > { %9431 = vmatmul.mubr.f32.vlgmr.msra.gmra.mrb[56].mxu0 %v17229_v16  ;;  %11970 = vmatpush3.bf16.msra.mxu1 %v20003_v45  ;;  %v8562_v45 = vsub.f32 %v17425_v5, %v8561_v34 }
 0xa6e   : > { %9436 = vmatprep.mubr.f32.mxu0 %v17239_v37  ;;  %12004 = vmatprep.subr.bf16.mxu1 %v16988_v10  ;;  %v8571_v10 = vsub.f32 %v17431_v42, %v8570_v26 }
 0xa6f   : > { %v8563_v30 = vand.u32 4294901760, %v8562_v45 }
 0xa70   : > { %8534 = vmatmul.mubr.f32.vlgmr.msra.gmra.mrb[56].mxu1 %v8533_v7  ;;  %v8572_v50 = vand.u32 4294901760, %v8571_v10 }
 0xa71   : > { %9438 = vmatmul.mubr.f32.gmra.mrb[58].mxu0 %v17253_v35  ;;  %8543 = vmatprep.mubr.f32.mxu1 %v8542_v58 }
 0xa72   : > { %12006 = vmatpush3.bf16.msra.mxu1 %v16992_v20  ;;  %9443 = vmatprep.mubr.f32.mxu0 %v17264_v32  ;;  %v8577_v20 = vsub.f32 %v17440_v22, %v8576_v61 }
 0xa73   : > { %12008 = vmatprep.subr.bf16.mxu1 %v16996_v40 }
 0xa74   : > { %8549 = vmatmul.mubr.f32.gmra.mrb[58].mxu1 %v8548_v15  ;;  %v8578_v40 = vand.u32 4294901760, %v8577_v20 }
 0xa75   : > { %9445 = vmatmul.mubr.f32.gmra.mrb[60].mxu0 %v17279_v4  ;;  %8558 = vmatprep.mubr.f32.mxu1 %v8557_v33 }
 0xa76   : > { %12010 = vmatpush3.bf16.msra.mxu1 %v17000_v6  ;;  %9450 = vmatprep.mubr.f32.mxu0 %v17290_v27  ;;  %v20090_v6 = vld [vmem:[#allocation118_spill] sm:$0xff] }
 0xa77   : > { %12012 = vmatprep.subr.bf16.mxu1 %v17004_v14  ;;  %v20091_v14 = vld [vmem:[#allocation34_spill] sm:$0xff] }
 0xa78   : > { %8564 = vmatmul.mubr.f32.gmra.mrb[60].mxu1 %v8563_v30 }
 0xa79   : > { %9452 = vmatmul.mubr.f32.gmra.mrb[62].mxu0 %v17309_v18  ;;  %8573 = vmatprep.mubr.f32.mxu1 %v8572_v50 }
 0xa7a   : > { %12014 = vmatpush3.bf16.msra.mxu1 %v17008_v53  ;;  %v20092_v53 = vld [vmem:[#allocation44_spill] sm:$0xff] }
 0xa7b   : > { %12016 = vmatprep.subr.bf16.mxu1 %v17012_v63  ;;  %v20093_v63 = vld [vmem:[#allocation144_spill] sm:$0xff] }
 0xa7c   : > { %8579 = vmatmul.mubr.f32.gmra.mrb[62].mxu1 %v8578_v40 }
 0xa7d   : > { %8967 = vmatprep.mubr.f32.mxu1 %v17294_v49  ;;  %v20105_v49 = vld [vmem:[#allocation28_spill] sm:$0xff] }
 0xa7e   : > { %12018 = vmatpush3.bf16.msra.mxu1 %v17016_v1  ;;  %v20095_v1 = vld [vmem:[#allocation150_spill] sm:$0xff] }
 0xa7f   : > { %12020 = vmatprep.subr.bf16.mxu1 %v17020_v60  ;;  %v20096_v60 = vld [vmem:[#allocation151_spill] sm:$0xff] }
 0xa82   : > { %12022 = vmatpush3.bf16.msra.mxu1 %v17024_v31  ;;  %v20098_v31 = vld [vmem:[#allocation153_spill] sm:$0xff] }
 0xa83   : > { %12024 = vmatprep.subr.bf16.mxu1 %v17028_v38  ;;  %v20099_v38 = vld [vmem:[#allocation154_spill] sm:$0xff] }
 0xa86   : > { %12026 = vmatpush3.bf16.msra.mxu1 %v17032_v41  ;;  %v20097_v41 = vld [vmem:[#allocation152_spill] sm:$0xff] }
 0xa87   : > { %12028 = vmatprep.subr.bf16.mxu1 %v20090_v6 }
 0xa8a   : > { %12030 = vmatpush3.bf16.msra.mxu1 %v20091_v14 }
 0xa8b   : > { %12032 = vmatprep.subr.bf16.mxu1 %v20092_v53 }
 0xa8e   : > { %12034 = vmatpush3.bf16.msra.mxu1 %v20093_v63 }
 0xa8f   : > { %12068 = vmatprep.subr.bf16.mxu1 %v20094_v28 }
 0xa91   : > { %8970 = vmatmul.mubr.f32.vlgmr.msra.gmra.mrb[64].mxu1 %v17391_v39 }
 0xa92   : > { %8976 = vmatprep.mubr.f32.mxu1 %v17396_v57  ;;  %12070 = vmatpush3.bf16.msra.mxu1 %v20095_v1 }
 0xa93   : > { %12072 = vmatprep.subr.bf16.mxu1 %v20096_v60 }
 0xa95   : > { %8979 = vmatmul.mubr.f32.gmra.mrb[66].mxu1 %v17411_v11 }
 0xa96   : > { %8985 = vmatprep.mubr.f32.mxu1 %v17416_v0  ;;  %12074 = vmatpush3.bf16.msra.mxu1 %v20097_v41 }
 0xa97   : > { %12076 = vmatprep.subr.bf16.mxu1 %v20098_v31 }
 0xa99   : > { %8988 = vmatmul.mubr.f32.gmra.mrb[68].mxu1 %v17425_v5 }
 0xa9a   : > { %8994 = vmatprep.mubr.f32.mxu1 %v17431_v42  ;;  %12078 = vmatpush3.bf16.msra.mxu1 %v20099_v38 }
 0xa9b   : > { %12080 = vmatprep.subr.bf16.mxu1 %v20100_v24 }
 0xa9d   : > { %8997 = vmatmul.mubr.f32.gmra.mrb[70].mxu1 %v17440_v22 }
 0xa9e   : > { %12082 = vmatpush3.bf16.msra.mxu1 %v20101_v25  ;;  %9304 = vmatprep.mubr.f32.mxu1 %v17203_v59 }
 0xa9f   : > { %12084 = vmatprep.subr.bf16.mxu1 %v20102_v56 }
 0xaa2   : > { %12086 = vmatpush3.bf16.msra.mxu1 %v20103_v23 }
 0xaa3   : > { %12088 = vmatprep.subr.bf16.mxu1 %v20104_v9 }
 0xaa6   : > { %12090 = vmatpush3.bf16.msra.mxu1 %v17363_v47 }
 0xaa7   : > { %12092 = vmatprep.subr.bf16.mxu1 %v20105_v49 }
 0xaaa   : > { %12094 = vmatpush3.bf16.msra.mxu1 %v17379_v44 }
 0xaab   : > { %12096 = vmatprep.subr.bf16.mxu1 %v17387_v36 }
 0xaae   : > { %12098 = vmatpush3.bf16.msra.mxu1 %v17403_v54 }
 0xab1   : > { %9306 = vmatmul.mubr.f32.vlgmr.msra.gmra.mrb[72].mxu1 %v17229_v16 }
 0xab2   : > { %9311 = vmatprep.mubr.f32.mxu1 %v17239_v37 }
 0xab5   : > { %9313 = vmatmul.mubr.f32.gmra.mrb[74].mxu1 %v17253_v35 }
 0xab6   : > { %9318 = vmatprep.mubr.f32.mxu1 %v17264_v32 }
 0xab9   : > { %9320 = vmatmul.mubr.f32.gmra.mrb[76].mxu1 %v17279_v4 }
 0xaba   : > { %9325 = vmatprep.mubr.f32.mxu1 %v17290_v27 }
 0xabd   : > { %9327 = vmatmul.mubr.f32.gmra.mrb[78].mxu1 %v17309_v18  ;;  %v9823_v59 = vpop.f32.mrb[24].mxu0 }
 0xabe   : > { %v9824_v21 = vpop.f32.mrb[25].mxu0 }
 0xabf   : > { %v17540_v48 = vadd.f32 %v9824_v21, %v9823_v59 }
 0xac1   : > { %v9691_v47 = vpop.f32.mrb[24].mxu1  ;;  %v9826_v54 = vpop.f32.mrb[26].mxu0 }
 0xac2   : > { %v9692_v44 = vpop.f32.mrb[25].mxu1  ;;  %v9827_v16 = vpop.f32.mrb[27].mxu0 }
 0xac3   : > { %v9693_v36 = vadd.f32 %v9692_v44, %v9691_v47  ;;  %v17542_v37 = vadd.f32 %v9827_v16, %v9826_v54 }
 0xac5   : > { %v9694_v35 = vpop.f32.mrb[26].mxu1  ;;  %v9829_v39 = vpop.f32.mrb[28].mxu0 }
 0xac6   : > { %v9695_v32 = vpop.f32.mrb[27].mxu1  ;;  %v9830_v57 = vpop.f32.mrb[29].mxu0 }
 0xac7   : > { %v9696_v4 = vadd.f32 %v9695_v32, %v9694_v35  ;;  %v17544_v19 = vadd.f32 %v9830_v57, %v9829_v39 }
 0xac9   : > { %v9697_v27 = vpop.f32.mrb[28].mxu1  ;;  %v9832_v18 = vpop.f32.mrb[30].mxu0 }
 0xaca   : > { %v9698_v17 = vpop.f32.mrb[29].mxu1  ;;  %v9833_v46 = vpop.f32.mrb[31].mxu0 }
 0xacb   : > { %v9699_v52 = vadd.f32 %v9698_v17, %v9697_v27  ;;  %v17546_v11 = vadd.f32 %v9833_v46, %v9832_v18 }
 0xacd   : > { %v9700_v51 = vpop.f32.mrb[30].mxu1 }
 0xace   : > { %v9701_v0 = vpop.f32.mrb[31].mxu1 }
 0xacf   : > { %v9702_v13 = vadd.f32 %v9701_v0, %v9700_v51 }
 0xadd   : > { %v9911_v5 = vpop.f32.mrb[32].mxu0 }
 0xade   : > { %v9912_v12 = vpop.f32.mrb[33].mxu0 }
 0xadf   : > { %v17548_v42 = vadd.f32 %v9912_v12, %v9911_v5 }
 0xae1   : > { %v9735_v34 = vpop.f32.mrb[32].mxu1  ;;  %v9914_v22 = vpop.f32.mrb[34].mxu0 }
 0xae2   : > { %v9736_v26 = vpop.f32.mrb[33].mxu1  ;;  %v9915_v61 = vpop.f32.mrb[35].mxu0 }
 0xae3   : > { %v9737_v43 = vadd.f32 %v9736_v26, %v9735_v34  ;;  %v17550_v55 = vadd.f32 %v9915_v61, %v9914_v22 }
 0xae5   : > { %v7747_v62 = vadd.f32 %v9737_v43, %v9693_v36  ;;  %v9738_v8 = vpop.f32.mrb[34].mxu1  ;;  %v9917_v29 = vpop.f32.mrb[36].mxu0 }
 0xae6   : > { %v9739_v7 = vpop.f32.mrb[35].mxu1  ;;  %v9918_v3 = vpop.f32.mrb[37].mxu0 }
 0xae7   : > { %v9740_v58 = vadd.f32 %v9739_v7, %v9738_v8  ;;  %v17552_v2 = vadd.f32 %v9918_v3, %v9917_v29 }
 0xae9   : > { %v7754_v15 = vadd.f32 %v9740_v58, %v9696_v4  ;;  %v9741_v45 = vpop.f32.mrb[36].mxu1  ;;  %v9920_v33 = vpop.f32.mrb[38].mxu0 }
 0xaea   : > { %v9742_v10 = vpop.f32.mrb[37].mxu1  ;;  %v9921_v30 = vpop.f32.mrb[39].mxu0 }
 0xaeb   : > { %v9743_v20 = vadd.f32 %v9742_v10, %v9741_v45  ;;  %v17554_v50 = vadd.f32 %v9921_v30, %v9920_v33 }
 0xaed   : > { %v7761_v40 = vadd.f32 %v9743_v20, %v9699_v52  ;;  %v9744_v6 = vpop.f32.mrb[38].mxu1 }
 0xaee   : > { %v9745_v14 = vpop.f32.mrb[39].mxu1 }
 0xaef   : > { %v9746_v53 = vadd.f32 %v9745_v14, %v9744_v6 }
 0xaf1   : > { %v7768_v63 = vadd.f32 %v9746_v53, %v9702_v13 }
 0xafe   : > { %v9999_v28 = vpop.f32.mrb[40].mxu0 }
 0xaff   : > { %v10000_v1 = vpop.f32.mrb[41].mxu0 }
 0xb00   : > { %v17556_v60 = vadd.f32 %v10000_v1, %v9999_v28 }
 0xb01   : > { %v9779_v41 = vpop.f32.mrb[40].mxu1 }
 0xb02   : > { %v10002_v31 = vpop.f32.mrb[42].mxu0  ;;  %v9780_v38 = vpop.f32.mrb[41].mxu1 }
 0xb03   : > { %v9781_v24 = vadd.f32 %v9780_v38, %v9779_v41  ;;  %v10003_v25 = vpop.f32.mrb[43].mxu0 }
 0xb04   : > { %v17558_v56 = vadd.f32 %v10003_v25, %v10002_v31 }
 0xb05   : > { %v7906_v23 = vadd.f32 %v9781_v24, %v7747_v62  ;;  %v9782_v9 = vpop.f32.mrb[42].mxu1 }
 0xb06   : > { %v10005_v49 = vpop.f32.mrb[44].mxu0  ;;  %v9783_v59 = vpop.f32.mrb[43].mxu1 }
 0xb07   : > { %v9784_v21 = vadd.f32 %v9783_v59, %v9782_v9  ;;  %v10006_v47 = vpop.f32.mrb[45].mxu0  ;;  %v8041_v54 = vadd.f32 %v17540_v48, %v7906_v23 }
 0xb08   : > { %v17561_v44 = vadd.f32 %v10006_v47, %v10005_v49 }
 0xb09   : > { %v7915_v16 = vadd.f32 %v9784_v21, %v7754_v15  ;;  %v9785_v36 = vpop.f32.mrb[44].mxu1 }
 0xb0a   : > { %v10008_v35 = vpop.f32.mrb[46].mxu0  ;;  %v9786_v39 = vpop.f32.mrb[45].mxu1 }
 0xb0b   : > { %v9787_v32 = vadd.f32 %v9786_v39, %v9785_v36  ;;  %v10009_v57 = vpop.f32.mrb[47].mxu0  ;;  %v8052_v4 = vadd.f32 %v17542_v37, %v7915_v16 }
 0xb0c   : > { %v17564_v27 = vadd.f32 %v10009_v57, %v10008_v35 }
 0xb0d   : > { %v7924_v18 = vadd.f32 %v9787_v32, %v7761_v40  ;;  %v9788_v17 = vpop.f32.mrb[46].mxu1 }
 0xb0e   : > { %v9789_v46 = vpop.f32.mrb[47].mxu1 }
 0xb0f   : > { %v9790_v52 = vadd.f32 %v9789_v46, %v9788_v17  ;;  %v8063_v51 = vadd.f32 %v17544_v19, %v7924_v18 }
 0xb11   : > { %v7933_v48 = vadd.f32 %v9790_v52, %v7768_v63 }
 0xb13   : > { %v8074_v0 = vadd.f32 %v17546_v11, %v7933_v48 }
 0xb1f   : > { %v10087_v13 = vpop.f32.mrb[48].mxu0 }
 0xb20   : > { %v10088_v5 = vpop.f32.mrb[49].mxu0 }
 0xb21   : > { %v17568_v12 = vadd.f32 %v10088_v5, %v10087_v13 }
 0xb22   : > { %v9867_v34 = vpop.f32.mrb[48].mxu1 }
 0xb23   : > { %v10090_v22 = vpop.f32.mrb[50].mxu0  ;;  %v9868_v26 = vpop.f32.mrb[49].mxu1 }
 0xb24   : > { %v9869_v37 = vadd.f32 %v9868_v26, %v9867_v34  ;;  %v10091_v61 = vpop.f32.mrb[51].mxu0 }
 0xb25   : > { %v17570_v43 = vadd.f32 %v10091_v61, %v10090_v22 }
 0xb26   : > { %v8242_v62 = vadd.f32 %v9869_v37, %v8041_v54  ;;  %v9870_v8 = vpop.f32.mrb[50].mxu1 }
 0xb27   : > { %v10093_v19 = vpop.f32.mrb[52].mxu0  ;;  %v9871_v29 = vpop.f32.mrb[51].mxu1 }
 0xb28   : > { %v8367_v11 = vadd.f32 %v17548_v42, %v8242_v62  ;;  %v9872_v7 = vadd.f32 %v9871_v29, %v9870_v8  ;;  %v10094_v3 = vpop.f32.mrb[53].mxu0 }
 0xb29   : > { %v17577_v58 = vadd.f32 %v10094_v3, %v10093_v19 }
 0xb2a   : > { %8391 = vst.msk [vmem:[%s476_s22] sm:$0xff] %vm6670_vm0, %v8367_v11  ;;  %v8249_v15 = vadd.f32 %v9872_v7, %v8052_v4  ;;  %v9873_v45 = vpop.f32.mrb[52].mxu1 }
 0xb2b   : > { %v10096_v33 = vpop.f32.mrb[54].mxu0  ;;  %v9874_v10 = vpop.f32.mrb[53].mxu1 }
 0xb2c   : > { %v8374_v30 = vadd.f32 %v17550_v55, %v8249_v15  ;;  %v9875_v20 = vadd.f32 %v9874_v10, %v9873_v45  ;;  %v10097_v40 = vpop.f32.mrb[55].mxu0 }
 0xb2d   : > { %v10098_v6 = vadd.f32 %v10097_v40, %v10096_v33 }
 0xb2e   : > { %8392 = vst.msk [vmem:[%s476_s22 + $0x8] sm:$0xff] %vm6670_vm0, %v8374_v30  ;;  %v8256_v14 = vadd.f32 %v9875_v20, %v8063_v51  ;;  %v9876_v53 = vpop.f32.mrb[54].mxu1 }
 0xb2f   : > { %v9877_v42 = vpop.f32.mrb[55].mxu1 }
 0xb30   : > { %v8381_v63 = vadd.f32 %v17552_v2, %v8256_v14  ;;  %v9878_v28 = vadd.f32 %v9877_v42, %v9876_v53  ;;  %v9457_v53 = vld [vmem:[%s470_s25] sm:$0xff] }
 0xb32   : > { %8393 = vst.msk [vmem:[%s476_s22 + $0x10] sm:$0xff] %vm6670_vm0, %v8381_v63  ;;  %v8263_v1 = vadd.f32 %v9878_v28, %v8074_v0  ;;  %v9458_v28 = vld [vmem:[%s470_s25 + $0x8] sm:$0xff] }
 0xb34   : > { %v8388_v41 = vadd.f32 %v17554_v50, %v8263_v1 }
 0xb36   : > { %8394 = vst.msk [vmem:[%s476_s22 + $0x18] sm:$0xff] %vm6670_vm0, %v8388_v41  ;;  %s12512_s22 = sshll.u32 %s12585_s21, 4  ;;  %s12513_s22 = int_to_ptr.vmem [resolvable:$false] %s12512_s22 }
 0xb37   : > { %s12514_s26 = scalar_lea.vmem %s12513_s22, 256  ;;  %p12515_p4 = scmp.lt.s32.totalorder %s17603_s14, %s12513_s22 }
 0xb38   : > { %p12516_p7 = scmp.lt.s32.totalorder %s12514_s26, %s12508_s16 }
 0xb3a   : > { %p12517_p8 = por %p12516_p7, %p12515_p4 }
 0xb3c   : > { %p12518_p11 = pnand %p12517_p8, %p12511_p3 }
 0xb40   : > { %v10175_v31 = vpop.f32.mrb[56].mxu0 }
 0xb41   : > { %v10176_v55 = vpop.f32.mrb[57].mxu0 }
 0xb42   : > { %v10177_v38 = vadd.f32 %v10176_v55, %v10175_v31 }
 0xb43   : > { %v9955_v24 = vpop.f32.mrb[56].mxu1 }
 0xb44   : > { %v10178_v25 = vpop.f32.mrb[58].mxu0  ;;  %v9956_v23 = vpop.f32.mrb[57].mxu1 }
 0xb45   : > { %v9957_v9 = vadd.f32 %v9956_v23, %v9955_v24  ;;  %v10179_v49 = vpop.f32.mrb[59].mxu0  ;;  %v9459_v23 = vld [vmem:[%s470_s25 + $0x10] sm:$0xff] }
 0xb46   : > { %v10180_v59 = vadd.f32 %v10179_v49, %v10178_v25 }
 0xb47   : > { %v8813_v21 = vadd.f32 %v17556_v60, %v9957_v9  ;;  %v9958_v2 = vpop.f32.mrb[58].mxu1 }
 0xb48   : > { %v10181_v47 = vpop.f32.mrb[60].mxu0  ;;  %v9959_v54 = vpop.f32.mrb[59].mxu1 }
 0xb49   : > { %v9960_v16 = vadd.f32 %v9959_v54, %v9958_v2  ;;  %v10182_v36 = vpop.f32.mrb[61].mxu0 }
 0xb4a   : > { %v10183_v35 = vadd.f32 %v10182_v36, %v10181_v47 }
 0xb4b   : > { %v8820_v50 = vadd.f32 %v17558_v56, %v9960_v16  ;;  %v9961_v39 = vpop.f32.mrb[60].mxu1  ;;  %v9460_v16 = vld [vmem:[%s470_s25 + $0x18] sm:$0xff] }
 0xb4c   : > { %v10184_v32 = vpop.f32.mrb[62].mxu0  ;;  %v9962_v57 = vpop.f32.mrb[61].mxu1 }
 0xb4d   : > { %v9963_v4 = vadd.f32 %v9962_v57, %v9961_v39  ;;  %v10185_v18 = vpop.f32.mrb[63].mxu0 }
 0xb4e   : > { %v10186_v17 = vadd.f32 %v10185_v18, %v10184_v32 }
 0xb4f   : > { %v8827_v46 = vadd.f32 %v17561_v44, %v9963_v4  ;;  %v9964_v52 = vpop.f32.mrb[62].mxu1 }
 0xb50   : > { %v9965_v51 = vpop.f32.mrb[63].mxu1 }
 0xb51   : > { %v9966_v48 = vadd.f32 %v9965_v51, %v9964_v52 }
 0xb53   : > { %v8834_v60 = vadd.f32 %v17564_v27, %v9966_v48 }
 0xb64   : > { %v10043_v0 = vpop.f32.mrb[64].mxu1 }
 0xb65   : > { %v10044_v13 = vpop.f32.mrb[65].mxu1 }
 0xb66   : > { %v10045_v5 = vadd.f32 %v10044_v13, %v10043_v0 }
 0xb68   : > { %v8972_v34 = vadd.f32 %v10045_v5, %v8813_v21  ;;  %v10046_v22 = vpop.f32.mrb[66].mxu1 }
 0xb69   : > { %v10047_v26 = vpop.f32.mrb[67].mxu1 }
 0xb6a   : > { %v10048_v56 = vadd.f32 %v10047_v26, %v10046_v22  ;;  %v9107_v37 = vadd.f32 %v17568_v12, %v8972_v34 }
 0xb6c   : > { %v8981_v61 = vadd.f32 %v10048_v56, %v8820_v50  ;;  %v10049_v62 = vpop.f32.mrb[68].mxu1 }
 0xb6d   : > { %v10050_v8 = vpop.f32.mrb[69].mxu1 }
 0xb6e   : > { %v10051_v19 = vadd.f32 %v10050_v8, %v10049_v62  ;;  %v9118_v44 = vadd.f32 %v17570_v43, %v8981_v61 }
 0xb70   : > { %v8990_v29 = vadd.f32 %v10051_v19, %v8827_v46  ;;  %v10052_v11 = vpop.f32.mrb[70].mxu1 }
 0xb71   : > { %v10053_v7 = vpop.f32.mrb[71].mxu1 }
 0xb72   : > { %v10054_v27 = vadd.f32 %v10053_v7, %v10052_v11  ;;  %v9129_v3 = vadd.f32 %v17577_v58, %v8990_v29 }
 0xb74   : > { %v8999_v15 = vadd.f32 %v10054_v27, %v8834_v60 }
 0xb76   : > { %v9140_v45 = vadd.f32 %v10098_v6, %v8999_v15 }
 0xb84   : > { %v10131_v33 = vpop.f32.mrb[72].mxu1 }
 0xb85   : > { %v10132_v10 = vpop.f32.mrb[73].mxu1 }
 0xb86   : > { %v10133_v30 = vadd.f32 %v10132_v10, %v10131_v33 }
 0xb88   : > { %v9308_v12 = vadd.f32 %v10133_v30, %v9107_v37  ;;  %v10134_v20 = vpop.f32.mrb[74].mxu1 }
 0xb89   : > { %v10135_v40 = vpop.f32.mrb[75].mxu1 }
 0xb8a   : > { %v9433_v14 = vadd.f32 %v10177_v38, %v9308_v12  ;;  %v10136_v43 = vadd.f32 %v10135_v40, %v10134_v20 }
 0xb8c   : > { %v9315_v42 = vadd.f32 %v10136_v43, %v9118_v44  ;;  %v10137_v63 = vpop.f32.mrb[76].mxu1  ;;  %v9461_v58 = vmul.f32 %v9457_v53, %v9433_v14 }
 0xb8d   : > { %v10138_v1 = vpop.f32.mrb[77].mxu1 }
 0xb8e   : > { %v9440_v41 = vadd.f32 %v10180_v59, %v9315_v42  ;;  %v10139_v6 = vadd.f32 %v10138_v1, %v10137_v63  ;;  %v9465_v21 = vsel %vm6670_vm0, %v9461_v58, 0.0 }
 0xb90   : > { %v9462_v31 = vmul.f32 %v9458_v28, %v9440_v41  ;;  %v9322_v55 = vadd.f32 %v10139_v6, %v9129_v3  ;;  %v10140_v24 = vpop.f32.mrb[78].mxu1 }
 0xb91   : > { %v10141_v25 = vpop.f32.mrb[79].mxu1 }
 0xb92   : > { %v9447_v9 = vadd.f32 %v10183_v35, %v9322_v55  ;;  %v10142_v49 = vadd.f32 %v10141_v25, %v10140_v24  ;;  %v9466_v38 = vsel %vm6670_vm0, %v9462_v31, 0.0 }
 0xb93   : > { %v9467_v2 = vadd.f32 %v9466_v38, %v9465_v21 }
 0xb94   : > { %v9329_v47 = vadd.f32 %v10142_v49, %v9140_v45  ;;  %v9463_v54 = vmul.f32 %v9459_v23, %v9447_v9 }
 0xb96   : > { %v9454_v36 = vadd.f32 %v10186_v17, %v9329_v47  ;;  %v9468_v59 = vsel %vm6670_vm0, %v9463_v54, 0.0 }
 0xb97   : > { %v9469_v50 = vadd.f32 %v9468_v59, %v9467_v2 }
 0xb98   : > { %v9464_v39 = vmul.f32 %v9460_v16, %v9454_v36 }
 0xb9a   : > { %v9470_v32 = vsel %vm6670_vm0, %v9464_v39, 0.0 }
 0xb9b   : > { %v9471_v57 = vadd.f32 %v9470_v32, %v9469_v50 }
 0xb9d   : > { %9472 = vadd.xlane.f32.xlu0 %v9471_v57 }
 0xc2a   : > { %v9473_v35 = vpop.xlane.xlu0 %9472 }
 0xc2b   : > { %v9474_v4 = vrot.slane %v9473_v35, 4 }
 0xc2d   : > { %v9475_v18 = vadd.f32 %v9474_v4, %v9473_v35 }
 0xc2f   : > { %v9476_v46 = vrot.slane %v9475_v18, 2 }
 0xc31   : > { %v9477_v52 = vadd.f32 %v9476_v46, %v9475_v18 }
 0xc33   : > { %v9478_v51 = vrot.slane %v9477_v52, 1 }
 0xc35   : > { %v9479_v48 = vadd.f32 %v9478_v51, %v9477_v52 }
 0xc37   : > { %12339 = vpush %v9479_v48 }
 0xc68   : > { %s12340_s17 = spop %12339 }
 0xc69   : > { %v9481_v17 = vstv %s12340_s17 }
 0xc6a   : > { %9482 = vst [vmem:[%s452_s30] sm:$0xff] %v9481_v17 }
 0xc6b   : > { %12521 = shalt.err (!%p12518_p11)
}
 0xc6c   : > { %s12522_s24 = scalar_lea.hbm %s17608_s13, 128  ;;  %s12526_s28 = scalar_lea.hbm %s17659_s11, 256 }
 0xc6d   : > { %p12523_p13 = scmp.ne.s32.totalorder %s17608_s13, %s12522_s24  ;;  %p12527_p6 = scmp.lt.u32.totalorder %s17608_s13, %s17659_s11 }
 0xc6e   : > { %p12528_p9 = scmp.lt.u32.totalorder %s12526_s28, %s12522_s24  ;;  %p12530_p10 = scmp.lt.u32.totalorder %s12522_s24, %s17608_s13 }
 0xc6f   : > { %p12524_p5 = pnand %p12523_p13, %p20106_p1 }
 0xc70   : > { %p12529_p12 = por %p12528_p9, %p12527_p6 }
 0xc71   : > { %p12525_p0 = pneg %p12524_p5 }
 0xc72   : > { %p12531_p2 = por %p12530_p10, %p12529_p12 }
 0xc74   : > { %p12532_p3 = pnand %p12531_p2, %p12525_p0 }
 0xc76   : > { %12535 = shalt.err (!%p12532_p3)
}
 0xc77   : > { %12349 = dma.vmem_to_hbm [thread:$0]  (%p20106_p1), %s17603_s14, 128, %s17608_s13, %s9489_s15  }
 0xc78 PF: > { %s20107_s17 = sld [smem:[#allocation11_spill]]  ;;  %s20108_s23 = sld [smem:[#allocation15_spill]] }
 0xc79   : > { %p12366_p4 = scmp.ge.s32.totalorder %s12578_s20, 2 }
 0xc7e   : > { %s9526_s29 = sand.u32 1, %s20107_s17   ;;  %p20109_p7 = scmp.ne.s32.totalorder %s20108_s23, 0 }
 0xc7f   : > { %s9527_s16 = scalar_lea.sflag [#allocation4], %s9526_s29 }
 0xc80   : > { %p12359_p8 = pnand %p12366_p4, %p20109_p7 }
 0xc82   : > { %12561 = dma.done.wait (!%p12359_p8), %s9527_s16, 128  }
 0xc83   : > { %12563 = vsyncadd (!%p12359_p8), %s9527_s16, 4294967168  ;;  %s20110_s20 = sld [smem:[#allocation13_spill]]  ;;  %s20111_s21 = sld [smem:[#allocation12_spill]] }
 0xc84   : > { %s20112_s19 = sld [smem:[#allocation14_spill]]  ;;  %s20113_s17 = smov %s12570_s18 }
 0xc89   : > { %p24_p11 = scmp.ge.s32.totalorder %s20110_s20, 4   ;;  %s20114_s18 = smov %s20111_s21 }
 0xc8b   :  { %26 = sbr.rel (!%p24_p11) target bundleno = 5 (0x5), region = 122 }
 0xc92   :  { %9532 = vsyncpa [#allocation3], 1 }
 0xc93   :  { %9534 = vsyncpa [#allocation3 + $0x1], 1 }
 0xc94   :  { %9535 = vsyncpa [#allocation6], 1 }
 0xc95   :  { %9536 = vsyncpa [#allocation4], 1 }
 0xc96   :  { %9538 = vsyncpa [#allocation4 + $0x1], 1 }

</bundles_post_ra>
